<compile_context>
chip_gen: v7x
topology: tpu7x:2x2x1
jax: 0.10.0
libtpu: 0.0.40
codegen_flags: <defaults>
</compile_context>

<pallas_src>
import functools

import jax
import jax.numpy as jnp
from jax.experimental import pallas as pl
from jax.experimental.pallas import tpu as pltpu


_FUSED_VMEM_BUDGET = 24 * 1024 * 1024   # switch to two-pass above this (v7x: 64 MiB VMEM)
_VMEM_LIMIT_BYTES = 48 * 1024 * 1024    # explicit scoped-VMEM cap, safe on v5e/v6e/v7x
_MAX_N_TILE = 1024                      # n tile for the two-pass path (>=512 keeps DMA near roofline)


# ---------------------------------------------------------------------------
# Fused single-pass kernel: one batch element per grid step, full n resident.
# ---------------------------------------------------------------------------
def _ea3d_fused_kernel(x_ref, wk_ref, wv_ref, o_ref, *, res):
    # x_ref: (1, c, n), wk_ref: (S, c), wv_ref: (c, S), o_ref: (1, c, n)
    x = x_ref[0]                                                      # (c, n)
    # attn^T = Wk @ X : (S, n) — contraction over c, no operand transposes.
    a = jnp.dot(wk_ref[...], x, preferred_element_type=jnp.float32)
    # softmax over n (lane axis).
    m = jnp.max(a, axis=1, keepdims=True)                             # (S, 1)
    e = jnp.exp(a - m)
    p = e * pl.reciprocal(jnp.sum(e, axis=1, keepdims=True), approx=True)
    # normalisation over S (sublane axis).
    q = p * pl.reciprocal(jnp.sum(p, axis=0, keepdims=True), approx=True)
    # out^T = Wv @ Q : (c, n).  Cast attn to the weight dtype so bf16 weights
    # run the MXU at full rate in production (no-op for f32).
    out = jnp.dot(wv_ref[...], q.astype(wv_ref.dtype),
                  preferred_element_type=jnp.float32)
    if res:
        out = out + x.astype(jnp.float32)
    o_ref[0] = out.astype(o_ref.dtype)


# ---------------------------------------------------------------------------
# Two-pass path, pass 1: online (max, exp-sum) softmax stats over n tiles.
# Outputs are (1, S, 1) blocks resident across the n-tile grid axis.
# ---------------------------------------------------------------------------
def _ea3d_stats_kernel(x_ref, wk_ref, m_ref, l_ref):
    t = pl.program_id(1)

    @pl.when(t == 0)
    def _():
        m_ref[...] = jnp.full(m_ref.shape, -jnp.inf, dtype=jnp.float32)
        l_ref[...] = jnp.zeros(l_ref.shape, dtype=jnp.float32)

    a = jnp.dot(wk_ref[...], x_ref[0], preferred_element_type=jnp.float32)  # (S, tn)
    m_prev = m_ref[0]                                                       # (S, 1)
    m_new = jnp.maximum(m_prev, jnp.max(a, axis=1, keepdims=True))
    l_ref[0] = (l_ref[0] * jnp.exp(m_prev - m_new)
                + jnp.sum(jnp.exp(a - m_new), axis=1, keepdims=True))
    m_ref[0] = m_new


# ---------------------------------------------------------------------------
# Two-pass path, pass 2: apply softmax with global stats, S-normalise, Wv.
# Fully parallel over (b, n-tile) — keeps both v7x TensorCores busy even for
# b == 1.
# ---------------------------------------------------------------------------
def _ea3d_apply_kernel(x_ref, wk_ref, wv_ref, m_ref, l_ref, o_ref, *, res):
    x = x_ref[0]                                                      # (c, tn)
    a = jnp.dot(wk_ref[...], x, preferred_element_type=jnp.float32)   # (S, tn)
    p = jnp.exp(a - m_ref[0]) * pl.reciprocal(l_ref[0], approx=True)
    q = p * pl.reciprocal(jnp.sum(p, axis=0, keepdims=True), approx=True)
    out = jnp.dot(wv_ref[...], q.astype(wv_ref.dtype),
                  preferred_element_type=jnp.float32)
    if res:
        out = out + x.astype(jnp.float32)
    o_ref[0] = out.astype(o_ref.dtype)


def _choose_n_tile(n, max_tile):
    """Largest multiple-of-128 divisor of n that is <= max_tile (None if n % 128)."""
    if n % 128 != 0:
        return None
    if n <= max_tile:
        return n
    t = (max_tile // 128) * 128
    while t >= 128:
        if n % t == 0:
            return t
        t -= 128
    return None


def _ea3d_fused(x_cn, wk, wv, *, res):
    b, c, n = x_cn.shape
    S = wk.shape[0]
    itemsize = jnp.dtype(x_cn.dtype).itemsize
    cost = pl.CostEstimate(
        flops=int(b * n * S * (4 * c + 6)),
        transcendentals=int(b * n * S),
        bytes_accessed=int(2 * b * c * n * itemsize + 2 * S * c * 4),
    )
    # TODO(synk): with b == 1 this path keeps one v7x TensorCore idle; the
    # two-pass path (parallel n tiles in the apply stage) covers that case.
    return pl.pallas_call(
        functools.partial(_ea3d_fused_kernel, res=res),
        out_shape=jax.ShapeDtypeStruct((b, c, n), x_cn.dtype),
        grid_spec=pltpu.PrefetchScalarGridSpec(
            num_scalar_prefetch=0,
            grid=(b,),
            in_specs=[
                pl.BlockSpec((1, c, n), lambda i: (i, 0, 0)),
                # Grid-invariant weights: constant index_map -> fetched once,
                # never re-DMA'd across grid steps (and they are tiny anyway).
                pl.BlockSpec((S, c), lambda i: (0, 0)),
                pl.BlockSpec((c, S), lambda i: (0, 0)),
            ],
            out_specs=pl.BlockSpec((1, c, n), lambda i: (i, 0, 0)),
        ),
        compiler_params=pltpu.CompilerParams(
            dimension_semantics=("parallel",),
            vmem_limit_bytes=_VMEM_LIMIT_BYTES,
        ),
        cost_estimate=cost,
    )(x_cn, wk, wv)


def _ea3d_two_pass(x_cn, wk, wv, *, tn, res):
    b, c, n = x_cn.shape
    S = wk.shape[0]
    nt = n // tn
    itemsize = jnp.dtype(x_cn.dtype).itemsize

    stats_cost = pl.CostEstimate(
        flops=int(b * n * S * (2 * c + 4)),
        transcendentals=int(b * n * S),
        bytes_accessed=int(b * c * n * itemsize + S * c * 4 + 2 * b * S * 4),
    )
    m_col, l_col = pl.pallas_call(
        _ea3d_stats_kernel,
        out_shape=(jax.ShapeDtypeStruct((b, S, 1), jnp.float32),
                   jax.ShapeDtypeStruct((b, S, 1), jnp.float32)),
        grid_spec=pltpu.PrefetchScalarGridSpec(
            num_scalar_prefetch=0,
            grid=(b, nt),
            in_specs=[
                pl.BlockSpec((1, c, tn), lambda i, t: (i, 0, t)),
                pl.BlockSpec((S, c), lambda i, t: (0, 0)),
            ],
            out_specs=[
                pl.BlockSpec((1, S, 1), lambda i, t: (i, 0, 0)),
                pl.BlockSpec((1, S, 1), lambda i, t: (i, 0, 0)),
            ],
        ),
        compiler_params=pltpu.CompilerParams(
            dimension_semantics=("parallel", "arbitrary"),
            vmem_limit_bytes=_VMEM_LIMIT_BYTES,
        ),
        cost_estimate=stats_cost,
    )(x_cn, wk)

    apply_cost = pl.CostEstimate(
        flops=int(b * n * S * (4 * c + 4)),
        transcendentals=int(b * n * S),
        bytes_accessed=int(2 * b * c * n * itemsize + 2 * S * c * 4 + 2 * b * S * 4),
    )
    return pl.pallas_call(
        functools.partial(_ea3d_apply_kernel, res=res),
        out_shape=jax.ShapeDtypeStruct((b, c, n), x_cn.dtype),
        grid_spec=pltpu.PrefetchScalarGridSpec(
            num_scalar_prefetch=0,
            grid=(b, nt),
            in_specs=[
                pl.BlockSpec((1, c, tn), lambda i, t: (i, 0, t)),
                pl.BlockSpec((S, c), lambda i, t: (0, 0)),
                pl.BlockSpec((c, S), lambda i, t: (0, 0)),
                pl.BlockSpec((1, S, 1), lambda i, t: (i, 0, 0)),
                pl.BlockSpec((1, S, 1), lambda i, t: (i, 0, 0)),
            ],
            out_specs=pl.BlockSpec((1, c, tn), lambda i, t: (i, 0, t)),
        ),
        compiler_params=pltpu.CompilerParams(
            dimension_semantics=("parallel", "parallel"),
            vmem_limit_bytes=_VMEM_LIMIT_BYTES,
        ),
        cost_estimate=apply_cost,
    )(x_cn, wk, wv, m_col, l_col)


@functools.partial(jax.jit, static_argnames=("res", "force_two_pass"))
def external_attention_3d(x, wk, wv, *, res=False, force_two_pass=False):
    """x: (b, c, h, w, d); wk = mk.weight: (S, c); wv = mv.weight: (c, S)."""
    b, c, h, w, d = x.shape
    n = h * w * d
    S = wk.shape[0]

    # Channels-major: just a reshape, no transpose round-trips through HBM.
    x_cn = x.reshape(b, c, n)

    itemsize = jnp.dtype(x.dtype).itemsize
    fused_vmem = (4 * c * n * itemsize        # double-buffered (c, n) in + out blocks
                  + 3 * S * n * 4             # f32 (S, n) attention intermediates
                  + 4 * S * c * jnp.dtype(wk.dtype).itemsize)
    tn = _choose_n_tile(n, _MAX_N_TILE)
    two_pass = (force_two_pass or fused_vmem > _FUSED_VMEM_BUDGET) and tn is not None
    # TODO(synk): if n is not a multiple of 128 we cannot tile it cleanly and
    # fall back to the fused path even above the VMEM budget (pad n upstream).

    if two_pass:
        out_cn = _ea3d_two_pass(x_cn, wk, wv, tn=tn, res=res)
    else:
        out_cn = _ea3d_fused(x_cn, wk, wv, res=res)

    return out_cn.reshape(b, c, h, w, d)


def _reference(x, wk, wv, res=False):
    """Plain-JAX reference mirroring the PyTorch forward exactly."""
    b, c, h, w, d = x.shape
    q = jnp.transpose(x.reshape(b, c, -1), (0, 2, 1))          # (b, n, c)
    attn = jnp.einsum("bnc,sc->bns", q, wk)                    # mk
    attn = jax.nn.softmax(attn, axis=1)                        # softmax over n
    attn = attn / jnp.sum(attn, axis=2, keepdims=True)         # norm over S
    out = jnp.einsum("bns,cs->bnc", attn, wv)                  # mv
    out = jnp.transpose(out, (0, 2, 1)).reshape(b, c, h, w, d)
    if res:
        out = out + x
    return out


if __name__ == "__main__":
    key = jax.random.PRNGKey(0)
    k_x, k_wk, k_wv = jax.random.split(key, 3)

    # d_model (c) = 8, spatial 16x16x16 -> n = 4096, S = 64, batch = 2.
    b, c, h, w, d = 2, 8, 16, 16, 16
    S = 64

    x = jax.random.normal(k_x, (b, c, h, w, d), dtype=jnp.float32)
    # nn.Linear weights (no bias); larger std than the module's 0.001 init so
    # the softmax / normalisation are non-degenerate and axis bugs detectable.
    wk = 0.1 * jax.random.normal(k_wk, (S, c), dtype=jnp.float32)   # mk.weight (S, d_model)
    wv = 0.1 * jax.random.normal(k_wv, (c, S), dtype=jnp.float32)   # mv.weight (d_model, S)

    ref = _reference(x, wk, wv, res=False)
    ref_res = _reference(x, wk, wv, res=True)

    # Fused (single-pass) path.
    out = jax.block_until_ready(external_attention_3d(x, wk, wv, res=False))
    assert out.shape == (b, c, h, w, d)
    err = float(jnp.max(jnp.abs(out - ref)))
    assert err < 5e-4, f"fused path mismatch: max abs err {err}"

    # Two-pass (n-tiled) path, forced so the small test exercises it too.
    out2 = jax.block_until_ready(
        external_attention_3d(x, wk, wv, res=False, force_two_pass=True))
    err2 = float(jnp.max(jnp.abs(out2 - ref)))
    assert err2 < 5e-4, f"two-pass path mismatch: max abs err {err2}"

    # Residual connection (fused in-kernel).
    out3 = jax.block_until_ready(external_attention_3d(x, wk, wv, res=True))
    err3 = float(jnp.max(jnp.abs(out3 - ref_res)))
    assert err3 < 5e-4, f"res=True mismatch: max abs err {err3}"

    print("KERNEL_OK")
</pallas_src>

<mosaic_0001>
module attributes {stable_mosaic.version = 11 : i64} {
  func.func @_ea3d_fused_kernel(%arg0: i32, %arg1: memref<1x8x4096xf32, #tpu.memory_space<vmem>>, %arg2: memref<64x8xf32, #tpu.memory_space<vmem>>, %arg3: memref<8x64xf32, #tpu.memory_space<vmem>>, %arg4: memref<1x8x4096xf32, #tpu.memory_space<vmem>>) attributes {dimension_semantics = [#tpu.dimension_semantics<parallel>], iteration_bounds = array<i64: 2>, scalar_prefetch = 0 : i64, scratch_operands = 0 : i64, tpu.core_type = #tpu.core_type<tc>, window_params = [{transform_indices = @transform_0, window_bounds = array<i64: 1, 8, 4096>}, {pipeline_mode = #tpu.pipeline_mode<synchronous>, transform_indices = @transform_1, window_bounds = array<i64: 64, 8>}, {pipeline_mode = #tpu.pipeline_mode<synchronous>, transform_indices = @transform_2, window_bounds = array<i64: 8, 64>}, {transform_indices = @transform_3, window_bounds = array<i64: 1, 8, 4096>}]} {
    %c0 = arith.constant 0 : index
    %c0_0 = arith.constant 0 : index
    %c0_1 = arith.constant 0 : index
    %0 = vector.load %arg1[%c0, %c0_0, %c0_1] : memref<1x8x4096xf32, #tpu.memory_space<vmem>>, vector<1x8x4096xf32>
    %1 = vector.shape_cast %0 : vector<1x8x4096xf32> to vector<8x4096xf32>
    %c0_2 = arith.constant 0 : index
    %c0_3 = arith.constant 0 : index
    %2 = vector.load %arg2[%c0_2, %c0_3] : memref<64x8xf32, #tpu.memory_space<vmem>>, vector<64x8xf32>
    %cst = arith.constant dense<0.000000e+00> : vector<64x4096xf32>
    %3 = tpu.matmul %2, %1, %cst {dimension_numbers = #tpu.dot_dimension_numbers<[1], [0], [0], [1], [0, 0, 1, 1], [], []>} : vector<64x8xf32>, vector<8x4096xf32>, vector<64x4096xf32> -> vector<64x4096xf32>
    %cst_4 = arith.constant dense<0xFF800000> : vector<64xf32>
    %4 = vector.multi_reduction <maximumf>, %3, %cst_4 [1] : vector<64x4096xf32> to vector<64xf32>
    %5 = vector.shape_cast %4 : vector<64xf32> to vector<64x1xf32>
    %6 = vector.broadcast %5 : vector<64x1xf32> to vector<64x4096xf32>
    %7 = arith.subf %3, %6 : vector<64x4096xf32>
    %8 = math.exp %7 : vector<64x4096xf32>
    %cst_5 = arith.constant dense<0.000000e+00> : vector<64xf32>
    %9 = vector.multi_reduction <add>, %8, %cst_5 [1] : vector<64x4096xf32> to vector<64xf32>
    %10 = vector.shape_cast %9 : vector<64xf32> to vector<64x1xf32>
    %11 = tpu.reciprocal %10 {approx = true} : vector<64x1xf32> -> vector<64x1xf32>
    %12 = vector.broadcast %11 : vector<64x1xf32> to vector<64x4096xf32>
    %13 = arith.mulf %8, %12 : vector<64x4096xf32>
    %cst_6 = arith.constant dense<0.000000e+00> : vector<4096xf32>
    %14 = vector.multi_reduction <add>, %13, %cst_6 [0] : vector<64x4096xf32> to vector<4096xf32>
    %15 = vector.shape_cast %14 : vector<4096xf32> to vector<1x4096xf32>
    %16 = tpu.reciprocal %15 {approx = true} : vector<1x4096xf32> -> vector<1x4096xf32>
    %17 = vector.broadcast %16 : vector<1x4096xf32> to vector<64x4096xf32>
    %18 = arith.mulf %13, %17 : vector<64x4096xf32>
    %c0_7 = arith.constant 0 : index
    %c0_8 = arith.constant 0 : index
    %19 = vector.load %arg3[%c0_7, %c0_8] : memref<8x64xf32, #tpu.memory_space<vmem>>, vector<8x64xf32>
    %cst_9 = arith.constant dense<0.000000e+00> : vector<8x4096xf32>
    %20 = tpu.matmul %19, %18, %cst_9 {dimension_numbers = #tpu.dot_dimension_numbers<[1], [0], [0], [1], [0, 0, 1, 1], [], []>} : vector<8x64xf32>, vector<64x4096xf32>, vector<8x4096xf32> -> vector<8x4096xf32>
    %c0_10 = arith.constant 0 : index
    %c0_11 = arith.constant 0 : index
    %c0_12 = arith.constant 0 : index
    %21 = vector.load %arg4[%c0_10, %c0_11, %c0_12] : memref<1x8x4096xf32, #tpu.memory_space<vmem>>, vector<1x8x4096xf32>
    %22 = vector.shape_cast %21 : vector<1x8x4096xf32> to vector<8x4096xf32>
    %23 = vector.shape_cast %20 : vector<8x4096xf32> to vector<1x8x4096xf32>
    tpu.vector_store %arg4[%c0_10, %c0_11, %c0_12], %23 {strides = array<i32>} : memref<1x8x4096xf32, #tpu.memory_space<vmem>>, vector<1x8x4096xf32>,
    return
  }
  func.func @transform_0(%arg0: i32) -> (i32, i32, i32) {
    %c0_i32 = arith.constant 0 : i32
    %c0_i32_0 = arith.constant 0 : i32
    %c0_i32_1 = arith.constant 0 : i32
    return %arg0, %c0_i32, %c0_i32_0 : i32, i32, i32
  }
  func.func @transform_1(%arg0: i32) -> (i32, i32) {
    %c0_i32 = arith.constant 0 : i32
    %c0_i32_0 = arith.constant 0 : i32
    %c0_i32_1 = arith.constant 0 : i32
    return %c0_i32, %c0_i32_0 : i32, i32
  }
  func.func @transform_2(%arg0: i32) -> (i32, i32) {
    %c0_i32 = arith.constant 0 : i32
    %c0_i32_0 = arith.constant 0 : i32
    %c0_i32_1 = arith.constant 0 : i32
    return %c0_i32, %c0_i32_0 : i32, i32
  }
  func.func @transform_3(%arg0: i32) -> (i32, i32, i32) {
    %c0_i32 = arith.constant 0 : i32
    %c0_i32_0 = arith.constant 0 : i32
    %c0_i32_1 = arith.constant 0 : i32
    return %arg0, %c0_i32, %c0_i32_0 : i32, i32, i32
  }
}

</mosaic_0001>

<bundles_post_ra>
// kernel: external_attention_3d.1
= control target key start
LH: loop header
LB: loop body
LE: loop exit
PB: predicated region body
PF: predicated region fallthrough
CT: control target
= control target key end

     0   :  { %s6580_s12 = smov 0   ;;  %s11294_s0 = inlined_call_operand.vmem [shape: f32[2,8,4096], index: 0, kind: input, shape index: {}]   ;;  %s11295_s1 = inlined_call_operand.vmem [shape: f32[64,8], index: 1, kind: input, shape index: {}]   ;;  %s11296_s2 = inlined_call_operand.vmem [shape: f32[8,64], index: 2, kind: input, shape index: {}]   ;;  %s11297_s3 = inlined_call_operand.vmem [shape: f32[2,8,4096], index: 3, kind: output, shape index: {}]  }
   0x1 LB: > { %s5536_s13 = sadd.s32 4294967295, %s6557_s12   ;;  %p5540_p0 = scmp.ge.s32.totalorder %s6557_s12, 1  ;;  %s6557_s12 = sphi %s6580_s12, %s13_s12  }
   0x2   : > { %p137_p1 = scmp.lt.s32.totalorder %s6557_s12, 3 }
   0x4   : > { %p138_p2 = pnand %p5540_p0, %p137_p1 }
   0x6   : > { %141 = sbr.rel (%p138_p2) target bundleno = 1488 (0x5d0), region = 32 }
   0xd   : > { %p161_p3 = scmp.lt.s32.totalorder %s5536_s13, 1  ;;  %v11298_v0 = vmov 0.0   ;;  %v6603_v1 = vld [vmem:[%s11295_s1] sm:$0xff]  ;;  %vm211_vm0 = vcmask 64512   ;;  %v6621_v10 = vld [vmem:[%s11295_s1 + $0x8] sm:$0xff]  ;;  %v6634_v13 = vld [vmem:[%s11295_s1 + $0x10] sm:$0xff] }
   0xe   : > { %300 = vmatprep.mubr.f32.mxu0 %v11298_v0  ;;  %413 = vmatprep.mubr.f32.mxu1 %v11298_v0  ;;  %v6645_v14 = vld [vmem:[%s11295_s1 + $0x18] sm:$0xff]  ;;  %v6656_v15 = vld [vmem:[%s11295_s1 + $0x20] sm:$0xff]  ;;  %v6667_v16 = vld [vmem:[%s11295_s1 + $0x28] sm:$0xff]  ;;  %vm4309_vm1 = vcmask 523264  }
   0xf   : > { %s13218_s13 = smov (!%p161_p3, %s5536_s13), 1  ;;  %v6678_v17 = vld [vmem:[%s11295_s1 + $0x30] sm:$0xff]  ;;  %v6689_v18 = vld [vmem:[%s11295_s1 + $0x38] sm:$0xff] }
  0x10   : > { %s5691_s14 = sshll.u32 %s13218_s13, 8 }
  0x11   : > { %s6598_s17 = scalar_lea.vmem %s11294_s0, %s5691_s14  ;;  %s11257_s16 = scalar_lea.vmem %s11297_s3, %s5691_s14 }
  0x12   : > { %v172_v2 = vld [vmem:[%s6598_s17 + $0x8] sm:$0xff]  ;;  %v171_v3 = vld [vmem:[%s6598_s17] sm:$0xff]  ;;  %v174_v4 = vld [vmem:[%s6598_s17 + $0x18] sm:$0xff] }
  0x13   : > { %236 = vmatprep.subr.mxu0 %v172_v2  ;;  %349 = vmatprep.subr.mxu1 %v174_v4  ;;  %v173_v5 = vld [vmem:[%s6598_s17 + $0x10] sm:$0xff]  ;;  %v176_v6 = vld [vmem:[%s6598_s17 + $0x28] sm:$0xff]  ;;  %v178_v7 = vld [vmem:[%s6598_s17 + $0x38] sm:$0xff] }
  0x14   : > { %237 = vmatpush1.msra.mxu0 %v171_v3  ;;  %350 = vmatpush1.msra.mxu1 %v173_v5  ;;  %v175_v8 = vld [vmem:[%s6598_s17 + $0x20] sm:$0xff]  ;;  %v177_v9 = vld [vmem:[%s6598_s17 + $0x30] sm:$0xff]  ;;  %v180_v11 = vld [vmem:[%s6598_s17 + $0x48] sm:$0xff] }
  0x15   : > { %5545 = vmatmul.mubr.msk.f32.vlgmr.msra.gmra.mrb[0].mxu0 %vm211_vm0, %v6603_v1  ;;  %5553 = vmatmul.mubr.msk.f32.vlgmr.msra.gmra.mrb[0].mxu1 %vm211_vm0, %v6603_v1  ;;  %v182_v12 = vld [vmem:[%s6598_s17 + $0x58] sm:$0xff]  ;;  %v179_v19 = vld [vmem:[%s6598_s17 + $0x40] sm:$0xff]  ;;  %v181_v20 = vld [vmem:[%s6598_s17 + $0x50] sm:$0xff] }
  0x16   : > { %306 = vmatprep.mubr.f32.mxu0 %v11298_v0  ;;  %419 = vmatprep.mubr.f32.mxu1 %v11298_v0  ;;  %v184_v21 = vld [vmem:[%s6598_s17 + $0x68] sm:$0xff]  ;;  %v186_v22 = vld [vmem:[%s6598_s17 + $0x78] sm:$0xff]  ;;  %v183_v23 = vld [vmem:[%s6598_s17 + $0x60] sm:$0xff] }
  0x17   : > { %462 = vmatprep.subr.mxu0 %v176_v6  ;;  %575 = vmatprep.subr.mxu1 %v178_v7  ;;  %v185_v24 = vld [vmem:[%s6598_s17 + $0x70] sm:$0xff]  ;;  %v188_v25 = vld [vmem:[%s6598_s17 + $0x88] sm:$0xff]  ;;  %v190_v26 = vld [vmem:[%s6598_s17 + $0x98] sm:$0xff] }
  0x18   : > { %463 = vmatpush1.msra.mxu0 %v175_v8  ;;  %576 = vmatpush1.msra.mxu1 %v177_v9  ;;  %v187_v27 = vld [vmem:[%s6598_s17 + $0x80] sm:$0xff]  ;;  %v189_v28 = vld [vmem:[%s6598_s17 + $0x90] sm:$0xff]  ;;  %v192_v29 = vld [vmem:[%s6598_s17 + $0xa8] sm:$0xff] }
  0x19   : > { %5546 = vmatmul.mubr.msk.f32.gmra.mrb[2].mxu0 %vm211_vm0, %v6621_v10  ;;  %5554 = vmatmul.mubr.msk.f32.gmra.mrb[2].mxu1 %vm211_vm0, %v6621_v10  ;;  %v194_v30 = vld [vmem:[%s6598_s17 + $0xb8] sm:$0xff]  ;;  %v191_v31 = vld [vmem:[%s6598_s17 + $0xa0] sm:$0xff]  ;;  %v193_v32 = vld [vmem:[%s6598_s17 + $0xb0] sm:$0xff] }
  0x1a   : > { %312 = vmatprep.mubr.f32.mxu0 %v11298_v0  ;;  %425 = vmatprep.mubr.f32.mxu1 %v11298_v0  ;;  %v196_v33 = vld [vmem:[%s6598_s17 + $0xc8] sm:$0xff]  ;;  %v198_v34 = vld [vmem:[%s6598_s17 + $0xd8] sm:$0xff]  ;;  %v195_v35 = vld [vmem:[%s6598_s17 + $0xc0] sm:$0xff] }
  0x1b   : > { %688 = vmatprep.subr.mxu0 %v180_v11  ;;  %801 = vmatprep.subr.mxu1 %v182_v12  ;;  %v197_v36 = vld [vmem:[%s6598_s17 + $0xd0] sm:$0xff]  ;;  %v200_v37 = vld [vmem:[%s6598_s17 + $0xe8] sm:$0xff]  ;;  %v202_v38 = vld [vmem:[%s6598_s17 + $0xf8] sm:$0xff] }
  0x1c   : > { %v199_v39 = vld [vmem:[%s6598_s17 + $0xe0] sm:$0xff]  ;;  %v201_v40 = vld [vmem:[%s6598_s17 + $0xf0] sm:$0xff] }
  0x1d   : > { %5547 = vmatmul.mubr.msk.f32.gmra.mrb[4].mxu0 %vm211_vm0, %v6634_v13  ;;  %5555 = vmatmul.mubr.msk.f32.gmra.mrb[4].mxu1 %vm211_vm0, %v6634_v13 }
  0x1e   : > { %318 = vmatprep.mubr.f32.mxu0 %v11298_v0  ;;  %431 = vmatprep.mubr.f32.mxu1 %v11298_v0 }
  0x21   : > { %5548 = vmatmul.mubr.msk.f32.gmra.mrb[6].mxu0 %vm211_vm0, %v6645_v14  ;;  %5556 = vmatmul.mubr.msk.f32.gmra.mrb[6].mxu1 %vm211_vm0, %v6645_v14 }
  0x22   : > { %324 = vmatprep.mubr.f32.mxu0 %v11298_v0  ;;  %437 = vmatprep.mubr.f32.mxu1 %v11298_v0 }
  0x25   : > { %5549 = vmatmul.mubr.msk.f32.gmra.mrb[8].mxu0 %vm211_vm0, %v6656_v15  ;;  %5557 = vmatmul.mubr.msk.f32.gmra.mrb[8].mxu1 %vm211_vm0, %v6656_v15 }
  0x26   : > { %330 = vmatprep.mubr.f32.mxu0 %v11298_v0  ;;  %443 = vmatprep.mubr.f32.mxu1 %v11298_v0 }
  0x29   : > { %5550 = vmatmul.mubr.msk.f32.gmra.mrb[10].mxu0 %vm211_vm0, %v6667_v16  ;;  %5558 = vmatmul.mubr.msk.f32.gmra.mrb[10].mxu1 %vm211_vm0, %v6667_v16 }
  0x2a   : > { %336 = vmatprep.mubr.f32.mxu0 %v11298_v0  ;;  %449 = vmatprep.mubr.f32.mxu1 %v11298_v0 }
  0x2d   : > { %5551 = vmatmul.mubr.msk.f32.gmra.mrb[12].mxu0 %vm211_vm0, %v6678_v17  ;;  %5559 = vmatmul.mubr.msk.f32.gmra.mrb[12].mxu1 %vm211_vm0, %v6678_v17 }
  0x2e   : > { %342 = vmatprep.mubr.f32.mxu0 %v11298_v0  ;;  %455 = vmatprep.mubr.f32.mxu1 %v11298_v0 }
  0x31   : > { %5552 = vmatmul.mubr.msk.f32.gmra.mrb[14].mxu0 %vm211_vm0, %v6689_v18  ;;  %5560 = vmatmul.mubr.msk.f32.gmra.mrb[14].mxu1 %vm211_vm0, %v6689_v18 }
  0x32   : > { %526 = vmatprep.mubr.f32.mxu0 %v11298_v0  ;;  %639 = vmatprep.mubr.f32.mxu1 %v11298_v0 }
  0x35   : > { %5561 = vmatmul.mubr.msk.f32.vlgmr.msra.gmra.mrb[16].mxu0 %vm211_vm0, %v6603_v1  ;;  %5569 = vmatmul.mubr.msk.f32.vlgmr.msra.gmra.mrb[16].mxu1 %vm211_vm0, %v6603_v1 }
  0x36   : > { %532 = vmatprep.mubr.f32.mxu0 %v11298_v0  ;;  %645 = vmatprep.mubr.f32.mxu1 %v11298_v0 }
  0x37   : > { %689 = vmatpush1.msra.mxu0 %v179_v19  ;;  %802 = vmatpush1.msra.mxu1 %v181_v20 }
  0x38   : > { %914 = vmatprep.subr.mxu0 %v184_v21  ;;  %1027 = vmatprep.subr.mxu1 %v186_v22 }
  0x39   : > { %5562 = vmatmul.mubr.msk.f32.gmra.mrb[18].mxu0 %vm211_vm0, %v6621_v10  ;;  %5570 = vmatmul.mubr.msk.f32.gmra.mrb[18].mxu1 %vm211_vm0, %v6621_v10 }
  0x3a   : > { %538 = vmatprep.mubr.f32.mxu0 %v11298_v0  ;;  %651 = vmatprep.mubr.f32.mxu1 %v11298_v0 }
  0x3d   : > { %5563 = vmatmul.mubr.msk.f32.gmra.mrb[20].mxu0 %vm211_vm0, %v6634_v13  ;;  %5571 = vmatmul.mubr.msk.f32.gmra.mrb[20].mxu1 %vm211_vm0, %v6634_v13 }
  0x3e   : > { %544 = vmatprep.mubr.f32.mxu0 %v11298_v0  ;;  %657 = vmatprep.mubr.f32.mxu1 %v11298_v0 }
  0x41   : > { %5564 = vmatmul.mubr.msk.f32.gmra.mrb[22].mxu0 %vm211_vm0, %v6645_v14  ;;  %5572 = vmatmul.mubr.msk.f32.gmra.mrb[22].mxu1 %vm211_vm0, %v6645_v14 }
  0x42   : > { %550 = vmatprep.mubr.f32.mxu0 %v11298_v0  ;;  %663 = vmatprep.mubr.f32.mxu1 %v11298_v0 }
  0x45   : > { %5565 = vmatmul.mubr.msk.f32.gmra.mrb[24].mxu0 %vm211_vm0, %v6656_v15  ;;  %5573 = vmatmul.mubr.msk.f32.gmra.mrb[24].mxu1 %vm211_vm0, %v6656_v15 }
  0x46   : > { %556 = vmatprep.mubr.f32.mxu0 %v11298_v0  ;;  %669 = vmatprep.mubr.f32.mxu1 %v11298_v0 }
  0x49   : > { %5566 = vmatmul.mubr.msk.f32.gmra.mrb[26].mxu0 %vm211_vm0, %v6667_v16  ;;  %5574 = vmatmul.mubr.msk.f32.gmra.mrb[26].mxu1 %vm211_vm0, %v6667_v16 }
  0x4a   : > { %562 = vmatprep.mubr.f32.mxu0 %v11298_v0  ;;  %675 = vmatprep.mubr.f32.mxu1 %v11298_v0 }
  0x4d   : > { %5567 = vmatmul.mubr.msk.f32.gmra.mrb[28].mxu0 %vm211_vm0, %v6678_v17  ;;  %5575 = vmatmul.mubr.msk.f32.gmra.mrb[28].mxu1 %vm211_vm0, %v6678_v17 }
  0x4e   : > { %568 = vmatprep.mubr.f32.mxu0 %v11298_v0  ;;  %681 = vmatprep.mubr.f32.mxu1 %v11298_v0 }
  0x51   : > { %5568 = vmatmul.mubr.msk.f32.gmra.mrb[30].mxu0 %vm211_vm0, %v6689_v18  ;;  %5576 = vmatmul.mubr.msk.f32.gmra.mrb[30].mxu1 %vm211_vm0, %v6689_v18 }
  0x52   : > { %752 = vmatprep.mubr.f32.mxu0 %v11298_v0  ;;  %865 = vmatprep.mubr.f32.mxu1 %v11298_v0 }
  0x55   : > { %5577 = vmatmul.mubr.msk.f32.vlgmr.msra.gmra.mrb[32].mxu0 %vm211_vm0, %v6603_v1  ;;  %5585 = vmatmul.mubr.msk.f32.vlgmr.msra.gmra.mrb[32].mxu1 %vm211_vm0, %v6603_v1 }
  0x56   : > { %758 = vmatprep.mubr.f32.mxu0 %v11298_v0  ;;  %871 = vmatprep.mubr.f32.mxu1 %v11298_v0 }
  0x57   : > { %915 = vmatpush1.msra.mxu0 %v183_v23  ;;  %1028 = vmatpush1.msra.mxu1 %v185_v24 }
  0x58   : > { %1140 = vmatprep.subr.mxu0 %v188_v25  ;;  %1253 = vmatprep.subr.mxu1 %v190_v26 }
  0x59   : > { %5578 = vmatmul.mubr.msk.f32.gmra.mrb[34].mxu0 %vm211_vm0, %v6621_v10  ;;  %5586 = vmatmul.mubr.msk.f32.gmra.mrb[34].mxu1 %vm211_vm0, %v6621_v10 }
  0x5a   : > { %764 = vmatprep.mubr.f32.mxu0 %v11298_v0  ;;  %877 = vmatprep.mubr.f32.mxu1 %v11298_v0 }
  0x5d   : > { %5579 = vmatmul.mubr.msk.f32.gmra.mrb[36].mxu0 %vm211_vm0, %v6634_v13  ;;  %5587 = vmatmul.mubr.msk.f32.gmra.mrb[36].mxu1 %vm211_vm0, %v6634_v13 }
  0x5e   : > { %770 = vmatprep.mubr.f32.mxu0 %v11298_v0  ;;  %883 = vmatprep.mubr.f32.mxu1 %v11298_v0 }
  0x61   : > { %5580 = vmatmul.mubr.msk.f32.gmra.mrb[38].mxu0 %vm211_vm0, %v6645_v14  ;;  %5588 = vmatmul.mubr.msk.f32.gmra.mrb[38].mxu1 %vm211_vm0, %v6645_v14 }
  0x62   : > { %776 = vmatprep.mubr.f32.mxu0 %v11298_v0  ;;  %889 = vmatprep.mubr.f32.mxu1 %v11298_v0 }
  0x65   : > { %5581 = vmatmul.mubr.msk.f32.gmra.mrb[40].mxu0 %vm211_vm0, %v6656_v15  ;;  %5589 = vmatmul.mubr.msk.f32.gmra.mrb[40].mxu1 %vm211_vm0, %v6656_v15 }
  0x66   : > { %782 = vmatprep.mubr.f32.mxu0 %v11298_v0  ;;  %895 = vmatprep.mubr.f32.mxu1 %v11298_v0 }
  0x69   : > { %5582 = vmatmul.mubr.msk.f32.gmra.mrb[42].mxu0 %vm211_vm0, %v6667_v16  ;;  %5590 = vmatmul.mubr.msk.f32.gmra.mrb[42].mxu1 %vm211_vm0, %v6667_v16 }
  0x6a   : > { %788 = vmatprep.mubr.f32.mxu0 %v11298_v0  ;;  %901 = vmatprep.mubr.f32.mxu1 %v11298_v0 }
  0x6d   : > { %5583 = vmatmul.mubr.msk.f32.gmra.mrb[44].mxu0 %vm211_vm0, %v6678_v17  ;;  %5591 = vmatmul.mubr.msk.f32.gmra.mrb[44].mxu1 %vm211_vm0, %v6678_v17 }
  0x6e   : > { %794 = vmatprep.mubr.f32.mxu0 %v11298_v0  ;;  %907 = vmatprep.mubr.f32.mxu1 %v11298_v0 }
  0x71   : > { %5584 = vmatmul.mubr.msk.f32.gmra.mrb[46].mxu0 %vm211_vm0, %v6689_v18  ;;  %5592 = vmatmul.mubr.msk.f32.gmra.mrb[46].mxu1 %vm211_vm0, %v6689_v18 }
  0x72   : > { %978 = vmatprep.mubr.f32.mxu0 %v11298_v0  ;;  %1091 = vmatprep.mubr.f32.mxu1 %v11298_v0 }
  0x75   : > { %5593 = vmatmul.mubr.msk.f32.vlgmr.msra.gmra.mrb[48].mxu0 %vm211_vm0, %v6603_v1  ;;  %5601 = vmatmul.mubr.msk.f32.vlgmr.msra.gmra.mrb[48].mxu1 %vm211_vm0, %v6603_v1 }
  0x76   : > { %984 = vmatprep.mubr.f32.mxu0 %v11298_v0  ;;  %1097 = vmatprep.mubr.f32.mxu1 %v11298_v0 }
  0x77   : > { %1141 = vmatpush1.msra.mxu0 %v187_v27  ;;  %1254 = vmatpush1.msra.mxu1 %v189_v28 }
  0x78   : > { %1366 = vmatprep.subr.mxu0 %v192_v29  ;;  %1479 = vmatprep.subr.mxu1 %v194_v30 }
  0x79   : > { %5594 = vmatmul.mubr.msk.f32.gmra.mrb[50].mxu0 %vm211_vm0, %v6621_v10  ;;  %5602 = vmatmul.mubr.msk.f32.gmra.mrb[50].mxu1 %vm211_vm0, %v6621_v10 }
  0x7a   : > { %990 = vmatprep.mubr.f32.mxu0 %v11298_v0  ;;  %1103 = vmatprep.mubr.f32.mxu1 %v11298_v0 }
  0x7d   : > { %5595 = vmatmul.mubr.msk.f32.gmra.mrb[52].mxu0 %vm211_vm0, %v6634_v13  ;;  %5603 = vmatmul.mubr.msk.f32.gmra.mrb[52].mxu1 %vm211_vm0, %v6634_v13 }
  0x7e   : > { %996 = vmatprep.mubr.f32.mxu0 %v11298_v0  ;;  %1109 = vmatprep.mubr.f32.mxu1 %v11298_v0 }
  0x81   : > { %5596 = vmatmul.mubr.msk.f32.gmra.mrb[54].mxu0 %vm211_vm0, %v6645_v14  ;;  %5604 = vmatmul.mubr.msk.f32.gmra.mrb[54].mxu1 %vm211_vm0, %v6645_v14 }
  0x82   : > { %1002 = vmatprep.mubr.f32.mxu0 %v11298_v0  ;;  %1115 = vmatprep.mubr.f32.mxu1 %v11298_v0 }
  0x85   : > { %5597 = vmatmul.mubr.msk.f32.gmra.mrb[56].mxu0 %vm211_vm0, %v6656_v15  ;;  %5605 = vmatmul.mubr.msk.f32.gmra.mrb[56].mxu1 %vm211_vm0, %v6656_v15 }
  0x86   : > { %1008 = vmatprep.mubr.f32.mxu0 %v11298_v0  ;;  %1121 = vmatprep.mubr.f32.mxu1 %v11298_v0 }
  0x89   : > { %5598 = vmatmul.mubr.msk.f32.gmra.mrb[58].mxu0 %vm211_vm0, %v6667_v16  ;;  %5606 = vmatmul.mubr.msk.f32.gmra.mrb[58].mxu1 %vm211_vm0, %v6667_v16 }
  0x8a   : > { %1014 = vmatprep.mubr.f32.mxu0 %v11298_v0  ;;  %1127 = vmatprep.mubr.f32.mxu1 %v11298_v0 }
  0x8d   : > { %5599 = vmatmul.mubr.msk.f32.gmra.mrb[60].mxu0 %vm211_vm0, %v6678_v17  ;;  %5607 = vmatmul.mubr.msk.f32.gmra.mrb[60].mxu1 %vm211_vm0, %v6678_v17 }
  0x8e   : > { %1020 = vmatprep.mubr.f32.mxu0 %v11298_v0  ;;  %1133 = vmatprep.mubr.f32.mxu1 %v11298_v0 }
  0x91   : > { %5600 = vmatmul.mubr.msk.f32.gmra.mrb[62].mxu0 %vm211_vm0, %v6689_v18  ;;  %5608 = vmatmul.mubr.msk.f32.gmra.mrb[62].mxu1 %vm211_vm0, %v6689_v18 }
  0x92   : > { %1204 = vmatprep.mubr.f32.mxu0 %v11298_v0  ;;  %1317 = vmatprep.mubr.f32.mxu1 %v11298_v0 }
  0x95   : > { %5609 = vmatmul.mubr.msk.f32.vlgmr.msra.gmra.mrb[64].mxu0 %vm211_vm0, %v6603_v1  ;;  %5617 = vmatmul.mubr.msk.f32.vlgmr.msra.gmra.mrb[64].mxu1 %vm211_vm0, %v6603_v1 }
  0x96   : > { %1210 = vmatprep.mubr.f32.mxu0 %v11298_v0  ;;  %1323 = vmatprep.mubr.f32.mxu1 %v11298_v0 }
  0x97   : > { %1367 = vmatpush1.msra.mxu0 %v191_v31  ;;  %1480 = vmatpush1.msra.mxu1 %v193_v32 }
  0x98   : > { %1592 = vmatprep.subr.mxu0 %v196_v33  ;;  %1705 = vmatprep.subr.mxu1 %v198_v34 }
  0x99   : > { %5610 = vmatmul.mubr.msk.f32.gmra.mrb[66].mxu0 %vm211_vm0, %v6621_v10  ;;  %5618 = vmatmul.mubr.msk.f32.gmra.mrb[66].mxu1 %vm211_vm0, %v6621_v10 }
  0x9a   : > { %1216 = vmatprep.mubr.f32.mxu0 %v11298_v0  ;;  %1329 = vmatprep.mubr.f32.mxu1 %v11298_v0 }
  0x9d   : > { %5611 = vmatmul.mubr.msk.f32.gmra.mrb[68].mxu0 %vm211_vm0, %v6634_v13  ;;  %5619 = vmatmul.mubr.msk.f32.gmra.mrb[68].mxu1 %vm211_vm0, %v6634_v13 }
  0x9e   : > { %1222 = vmatprep.mubr.f32.mxu0 %v11298_v0  ;;  %1335 = vmatprep.mubr.f32.mxu1 %v11298_v0 }
  0xa1   : > { %5612 = vmatmul.mubr.msk.f32.gmra.mrb[70].mxu0 %vm211_vm0, %v6645_v14  ;;  %5620 = vmatmul.mubr.msk.f32.gmra.mrb[70].mxu1 %vm211_vm0, %v6645_v14 }
  0xa2   : > { %1228 = vmatprep.mubr.f32.mxu0 %v11298_v0  ;;  %1341 = vmatprep.mubr.f32.mxu1 %v11298_v0 }
  0xa5   : > { %5613 = vmatmul.mubr.msk.f32.gmra.mrb[72].mxu0 %vm211_vm0, %v6656_v15  ;;  %5621 = vmatmul.mubr.msk.f32.gmra.mrb[72].mxu1 %vm211_vm0, %v6656_v15 }
  0xa6   : > { %1234 = vmatprep.mubr.f32.mxu0 %v11298_v0  ;;  %1347 = vmatprep.mubr.f32.mxu1 %v11298_v0 }
  0xa9   : > { %5614 = vmatmul.mubr.msk.f32.gmra.mrb[74].mxu0 %vm211_vm0, %v6667_v16  ;;  %5622 = vmatmul.mubr.msk.f32.gmra.mrb[74].mxu1 %vm211_vm0, %v6667_v16 }
  0xaa   : > { %1240 = vmatprep.mubr.f32.mxu0 %v11298_v0  ;;  %1353 = vmatprep.mubr.f32.mxu1 %v11298_v0 }
  0xad   : > { %5615 = vmatmul.mubr.msk.f32.gmra.mrb[76].mxu0 %vm211_vm0, %v6678_v17  ;;  %5623 = vmatmul.mubr.msk.f32.gmra.mrb[76].mxu1 %vm211_vm0, %v6678_v17 }
  0xae   : > { %1246 = vmatprep.mubr.f32.mxu0 %v11298_v0  ;;  %1359 = vmatprep.mubr.f32.mxu1 %v11298_v0 }
  0xb1   : > { %5616 = vmatmul.mubr.msk.f32.gmra.mrb[78].mxu0 %vm211_vm0, %v6689_v18  ;;  %5624 = vmatmul.mubr.msk.f32.gmra.mrb[78].mxu1 %vm211_vm0, %v6689_v18 }
  0xb2   : > { %1430 = vmatprep.mubr.f32.mxu0 %v11298_v0  ;;  %1543 = vmatprep.mubr.f32.mxu1 %v11298_v0 }
  0xb5   : > { %5625 = vmatmul.mubr.msk.f32.vlgmr.msra.gmra.mrb[80].mxu0 %vm211_vm0, %v6603_v1  ;;  %5633 = vmatmul.mubr.msk.f32.vlgmr.msra.gmra.mrb[80].mxu1 %vm211_vm0, %v6603_v1 }
  0xb6   : > { %1436 = vmatprep.mubr.f32.mxu0 %v11298_v0  ;;  %1549 = vmatprep.mubr.f32.mxu1 %v11298_v0 }
  0xb7   : > { %1593 = vmatpush1.msra.mxu0 %v195_v35  ;;  %1706 = vmatpush1.msra.mxu1 %v197_v36 }
  0xb8   : > { %1818 = vmatprep.subr.mxu0 %v200_v37  ;;  %1931 = vmatprep.subr.mxu1 %v202_v38 }
  0xb9   : > { %5626 = vmatmul.mubr.msk.f32.gmra.mrb[82].mxu0 %vm211_vm0, %v6621_v10  ;;  %5634 = vmatmul.mubr.msk.f32.gmra.mrb[82].mxu1 %vm211_vm0, %v6621_v10 }
  0xba   : > { %1442 = vmatprep.mubr.f32.mxu0 %v11298_v0  ;;  %1555 = vmatprep.mubr.f32.mxu1 %v11298_v0 }
  0xbd   : > { %5627 = vmatmul.mubr.msk.f32.gmra.mrb[84].mxu0 %vm211_vm0, %v6634_v13  ;;  %5635 = vmatmul.mubr.msk.f32.gmra.mrb[84].mxu1 %vm211_vm0, %v6634_v13 }
  0xbe   : > { %1448 = vmatprep.mubr.f32.mxu0 %v11298_v0  ;;  %1561 = vmatprep.mubr.f32.mxu1 %v11298_v0 }
  0xc1   : > { %5628 = vmatmul.mubr.msk.f32.gmra.mrb[86].mxu0 %vm211_vm0, %v6645_v14  ;;  %5636 = vmatmul.mubr.msk.f32.gmra.mrb[86].mxu1 %vm211_vm0, %v6645_v14 }
  0xc2   : > { %1454 = vmatprep.mubr.f32.mxu0 %v11298_v0  ;;  %1567 = vmatprep.mubr.f32.mxu1 %v11298_v0 }
  0xc5   : > { %5629 = vmatmul.mubr.msk.f32.gmra.mrb[88].mxu0 %vm211_vm0, %v6656_v15  ;;  %5637 = vmatmul.mubr.msk.f32.gmra.mrb[88].mxu1 %vm211_vm0, %v6656_v15 }
  0xc6   : > { %1460 = vmatprep.mubr.f32.mxu0 %v11298_v0  ;;  %1573 = vmatprep.mubr.f32.mxu1 %v11298_v0 }
  0xc9   : > { %5630 = vmatmul.mubr.msk.f32.gmra.mrb[90].mxu0 %vm211_vm0, %v6667_v16  ;;  %5638 = vmatmul.mubr.msk.f32.gmra.mrb[90].mxu1 %vm211_vm0, %v6667_v16 }
  0xca   : > { %1466 = vmatprep.mubr.f32.mxu0 %v11298_v0  ;;  %1579 = vmatprep.mubr.f32.mxu1 %v11298_v0 }
  0xcd   : > { %5631 = vmatmul.mubr.msk.f32.gmra.mrb[92].mxu0 %vm211_vm0, %v6678_v17  ;;  %5639 = vmatmul.mubr.msk.f32.gmra.mrb[92].mxu1 %vm211_vm0, %v6678_v17 }
  0xce   : > { %1472 = vmatprep.mubr.f32.mxu0 %v11298_v0  ;;  %1585 = vmatprep.mubr.f32.mxu1 %v11298_v0 }
  0xd1   : > { %5632 = vmatmul.mubr.msk.f32.gmra.mrb[94].mxu0 %vm211_vm0, %v6689_v18  ;;  %5640 = vmatmul.mubr.msk.f32.gmra.mrb[94].mxu1 %vm211_vm0, %v6689_v18 }
  0xd2   : > { %1656 = vmatprep.mubr.f32.mxu0 %v11298_v0  ;;  %1769 = vmatprep.mubr.f32.mxu1 %v11298_v0 }
  0xd5   : > { %5641 = vmatmul.mubr.msk.f32.vlgmr.msra.gmra.mrb[96].mxu0 %vm211_vm0, %v6603_v1  ;;  %5649 = vmatmul.mubr.msk.f32.vlgmr.msra.gmra.mrb[96].mxu1 %vm211_vm0, %v6603_v1 }
  0xd6   : > { %1662 = vmatprep.mubr.f32.mxu0 %v11298_v0  ;;  %1775 = vmatprep.mubr.f32.mxu1 %v11298_v0 }
  0xd7   : > { %1819 = vmatpush1.msra.mxu0 %v199_v39  ;;  %1932 = vmatpush1.msra.mxu1 %v201_v40 }
  0xd9   : > { %5642 = vmatmul.mubr.msk.f32.gmra.mrb[98].mxu0 %vm211_vm0, %v6621_v10  ;;  %5650 = vmatmul.mubr.msk.f32.gmra.mrb[98].mxu1 %vm211_vm0, %v6621_v10 }
  0xda   : > { %1668 = vmatprep.mubr.f32.mxu0 %v11298_v0  ;;  %1781 = vmatprep.mubr.f32.mxu1 %v11298_v0 }
  0xdd   : > { %5643 = vmatmul.mubr.msk.f32.gmra.mrb[100].mxu0 %vm211_vm0, %v6634_v13  ;;  %5651 = vmatmul.mubr.msk.f32.gmra.mrb[100].mxu1 %vm211_vm0, %v6634_v13 }
  0xde   : > { %1674 = vmatprep.mubr.f32.mxu0 %v11298_v0  ;;  %1787 = vmatprep.mubr.f32.mxu1 %v11298_v0 }
  0xe1   : > { %5644 = vmatmul.mubr.msk.f32.gmra.mrb[102].mxu0 %vm211_vm0, %v6645_v14  ;;  %5652 = vmatmul.mubr.msk.f32.gmra.mrb[102].mxu1 %vm211_vm0, %v6645_v14 }
  0xe2   : > { %1680 = vmatprep.mubr.f32.mxu0 %v11298_v0  ;;  %1793 = vmatprep.mubr.f32.mxu1 %v11298_v0 }
  0xe5   : > { %5645 = vmatmul.mubr.msk.f32.gmra.mrb[104].mxu0 %vm211_vm0, %v6656_v15  ;;  %5653 = vmatmul.mubr.msk.f32.gmra.mrb[104].mxu1 %vm211_vm0, %v6656_v15 }
  0xe6   : > { %1686 = vmatprep.mubr.f32.mxu0 %v11298_v0  ;;  %1799 = vmatprep.mubr.f32.mxu1 %v11298_v0 }
  0xe8   : > { %v6990_v41 = vpop.f32.mrb[0].mxu0  ;;  %v6992_v42 = vpop.f32.mrb[0].mxu1 }
  0xe9   : > { %v6994_v43 = vpop.f32.mrb[1].mxu0  ;;  %5646 = vmatmul.mubr.msk.f32.gmra.mrb[106].mxu0 %vm211_vm0, %v6667_v16  ;;  %v6998_v44 = vpop.f32.mrb[1].mxu1  ;;  %5654 = vmatmul.mubr.msk.f32.gmra.mrb[106].mxu1 %vm211_vm0, %v6667_v16 }
  0xea   : > { %v2044_v45 = vmax.f32 %v6990_v41, %v6994_v43  ;;  %1692 = vmatprep.mubr.f32.mxu0 %v11298_v0  ;;  %1805 = vmatprep.mubr.f32.mxu1 %v11298_v0 }
  0xec   : > { %v7007_v46 = vmax.f32 %v2044_v45, %v6992_v42  ;;  %v7009_v47 = vpop.f32.mrb[2].mxu0  ;;  %v7011_v48 = vpop.f32.mrb[2].mxu1 }
  0xed   : > { %v7013_v49 = vpop.f32.mrb[3].mxu0  ;;  %5647 = vmatmul.mubr.msk.f32.gmra.mrb[108].mxu0 %vm211_vm0, %v6678_v17  ;;  %v7017_v50 = vpop.f32.mrb[3].mxu1  ;;  %5655 = vmatmul.mubr.msk.f32.gmra.mrb[108].mxu1 %vm211_vm0, %v6678_v17 }
  0xee   : > { %v2046_v51 = vmax.f32 %v7007_v46, %v6998_v44  ;;  %v2077_v52 = vmax.f32 %v7009_v47, %v7013_v49  ;;  %1698 = vmatprep.mubr.f32.mxu0 %v11298_v0  ;;  %1811 = vmatprep.mubr.f32.mxu1 %v11298_v0 }
  0xf0   : > { %v7028_v53 = vmax.f32 %v2077_v52, %v7011_v48  ;;  %v7030_v54 = vpop.f32.mrb[4].mxu0  ;;  %v7032_v55 = vpop.f32.mrb[4].mxu1 }
  0xf1   : > { %11932 = vst [vmem:[#allocation2_spill] sm:$0xff] %v7030_v54  ;;  %11933 = vst [vmem:[#allocation3_spill] sm:$0xff] %v7032_v55  ;;  %v7034_v56 = vpop.f32.mrb[5].mxu0  ;;  %5648 = vmatmul.mubr.msk.f32.gmra.mrb[110].mxu0 %vm211_vm0, %v6689_v18  ;;  %v7038_v57 = vpop.f32.mrb[5].mxu1  ;;  %5656 = vmatmul.mubr.msk.f32.gmra.mrb[110].mxu1 %vm211_vm0, %v6689_v18 }
  0xf2   : > { %11934 = vst [vmem:[#allocation4_spill] sm:$0xff] %v7034_v56  ;;  %11935 = vst [vmem:[#allocation5_spill] sm:$0xff] %v7038_v57  ;;  %v2079_v58 = vmax.f32 %v7028_v53, %v7017_v50  ;;  %v2110_v59 = vmax.f32 %v7030_v54, %v7034_v56  ;;  %1882 = vmatprep.mubr.f32.mxu0 %v11298_v0  ;;  %1995 = vmatprep.mubr.f32.mxu1 %v11298_v0 }
  0xf4   : > { %v7049_v60 = vmax.f32 %v2110_v59, %v7032_v55  ;;  %v7051_v61 = vpop.f32.mrb[6].mxu0  ;;  %v7053_v62 = vpop.f32.mrb[6].mxu1 }
  0xf5   : > { %11936 = vst [vmem:[#allocation6_spill] sm:$0xff] %v7051_v61  ;;  %11937 = vst [vmem:[#allocation7_spill] sm:$0xff] %v7053_v62  ;;  %v7055_v63 = vpop.f32.mrb[7].mxu0  ;;  %5657 = vmatmul.mubr.msk.f32.vlgmr.msra.gmra.mrb[112].mxu0 %vm211_vm0, %v6603_v1  ;;  %v7059_v2 = vpop.f32.mrb[7].mxu1  ;;  %5665 = vmatmul.mubr.msk.f32.vlgmr.msra.gmra.mrb[112].mxu1 %vm211_vm0, %v6603_v1 }
  0xf6   : > { %11938 = vst [vmem:[#allocation8_spill] sm:$0xff] %v7055_v63  ;;  %11939 = vst [vmem:[#allocation9_spill] sm:$0xff] %v7059_v2  ;;  %v2112_v3 = vmax.f32 %v7049_v60, %v7038_v57  ;;  %v2143_v4 = vmax.f32 %v7051_v61, %v7055_v63  ;;  %1888 = vmatprep.mubr.f32.mxu0 %v11298_v0  ;;  %2001 = vmatprep.mubr.f32.mxu1 %v11298_v0 }
  0xf8   : > { %v7070_v5 = vmax.f32 %v2143_v4, %v7053_v62  ;;  %v7072_v6 = vpop.f32.mrb[8].mxu0  ;;  %v7074_v7 = vpop.f32.mrb[8].mxu1 }
  0xf9   : > { %11940 = vst [vmem:[#allocation10_spill] sm:$0xff] %v7072_v6  ;;  %11941 = vst [vmem:[#allocation11_spill] sm:$0xff] %v7074_v7  ;;  %v7076_v8 = vpop.f32.mrb[9].mxu0  ;;  %5658 = vmatmul.mubr.msk.f32.gmra.mrb[114].mxu0 %vm211_vm0, %v6621_v10  ;;  %v7080_v1 = vpop.f32.mrb[9].mxu1  ;;  %5666 = vmatmul.mubr.msk.f32.gmra.mrb[114].mxu1 %vm211_vm0, %v6621_v10 }
  0xfa   : > { %11942 = vst [vmem:[#allocation12_spill] sm:$0xff] %v7076_v8  ;;  %11943 = vst [vmem:[#allocation13_spill] sm:$0xff] %v7080_v1  ;;  %v2145_v9 = vmax.f32 %v7070_v5, %v7059_v2  ;;  %v2176_v11 = vmax.f32 %v7072_v6, %v7076_v8  ;;  %1894 = vmatprep.mubr.f32.mxu0 %v11298_v0  ;;  %2007 = vmatprep.mubr.f32.mxu1 %v11298_v0 }
  0xfc   : > { %v7091_v12 = vmax.f32 %v2176_v11, %v7074_v7  ;;  %v7093_v19 = vpop.f32.mrb[10].mxu0  ;;  %v7095_v20 = vpop.f32.mrb[10].mxu1 }
  0xfd   : > { %11944 = vst [vmem:[#allocation14_spill] sm:$0xff] %v7093_v19  ;;  %11945 = vst [vmem:[#allocation15_spill] sm:$0xff] %v7095_v20  ;;  %v7097_v21 = vpop.f32.mrb[11].mxu0  ;;  %5659 = vmatmul.mubr.msk.f32.gmra.mrb[116].mxu0 %vm211_vm0, %v6634_v13  ;;  %v7101_v10 = vpop.f32.mrb[11].mxu1  ;;  %5667 = vmatmul.mubr.msk.f32.gmra.mrb[116].mxu1 %vm211_vm0, %v6634_v13 }
  0xfe   : > { %11946 = vst [vmem:[#allocation16_spill] sm:$0xff] %v7097_v21  ;;  %11947 = vst [vmem:[#allocation17_spill] sm:$0xff] %v7101_v10  ;;  %v2209_v23 = vmax.f32 %v7093_v19, %v7097_v21  ;;  %1900 = vmatprep.mubr.f32.mxu0 %v11298_v0  ;;  %2013 = vmatprep.mubr.f32.mxu1 %v11298_v0 }
 0x100   : > { %v7112_v24 = vmax.f32 %v2209_v23, %v7095_v20  ;;  %v7114_v25 = vpop.f32.mrb[12].mxu0  ;;  %v7116_v26 = vpop.f32.mrb[12].mxu1 }
 0x101   : > { %11948 = vst [vmem:[#allocation18_spill] sm:$0xff] %v7114_v25  ;;  %11949 = vst [vmem:[#allocation19_spill] sm:$0xff] %v7116_v26  ;;  %v7118_v27 = vpop.f32.mrb[13].mxu0  ;;  %5660 = vmatmul.mubr.msk.f32.gmra.mrb[118].mxu0 %vm211_vm0, %v6645_v14  ;;  %v7122_v13 = vpop.f32.mrb[13].mxu1  ;;  %5668 = vmatmul.mubr.msk.f32.gmra.mrb[118].mxu1 %vm211_vm0, %v6645_v14 }
 0x102   : > { %11950 = vst [vmem:[#allocation20_spill] sm:$0xff] %v7118_v27  ;;  %11951 = vst [vmem:[#allocation21_spill] sm:$0xff] %v7122_v13  ;;  %v2242_v29 = vmax.f32 %v7114_v25, %v7118_v27  ;;  %1906 = vmatprep.mubr.f32.mxu0 %v11298_v0  ;;  %2019 = vmatprep.mubr.f32.mxu1 %v11298_v0 }
 0x104   : > { %v7133_v30 = vmax.f32 %v2242_v29, %v7116_v26  ;;  %v7135_v31 = vpop.f32.mrb[14].mxu0  ;;  %v7137_v32 = vpop.f32.mrb[14].mxu1 }
 0x105   : > { %11952 = vst [vmem:[#allocation22_spill] sm:$0xff] %v7135_v31  ;;  %11953 = vst [vmem:[#allocation23_spill] sm:$0xff] %v7137_v32  ;;  %v7139_v33 = vpop.f32.mrb[15].mxu0  ;;  %5661 = vmatmul.mubr.msk.f32.gmra.mrb[120].mxu0 %vm211_vm0, %v6656_v15  ;;  %v7143_v14 = vpop.f32.mrb[15].mxu1  ;;  %5669 = vmatmul.mubr.msk.f32.gmra.mrb[120].mxu1 %vm211_vm0, %v6656_v15 }
 0x106   : > { %11954 = vst [vmem:[#allocation24_spill] sm:$0xff] %v7139_v33  ;;  %11955 = vst [vmem:[#allocation25_spill] sm:$0xff] %v7143_v14  ;;  %v2275_v35 = vmax.f32 %v7135_v31, %v7139_v33  ;;  %1912 = vmatprep.mubr.f32.mxu0 %v11298_v0  ;;  %2025 = vmatprep.mubr.f32.mxu1 %v11298_v0 }
 0x108   : > { %v7154_v36 = vmax.f32 %v2275_v35, %v7137_v32  ;;  %v7156_v37 = vpop.f32.mrb[16].mxu0  ;;  %v7158_v38 = vpop.f32.mrb[16].mxu1 }
 0x109   : > { %v2047_v15 = vmax.f32 %v2046_v51, %v7156_v37  ;;  %v7164_v39 = vpop.f32.mrb[17].mxu0  ;;  %5662 = vmatmul.mubr.msk.f32.gmra.mrb[122].mxu0 %vm211_vm0, %v6667_v16  ;;  %v7168_v40 = vpop.f32.mrb[17].mxu1  ;;  %5670 = vmatmul.mubr.msk.f32.gmra.mrb[122].mxu1 %vm211_vm0, %v6667_v16 }
 0x10a   : > { %1918 = vmatprep.mubr.f32.mxu0 %v11298_v0  ;;  %2031 = vmatprep.mubr.f32.mxu1 %v11298_v0 }
 0x10b   : > { %v2048_v46 = vmax.f32 %v2047_v15, %v7164_v39 }
 0x10c   : > { %v7177_v51 = vpop.f32.mrb[18].mxu0  ;;  %v7179_v52 = vpop.f32.mrb[18].mxu1 }
 0x10d   : > { %v7182_v59 = vmax.f32 %v2048_v46, %v7158_v38  ;;  %v2080_v16 = vmax.f32 %v2079_v58, %v7177_v51  ;;  %v7188_v4 = vpop.f32.mrb[19].mxu0  ;;  %5663 = vmatmul.mubr.msk.f32.gmra.mrb[124].mxu0 %vm211_vm0, %v6678_v17  ;;  %v7192_v11 = vpop.f32.mrb[19].mxu1  ;;  %5671 = vmatmul.mubr.msk.f32.gmra.mrb[124].mxu1 %vm211_vm0, %v6678_v17 }
 0x10e   : > { %1924 = vmatprep.mubr.f32.mxu0 %v11298_v0  ;;  %2037 = vmatprep.mubr.f32.mxu1 %v11298_v0 }
 0x10f   : > { %v2050_v23 = vmax.f32 %v7182_v59, %v7168_v40  ;;  %v2081_v53 = vmax.f32 %v2080_v16, %v7188_v4 }
 0x110   : > { %v7201_v58 = vpop.f32.mrb[20].mxu0  ;;  %v7203_v29 = vpop.f32.mrb[20].mxu1 }
 0x111   : > { %11956 = vst [vmem:[#allocation26_spill] sm:$0xff] %v7201_v58  ;;  %11957 = vst [vmem:[#allocation27_spill] sm:$0xff] %v7203_v29  ;;  %v2082_v35 = vmax.f32 %v2081_v53, %v7179_v52  ;;  %v2113_v17 = vmax.f32 %v2112_v3, %v7201_v58  ;;  %v7210_v15 = vpop.f32.mrb[21].mxu0  ;;  %5664 = vmatmul.mubr.msk.f32.gmra.mrb[126].mxu0 %vm211_vm0, %v6689_v18  ;;  %v7214_v46 = vpop.f32.mrb[21].mxu1  ;;  %5672 = vmatmul.mubr.msk.f32.gmra.mrb[126].mxu1 %vm211_vm0, %v6689_v18 }
 0x112   : > { %11958 = vst [vmem:[#allocation28_spill] sm:$0xff] %v7210_v15  ;;  %11959 = vst [vmem:[#allocation29_spill] sm:$0xff] %v7214_v46  ;;  %4377 = vmatprep.mubr.f32.mxu0 %v11298_v0  ;;  %4448 = vmatprep.mubr.f32.mxu1 %v11298_v0 }
 0x113   : > { %v2083_v59 = vmax.f32 %v2082_v35, %v7192_v11  ;;  %v2114_v16 = vmax.f32 %v2113_v17, %v7210_v15 }
 0x114   : > { %v7222_v60 = vpop.f32.mrb[22].mxu0  ;;  %v7224_v3 = vpop.f32.mrb[22].mxu1 }
 0x115   : > { %11960 = vst [vmem:[#allocation30_spill] sm:$0xff] %v7222_v60  ;;  %11961 = vst [vmem:[#allocation31_spill] sm:$0xff] %v7224_v3  ;;  %v2115_v53 = vmax.f32 %v2114_v16, %v7203_v29  ;;  %v2146_v45 = vmax.f32 %v2145_v9, %v7222_v60  ;;  %v7231_v18 = vpop.f32.mrb[23].mxu0  ;;  %v7233_v34 = vpop.f32.mrb[23].mxu1  ;;  %v11966_v16 = vmax.f32 %v7091_v12, %v7080_v1 }
 0x116   : > { %11962 = vst [vmem:[#allocation32_spill] sm:$0xff] %v7231_v18  ;;  %11963 = vst [vmem:[#allocation33_spill] sm:$0xff] %v7233_v34 }
 0x117   : > { %v2116_v0 = vmax.f32 %v2115_v53, %v7214_v46  ;;  %v2147_v35 = vmax.f32 %v2146_v45, %v7231_v18 }
 0x118   : > { %v7237_v17 = vpop.f32.mrb[24].mxu0  ;;  %v7239_v28 = vpop.f32.mrb[24].mxu1 }
 0x119   : > { %11964 = vst [vmem:[#allocation34_spill] sm:$0xff] %v7237_v17  ;;  %11965 = vst [vmem:[#allocation35_spill] sm:$0xff] %v7239_v28  ;;  %v2148_v22 = vmax.f32 %v2147_v35, %v7224_v3  ;;  %v2179_v5 = vmax.f32 %v11966_v16, %v7237_v17  ;;  %v7246_v9 = vpop.f32.mrb[25].mxu0  ;;  %v7248_v32 = vpop.f32.mrb[25].mxu1  ;;  %v11971_v35 = vmax.f32 %v7112_v24, %v7101_v10 }
 0x11a   : > { %11967 = vst [vmem:[#allocation36_spill] sm:$0xff] %v7246_v9  ;;  %11968 = vst [vmem:[#allocation37_spill] sm:$0xff] %v7248_v32 }
 0x11b   : > { %v2149_v33 = vmax.f32 %v2148_v22, %v7233_v34  ;;  %v2180_v53 = vmax.f32 %v2179_v5, %v7246_v9 }
 0x11c   : > { %v7252_v45 = vpop.f32.mrb[26].mxu0  ;;  %v7254_v31 = vpop.f32.mrb[26].mxu1 }
 0x11d   : > { %11969 = vst [vmem:[#allocation38_spill] sm:$0xff] %v7252_v45  ;;  %11970 = vst [vmem:[#allocation39_spill] sm:$0xff] %v7254_v31  ;;  %v2181_v26 = vmax.f32 %v2180_v53, %v7239_v28  ;;  %v2212_v12 = vmax.f32 %v11971_v35, %v7252_v45  ;;  %v7261_v16 = vpop.f32.mrb[27].mxu0  ;;  %v7263_v27 = vpop.f32.mrb[27].mxu1  ;;  %v11976_v53 = vmax.f32 %v7133_v30, %v7122_v13 }
 0x11e   : > { %11972 = vst [vmem:[#allocation40_spill] sm:$0xff] %v7261_v16  ;;  %11973 = vst [vmem:[#allocation41_spill] sm:$0xff] %v7263_v27 }
 0x11f   : > { %v2182_v25 = vmax.f32 %v2181_v26, %v7248_v32  ;;  %v2213_v22 = vmax.f32 %v2212_v12, %v7261_v16 }
 0x120   : > { %v7267_v5 = vpop.f32.mrb[28].mxu0  ;;  %v7269_v20 = vpop.f32.mrb[28].mxu1 }
 0x121   : > { %11974 = vst [vmem:[#allocation42_spill] sm:$0xff] %v7267_v5  ;;  %11975 = vst [vmem:[#allocation43_spill] sm:$0xff] %v7269_v20  ;;  %v2214_v21 = vmax.f32 %v2213_v22, %v7254_v31  ;;  %v2245_v24 = vmax.f32 %v11976_v53, %v7267_v5  ;;  %v7276_v35 = vpop.f32.mrb[29].mxu0  ;;  %v7278_v45 = vpop.f32.mrb[29].mxu1  ;;  %v11981_v22 = vmax.f32 %v7154_v36, %v7143_v14 }
 0x122   : > { %11977 = vst [vmem:[#allocation44_spill] sm:$0xff] %v7276_v35  ;;  %11978 = vst [vmem:[#allocation45_spill] sm:$0xff] %v7278_v45 }
 0x123   : > { %v2215_v10 = vmax.f32 %v2214_v21, %v7263_v27  ;;  %v2246_v26 = vmax.f32 %v2245_v24, %v7276_v35 }
 0x124   : > { %v7282_v12 = vpop.f32.mrb[30].mxu0  ;;  %v7284_v16 = vpop.f32.mrb[30].mxu1 }
 0x125   : > { %11979 = vst [vmem:[#allocation46_spill] sm:$0xff] %v7282_v12  ;;  %11980 = vst [vmem:[#allocation47_spill] sm:$0xff] %v7284_v16  ;;  %v2247_v19 = vmax.f32 %v2246_v26, %v7269_v20  ;;  %v2278_v30 = vmax.f32 %v11981_v22, %v7282_v12  ;;  %v7291_v53 = vpop.f32.mrb[31].mxu0  ;;  %v7293_v5 = vpop.f32.mrb[31].mxu1 }
 0x126   : > { %11982 = vst [vmem:[#allocation48_spill] sm:$0xff] %v7291_v53  ;;  %11983 = vst [vmem:[#allocation49_spill] sm:$0xff] %v7293_v5 }
 0x127   : > { %v2248_v13 = vmax.f32 %v2247_v19, %v7278_v45  ;;  %v2279_v21 = vmax.f32 %v2278_v30, %v7291_v53 }
 0x128   : > { %v7297_v24 = vpop.f32.mrb[32].mxu0  ;;  %v7299_v35 = vpop.f32.mrb[32].mxu1 }
 0x129   : > { %v2280_v27 = vmax.f32 %v2279_v21, %v7284_v16  ;;  %v2051_v26 = vmax.f32 %v2050_v23, %v7297_v24  ;;  %v7303_v20 = vpop.f32.mrb[33].mxu0  ;;  %v7305_v36 = vpop.f32.mrb[33].mxu1 }
 0x12b   : > { %v2281_v22 = vmax.f32 %v2280_v27, %v7293_v5  ;;  %v2052_v12 = vmax.f32 %v2051_v26, %v7303_v20 }
 0x12c   : > { %v7309_v14 = vpop.f32.mrb[34].mxu0  ;;  %v7311_v19 = vpop.f32.mrb[34].mxu1 }
 0x12d   : > { %v2053_v30 = vmax.f32 %v2052_v12, %v7299_v35  ;;  %v2084_v53 = vmax.f32 %v2083_v59, %v7309_v14  ;;  %v7315_v45 = vpop.f32.mrb[35].mxu0  ;;  %v7317_v21 = vpop.f32.mrb[35].mxu1 }
 0x12f   : > { %v2054_v23 = vmax.f32 %v2053_v30, %v7305_v36  ;;  %v2085_v16 = vmax.f32 %v2084_v53, %v7315_v45 }
 0x130   : > { %v7321_v31 = vpop.f32.mrb[36].mxu0  ;;  %v7323_v27 = vpop.f32.mrb[36].mxu1 }
 0x131   : > { %11984 = vst [vmem:[#allocation50_spill] sm:$0xff] %v7321_v31  ;;  %11985 = vst [vmem:[#allocation51_spill] sm:$0xff] %v7323_v27  ;;  %v2086_v26 = vmax.f32 %v2085_v16, %v7311_v19  ;;  %v2117_v5 = vmax.f32 %v2116_v0, %v7321_v31  ;;  %v7327_v32 = vpop.f32.mrb[37].mxu0  ;;  %v7329_v12 = vpop.f32.mrb[37].mxu1 }
 0x132   : > { %11986 = vst [vmem:[#allocation52_spill] sm:$0xff] %v7327_v32  ;;  %11987 = vst [vmem:[#allocation53_spill] sm:$0xff] %v7329_v12 }
 0x133   : > { %v2087_v59 = vmax.f32 %v2086_v26, %v7317_v21  ;;  %v2118_v28 = vmax.f32 %v2117_v5, %v7327_v32 }
 0x134   : > { %v7333_v9 = vpop.f32.mrb[38].mxu0  ;;  %v7335_v30 = vpop.f32.mrb[38].mxu1 }
 0x135   : > { %11988 = vst [vmem:[#allocation54_spill] sm:$0xff] %v7333_v9  ;;  %11989 = vst [vmem:[#allocation55_spill] sm:$0xff] %v7335_v30  ;;  %v2119_v53 = vmax.f32 %v2118_v28, %v7323_v27  ;;  %v2150_v17 = vmax.f32 %v2149_v33, %v7333_v9  ;;  %v7339_v1 = vpop.f32.mrb[39].mxu0  ;;  %v7341_v16 = vpop.f32.mrb[39].mxu1 }
 0x136   : > { %11990 = vst [vmem:[#allocation56_spill] sm:$0xff] %v7339_v1  ;;  %11991 = vst [vmem:[#allocation57_spill] sm:$0xff] %v7341_v16 }
 0x137   : > { %v2120_v0 = vmax.f32 %v2119_v53, %v7329_v12  ;;  %v2151_v7 = vmax.f32 %v2150_v17, %v7339_v1 }
 0x138   : > { %v7345_v8 = vpop.f32.mrb[40].mxu0  ;;  %v7347_v26 = vpop.f32.mrb[40].mxu1 }
 0x139   : > { %11992 = vst [vmem:[#allocation58_spill] sm:$0xff] %v7345_v8  ;;  %11993 = vst [vmem:[#allocation59_spill] sm:$0xff] %v7347_v26  ;;  %v2152_v5 = vmax.f32 %v2151_v7, %v7335_v30  ;;  %v2183_v6 = vmax.f32 %v2182_v25, %v7345_v8  ;;  %v7351_v34 = vpop.f32.mrb[41].mxu0  ;;  %v7353_v28 = vpop.f32.mrb[41].mxu1 }
 0x13a   : > { %11994 = vst [vmem:[#allocation60_spill] sm:$0xff] %v7351_v34  ;;  %11995 = vst [vmem:[#allocation61_spill] sm:$0xff] %v7353_v28 }
 0x13b   : > { %v2153_v33 = vmax.f32 %v2152_v5, %v7341_v16  ;;  %v2184_v9 = vmax.f32 %v2183_v6, %v7351_v34 }
 0x13c   : > { %v7357_v3 = vpop.f32.mrb[42].mxu0  ;;  %v7359_v53 = vpop.f32.mrb[42].mxu1 }
 0x13d   : > { %11996 = vst [vmem:[#allocation62_spill] sm:$0xff] %v7357_v3  ;;  %11997 = vst [vmem:[#allocation63_spill] sm:$0xff] %v7359_v53  ;;  %v2185_v17 = vmax.f32 %v2184_v9, %v7347_v26  ;;  %v2216_v1 = vmax.f32 %v2215_v10, %v7357_v3  ;;  %v7363_v18 = vpop.f32.mrb[43].mxu0  ;;  %v7365_v7 = vpop.f32.mrb[43].mxu1 }
 0x13e   : > { %11998 = vst [vmem:[#allocation64_spill] sm:$0xff] %v7363_v18  ;;  %11999 = vst [vmem:[#allocation65_spill] sm:$0xff] %v7365_v7 }
 0x13f   : > { %v2186_v25 = vmax.f32 %v2185_v17, %v7353_v28  ;;  %v2217_v8 = vmax.f32 %v2216_v1, %v7363_v18 }
 0x140   : > { %v7369_v30 = vpop.f32.mrb[44].mxu0  ;;  %v7371_v5 = vpop.f32.mrb[44].mxu1 }
 0x141   : > { %12000 = vst [vmem:[#allocation66_spill] sm:$0xff] %v7369_v30  ;;  %12001 = vst [vmem:[#allocation67_spill] sm:$0xff] %v7371_v5  ;;  %v2218_v6 = vmax.f32 %v2217_v8, %v7359_v53  ;;  %v2249_v34 = vmax.f32 %v2248_v13, %v7369_v30  ;;  %v7375_v16 = vpop.f32.mrb[45].mxu0  ;;  %v7377_v9 = vpop.f32.mrb[45].mxu1 }
 0x142   : > { %12002 = vst [vmem:[#allocation68_spill] sm:$0xff] %v7375_v16  ;;  %12003 = vst [vmem:[#allocation69_spill] sm:$0xff] %v7377_v9 }
 0x143   : > { %v2219_v10 = vmax.f32 %v2218_v6, %v7365_v7  ;;  %v2250_v3 = vmax.f32 %v2249_v34, %v7375_v16 }
 0x144   : > { %v7381_v26 = vpop.f32.mrb[46].mxu0  ;;  %v7383_v17 = vpop.f32.mrb[46].mxu1 }
 0x145   : > { %12004 = vst [vmem:[#allocation70_spill] sm:$0xff] %v7381_v26  ;;  %12005 = vst [vmem:[#allocation71_spill] sm:$0xff] %v7383_v17  ;;  %v2251_v1 = vmax.f32 %v2250_v3, %v7371_v5  ;;  %v2282_v18 = vmax.f32 %v2281_v22, %v7381_v26  ;;  %v7387_v28 = vpop.f32.mrb[47].mxu0  ;;  %v7389_v8 = vpop.f32.mrb[47].mxu1 }
 0x146   : > { %12006 = vst [vmem:[#allocation72_spill] sm:$0xff] %v7387_v28  ;;  %12007 = vst [vmem:[#allocation73_spill] sm:$0xff] %v7389_v8 }
 0x147   : > { %v2252_v13 = vmax.f32 %v2251_v1, %v7377_v9  ;;  %v2283_v30 = vmax.f32 %v2282_v18, %v7387_v28 }
 0x148   : > { %v7393_v53 = vpop.f32.mrb[48].mxu0  ;;  %v7395_v6 = vpop.f32.mrb[48].mxu1 }
 0x149   : > { %v2284_v34 = vmax.f32 %v2283_v30, %v7383_v17  ;;  %v2055_v16 = vmax.f32 %v2054_v23, %v7393_v53  ;;  %v7399_v7 = vpop.f32.mrb[49].mxu0  ;;  %v7401_v3 = vpop.f32.mrb[49].mxu1 }
 0x14b   : > { %v2285_v22 = vmax.f32 %v2284_v34, %v7389_v8  ;;  %v2056_v26 = vmax.f32 %v2055_v16, %v7399_v7 }
 0x14c   : > { %v7405_v5 = vpop.f32.mrb[50].mxu0  ;;  %v7407_v1 = vpop.f32.mrb[50].mxu1 }
 0x14d   : > { %12008 = vst [vmem:[#allocation74_spill] sm:$0xff] %v7405_v5  ;;  %12009 = vst [vmem:[#allocation75_spill] sm:$0xff] %v7407_v1  ;;  %v2057_v18 = vmax.f32 %v2056_v26, %v7395_v6  ;;  %v2088_v28 = vmax.f32 %v2087_v59, %v7405_v5  ;;  %v7411_v9 = vpop.f32.mrb[51].mxu0  ;;  %v7413_v30 = vpop.f32.mrb[51].mxu1 }
 0x14e   : > { %12010 = vst [vmem:[#allocation76_spill] sm:$0xff] %v7411_v9  ;;  %12011 = vst [vmem:[#allocation77_spill] sm:$0xff] %v7413_v30 }
 0x14f   : > { %v2058_v23 = vmax.f32 %v2057_v18, %v7401_v3  ;;  %v2089_v17 = vmax.f32 %v2088_v28, %v7411_v9 }
 0x150   : > { %v7417_v60 = vpop.f32.mrb[52].mxu0  ;;  %v7419_v34 = vpop.f32.mrb[52].mxu1 }
 0x151   : > { %12012 = vst [vmem:[#allocation78_spill] sm:$0xff] %v7417_v60  ;;  %12013 = vst [vmem:[#allocation79_spill] sm:$0xff] %v7419_v34  ;;  %v2090_v16 = vmax.f32 %v2089_v17, %v7407_v1  ;;  %v2121_v8 = vmax.f32 %v2120_v0, %v7417_v60  ;;  %v7423_v2 = vpop.f32.mrb[53].mxu0  ;;  %v7425_v26 = vpop.f32.mrb[53].mxu1 }
 0x152   : > { %12014 = vst [vmem:[#allocation80_spill] sm:$0xff] %v7423_v2  ;;  %12015 = vst [vmem:[#allocation81_spill] sm:$0xff] %v7425_v26 }
 0x153   : > { %v2091_v59 = vmax.f32 %v2090_v16, %v7413_v30  ;;  %v2122_v62 = vmax.f32 %v2121_v8, %v7423_v2 }
 0x154   : > { %v7429_v63 = vpop.f32.mrb[54].mxu0  ;;  %v7431_v18 = vpop.f32.mrb[54].mxu1 }
 0x155   : > { %12016 = vst [vmem:[#allocation82_spill] sm:$0xff] %v7429_v63  ;;  %12017 = vst [vmem:[#allocation83_spill] sm:$0xff] %v7431_v18  ;;  %v2123_v28 = vmax.f32 %v2122_v62, %v7419_v34  ;;  %v2154_v61 = vmax.f32 %v2153_v33, %v7429_v63  ;;  %v7435_v12 = vpop.f32.mrb[55].mxu0  ;;  %v7437_v17 = vpop.f32.mrb[55].mxu1 }
 0x156   : > { %12018 = vst [vmem:[#allocation84_spill] sm:$0xff] %v7435_v12  ;;  %12019 = vst [vmem:[#allocation85_spill] sm:$0xff] %v7437_v17 }
 0x157   : > { %v2124_v0 = vmax.f32 %v2123_v28, %v7425_v26  ;;  %v2155_v60 = vmax.f32 %v2154_v61, %v7435_v12 }
 0x158   : > { %v7441_v27 = vpop.f32.mrb[56].mxu0  ;;  %v7443_v16 = vpop.f32.mrb[56].mxu1 }
 0x159   : > { %12020 = vst [vmem:[#allocation86_spill] sm:$0xff] %v7441_v27  ;;  %12021 = vst [vmem:[#allocation87_spill] sm:$0xff] %v7443_v16  ;;  %v2156_v8 = vmax.f32 %v2155_v60, %v7431_v18  ;;  %v2187_v2 = vmax.f32 %v2186_v25, %v7441_v27  ;;  %v7447_v32 = vpop.f32.mrb[57].mxu0  ;;  %v7449_v62 = vpop.f32.mrb[57].mxu1 }
 0x15a   : > { %12022 = vst [vmem:[#allocation88_spill] sm:$0xff] %v7447_v32  ;;  %12023 = vst [vmem:[#allocation89_spill] sm:$0xff] %v7449_v62 }
 0x15b   : > { %v2157_v33 = vmax.f32 %v2156_v8, %v7437_v17  ;;  %v2188_v63 = vmax.f32 %v2187_v2, %v7447_v32 }
 0x15c   : > { %v7453_v34 = vpop.f32.mrb[58].mxu0  ;;  %v7455_v28 = vpop.f32.mrb[58].mxu1 }
 0x15d   : > { %12024 = vst [vmem:[#allocation90_spill] sm:$0xff] %v7453_v34  ;;  %12025 = vst [vmem:[#allocation91_spill] sm:$0xff] %v7455_v28  ;;  %v2189_v61 = vmax.f32 %v2188_v63, %v7443_v16  ;;  %v2220_v12 = vmax.f32 %v2219_v10, %v7453_v34  ;;  %v7459_v26 = vpop.f32.mrb[59].mxu0  ;;  %v7461_v60 = vpop.f32.mrb[59].mxu1 }
 0x15e   : > { %12026 = vst [vmem:[#allocation92_spill] sm:$0xff] %v7459_v26  ;;  %12027 = vst [vmem:[#allocation93_spill] sm:$0xff] %v7461_v60 }
 0x15f   : > { %v2190_v25 = vmax.f32 %v2189_v61, %v7449_v62  ;;  %v2221_v27 = vmax.f32 %v2220_v12, %v7459_v26 }
 0x160   : > { %v7465_v18 = vpop.f32.mrb[60].mxu0  ;;  %v7467_v8 = vpop.f32.mrb[60].mxu1 }
 0x161   : > { %12028 = vst [vmem:[#allocation94_spill] sm:$0xff] %v7465_v18  ;;  %12029 = vst [vmem:[#allocation95_spill] sm:$0xff] %v7467_v8  ;;  %v2222_v2 = vmax.f32 %v2221_v27, %v7455_v28  ;;  %v2253_v32 = vmax.f32 %v2252_v13, %v7465_v18  ;;  %v7471_v17 = vpop.f32.mrb[61].mxu0  ;;  %v7473_v63 = vpop.f32.mrb[61].mxu1 }
 0x162   : > { %12030 = vst [vmem:[#allocation96_spill] sm:$0xff] %v7471_v17  ;;  %12031 = vst [vmem:[#allocation97_spill] sm:$0xff] %v7473_v63 }
 0x163   : > { %v2223_v10 = vmax.f32 %v2222_v2, %v7461_v60  ;;  %v2254_v34 = vmax.f32 %v2253_v32, %v7471_v17 }
 0x164   : > { %v7477_v16 = vpop.f32.mrb[62].mxu0  ;;  %v7479_v61 = vpop.f32.mrb[62].mxu1 }
 0x165   : > { %12032 = vst [vmem:[#allocation98_spill] sm:$0xff] %v7477_v16  ;;  %12033 = vst [vmem:[#allocation99_spill] sm:$0xff] %v7479_v61  ;;  %v2255_v12 = vmax.f32 %v2254_v34, %v7467_v8  ;;  %v2286_v26 = vmax.f32 %v2285_v22, %v7477_v16  ;;  %v7483_v62 = vpop.f32.mrb[63].mxu0  ;;  %v7485_v27 = vpop.f32.mrb[63].mxu1 }
 0x166   : > { %12034 = vst [vmem:[#allocation100_spill] sm:$0xff] %v7483_v62  ;;  %12035 = vst [vmem:[#allocation101_spill] sm:$0xff] %v7485_v27 }
 0x167   : > { %v2256_v13 = vmax.f32 %v2255_v12, %v7473_v63  ;;  %v2287_v18 = vmax.f32 %v2286_v26, %v7483_v62 }
 0x168   : > { %v7489_v28 = vpop.f32.mrb[64].mxu0  ;;  %v7491_v2 = vpop.f32.mrb[64].mxu1 }
 0x169   : > { %v2288_v32 = vmax.f32 %v2287_v18, %v7479_v61  ;;  %v2059_v17 = vmax.f32 %v2058_v23, %v7489_v28  ;;  %v7495_v60 = vpop.f32.mrb[65].mxu0  ;;  %v7497_v34 = vpop.f32.mrb[65].mxu1 }
 0x16b   : > { %v2289_v22 = vmax.f32 %v2288_v32, %v7485_v27  ;;  %v2060_v16 = vmax.f32 %v2059_v17, %v7495_v60 }
 0x16c   : > { %v7501_v8 = vpop.f32.mrb[66].mxu0  ;;  %v7503_v12 = vpop.f32.mrb[66].mxu1 }
 0x16d   : > { %12036 = vst [vmem:[#allocation102_spill] sm:$0xff] %v7501_v8  ;;  %12037 = vst [vmem:[#allocation103_spill] sm:$0xff] %v7503_v12  ;;  %v2061_v26 = vmax.f32 %v2060_v16, %v7491_v2  ;;  %v2092_v62 = vmax.f32 %v2091_v59, %v7501_v8  ;;  %v7507_v63 = vpop.f32.mrb[67].mxu0  ;;  %v7509_v18 = vpop.f32.mrb[67].mxu1 }
 0x16e   : > { %12038 = vst [vmem:[#allocation104_spill] sm:$0xff] %v7507_v63  ;;  %12039 = vst [vmem:[#allocation105_spill] sm:$0xff] %v7509_v18 }
 0x16f   : > { %v2062_v23 = vmax.f32 %v2061_v26, %v7497_v34  ;;  %v2093_v61 = vmax.f32 %v2092_v62, %v7507_v63 }
 0x170   : > { %v7513_v31 = vpop.f32.mrb[68].mxu0  ;;  %v7515_v32 = vpop.f32.mrb[68].mxu1 }
 0x171   : > { %12040 = vst [vmem:[#allocation106_spill] sm:$0xff] %v7513_v31  ;;  %12041 = vst [vmem:[#allocation107_spill] sm:$0xff] %v7515_v32  ;;  %v2094_v17 = vmax.f32 %v2093_v61, %v7503_v12  ;;  %v2125_v27 = vmax.f32 %v2124_v0, %v7513_v31  ;;  %v7519_v46 = vpop.f32.mrb[69].mxu0  ;;  %v7521_v16 = vpop.f32.mrb[69].mxu1 }
 0x172   : > { %12042 = vst [vmem:[#allocation108_spill] sm:$0xff] %v7519_v46  ;;  %12043 = vst [vmem:[#allocation109_spill] sm:$0xff] %v7521_v16 }
 0x173   : > { %v2095_v59 = vmax.f32 %v2094_v17, %v7509_v18  ;;  %v2126_v29 = vmax.f32 %v2125_v27, %v7519_v46 }
 0x174   : > { %v7525_v15 = vpop.f32.mrb[70].mxu0  ;;  %v7527_v26 = vpop.f32.mrb[70].mxu1 }
 0x175   : > { %12044 = vst [vmem:[#allocation110_spill] sm:$0xff] %v7525_v15  ;;  %12045 = vst [vmem:[#allocation111_spill] sm:$0xff] %v7527_v26  ;;  %v2127_v62 = vmax.f32 %v2126_v29, %v7515_v32  ;;  %v2158_v58 = vmax.f32 %v2157_v33, %v7525_v15  ;;  %v7531_v57 = vpop.f32.mrb[71].mxu0  ;;  %v7533_v61 = vpop.f32.mrb[71].mxu1 }
 0x176   : > { %12046 = vst [vmem:[#allocation112_spill] sm:$0xff] %v7531_v57  ;;  %12047 = vst [vmem:[#allocation113_spill] sm:$0xff] %v7533_v61 }
 0x177   : > { %v2128_v0 = vmax.f32 %v2127_v62, %v7521_v16  ;;  %v2159_v31 = vmax.f32 %v2158_v58, %v7531_v57 }
 0x178   : > { %v7537_v55 = vpop.f32.mrb[72].mxu0  ;;  %v7539_v17 = vpop.f32.mrb[72].mxu1 }
 0x179   : > { %12048 = vst [vmem:[#allocation114_spill] sm:$0xff] %v7537_v55  ;;  %12049 = vst [vmem:[#allocation115_spill] sm:$0xff] %v7539_v17  ;;  %v2160_v27 = vmax.f32 %v2159_v31, %v7527_v26  ;;  %v2191_v46 = vmax.f32 %v2190_v25, %v7537_v55  ;;  %v7543_v18 = vpop.f32.mrb[73].mxu0  ;;  %v7545_v29 = vpop.f32.mrb[73].mxu1 }
 0x17a   : > { %12050 = vst [vmem:[#allocation116_spill] sm:$0xff] %v7543_v18  ;;  %12051 = vst [vmem:[#allocation117_spill] sm:$0xff] %v7545_v29 }
 0x17b   : > { %v2161_v33 = vmax.f32 %v2160_v27, %v7533_v61  ;;  %v2192_v15 = vmax.f32 %v2191_v46, %v7543_v18 }
 0x17c   : > { %v7549_v32 = vpop.f32.mrb[74].mxu0  ;;  %v7551_v62 = vpop.f32.mrb[74].mxu1 }
 0x17d   : > { %12052 = vst [vmem:[#allocation118_spill] sm:$0xff] %v7549_v32  ;;  %12053 = vst [vmem:[#allocation119_spill] sm:$0xff] %v7551_v62  ;;  %v2193_v58 = vmax.f32 %v2192_v15, %v7539_v17  ;;  %v2224_v57 = vmax.f32 %v2223_v10, %v7549_v32  ;;  %v7555_v16 = vpop.f32.mrb[75].mxu0  ;;  %v7557_v31 = vpop.f32.mrb[75].mxu1 }
 0x17e   : > { %12054 = vst [vmem:[#allocation120_spill] sm:$0xff] %v7555_v16  ;;  %12055 = vst [vmem:[#allocation121_spill] sm:$0xff] %v7557_v31 }
 0x17f   : > { %v2194_v25 = vmax.f32 %v2193_v58, %v7545_v29  ;;  %v2225_v55 = vmax.f32 %v2224_v57, %v7555_v16 }
 0x180   : > { %v7561_v26 = vpop.f32.mrb[76].mxu0  ;;  %v7563_v27 = vpop.f32.mrb[76].mxu1 }
 0x181   : > { %12056 = vst [vmem:[#allocation122_spill] sm:$0xff] %v7561_v26  ;;  %12057 = vst [vmem:[#allocation123_spill] sm:$0xff] %v7563_v27  ;;  %v2226_v46 = vmax.f32 %v2225_v55, %v7551_v62  ;;  %v2257_v18 = vmax.f32 %v2256_v13, %v7561_v26  ;;  %v7567_v61 = vpop.f32.mrb[77].mxu0  ;;  %v7569_v15 = vpop.f32.mrb[77].mxu1 }
 0x182   : > { %12058 = vst [vmem:[#allocation124_spill] sm:$0xff] %v7567_v61  ;;  %12059 = vst [vmem:[#allocation125_spill] sm:$0xff] %v7569_v15 }
 0x183   : > { %v2227_v10 = vmax.f32 %v2226_v46, %v7557_v31  ;;  %v2258_v32 = vmax.f32 %v2257_v18, %v7567_v61 }
 0x184   : > { %v7573_v17 = vpop.f32.mrb[78].mxu0  ;;  %v7575_v58 = vpop.f32.mrb[78].mxu1 }
 0x185   : > { %12060 = vst [vmem:[#allocation126_spill] sm:$0xff] %v7573_v17  ;;  %12061 = vst [vmem:[#allocation127_spill] sm:$0xff] %v7575_v58  ;;  %v2259_v57 = vmax.f32 %v2258_v32, %v7563_v27  ;;  %v2290_v16 = vmax.f32 %v2289_v22, %v7573_v17  ;;  %v7579_v29 = vpop.f32.mrb[79].mxu0  ;;  %v7581_v55 = vpop.f32.mrb[79].mxu1 }
 0x186   : > { %12062 = vst [vmem:[#allocation128_spill] sm:$0xff] %v7579_v29  ;;  %12063 = vst [vmem:[#allocation129_spill] sm:$0xff] %v7581_v55 }
 0x187   : > { %v2260_v13 = vmax.f32 %v2259_v57, %v7569_v15  ;;  %v2291_v26 = vmax.f32 %v2290_v16, %v7579_v29 }
 0x188   : > { %v7585_v62 = vpop.f32.mrb[80].mxu0  ;;  %v7587_v46 = vpop.f32.mrb[80].mxu1 }
 0x189   : > { %v2292_v18 = vmax.f32 %v2291_v26, %v7575_v58  ;;  %v2063_v61 = vmax.f32 %v2062_v23, %v7585_v62  ;;  %v7591_v31 = vpop.f32.mrb[81].mxu0  ;;  %v7593_v32 = vpop.f32.mrb[81].mxu1 }
 0x18b   : > { %v2293_v22 = vmax.f32 %v2292_v18, %v7581_v55  ;;  %v2064_v17 = vmax.f32 %v2063_v61, %v7591_v31 }
 0x18c   : > { %v7597_v27 = vpop.f32.mrb[82].mxu0  ;;  %v7599_v57 = vpop.f32.mrb[82].mxu1 }
 0x18d   : > { %12064 = vst [vmem:[#allocation130_spill] sm:$0xff] %v7597_v27  ;;  %12065 = vst [vmem:[#allocation131_spill] sm:$0xff] %v7599_v57  ;;  %v2065_v16 = vmax.f32 %v2064_v17, %v7587_v46  ;;  %v2096_v29 = vmax.f32 %v2095_v59, %v7597_v27  ;;  %v7603_v15 = vpop.f32.mrb[83].mxu0  ;;  %v7605_v26 = vpop.f32.mrb[83].mxu1 }
 0x18e   : > { %12066 = vst [vmem:[#allocation132_spill] sm:$0xff] %v7603_v15  ;;  %12067 = vst [vmem:[#allocation133_spill] sm:$0xff] %v7605_v26 }
 0x18f   : > { %v2066_v23 = vmax.f32 %v2065_v16, %v7593_v32  ;;  %v2097_v58 = vmax.f32 %v2096_v29, %v7603_v15 }
 0x190   : > { %v7609_v56 = vpop.f32.mrb[84].mxu0  ;;  %v7611_v18 = vpop.f32.mrb[84].mxu1 }
 0x191   : > { %12068 = vst [vmem:[#allocation134_spill] sm:$0xff] %v7609_v56  ;;  %12069 = vst [vmem:[#allocation135_spill] sm:$0xff] %v7611_v18  ;;  %v2098_v61 = vmax.f32 %v2097_v58, %v7599_v57  ;;  %v2129_v55 = vmax.f32 %v2128_v0, %v7609_v56  ;;  %v7615_v12 = vpop.f32.mrb[85].mxu0  ;;  %v7617_v17 = vpop.f32.mrb[85].mxu1 }
 0x192   : > { %12070 = vst [vmem:[#allocation136_spill] sm:$0xff] %v7615_v12  ;;  %12071 = vst [vmem:[#allocation137_spill] sm:$0xff] %v7617_v17 }
 0x193   : > { %v2099_v59 = vmax.f32 %v2098_v61, %v7605_v26  ;;  %v2130_v27 = vmax.f32 %v2129_v55, %v7615_v12 }
 0x194   : > { %v7621_v54 = vpop.f32.mrb[86].mxu0  ;;  %v7623_v16 = vpop.f32.mrb[86].mxu1 }
 0x195   : > { %12072 = vst [vmem:[#allocation138_spill] sm:$0xff] %v7621_v54  ;;  %12073 = vst [vmem:[#allocation139_spill] sm:$0xff] %v7623_v16  ;;  %v2131_v29 = vmax.f32 %v2130_v27, %v7611_v18  ;;  %v2162_v15 = vmax.f32 %v2161_v33, %v7621_v54  ;;  %v7627_v63 = vpop.f32.mrb[87].mxu0  ;;  %v7629_v58 = vpop.f32.mrb[87].mxu1 }
 0x196   : > { %12074 = vst [vmem:[#allocation140_spill] sm:$0xff] %v7627_v63  ;;  %12075 = vst [vmem:[#allocation141_spill] sm:$0xff] %v7629_v58 }
 0x197   : > { %v2132_v0 = vmax.f32 %v2131_v29, %v7617_v17  ;;  %v2163_v56 = vmax.f32 %v2162_v15, %v7627_v63 }
 0x198   : > { %v7633_v57 = vpop.f32.mrb[88].mxu0  ;;  %v7635_v61 = vpop.f32.mrb[88].mxu1 }
 0x199   : > { %12076 = vst [vmem:[#allocation142_spill] sm:$0xff] %v7633_v57  ;;  %12077 = vst [vmem:[#allocation143_spill] sm:$0xff] %v7635_v61  ;;  %v2164_v55 = vmax.f32 %v2163_v56, %v7623_v16  ;;  %v2195_v12 = vmax.f32 %v2194_v25, %v7633_v57  ;;  %v7639_v26 = vpop.f32.mrb[89].mxu0  ;;  %v7641_v27 = vpop.f32.mrb[89].mxu1 }
 0x19a   : > { %12078 = vst [vmem:[#allocation144_spill] sm:$0xff] %v7639_v26  ;;  %12079 = vst [vmem:[#allocation145_spill] sm:$0xff] %v7641_v27 }
 0x19b   : > { %v2165_v33 = vmax.f32 %v2164_v55, %v7629_v58  ;;  %v2196_v54 = vmax.f32 %v2195_v12, %v7639_v26 }
 0x19c   : > { %v7645_v18 = vpop.f32.mrb[90].mxu0  ;;  %v7647_v29 = vpop.f32.mrb[90].mxu1 }
 0x19d   : > { %12080 = vst [vmem:[#allocation146_spill] sm:$0xff] %v7645_v18  ;;  %12081 = vst [vmem:[#allocation147_spill] sm:$0xff] %v7647_v29  ;;  %v2197_v15 = vmax.f32 %v2196_v54, %v7635_v61  ;;  %v2228_v63 = vmax.f32 %v2227_v10, %v7645_v18  ;;  %v7651_v17 = vpop.f32.mrb[91].mxu0  ;;  %v7653_v56 = vpop.f32.mrb[91].mxu1 }
 0x19e   : > { %12082 = vst [vmem:[#allocation148_spill] sm:$0xff] %v7651_v17  ;;  %12083 = vst [vmem:[#allocation149_spill] sm:$0xff] %v7653_v56 }
 0x19f   : > { %v2198_v25 = vmax.f32 %v2197_v15, %v7641_v27  ;;  %v2229_v57 = vmax.f32 %v2228_v63, %v7651_v17 }
 0x1a0   : > { %v7657_v16 = vpop.f32.mrb[92].mxu0  ;;  %v7659_v55 = vpop.f32.mrb[92].mxu1 }
 0x1a1   : > { %12084 = vst [vmem:[#allocation150_spill] sm:$0xff] %v7657_v16  ;;  %12085 = vst [vmem:[#allocation151_spill] sm:$0xff] %v7659_v55  ;;  %v2230_v12 = vmax.f32 %v2229_v57, %v7647_v29  ;;  %v2261_v26 = vmax.f32 %v2260_v13, %v7657_v16  ;;  %v7663_v58 = vpop.f32.mrb[93].mxu0  ;;  %v7665_v54 = vpop.f32.mrb[93].mxu1 }
 0x1a2   : > { %12086 = vst [vmem:[#allocation152_spill] sm:$0xff] %v7663_v58  ;;  %12087 = vst [vmem:[#allocation153_spill] sm:$0xff] %v7665_v54 }
 0x1a3   : > { %v2231_v10 = vmax.f32 %v2230_v12, %v7653_v56  ;;  %v2262_v18 = vmax.f32 %v2261_v26, %v7663_v58 }
 0x1a4   : > { %v7669_v61 = vpop.f32.mrb[94].mxu0  ;;  %v7671_v15 = vpop.f32.mrb[94].mxu1 }
 0x1a5   : > { %12088 = vst [vmem:[#allocation154_spill] sm:$0xff] %v7669_v61  ;;  %12089 = vst [vmem:[#allocation155_spill] sm:$0xff] %v7671_v15  ;;  %v2263_v63 = vmax.f32 %v2262_v18, %v7659_v55  ;;  %v2294_v17 = vmax.f32 %v2293_v22, %v7669_v61  ;;  %v7675_v27 = vpop.f32.mrb[95].mxu0  ;;  %v7677_v57 = vpop.f32.mrb[95].mxu1 }
 0x1a6   : > { %12090 = vst [vmem:[#allocation156_spill] sm:$0xff] %v7675_v27  ;;  %12091 = vst [vmem:[#allocation157_spill] sm:$0xff] %v7677_v57 }
 0x1a7   : > { %v2264_v13 = vmax.f32 %v2263_v63, %v7665_v54  ;;  %v2295_v16 = vmax.f32 %v2294_v17, %v7675_v27 }
 0x1a8   : > { %v7681_v29 = vpop.f32.mrb[96].mxu0  ;;  %v7683_v12 = vpop.f32.mrb[96].mxu1 }
 0x1a9   : > { %v2296_v26 = vmax.f32 %v2295_v16, %v7671_v15  ;;  %v2067_v58 = vmax.f32 %v2066_v23, %v7681_v29  ;;  %v7687_v56 = vpop.f32.mrb[97].mxu0  ;;  %v7689_v18 = vpop.f32.mrb[97].mxu1 }
 0x1ab   : > { %v2297_v22 = vmax.f32 %v2296_v26, %v7677_v57  ;;  %v2068_v61 = vmax.f32 %v2067_v58, %v7687_v56 }
 0x1ac   : > { %v7693_v55 = vpop.f32.mrb[98].mxu0  ;;  %v7695_v63 = vpop.f32.mrb[98].mxu1 }
 0x1ad   : > { %12092 = vst [vmem:[#allocation158_spill] sm:$0xff] %v7693_v55  ;;  %12093 = vst [vmem:[#allocation159_spill] sm:$0xff] %v7695_v63  ;;  %v2069_v17 = vmax.f32 %v2068_v61, %v7683_v12  ;;  %v2100_v27 = vmax.f32 %v2099_v59, %v7693_v55  ;;  %v7699_v54 = vpop.f32.mrb[99].mxu0  ;;  %v7701_v16 = vpop.f32.mrb[99].mxu1 }
 0x1ae   : > { %12094 = vst [vmem:[#allocation160_spill] sm:$0xff] %v7699_v54  ;;  %12095 = vst [vmem:[#allocation161_spill] sm:$0xff] %v7701_v16 }
 0x1af   : > { %v2070_v23 = vmax.f32 %v2069_v17, %v7689_v18  ;;  %v2101_v15 = vmax.f32 %v2100_v27, %v7699_v54 }
 0x1b0   : > { %v7705_v8 = vpop.f32.mrb[100].mxu0  ;;  %v7707_v26 = vpop.f32.mrb[100].mxu1 }
 0x1b1   : > { %12096 = vst [vmem:[#allocation162_spill] sm:$0xff] %v7705_v8  ;;  %12097 = vst [vmem:[#allocation163_spill] sm:$0xff] %v7707_v26  ;;  %v2102_v58 = vmax.f32 %v2101_v15, %v7695_v63  ;;  %v2133_v57 = vmax.f32 %v2132_v0, %v7705_v8  ;;  %v7711_v30 = vpop.f32.mrb[101].mxu0  ;;  %v7713_v61 = vpop.f32.mrb[101].mxu1 }
 0x1b2   : > { %12098 = vst [vmem:[#allocation164_spill] sm:$0xff] %v7711_v30  ;;  %12099 = vst [vmem:[#allocation165_spill] sm:$0xff] %v7713_v61 }
 0x1b3   : > { %v2103_v59 = vmax.f32 %v2102_v58, %v7701_v16  ;;  %v2134_v55 = vmax.f32 %v2133_v57, %v7711_v30 }
 0x1b4   : > { %v7717_v1 = vpop.f32.mrb[102].mxu0  ;;  %v7719_v17 = vpop.f32.mrb[102].mxu1 }
 0x1b5   : > { %12100 = vst [vmem:[#allocation166_spill] sm:$0xff] %v7717_v1  ;;  %12101 = vst [vmem:[#allocation167_spill] sm:$0xff] %v7719_v17  ;;  %v2135_v27 = vmax.f32 %v2134_v55, %v7707_v26  ;;  %v2166_v54 = vmax.f32 %v2165_v33, %v7717_v1  ;;  %v7723_v9 = vpop.f32.mrb[103].mxu0  ;;  %v7725_v15 = vpop.f32.mrb[103].mxu1 }
 0x1b6   : > { %12102 = vst [vmem:[#allocation168_spill] sm:$0xff] %v7723_v9  ;;  %12103 = vst [vmem:[#allocation169_spill] sm:$0xff] %v7725_v15 }
 0x1b7   : > { %v2136_v0 = vmax.f32 %v2135_v27, %v7713_v61  ;;  %v2167_v8 = vmax.f32 %v2166_v54, %v7723_v9 }
 0x1b8   : > { %v7729_v63 = vpop.f32.mrb[104].mxu0  ;;  %v7731_v58 = vpop.f32.mrb[104].mxu1 }
 0x1b9   : > { %12104 = vst [vmem:[#allocation170_spill] sm:$0xff] %v7729_v63  ;;  %12105 = vst [vmem:[#allocation171_spill] sm:$0xff] %v7731_v58  ;;  %v2168_v57 = vmax.f32 %v2167_v8, %v7719_v17  ;;  %v2199_v30 = vmax.f32 %v2198_v25, %v7729_v63  ;;  %v7735_v16 = vpop.f32.mrb[105].mxu0  ;;  %v7737_v55 = vpop.f32.mrb[105].mxu1 }
 0x1ba   : > { %12106 = vst [vmem:[#allocation172_spill] sm:$0xff] %v7735_v16  ;;  %12107 = vst [vmem:[#allocation173_spill] sm:$0xff] %v7737_v55 }
 0x1bb   : > { %v2169_v33 = vmax.f32 %v2168_v57, %v7725_v15  ;;  %v2200_v1 = vmax.f32 %v2199_v30, %v7735_v16 }
 0x1bc   : > { %v7741_v26 = vpop.f32.mrb[106].mxu0  ;;  %v7743_v27 = vpop.f32.mrb[106].mxu1 }
 0x1bd   : > { %12108 = vst [vmem:[#allocation174_spill] sm:$0xff] %v7741_v26  ;;  %12109 = vst [vmem:[#allocation175_spill] sm:$0xff] %v7743_v27  ;;  %v2201_v54 = vmax.f32 %v2200_v1, %v7731_v58  ;;  %v2232_v9 = vmax.f32 %v2231_v10, %v7741_v26  ;;  %v7747_v61 = vpop.f32.mrb[107].mxu0  ;;  %v7749_v8 = vpop.f32.mrb[107].mxu1 }
 0x1be   : > { %12110 = vst [vmem:[#allocation176_spill] sm:$0xff] %v7747_v61  ;;  %12111 = vst [vmem:[#allocation177_spill] sm:$0xff] %v7749_v8 }
 0x1bf   : > { %v2202_v25 = vmax.f32 %v2201_v54, %v7737_v55  ;;  %v2233_v63 = vmax.f32 %v2232_v9, %v7747_v61 }
 0x1c0   : > { %v7753_v17 = vpop.f32.mrb[108].mxu0  ;;  %v7755_v57 = vpop.f32.mrb[108].mxu1 }
 0x1c1   : > { %12112 = vst [vmem:[#allocation178_spill] sm:$0xff] %v7753_v17  ;;  %12113 = vst [vmem:[#allocation179_spill] sm:$0xff] %v7755_v57  ;;  %v2234_v30 = vmax.f32 %v2233_v63, %v7743_v27  ;;  %v2265_v16 = vmax.f32 %v2264_v13, %v7753_v17  ;;  %v7759_v15 = vpop.f32.mrb[109].mxu0  ;;  %v7761_v1 = vpop.f32.mrb[109].mxu1 }
 0x1c2   : > { %12114 = vst [vmem:[#allocation180_spill] sm:$0xff] %v7759_v15  ;;  %12115 = vst [vmem:[#allocation181_spill] sm:$0xff] %v7761_v1 }
 0x1c3   : > { %v2235_v10 = vmax.f32 %v2234_v30, %v7749_v8  ;;  %v2266_v26 = vmax.f32 %v2265_v16, %v7759_v15 }
 0x1c4   : > { %v7765_v58 = vpop.f32.mrb[110].mxu0  ;;  %v7767_v54 = vpop.f32.mrb[110].mxu1 }
 0x1c5   : > { %12116 = vst [vmem:[#allocation182_spill] sm:$0xff] %v7765_v58  ;;  %12117 = vst [vmem:[#allocation183_spill] sm:$0xff] %v7767_v54  ;;  %v2267_v9 = vmax.f32 %v2266_v26, %v7755_v57  ;;  %v2298_v61 = vmax.f32 %v2297_v22, %v7765_v58  ;;  %v7771_v55 = vpop.f32.mrb[111].mxu0  ;;  %v7773_v63 = vpop.f32.mrb[111].mxu1 }
 0x1c6   : > { %12118 = vst [vmem:[#allocation184_spill] sm:$0xff] %v7771_v55  ;;  %12119 = vst [vmem:[#allocation185_spill] sm:$0xff] %v7773_v63 }
 0x1c7   : > { %v2268_v13 = vmax.f32 %v2267_v9, %v7761_v1  ;;  %v2299_v17 = vmax.f32 %v2298_v61, %v7771_v55 }
 0x1c8   : > { %v7777_v27 = vpop.f32.mrb[112].mxu0  ;;  %v7779_v30 = vpop.f32.mrb[112].mxu1 }
 0x1c9   : > { %12120 = vst [vmem:[#allocation186_spill] sm:$0xff] %v7779_v30  ;;  %v7782_v16 = vmax.f32 %v2299_v17, %v7767_v54  ;;  %v2071_v15 = vmax.f32 %v2070_v23, %v7777_v27  ;;  %v7785_v26 = vpop.f32.mrb[113].mxu0  ;;  %v7787_v22 = vpop.f32.mrb[113].mxu1 }
 0x1ca   : > { %12121 = vst [vmem:[#allocation187_spill] sm:$0xff] %v7787_v22 }
 0x1cb   : > { %v2301_v58 = vmax.f32 %v7782_v16, %v7773_v63  ;;  %v2072_v9 = vmax.f32 %v2071_v15, %v7785_v26 }
 0x1cc   : > { %v7792_v1 = vpop.f32.mrb[114].mxu0  ;;  %v7794_v61 = vpop.f32.mrb[114].mxu1 }
 0x1cd   : > { %12122 = vst [vmem:[#allocation188_spill] sm:$0xff] %v7792_v1  ;;  %v2073_v55 = vmax.f32 %v2072_v9, %v7779_v30  ;;  %v2104_v17 = vmax.f32 %v2103_v59, %v7792_v1  ;;  %v7798_v54 = vpop.f32.mrb[115].mxu0  ;;  %v7800_v23 = vpop.f32.mrb[115].mxu1 }
 0x1ce   : > { %12123 = vst [vmem:[#allocation189_spill] sm:$0xff] %v7798_v54  ;;  %12124 = vst [vmem:[#allocation190_spill] sm:$0xff] %v7800_v23 }
 0x1cf   : > { %v2105_v57 = vmax.f32 %v2104_v17, %v7798_v54  ;;  %v2074_v8 = vmax.f32 %v2073_v55, %v7787_v22 }
 0x1d0   : > { %v7804_v5 = vpop.f32.mrb[116].mxu0  ;;  %v7806_v16 = vpop.f32.mrb[116].mxu1 }
 0x1d1   : > { %12125 = vst [vmem:[#allocation191_spill] sm:$0xff] %v7804_v5  ;;  %v2106_v15 = vmax.f32 %v2105_v57, %v7794_v61  ;;  %v2137_v63 = vmax.f32 %v2136_v0, %v7804_v5  ;;  %2075 = vmax.xlane.f32.xlu0 %v2074_v8  ;;  %v7810_v9 = vpop.f32.mrb[117].mxu0  ;;  %v7812_v59 = vpop.f32.mrb[117].mxu1 }
 0x1d2   : > { %12126 = vst [vmem:[#allocation192_spill] sm:$0xff] %v7810_v9  ;;  %12127 = vst [vmem:[#allocation193_spill] sm:$0xff] %v7812_v59 }
 0x1d3   : > { %v2138_v1 = vmax.f32 %v2137_v63, %v7810_v9  ;;  %v2107_v30 = vmax.f32 %v2106_v15, %v7800_v23 }
 0x1d4   : > { %v7816_v17 = vpop.f32.mrb[118].mxu0  ;;  %v7818_v55 = vpop.f32.mrb[118].mxu1 }
 0x1d5   : > { %12128 = vst [vmem:[#allocation194_spill] sm:$0xff] %v7816_v17  ;;  %v2139_v54 = vmax.f32 %v2138_v1, %v7806_v16  ;;  %v2170_v22 = vmax.f32 %v2169_v33, %v7816_v17  ;;  %2108 = vmax.xlane.f32.xlu0 %v2107_v30  ;;  %v7822_v57 = vpop.f32.mrb[119].mxu0  ;;  %v7824_v0 = vpop.f32.mrb[119].mxu1 }
 0x1d6   : > { %12129 = vst [vmem:[#allocation195_spill] sm:$0xff] %v7822_v57  ;;  %12130 = vst [vmem:[#allocation196_spill] sm:$0xff] %v7824_v0 }
 0x1d7   : > { %v2171_v8 = vmax.f32 %v2170_v22, %v7822_v57  ;;  %v2140_v5 = vmax.f32 %v2139_v54, %v7812_v59 }
 0x1d8   : > { %v7828_v63 = vpop.f32.mrb[120].mxu0  ;;  %v7830_v15 = vpop.f32.mrb[120].mxu1 }
 0x1d9   : > { %12131 = vst [vmem:[#allocation197_spill] sm:$0xff] %v7828_v63  ;;  %v2172_v9 = vmax.f32 %v2171_v8, %v7818_v55  ;;  %v2203_v23 = vmax.f32 %v2202_v25, %v7828_v63  ;;  %2141 = vmax.xlane.f32.xlu1 %v2140_v5  ;;  %v7834_v1 = vpop.f32.mrb[121].mxu0  ;;  %v7836_v33 = vpop.f32.mrb[121].mxu1 }
 0x1da   : > { %12132 = vst [vmem:[#allocation198_spill] sm:$0xff] %v7834_v1  ;;  %12133 = vst [vmem:[#allocation199_spill] sm:$0xff] %v7836_v33 }
 0x1db   : > { %v2204_v30 = vmax.f32 %v2203_v23, %v7834_v1  ;;  %v2173_v17 = vmax.f32 %v2172_v9, %v7824_v0 }
 0x1dc   : > { %v7840_v22 = vpop.f32.mrb[122].mxu0  ;;  %v7842_v54 = vpop.f32.mrb[122].mxu1 }
 0x1dd   : > { %12134 = vst [vmem:[#allocation200_spill] sm:$0xff] %v7840_v22  ;;  %v2205_v57 = vmax.f32 %v2204_v30, %v7830_v15  ;;  %v2236_v59 = vmax.f32 %v2235_v10, %v7840_v22  ;;  %2174 = vmax.xlane.f32.xlu1 %v2173_v17  ;;  %v7846_v8 = vpop.f32.mrb[123].mxu0  ;;  %v7848_v5 = vpop.f32.mrb[123].mxu1 }
 0x1de   : > { %12135 = vst [vmem:[#allocation201_spill] sm:$0xff] %v7846_v8 }
 0x1df   : > { %v2237_v25 = vmax.f32 %v2236_v59, %v7846_v8  ;;  %v2206_v63 = vmax.f32 %v2205_v57, %v7836_v33 }
 0x1e0   : > { %v7852_v23 = vpop.f32.mrb[124].mxu0  ;;  %v7854_v9 = vpop.f32.mrb[124].mxu1 }
 0x1e1   : > { %12136 = vst [vmem:[#allocation202_spill] sm:$0xff] %v7852_v23  ;;  %v2238_v1 = vmax.f32 %v2237_v25, %v7842_v54  ;;  %v2269_v0 = vmax.f32 %v2268_v13, %v7852_v23  ;;  %2207 = vmax.xlane.f32.xlu0 %v2206_v63  ;;  %v7858_v30 = vpop.f32.mrb[125].mxu0  ;;  %v7860_v10 = vpop.f32.mrb[125].mxu1 }
 0x1e2   : > { %12137 = vst [vmem:[#allocation203_spill] sm:$0xff] %v7858_v30 }
 0x1e3   : > { %v2270_v17 = vmax.f32 %v2269_v0, %v7858_v30  ;;  %v2239_v22 = vmax.f32 %v2238_v1, %v7848_v5 }
 0x1e4   : > { %v7864_v59 = vpop.f32.mrb[126].mxu0  ;;  %v7866_v57 = vpop.f32.mrb[126].mxu1 }
 0x1e5   : > { %v2271_v8 = vmax.f32 %v2270_v17, %v7854_v9  ;;  %v2302_v33 = vmax.f32 %v2301_v58, %v7864_v59  ;;  %2240 = vmax.xlane.f32.xlu1 %v2239_v22  ;;  %v7870_v25 = vpop.f32.mrb[127].mxu0  ;;  %v7872_v13 = vpop.f32.mrb[127].mxu1 }
 0x1e7   : > { %v2303_v63 = vmax.f32 %v2302_v33, %v7870_v25  ;;  %v2272_v23 = vmax.f32 %v2271_v8, %v7860_v10 }
 0x1e9   : > { %v2304_v0 = vmax.f32 %v2303_v63, %v7866_v57  ;;  %2273 = vmax.xlane.f32.xlu0 %v2272_v23 }
 0x1eb   : > { %v2305_v1 = vmax.f32 %v2304_v0, %v7872_v13 }
 0x1ed   : > { %2306 = vmax.xlane.f32.xlu1 %v2305_v1 }
 0x25e   : > { %v7878_v30 = vpop.xlane.xlu0 %2075 }
 0x25f   : > { %v2308_v58 = vsub.f32 %v6990_v41, %v7878_v30  ;;  %v2309_v22 = vsub.f32 %v6994_v43, %v7878_v30  ;;  %v2310_v17 = vsub.f32 %v6992_v42, %v7878_v30  ;;  %v2311_v33 = vsub.f32 %v6998_v44, %v7878_v30 }
 0x260   : > { %v2312_v23 = vsub.f32 %v7156_v37, %v7878_v30  ;;  %v2313_v1 = vsub.f32 %v7164_v39, %v7878_v30  ;;  %v2314_v43 = vsub.f32 %v7158_v38, %v7878_v30  ;;  %v2315_v44 = vsub.f32 %v7168_v40, %v7878_v30 }
 0x261   : > { %v2564_v8 = vmul.f32 1.442695, %v2308_v58  ;;  %v2566_v63 = vmul.f32 1.442695, %v2309_v22  ;;  %v2568_v0 = vmul.f32 1.442695, %v2310_v17  ;;  %v2316_v37 = vsub.f32 %v7297_v24, %v7878_v30 }
 0x262   : > { %v2570_v41 = vmul.f32 1.442695, %v2311_v33  ;;  %v2572_v42 = vmul.f32 1.442695, %v2312_v23  ;;  %v2574_v58 = vmul.f32 1.442695, %v2313_v1  ;;  %v2317_v39 = vsub.f32 %v7303_v20, %v7878_v30 }
 0x263   : > { %5958 = vpow2.f32 %v2564_v8  ;;  %v2576_v22 = vmul.f32 1.442695, %v2314_v43  ;;  %v2578_v17 = vmul.f32 1.442695, %v2315_v44  ;;  %v2318_v8 = vsub.f32 %v7299_v35, %v7878_v30 }
 0x264   : > { %5960 = vpow2.f32 %v2566_v63  ;;  %v2580_v40 = vmul.f32 1.442695, %v2316_v37  ;;  %v2319_v23 = vsub.f32 %v7305_v36, %v7878_v30  ;;  %v2582_v20 = vmul.f32 1.442695, %v2317_v39 }
 0x265   : > { %5962 = vpow2.f32 %v2568_v0  ;;  %v2584_v35 = vmul.f32 1.442695, %v2318_v8  ;;  %v2321_v44 = vsub.f32 %v7399_v7, %v7878_v30  ;;  %v7930_v8 = vpop.xlane.xlu0 %2108  ;;  %v2323_v7 = vsub.f32 %v7401_v3, %v7878_v30 }
 0x266   : > { %5964 = vpow2.f32 %v2570_v41  ;;  %v2320_v41 = vsub.f32 %v7393_v53, %v7878_v30  ;;  %v2586_v36 = vmul.f32 1.442695, %v2319_v23 }
 0x267   : > { %5966 = vpow2.f32 %v2572_v42 }
 0x268   : > { %5968 = vpow2.f32 %v2574_v58  ;;  %v2588_v53 = vmul.f32 1.442695, %v2320_v41 }
 0x269   : > { %5970 = vpow2.f32 %v2576_v22  ;;  %v2322_v22 = vsub.f32 %v7395_v6, %v7878_v30  ;;  %v2325_v6 = vsub.f32 %v7495_v60, %v7878_v30 }
 0x26a   : > { %5972 = vpow2.f32 %v2578_v17 }
 0x26b   : > { %5974 = vpow2.f32 %v2580_v40  ;;  %v2590_v40 = vmul.f32 1.442695, %v2321_v44  ;;  %v2326_v44 = vsub.f32 %v7491_v2, %v7878_v30  ;;  %v2343_v2 = vsub.f32 %v7017_v50, %v7930_v8 }
 0x26c   : > { %5976 = vpow2.f32 %v2582_v20 }
 0x26d   : > { %v7900_v33 = vpop.eup %5958  ;;  %5978 = vpow2.f32 %v2584_v35  ;;  %v2340_v35 = vsub.f32 %v7009_v47, %v7930_v8  ;;  %v2342_v47 = vsub.f32 %v7011_v48, %v7930_v8 }
 0x26e   : > { %v7902_v38 = vpop.eup %5960  ;;  %5980 = vpow2.f32 %v2586_v36 }
 0x26f   : > { %v3076_v63 = vadd.f32 %v7902_v38, %v7900_v33  ;;  %v7908_v24 = vpop.eup %5962  ;;  %5982 = vpow2.f32 %v2588_v53  ;;  %v2327_v53 = vsub.f32 %v7497_v34, %v7878_v30  ;;  %v2344_v34 = vsub.f32 %v7177_v51, %v7930_v8 }
 0x270   : > { %v7913_v1 = vpop.eup %5964  ;;  %5984 = vpow2.f32 %v2590_v40 }
 0x271   : > { %v3077_v0 = vadd.f32 %v7908_v24, %v3076_v63  ;;  %v7918_v42 = vpop.eup %5966  ;;  %v2324_v63 = vsub.f32 %v7489_v28, %v7878_v30  ;;  %v2341_v28 = vsub.f32 %v7013_v49, %v7930_v8 }
 0x272   : > { %v7923_v37 = vpop.eup %5968 }
 0x273   : > { %v3078_v43 = vadd.f32 %v7913_v1, %v3077_v0  ;;  %v7928_v17 = vpop.eup %5970  ;;  %v2592_v0 = vmul.f32 1.442695, %v2322_v22  ;;  %v2596_v36 = vmul.f32 1.442695, %v2324_v63  ;;  %v2598_v22 = vmul.f32 1.442695, %v2325_v6 }
 0x274   : > { %v7937_v20 = vpop.eup %5972  ;;  %v2630_v40 = vmul.f32 1.442695, %v2341_v28  ;;  %v2328_v63 = vsub.f32 %v7585_v62, %v7878_v30  ;;  %v2345_v62 = vsub.f32 %v7188_v4, %v7930_v8  ;;  %v2634_v28 = vmul.f32 1.442695, %v2343_v2 }
 0x275   : > { %v3079_v58 = vadd.f32 %v7918_v42, %v3078_v43  ;;  %v7944_v3 = vpop.eup %5974  ;;  %v2594_v43 = vmul.f32 1.442695, %v2323_v7  ;;  %5986 = vpow2.f32 %v2592_v0  ;;  %v2628_v7 = vmul.f32 1.442695, %v2340_v35 }
 0x276   : > { %12138 = vst [vmem:[#allocation204_spill] sm:$0xff] %v7944_v3  ;;  %v2632_v0 = vmul.f32 1.442695, %v2342_v47  ;;  %v2602_v35 = vmul.f32 1.442695, %v2327_v53  ;;  %v2331_v47 = vsub.f32 %v7593_v32, %v7878_v30  ;;  %v2332_v2 = vsub.f32 %v7681_v29, %v7878_v30 }
 0x277   : > { %v3080_v39 = vadd.f32 %v7923_v37, %v3079_v58  ;;  %v7951_v58 = vpop.eup %5976  ;;  %5988 = vpow2.f32 %v2594_v43  ;;  %v2604_v51 = vmul.f32 1.442695, %v2328_v63  ;;  %v2348_v32 = vsub.f32 %v7309_v14, %v7930_v8 }
 0x278   : > { %v7958_v49 = vpop.eup %5978  ;;  %5990 = vpow2.f32 %v2596_v36  ;;  %v2334_v14 = vsub.f32 %v7683_v12, %v7878_v30 }
 0x279   : > { %v3081_v23 = vadd.f32 %v7928_v17, %v3080_v39  ;;  %12139 = vst [vmem:[#allocation205_spill] sm:$0xff] %v7958_v49  ;;  %v7965_v6 = vpop.eup %5980  ;;  %5992 = vpow2.f32 %v2598_v22  ;;  %v2636_v22 = vmul.f32 1.442695, %v2344_v34  ;;  %v2610_v34 = vmul.f32 1.442695, %v2331_v47 }
 0x27a   : > { %12140 = vst [vmem:[#allocation206_spill] sm:$0xff] %v7965_v6  ;;  %5994 = vpow2.f32 %v2628_v7  ;;  %v7972_v43 = vpop.eup %5982  ;;  %v2638_v7 = vmul.f32 1.442695, %v2345_v62  ;;  %v2612_v62 = vmul.f32 1.442695, %v2332_v2 }
 0x27b   : > { %v3082_v41 = vadd.f32 %v7937_v20, %v3081_v23  ;;  %v2600_v23 = vmul.f32 1.442695, %v2326_v44  ;;  %12141 = vst [vmem:[#allocation207_spill] sm:$0xff] %v7972_v43  ;;  %5996 = vpow2.f32 %v2630_v40  ;;  %v2330_v44 = vsub.f32 %v7587_v46, %v7878_v30 }
 0x27c   : > { %v2347_v46 = vsub.f32 %v7192_v11, %v7930_v8  ;;  %v2333_v11 = vsub.f32 %v7687_v56, %v7878_v30 }
 0x27d   : > { %v3083_v60 = vadd.f32 %v7944_v3, %v3082_v41  ;;  %v2329_v41 = vsub.f32 %v7591_v31, %v7878_v30  ;;  %5998 = vpow2.f32 %v2600_v23  ;;  %v2346_v31 = vsub.f32 %v7179_v52, %v7930_v8 }
 0x27e   : > { %6000 = vpow2.f32 %v2632_v0  ;;  %v2608_v52 = vmul.f32 1.442695, %v2330_v44  ;;  %v2335_v44 = vsub.f32 %v7689_v18, %v7878_v30  ;;  %v2351_v18 = vsub.f32 %v7317_v21, %v7930_v8 }
 0x27f   : > { %v3084_v39 = vadd.f32 %v7951_v58, %v3083_v60  ;;  %v7979_v60 = vpop.eup %5984  ;;  %6002 = vpow2.f32 %v2602_v35  ;;  %v2606_v4 = vmul.f32 1.442695, %v2329_v41  ;;  %v2640_v23 = vmul.f32 1.442695, %v2346_v31 }
 0x280   : > { %12142 = vst [vmem:[#allocation208_spill] sm:$0xff] %v7979_v60  ;;  %6004 = vpow2.f32 %v2634_v28  ;;  %v2349_v41 = vsub.f32 %v7315_v45, %v7930_v8  ;;  %v2642_v35 = vmul.f32 1.442695, %v2347_v46  ;;  %v2644_v45 = vmul.f32 1.442695, %v2348_v32 }
 0x281   : > { %v3085_v48 = vadd.f32 %v7958_v49, %v3084_v39  ;;  %v7986_v39 = vpop.eup %5986  ;;  %6006 = vpow2.f32 %v2604_v51  ;;  %v2350_v51 = vsub.f32 %v7311_v19, %v7930_v8  ;;  %v2614_v31 = vmul.f32 1.442695, %v2333_v11 }
 0x282   : > { %12143 = vst [vmem:[#allocation209_spill] sm:$0xff] %v7986_v39  ;;  %v7993_v63 = vpop.eup %5988  ;;  %6008 = vpow2.f32 %v2636_v22  ;;  %v2646_v19 = vmul.f32 1.442695, %v2349_v41  ;;  %v2616_v46 = vmul.f32 1.442695, %v2334_v14 }
 0x283   : > { %v3086_v50 = vadd.f32 %v7965_v6, %v3085_v48  ;;  %12144 = vst [vmem:[#allocation210_spill] sm:$0xff] %v7993_v63  ;;  %v7997_v48 = vpop.eup %5990  ;;  %6010 = vpow2.f32 %v2606_v4  ;;  %v2336_v4 = vsub.f32 %v7777_v27, %v7878_v30  ;;  %v12149_v27 = vld [vmem:[#allocation74_spill] sm:$0xff]  ;;  %v2648_v21 = vmul.f32 1.442695, %v2350_v51 }
 0x284   : > { %12145 = vst [vmem:[#allocation211_spill] sm:$0xff] %v7997_v48  ;;  %v8002_v0 = vpop.eup %5992  ;;  %6012 = vpow2.f32 %v2638_v7  ;;  %v2352_v32 = vsub.f32 %v12149_v27, %v7930_v8  ;;  %v2618_v11 = vmul.f32 1.442695, %v2335_v44 }
 0x285   : > { %v3087_v36 = vadd.f32 %v7972_v43, %v3086_v50  ;;  %12146 = vst [vmem:[#allocation212_spill] sm:$0xff] %v8002_v0  ;;  %v8006_v50 = vpop.eup %5994  ;;  %6014 = vpow2.f32 %v2608_v52  ;;  %v2620_v51 = vmul.f32 1.442695, %v2336_v4 }
 0x286   : > { %v8011_v28 = vpop.eup %5996  ;;  %6016 = vpow2.f32 %v2640_v23 }
 0x287   : > { %v3088_v53 = vadd.f32 %v7979_v60, %v3087_v36  ;;  %v8017_v36 = vpop.eup %5998  ;;  %6018 = vpow2.f32 %v2610_v34  ;;  %v3109_v22 = vadd.f32 %v8011_v28, %v8006_v50 }
 0x288   : > { %12147 = vst [vmem:[#allocation213_spill] sm:$0xff] %v8017_v36  ;;  %v8022_v47 = vpop.eup %6000  ;;  %6020 = vpow2.f32 %v2642_v35  ;;  %v12151_v35 = vld [vmem:[#allocation186_spill] sm:$0xff] }
 0x289   : > { %v3089_v40 = vadd.f32 %v7986_v39, %v3088_v53  ;;  %v8028_v53 = vpop.eup %6002  ;;  %6022 = vpow2.f32 %v2612_v62  ;;  %v3110_v2 = vadd.f32 %v8022_v47, %v3109_v22  ;;  %v2338_v14 = vsub.f32 %v12151_v35, %v7878_v30  ;;  %v12154_v22 = vld [vmem:[#allocation187_spill] sm:$0xff] }
 0x28a   : > { %12148 = vst [vmem:[#allocation214_spill] sm:$0xff] %v8028_v53  ;;  %v8032_v52 = vpop.eup %6004  ;;  %6024 = vpow2.f32 %v2644_v45  ;;  %v2652_v35 = vmul.f32 1.442695, %v2352_v32 }
 0x28b   : > { %v3090_v29 = vadd.f32 %v7993_v63, %v3089_v40  ;;  %v2337_v40 = vsub.f32 %v7785_v26, %v7878_v30  ;;  %v8038_v23 = vpop.eup %6006  ;;  %6026 = vpow2.f32 %v2614_v31  ;;  %v12152_v26 = vld [vmem:[#allocation76_spill] sm:$0xff] }
 0x28c   : > { %12150 = vst [vmem:[#allocation74_spill] sm:$0xff] %v8038_v23  ;;  %v8042_v41 = vpop.eup %6008  ;;  %v2353_v62 = vsub.f32 %v12152_v26, %v7930_v8  ;;  %6028 = vpow2.f32 %v2646_v19  ;;  %v2624_v26 = vmul.f32 1.442695, %v2338_v14  ;;  %v12160_v14 = vld [vmem:[#allocation104_spill] sm:$0xff] }
 0x28d   : > { %v3091_v56 = vadd.f32 %v7997_v48, %v3090_v29  ;;  %v3111_v29 = vadd.f32 %v8032_v52, %v3110_v2  ;;  %v8048_v45 = vpop.eup %6010  ;;  %6030 = vpow2.f32 %v2616_v46  ;;  %v12155_v2 = vld [vmem:[#allocation75_spill] sm:$0xff] }
 0x28e   : > { %12153 = vst [vmem:[#allocation186_spill] sm:$0xff] %v8048_v45  ;;  %v2354_v27 = vsub.f32 %v12155_v2, %v7930_v8  ;;  %6032 = vpow2.f32 %v2648_v21  ;;  %v2654_v2 = vmul.f32 1.442695, %v2353_v62 }
 0x28f   : > { %v3092_v12 = vadd.f32 %v8002_v0, %v3091_v56  ;;  %v2650_v56 = vmul.f32 1.442695, %v2351_v18  ;;  %v3112_v31 = vadd.f32 %v8042_v41, %v3111_v29  ;;  %6034 = vpow2.f32 %v2618_v11  ;;  %v8064_v29 = vpop.xlane.xlu1 %2141 }
 0x290   : > { %v2622_v18 = vmul.f32 1.442695, %v2337_v40  ;;  %v12159_v40 = vld [vmem:[#allocation102_spill] sm:$0xff] }
 0x291   : > { %v3093_v7 = vadd.f32 %v8017_v36, %v3092_v12  ;;  %v8052_v12 = vpop.eup %6012  ;;  %6036 = vpow2.f32 %v2650_v56  ;;  %v2356_v11 = vsub.f32 %v12159_v40, %v7930_v8 }
 0x292   : > { %v8058_v19 = vpop.eup %6014  ;;  %v3113_v46 = vadd.f32 %v8052_v12, %v3112_v31  ;;  %6038 = vpow2.f32 %v2620_v51 }
 0x293   : > { %v3094_v34 = vadd.f32 %v8028_v53, %v3093_v7  ;;  %v2339_v7 = vsub.f32 %v12154_v22, %v7878_v30  ;;  %12156 = vst [vmem:[#allocation76_spill] sm:$0xff] %v8058_v19  ;;  %v12157_v30 = vld [vmem:[#allocation77_spill] sm:$0xff]  ;;  %6040 = vpow2.f32 %v2652_v35  ;;  %v12165_v35 = vld [vmem:[#allocation4_spill] sm:$0xff] }
 0x294   : > { %v2355_v22 = vsub.f32 %v12157_v30, %v7930_v8  ;;  %v2656_v30 = vmul.f32 1.442695, %v2354_v27  ;;  %6042 = vpow2.f32 %v2622_v18  ;;  %v2373_v27 = vsub.f32 %v12165_v35, %v8064_v29 }
 0x295   : > { %v3095_v44 = vadd.f32 %v8038_v23, %v3094_v34  ;;  %v8062_v34 = vpop.eup %6016  ;;  %v2626_v23 = vmul.f32 1.442695, %v2339_v7  ;;  %6044 = vpow2.f32 %v2654_v2 }
 0x296   : > { %v8068_v21 = vpop.eup %6018  ;;  %v2658_v36 = vmul.f32 1.442695, %v2355_v22  ;;  %6046 = vpow2.f32 %v2624_v26  ;;  %v12168_v22 = vld [vmem:[#allocation3_spill] sm:$0xff] }
 0x297   : > { %v3096_v4 = vadd.f32 %v8048_v45, %v3095_v44  ;;  %12158 = vst [vmem:[#allocation187_spill] sm:$0xff] %v8068_v21  ;;  %v3114_v44 = vadd.f32 %v8062_v34, %v3113_v46  ;;  %v8074_v31 = vpop.eup %6020  ;;  %v2357_v45 = vsub.f32 %v12160_v14, %v7930_v8  ;;  %v12164_v46 = vld [vmem:[#allocation103_spill] sm:$0xff]  ;;  %6048 = vpow2.f32 %v2656_v30  ;;  %v12172_v30 = vld [vmem:[#allocation5_spill] sm:$0xff] }
 0x298   : > { %v8078_v56 = vpop.eup %6022  ;;  %v2358_v7 = vsub.f32 %v12164_v46, %v7930_v8  ;;  %v2374_v2 = vsub.f32 %v12168_v22, %v8064_v29  ;;  %6050 = vpow2.f32 %v2626_v23 }
 0x299   : > { %v3097_v32 = vadd.f32 %v8058_v19, %v3096_v4  ;;  %12161 = vst [vmem:[#allocation75_spill] sm:$0xff] %v8078_v56  ;;  %v3115_v51 = vadd.f32 %v8074_v31, %v3114_v44  ;;  %v12162_v4 = vld [vmem:[#allocation2_spill] sm:$0xff]  ;;  %v8084_v19 = vpop.eup %6024  ;;  %v2662_v46 = vmul.f32 1.442695, %v2357_v45  ;;  %6052 = vpow2.f32 %v2658_v36 }
 0x29a   : > { %v2372_v40 = vsub.f32 %v12162_v4, %v8064_v29  ;;  %12163 = vst [vmem:[#allocation77_spill] sm:$0xff] %v8084_v19  ;;  %v8090_v14 = vpop.eup %6026  ;;  %v12167_v4 = vld [vmem:[#allocation105_spill] sm:$0xff]  ;;  %v2375_v45 = vsub.f32 %v12172_v30, %v8064_v29  ;;  %v2664_v23 = vmul.f32 1.442695, %v2358_v7  ;;  %v12176_v36 = vld [vmem:[#allocation26_spill] sm:$0xff] }
 0x29b   : > { %v3098_v62 = vadd.f32 %v8068_v21, %v3097_v32  ;;  %12166 = vst [vmem:[#allocation102_spill] sm:$0xff] %v8090_v14  ;;  %v2660_v32 = vmul.f32 1.442695, %v2356_v11  ;;  %v3116_v44 = vadd.f32 %v8084_v19, %v3115_v51  ;;  %v8094_v21 = vpop.eup %6028  ;;  %v2359_v48 = vsub.f32 %v12167_v4, %v7930_v8  ;;  %v12171_v51 = vld [vmem:[#allocation130_spill] sm:$0xff] }
 0x29c   : > { %v8100_v53 = vpop.eup %6030  ;;  %v2692_v11 = vmul.f32 1.442695, %v2372_v40  ;;  %v2694_v4 = vmul.f32 1.442695, %v2373_v27  ;;  %v12175_v40 = vld [vmem:[#allocation132_spill] sm:$0xff] }
 0x29d   : > { %v3099_v18 = vadd.f32 %v8078_v56, %v3098_v62  ;;  %12169 = vst [vmem:[#allocation104_spill] sm:$0xff] %v8100_v53  ;;  %v3117_v62 = vadd.f32 %v8094_v21, %v3116_v44  ;;  %v8104_v35 = vpop.eup %6032  ;;  %v2360_v56 = vsub.f32 %v12171_v51, %v7930_v8  ;;  %6054 = vpow2.f32 %v2660_v32 }
 0x29e   : > { %12170 = vst [vmem:[#allocation2_spill] sm:$0xff] %v8104_v35  ;;  %v8110_v0 = vpop.eup %6034  ;;  %6056 = vpow2.f32 %v2662_v46  ;;  %v2376_v51 = vsub.f32 %v12176_v36, %v8064_v29  ;;  %v2696_v39 = vmul.f32 1.442695, %v2374_v2  ;;  %v2666_v43 = vmul.f32 1.442695, %v2359_v48 }
 0x29f   : > { %v3100_v26 = vadd.f32 %v8090_v14, %v3099_v18  ;;  %12173 = vst [vmem:[#allocation103_spill] sm:$0xff] %v8110_v0  ;;  %v3118_v18 = vadd.f32 %v8104_v35, %v3117_v62  ;;  %v8114_v44 = vpop.eup %6036  ;;  %v2361_v14 = vsub.f32 %v12175_v40, %v7930_v8  ;;  %6058 = vpow2.f32 %v2692_v11  ;;  %v12180_v40 = vld [vmem:[#allocation28_spill] sm:$0xff]  ;;  %v12183_v11 = vld [vmem:[#allocation133_spill] sm:$0xff] }
 0x2a0   : > { %12174 = vst [vmem:[#allocation4_spill] sm:$0xff] %v8114_v44  ;;  %v8120_v30 = vpop.eup %6038  ;;  %v2377_v46 = vsub.f32 %v12180_v40, %v8064_v29  ;;  %6060 = vpow2.f32 %v2694_v4  ;;  %v2700_v40 = vmul.f32 1.442695, %v2376_v51 }
 0x2a1   : > { %v3101_v22 = vadd.f32 %v8100_v53, %v3100_v26  ;;  %12177 = vst [vmem:[#allocation105_spill] sm:$0xff] %v8120_v30  ;;  %v3119_v32 = vadd.f32 %v8114_v44, %v3118_v18  ;;  %v8124_v7 = vpop.eup %6040  ;;  %v12179_v26 = vld [vmem:[#allocation131_spill] sm:$0xff]  ;;  %v2698_v53 = vmul.f32 1.442695, %v2375_v45  ;;  %6062 = vpow2.f32 %v2664_v23 }
 0x2a2   : > { %12178 = vst [vmem:[#allocation3_spill] sm:$0xff] %v8124_v7  ;;  %v2362_v62 = vsub.f32 %v12179_v26, %v7930_v8  ;;  %v8130_v36 = vpop.eup %6042  ;;  %v12184_v26 = vld [vmem:[#allocation27_spill] sm:$0xff]  ;;  %6064 = vpow2.f32 %v2696_v39 }
 0x2a3   : > { %v3102_v27 = vadd.f32 %v8110_v0, %v3101_v22  ;;  %12181 = vst [vmem:[#allocation130_spill] sm:$0xff] %v8130_v36  ;;  %v2668_v22 = vmul.f32 1.442695, %v2360_v56  ;;  %v3120_v48 = vadd.f32 %v8124_v7, %v3119_v32  ;;  %v8134_v18 = vpop.eup %6044  ;;  %v2363_v0 = vsub.f32 %v12183_v11, %v7930_v8  ;;  %v12187_v32 = vld [vmem:[#allocation158_spill] sm:$0xff]  ;;  %v12188_v11 = vld [vmem:[#allocation29_spill] sm:$0xff] }
 0x2a4   : > { %12182 = vst [vmem:[#allocation5_spill] sm:$0xff] %v8134_v18  ;;  %v2378_v63 = vsub.f32 %v12184_v26, %v8064_v29  ;;  %v8140_v4 = vpop.eup %6046  ;;  %6066 = vpow2.f32 %v2666_v43  ;;  %v2379_v60 = vsub.f32 %v12188_v11, %v8064_v29  ;;  %v2702_v26 = vmul.f32 1.442695, %v2377_v46 }
 0x2a5   : > { %v3103_v2 = vadd.f32 %v8120_v30, %v3102_v27  ;;  %12185 = vst [vmem:[#allocation132_spill] sm:$0xff] %v8140_v4  ;;  %v2670_v27 = vmul.f32 1.442695, %v2361_v14  ;;  %v3121_v56 = vadd.f32 %v8134_v18, %v3120_v48  ;;  %v8144_v23 = vpop.eup %6048  ;;  %v2364_v30 = vsub.f32 %v12187_v32, %v7930_v8  ;;  %v12191_v48 = vld [vmem:[#allocation160_spill] sm:$0xff]  ;;  %v12192_v32 = vld [vmem:[#allocation50_spill] sm:$0xff] }
 0x2a6   : > { %12186 = vst [vmem:[#allocation26_spill] sm:$0xff] %v8144_v23  ;;  %6068 = vpow2.f32 %v2698_v53  ;;  %v8150_v39 = vpop.eup %6050  ;;  %v2380_v7 = vsub.f32 %v12192_v32, %v8064_v29  ;;  %v2704_v11 = vmul.f32 1.442695, %v2378_v63  ;;  %v12196_v63 = vld [vmem:[#allocation159_spill] sm:$0xff] }
 0x2a7   : > { %v3104_v45 = vadd.f32 %v8130_v36, %v3103_v2  ;;  %12189 = vst [vmem:[#allocation131_spill] sm:$0xff] %v8150_v39  ;;  %6070 = vpow2.f32 %v2668_v22  ;;  %v2672_v2 = vmul.f32 1.442695, %v2362_v62  ;;  %v3122_v43 = vadd.f32 %v8144_v23, %v3121_v56  ;;  %v8154_v14 = vpop.eup %6052  ;;  %v12195_v56 = vld [vmem:[#allocation52_spill] sm:$0xff] }
 0x2a8   : > { %12190 = vst [vmem:[#allocation28_spill] sm:$0xff] %v8154_v14  ;;  %v2365_v36 = vsub.f32 %v12191_v48, %v7930_v8  ;;  %6072 = vpow2.f32 %v2700_v40  ;;  %v8160_v53 = vpop.eup %6054  ;;  %v2706_v48 = vmul.f32 1.442695, %v2379_v60  ;;  %v2366_v40 = vsub.f32 %v12196_v63, %v7930_v8 }
 0x2a9   : > { %v3105_v51 = vadd.f32 %v8140_v4, %v3104_v45  ;;  %12193 = vst [vmem:[#allocation133_spill] sm:$0xff] %v8160_v53  ;;  %6074 = vpow2.f32 %v2670_v27  ;;  %v2674_v45 = vmul.f32 1.442695, %v2363_v0  ;;  %v3123_v62 = vadd.f32 %v8154_v14, %v3122_v43  ;;  %v8164_v22 = vpop.eup %6056 }
 0x2aa   : > { %12194 = vst [vmem:[#allocation27_spill] sm:$0xff] %v8164_v22  ;;  %v2381_v4 = vsub.f32 %v12195_v56, %v8064_v29  ;;  %6076 = vpow2.f32 %v2702_v26  ;;  %v8168_v23 = vpop.eup %6058  ;;  %v2676_v32 = vmul.f32 1.442695, %v2364_v30  ;;  %v2708_v60 = vmul.f32 1.442695, %v2380_v7 }
 0x2ab   : > { %v3106_v46 = vadd.f32 %v8150_v39, %v3105_v51  ;;  %6078 = vpow2.f32 %v2672_v2  ;;  %v3124_v27 = vadd.f32 %v8160_v53, %v3123_v62  ;;  %v8173_v0 = vpop.eup %6060  ;;  %v12197_v51 = vld [vmem:[#allocation161_spill] sm:$0xff]  ;;  %v12198_v39 = vld [vmem:[#allocation51_spill] sm:$0xff]  ;;  %v12200_v62 = vld [vmem:[#allocation188_spill] sm:$0xff] }
 0x2ac   : > { %v2367_v43 = vsub.f32 %v12197_v51, %v7930_v8  ;;  %v2382_v56 = vsub.f32 %v12198_v39, %v8064_v29  ;;  %6080 = vpow2.f32 %v2704_v11  ;;  %v8179_v26 = vpop.eup %6062  ;;  %v3142_v30 = vadd.f32 %v8173_v0, %v8168_v23  ;;  %v12201_v51 = vld [vmem:[#allocation53_spill] sm:$0xff] }
 0x2ad   : > { %3107 = vadd.xlane.f32.xlu0 %v3106_v46  ;;  %12199 = vst [vmem:[#allocation158_spill] sm:$0xff] %v8179_v26  ;;  %6082 = vpow2.f32 %v2674_v45  ;;  %v2678_v46 = vmul.f32 1.442695, %v2365_v36  ;;  %v3125_v63 = vadd.f32 %v8164_v22, %v3124_v27  ;;  %v8184_v2 = vpop.eup %6064  ;;  %v2368_v53 = vsub.f32 %v12200_v62, %v7930_v8  ;;  %v12203_v22 = vld [vmem:[#allocation189_spill] sm:$0xff]  ;;  %v12204_v62 = vld [vmem:[#allocation78_spill] sm:$0xff] }
 0x2ae   : > { %v2383_v14 = vsub.f32 %v12201_v51, %v8064_v29  ;;  %6084 = vpow2.f32 %v2706_v48  ;;  %v2710_v39 = vmul.f32 1.442695, %v2381_v4  ;;  %v8190_v7 = vpop.eup %6066  ;;  %v2680_v11 = vmul.f32 1.442695, %v2366_v40 }
 0x2af   : > { %12202 = vst [vmem:[#allocation29_spill] sm:$0xff] %v8190_v7  ;;  %6086 = vpow2.f32 %v2676_v32  ;;  %v3126_v36 = vadd.f32 %v8179_v26, %v3125_v63  ;;  %v3143_v45 = vadd.f32 %v8184_v2, %v3142_v30  ;;  %v2369_v18 = vsub.f32 %v12203_v22, %v7930_v8  ;;  %v12206_v22 = vld [vmem:[#allocation80_spill] sm:$0xff] }
 0x2b0   : > { %v8194_v27 = vpop.eup %6068  ;;  %v2384_v49 = vsub.f32 %v12204_v62, %v8064_v29  ;;  %6088 = vpow2.f32 %v2708_v60  ;;  %v2712_v51 = vmul.f32 1.442695, %v2382_v56  ;;  %v2682_v4 = vmul.f32 1.442695, %v2367_v43 }
 0x2b1   : > { %v8200_v48 = vpop.eup %6070  ;;  %6090 = vpow2.f32 %v2678_v46  ;;  %v3127_v40 = vadd.f32 %v8190_v7, %v3126_v36  ;;  %v3144_v32 = vadd.f32 %v8194_v27, %v3143_v45  ;;  %v2370_v30 = vsub.f32 %v7794_v61, %v7930_v8  ;;  %v12208_v45 = vld [vmem:[#allocation190_spill] sm:$0xff]  ;;  %v12209_v61 = vld [vmem:[#allocation79_spill] sm:$0xff] }
 0x2b2   : > { %12205 = vst [vmem:[#allocation160_spill] sm:$0xff] %v8200_v48  ;;  %v8204_v63 = vpop.eup %6072  ;;  %v2385_v26 = vsub.f32 %v12206_v22, %v8064_v29  ;;  %6092 = vpow2.f32 %v2710_v39  ;;  %v2714_v62 = vmul.f32 1.442695, %v2383_v14  ;;  %v2684_v56 = vmul.f32 1.442695, %v2368_v53 }
 0x2b3   : > { %v8210_v60 = vpop.eup %6074  ;;  %6094 = vpow2.f32 %v2680_v11  ;;  %v3128_v43 = vadd.f32 %v8200_v48, %v3127_v40  ;;  %v3145_v46 = vadd.f32 %v8204_v63, %v3144_v32  ;;  %v2371_v7 = vsub.f32 %v12208_v45, %v7930_v8  ;;  %v8226_v32 = vpop.xlane.xlu1 %2174  ;;  %v12212_v8 = vld [vmem:[#allocation81_spill] sm:$0xff] }
 0x2b4   : > { %12207 = vst [vmem:[#allocation50_spill] sm:$0xff] %v8210_v60  ;;  %v8214_v36 = vpop.eup %6076  ;;  %v2386_v3 = vsub.f32 %v12209_v61, %v8064_v29  ;;  %6096 = vpow2.f32 %v2712_v51  ;;  %v2716_v22 = vmul.f32 1.442695, %v2384_v49  ;;  %v2686_v14 = vmul.f32 1.442695, %v2369_v18  ;;  %v12214_v18 = vld [vmem:[#allocation106_spill] sm:$0xff] }
 0x2b5   : > { %v8220_v39 = vpop.eup %6078  ;;  %6098 = vpow2.f32 %v2682_v4  ;;  %v3129_v53 = vadd.f32 %v8210_v60, %v3128_v43  ;;  %v3146_v11 = vadd.f32 %v8214_v36, %v3145_v46  ;;  %v2688_v48 = vmul.f32 1.442695, %v2370_v30  ;;  %v12215_v30 = vld [vmem:[#allocation108_spill] sm:$0xff] }
 0x2b6   : > { %12210 = vst [vmem:[#allocation52_spill] sm:$0xff] %v8220_v39  ;;  %v8224_v40 = vpop.eup %6080  ;;  %v2387_v45 = vsub.f32 %v12212_v8, %v8064_v29  ;;  %6100 = vpow2.f32 %v2714_v62  ;;  %v2718_v61 = vmul.f32 1.442695, %v2385_v26  ;;  %v2388_v4 = vsub.f32 %v12214_v18, %v8064_v29 }
 0x2b7   : > { %12211 = vst [vmem:[#allocation159_spill] sm:$0xff] %v8224_v40  ;;  %v8230_v51 = vpop.eup %6082  ;;  %6102 = vpow2.f32 %v2684_v56  ;;  %v3130_v49 = vadd.f32 %v8220_v39, %v3129_v53  ;;  %v3147_v43 = vadd.f32 %v8224_v40, %v3146_v11  ;;  %v2690_v60 = vmul.f32 1.442695, %v2371_v7  ;;  %v12217_v53 = vld [vmem:[#allocation6_spill] sm:$0xff]  ;;  %v12219_v11 = vld [vmem:[#allocation107_spill] sm:$0xff] }
 0x2b8   : > { %12213 = vst [vmem:[#allocation161_spill] sm:$0xff] %v8230_v51  ;;  %v8236_v46 = vpop.eup %6084  ;;  %v2389_v6 = vsub.f32 %v12215_v30, %v8064_v29  ;;  %6104 = vpow2.f32 %v2716_v22  ;;  %v2720_v8 = vmul.f32 1.442695, %v2386_v3  ;;  %v2404_v18 = vsub.f32 %v12217_v53, %v8226_v32  ;;  %v12220_v22 = vld [vmem:[#allocation8_spill] sm:$0xff]  ;;  %v12223_v53 = vld [vmem:[#allocation109_spill] sm:$0xff] }
 0x2b9   : > { %v8240_v62 = vpop.eup %6086  ;;  %6106 = vpow2.f32 %v2686_v14  ;;  %v3131_v26 = vadd.f32 %v8230_v51, %v3130_v49  ;;  %v3148_v56 = vadd.f32 %v8236_v46, %v3147_v43  ;;  %v2390_v7 = vsub.f32 %v12219_v11, %v8064_v29 }
 0x2ba   : > { %12216 = vst [vmem:[#allocation51_spill] sm:$0xff] %v8240_v62  ;;  %v8246_v39 = vpop.eup %6088  ;;  %6108 = vpow2.f32 %v2718_v61  ;;  %v2722_v35 = vmul.f32 1.442695, %v2387_v45  ;;  %v2405_v3 = vsub.f32 %v12220_v22, %v8226_v32  ;;  %v2724_v49 = vmul.f32 1.442695, %v2388_v4  ;;  %v12224_v45 = vld [vmem:[#allocation7_spill] sm:$0xff] }
 0x2bb   : > { %12218 = vst [vmem:[#allocation188_spill] sm:$0xff] %v8246_v39  ;;  %v8252_v30 = vpop.eup %6090  ;;  %6110 = vpow2.f32 %v2688_v48  ;;  %v3132_v14 = vadd.f32 %v8240_v62, %v3131_v26  ;;  %v3149_v43 = vadd.f32 %v8246_v39, %v3148_v56  ;;  %v2391_v19 = vsub.f32 %v12223_v53, %v8064_v29  ;;  %v12227_v56 = vld [vmem:[#allocation134_spill] sm:$0xff] }
 0x2bc   : > { %12221 = vst [vmem:[#allocation53_spill] sm:$0xff] %v8252_v30  ;;  %v8256_v51 = vpop.eup %6092  ;;  %6112 = vpow2.f32 %v2720_v8  ;;  %v2726_v11 = vmul.f32 1.442695, %v2389_v6  ;;  %v2406_v61 = vsub.f32 %v12224_v45, %v8226_v32  ;;  %v2756_v4 = vmul.f32 1.442695, %v2404_v18  ;;  %v12228_v8 = vld [vmem:[#allocation9_spill] sm:$0xff] }
 0x2bd   : > { %12222 = vst [vmem:[#allocation189_spill] sm:$0xff] %v8256_v51  ;;  %v8262_v44 = vpop.eup %6094  ;;  %6114 = vpow2.f32 %v2690_v60  ;;  %v3133_v48 = vadd.f32 %v8252_v30, %v3132_v14  ;;  %v3150_v26 = vadd.f32 %v8256_v51, %v3149_v43  ;;  %v2392_v62 = vsub.f32 %v12227_v56, %v8064_v29  ;;  %v12231_v18 = vld [vmem:[#allocation136_spill] sm:$0xff] }
 0x2be   : > { %12225 = vst [vmem:[#allocation78_spill] sm:$0xff] %v8262_v44  ;;  %v8266_v22 = vpop.eup %6096  ;;  %6116 = vpow2.f32 %v2722_v35  ;;  %v2407_v6 = vsub.f32 %v12228_v8, %v8226_v32  ;;  %v2758_v53 = vmul.f32 1.442695, %v2405_v3  ;;  %v2728_v60 = vmul.f32 1.442695, %v2390_v7  ;;  %v12232_v35 = vld [vmem:[#allocation30_spill] sm:$0xff] }
 0x2bf   : > { %12226 = vst [vmem:[#allocation80_spill] sm:$0xff] %v8266_v22  ;;  %v8272_v39 = vpop.eup %6098  ;;  %v3134_v45 = vadd.f32 %v8262_v44, %v3133_v48  ;;  %6118 = vpow2.f32 %v2724_v49  ;;  %v3151_v14 = vadd.f32 %v8266_v22, %v3150_v26  ;;  %v2393_v30 = vsub.f32 %v12231_v18, %v8064_v29  ;;  %v12235_v48 = vld [vmem:[#allocation135_spill] sm:$0xff]  ;;  %v12236_v18 = vld [vmem:[#allocation32_spill] sm:$0xff] }
 0x2c0   : > { %12229 = vst [vmem:[#allocation190_spill] sm:$0xff] %v8272_v39  ;;  %v8276_v43 = vpop.eup %6100  ;;  %6120 = vpow2.f32 %v2726_v11  ;;  %v2408_v56 = vsub.f32 %v12232_v35, %v8226_v32  ;;  %v2760_v51 = vmul.f32 1.442695, %v2406_v61  ;;  %v2730_v40 = vmul.f32 1.442695, %v2391_v19 }
 0x2c1   : > { %12230 = vst [vmem:[#allocation79_spill] sm:$0xff] %v8276_v43  ;;  %v8282_v8 = vpop.eup %6102  ;;  %v3135_v3 = vadd.f32 %v8272_v39, %v3134_v45  ;;  %v3152_v49 = vadd.f32 %v8276_v43, %v3151_v14  ;;  %6122 = vpow2.f32 %v2756_v4  ;;  %v2394_v26 = vsub.f32 %v12235_v48, %v8064_v29  ;;  %v12239_v4 = vld [vmem:[#allocation137_spill] sm:$0xff]  ;;  %v12240_v48 = vld [vmem:[#allocation31_spill] sm:$0xff] }
 0x2c2   : > { %12233 = vst [vmem:[#allocation81_spill] sm:$0xff] %v8282_v8  ;;  %v8286_v7 = vpop.eup %6104  ;;  %v2409_v11 = vsub.f32 %v12236_v18, %v8226_v32  ;;  %6124 = vpow2.f32 %v2758_v53  ;;  %v2762_v44 = vmul.f32 1.442695, %v2407_v6  ;;  %v2732_v45 = vmul.f32 1.442695, %v2392_v62 }
 0x2c3   : > { %12234 = vst [vmem:[#allocation106_spill] sm:$0xff] %v8286_v7  ;;  %v8292_v35 = vpop.eup %6106  ;;  %v3136_v61 = vadd.f32 %v8282_v8, %v3135_v3  ;;  %6126 = vpow2.f32 %v2728_v60  ;;  %v3153_v19 = vadd.f32 %v8286_v7, %v3152_v49  ;;  %v2395_v39 = vsub.f32 %v12239_v4, %v8064_v29  ;;  %v12243_v49 = vld [vmem:[#allocation162_spill] sm:$0xff]  ;;  %v12244_v4 = vld [vmem:[#allocation33_spill] sm:$0xff] }
 0x2c4   : > { %12237 = vst [vmem:[#allocation108_spill] sm:$0xff] %v8292_v35  ;;  %v8296_v14 = vpop.eup %6108  ;;  %v2410_v22 = vsub.f32 %v12240_v48, %v8226_v32  ;;  %6128 = vpow2.f32 %v2760_v51  ;;  %v2764_v18 = vmul.f32 1.442695, %v2408_v56  ;;  %v2734_v3 = vmul.f32 1.442695, %v2393_v30 }
 0x2c5   : > { %12238 = vst [vmem:[#allocation6_spill] sm:$0xff] %v8296_v14  ;;  %v8302_v53 = vpop.eup %6110  ;;  %v3137_v6 = vadd.f32 %v8292_v35, %v3136_v61  ;;  %6130 = vpow2.f32 %v2730_v40  ;;  %v3154_v62 = vadd.f32 %v8296_v14, %v3153_v19  ;;  %v2396_v8 = vsub.f32 %v12243_v49, %v8064_v29  ;;  %v12247_v19 = vld [vmem:[#allocation164_spill] sm:$0xff]  ;;  %v12248_v49 = vld [vmem:[#allocation54_spill] sm:$0xff] }
 0x2c6   : > { %12241 = vst [vmem:[#allocation107_spill] sm:$0xff] %v8302_v53  ;;  %v8306_v60 = vpop.eup %6112  ;;  %v2411_v7 = vsub.f32 %v12244_v4, %v8226_v32  ;;  %6132 = vpow2.f32 %v2762_v44  ;;  %v2766_v48 = vmul.f32 1.442695, %v2409_v11  ;;  %v2736_v61 = vmul.f32 1.442695, %v2394_v26 }
 0x2c7   : > { %12242 = vst [vmem:[#allocation8_spill] sm:$0xff] %v8306_v60  ;;  %v8312_v51 = vpop.eup %6114  ;;  %v3138_v56 = vadd.f32 %v8302_v53, %v3137_v6  ;;  %6134 = vpow2.f32 %v2732_v45  ;;  %v3155_v40 = vadd.f32 %v8306_v60, %v3154_v62  ;;  %v2397_v35 = vsub.f32 %v12247_v19, %v8064_v29  ;;  %v12251_v62 = vld [vmem:[#allocation56_spill] sm:$0xff] }
 0x2c8   : > { %12245 = vst [vmem:[#allocation109_spill] sm:$0xff] %v8312_v51  ;;  %v8316_v30 = vpop.eup %6116  ;;  %v2412_v14 = vsub.f32 %v12248_v49, %v8226_v32  ;;  %6136 = vpow2.f32 %v2764_v18  ;;  %v2768_v4 = vmul.f32 1.442695, %v2410_v22  ;;  %v2738_v6 = vmul.f32 1.442695, %v2395_v39  ;;  %v12253_v22 = vld [vmem:[#allocation163_spill] sm:$0xff] }
 0x2c9   : > { %12246 = vst [vmem:[#allocation7_spill] sm:$0xff] %v8316_v30  ;;  %v8322_v44 = vpop.eup %6118  ;;  %v3139_v11 = vadd.f32 %v8312_v51, %v3138_v56  ;;  %6138 = vpow2.f32 %v2734_v3  ;;  %v3156_v26 = vadd.f32 %v8316_v30, %v3155_v40  ;;  %v2413_v53 = vsub.f32 %v12251_v62, %v8226_v32  ;;  %v12254_v56 = vld [vmem:[#allocation165_spill] sm:$0xff]  ;;  %v12255_v51 = vld [vmem:[#allocation55_spill] sm:$0xff] }
 0x2ca   : > { %12249 = vst [vmem:[#allocation134_spill] sm:$0xff] %v8322_v44  ;;  %v8326_v45 = vpop.eup %6120  ;;  %6140 = vpow2.f32 %v2766_v48  ;;  %v2770_v19 = vmul.f32 1.442695, %v2411_v7  ;;  %v2398_v18 = vsub.f32 %v12253_v22, %v8064_v29  ;;  %v2740_v49 = vmul.f32 1.442695, %v2396_v8 }
 0x2cb   : > { %12250 = vst [vmem:[#allocation9_spill] sm:$0xff] %v8326_v45  ;;  %v8330_v60 = vpop.eup %6122  ;;  %3140 = vadd.xlane.f32.xlu1 %v3139_v11  ;;  %6142 = vpow2.f32 %v2736_v61  ;;  %v3157_v3 = vadd.f32 %v8322_v44, %v3156_v26  ;;  %v2399_v40 = vsub.f32 %v12254_v56, %v8064_v29  ;;  %v2414_v62 = vsub.f32 %v12255_v51, %v8226_v32  ;;  %v12258_v26 = vld [vmem:[#allocation191_spill] sm:$0xff]  ;;  %v12259_v56 = vld [vmem:[#allocation57_spill] sm:$0xff] }
 0x2cc   : > { %12252 = vst [vmem:[#allocation136_spill] sm:$0xff] %v8330_v60  ;;  %v8335_v39 = vpop.eup %6124  ;;  %6144 = vpow2.f32 %v2768_v4  ;;  %v2772_v7 = vmul.f32 1.442695, %v2412_v14  ;;  %v2742_v11 = vmul.f32 1.442695, %v2397_v35  ;;  %v2400_v44 = vsub.f32 %v12258_v26, %v8064_v29  ;;  %v12263_v26 = vld [vmem:[#allocation82_spill] sm:$0xff] }
 0x2cd   : > { %v8341_v48 = vpop.eup %6126  ;;  %6146 = vpow2.f32 %v2738_v6  ;;  %v3158_v22 = vadd.f32 %v8326_v45, %v3157_v3  ;;  %v3175_v8 = vadd.f32 %v8335_v39, %v8330_v60  ;;  %v2415_v30 = vsub.f32 %v12259_v56, %v8226_v32  ;;  %v12262_v45 = vld [vmem:[#allocation192_spill] sm:$0xff] }
 0x2ce   : > { %12256 = vst [vmem:[#allocation30_spill] sm:$0xff] %v8341_v48  ;;  %v8346_v61 = vpop.eup %6128  ;;  %6148 = vpow2.f32 %v2770_v19  ;;  %v2774_v51 = vmul.f32 1.442695, %v2413_v53  ;;  %v2744_v4 = vmul.f32 1.442695, %v2398_v18  ;;  %v2401_v43 = vsub.f32 %v12262_v45, %v8064_v29  ;;  %v12266_v45 = vld [vmem:[#allocation84_spill] sm:$0xff] }
 0x2cf   : > { %12257 = vst [vmem:[#allocation135_spill] sm:$0xff] %v8346_v61  ;;  %v8352_v14 = vpop.eup %6130  ;;  %6150 = vpow2.f32 %v2740_v49  ;;  %v3159_v35 = vadd.f32 %v8341_v48, %v3158_v22  ;;  %v3176_v6 = vadd.f32 %v8346_v61, %v3175_v8  ;;  %v2416_v60 = vsub.f32 %v12263_v26, %v8226_v32 }
 0x2d0   : > { %12260 = vst [vmem:[#allocation32_spill] sm:$0xff] %v8352_v14  ;;  %v8356_v3 = vpop.eup %6132  ;;  %6152 = vpow2.f32 %v2772_v7  ;;  %v2776_v56 = vmul.f32 1.442695, %v2414_v62  ;;  %v2746_v53 = vmul.f32 1.442695, %v2399_v40  ;;  %v2402_v8 = vsub.f32 %v7806_v16, %v8064_v29  ;;  %v12270_v16 = vld [vmem:[#allocation83_spill] sm:$0xff] }
 0x2d1   : > { %12261 = vst [vmem:[#allocation137_spill] sm:$0xff] %v8356_v3  ;;  %v8362_v19 = vpop.eup %6134  ;;  %6154 = vpow2.f32 %v2742_v11  ;;  %v3160_v18 = vadd.f32 %v8352_v14, %v3159_v35  ;;  %v3177_v49 = vadd.f32 %v8356_v3, %v3176_v6  ;;  %v2417_v48 = vsub.f32 %v12266_v45, %v8226_v32  ;;  %v12269_v6 = vld [vmem:[#allocation193_spill] sm:$0xff] }
 0x2d2   : > { %12264 = vst [vmem:[#allocation31_spill] sm:$0xff] %v8362_v19  ;;  %v8366_v22 = vpop.eup %6136  ;;  %6156 = vpow2.f32 %v2774_v51  ;;  %v2778_v26 = vmul.f32 1.442695, %v2415_v30  ;;  %v2748_v62 = vmul.f32 1.442695, %v2400_v44  ;;  %v2403_v14 = vsub.f32 %v12269_v6, %v8064_v29  ;;  %v12273_v29 = vld [vmem:[#allocation85_spill] sm:$0xff] }
 0x2d3   : > { %12265 = vst [vmem:[#allocation162_spill] sm:$0xff] %v8366_v22  ;;  %v8372_v7 = vpop.eup %6138  ;;  %6158 = vpow2.f32 %v2744_v4  ;;  %v3161_v40 = vadd.f32 %v8362_v19, %v3160_v18  ;;  %v3178_v11 = vadd.f32 %v8366_v22, %v3177_v49  ;;  %v2418_v61 = vsub.f32 %v12270_v16, %v8226_v32  ;;  %v8388_v49 = vpop.xlane.xlu0 %2207 }
 0x2d4   : > { %12267 = vst [vmem:[#allocation33_spill] sm:$0xff] %v8372_v7  ;;  %v8376_v35 = vpop.eup %6140  ;;  %6160 = vpow2.f32 %v2776_v56  ;;  %v2780_v45 = vmul.f32 1.442695, %v2416_v60  ;;  %v2750_v30 = vmul.f32 1.442695, %v2401_v43  ;;  %v2419_v6 = vsub.f32 %v12273_v29, %v8226_v32  ;;  %v12275_v43 = vld [vmem:[#allocation110_spill] sm:$0xff] }
 0x2d5   : > { %12268 = vst [vmem:[#allocation164_spill] sm:$0xff] %v8376_v35  ;;  %v8382_v51 = vpop.eup %6142  ;;  %6162 = vpow2.f32 %v2746_v53  ;;  %v3162_v44 = vadd.f32 %v8372_v7, %v3161_v40  ;;  %v3179_v4 = vadd.f32 %v8376_v35, %v3178_v11  ;;  %v2752_v19 = vmul.f32 1.442695, %v2402_v8  ;;  %v12277_v8 = vld [vmem:[#allocation112_spill] sm:$0xff] }
 0x2d6   : > { %12271 = vst [vmem:[#allocation54_spill] sm:$0xff] %v8382_v51  ;;  %v8386_v18 = vpop.eup %6144  ;;  %6164 = vpow2.f32 %v2778_v26  ;;  %v2782_v16 = vmul.f32 1.442695, %v2417_v48  ;;  %v2420_v53 = vsub.f32 %v12275_v43, %v8226_v32  ;;  %v2754_v7 = vmul.f32 1.442695, %v2403_v14 }
 0x2d7   : > { %12272 = vst [vmem:[#allocation56_spill] sm:$0xff] %v8386_v18  ;;  %v8392_v56 = vpop.eup %6146  ;;  %6166 = vpow2.f32 %v2748_v62  ;;  %v3163_v60 = vadd.f32 %v8382_v51, %v3162_v44  ;;  %v3180_v40 = vadd.f32 %v8386_v18, %v3179_v4  ;;  %v2421_v22 = vsub.f32 %v12277_v8, %v8226_v32  ;;  %v12279_v44 = vld [vmem:[#allocation10_spill] sm:$0xff]  ;;  %v12281_v4 = vld [vmem:[#allocation111_spill] sm:$0xff] }
 0x2d8   : > { %12274 = vst [vmem:[#allocation163_spill] sm:$0xff] %v8392_v56  ;;  %v8398_v11 = vpop.eup %6148  ;;  %6168 = vpow2.f32 %v2780_v45  ;;  %v2784_v29 = vmul.f32 1.442695, %v2418_v61  ;;  %v2436_v43 = vsub.f32 %v12279_v44, %v8388_v49  ;;  %v2422_v14 = vsub.f32 %v12281_v4, %v8226_v32  ;;  %v12282_v45 = vld [vmem:[#allocation12_spill] sm:$0xff]  ;;  %v12285_v44 = vld [vmem:[#allocation113_spill] sm:$0xff] }
 0x2d9   : > { %12276 = vst [vmem:[#allocation165_spill] sm:$0xff] %v8398_v11  ;;  %v8402_v26 = vpop.eup %6150  ;;  %6170 = vpow2.f32 %v2750_v30  ;;  %v3164_v48 = vadd.f32 %v8392_v56, %v3163_v60  ;;  %v3181_v62 = vadd.f32 %v8398_v11, %v3180_v40  ;;  %v2786_v18 = vmul.f32 1.442695, %v2419_v6  ;;  %v12286_v6 = vld [vmem:[#allocation11_spill] sm:$0xff] }
 0x2da   : > { %12278 = vst [vmem:[#allocation55_spill] sm:$0xff] %v8402_v26  ;;  %v8408_v51 = vpop.eup %6152  ;;  %6172 = vpow2.f32 %v2782_v16  ;;  %v2437_v61 = vsub.f32 %v12282_v45, %v8388_v49  ;;  %v2788_v60 = vmul.f32 1.442695, %v2420_v53  ;;  %v2423_v11 = vsub.f32 %v12285_v44, %v8226_v32 }
 0x2db   : > { %12280 = vst [vmem:[#allocation191_spill] sm:$0xff] %v8408_v51  ;;  %v8414_v8 = vpop.eup %6154  ;;  %6174 = vpow2.f32 %v2752_v19  ;;  %v3165_v30 = vadd.f32 %v8402_v26, %v3164_v48  ;;  %v3182_v40 = vadd.f32 %v8408_v51, %v3181_v62  ;;  %v2790_v4 = vmul.f32 1.442695, %v2421_v22  ;;  %v12289_v62 = vld [vmem:[#allocation138_spill] sm:$0xff] }
 0x2dc   : > { %12283 = vst [vmem:[#allocation57_spill] sm:$0xff] %v8414_v8  ;;  %v8418_v56 = vpop.eup %6156  ;;  %6176 = vpow2.f32 %v2784_v29  ;;  %v2438_v16 = vsub.f32 %v12286_v6, %v8388_v49  ;;  %v2820_v53 = vmul.f32 1.442695, %v2436_v43  ;;  %v2424_v26 = vsub.f32 %v12289_v62, %v8226_v32  ;;  %v12290_v29 = vld [vmem:[#allocation13_spill] sm:$0xff]  ;;  %v12292_v43 = vld [vmem:[#allocation140_spill] sm:$0xff] }
 0x2dd   : > { %12284 = vst [vmem:[#allocation192_spill] sm:$0xff] %v8418_v56  ;;  %v8424_v35 = vpop.eup %6158  ;;  %6178 = vpow2.f32 %v2754_v7  ;;  %v3166_v19 = vadd.f32 %v8414_v8, %v3165_v30  ;;  %v3183_v48 = vadd.f32 %v8418_v56, %v3182_v40  ;;  %v2439_v22 = vsub.f32 %v12290_v29, %v8388_v49 }
 0x2de   : > { %12287 = vst [vmem:[#allocation82_spill] sm:$0xff] %v8424_v35  ;;  %v8428_v45 = vpop.eup %6160  ;;  %6180 = vpow2.f32 %v2786_v18  ;;  %v2822_v44 = vmul.f32 1.442695, %v2437_v61  ;;  %v2792_v7 = vmul.f32 1.442695, %v2422_v14  ;;  %v2425_v8 = vsub.f32 %v12292_v43, %v8226_v32  ;;  %v12293_v18 = vld [vmem:[#allocation34_spill] sm:$0xff] }
 0x2df   : > { %12288 = vst [vmem:[#allocation84_spill] sm:$0xff] %v8428_v45  ;;  %v8434_v51 = vpop.eup %6162  ;;  %v3167_v6 = vadd.f32 %v8424_v35, %v3166_v19  ;;  %6182 = vpow2.f32 %v2788_v60  ;;  %v3184_v30 = vadd.f32 %v8428_v45, %v3183_v48  ;;  %v2440_v62 = vsub.f32 %v12293_v18, %v8388_v49  ;;  %v12296_v19 = vld [vmem:[#allocation139_spill] sm:$0xff]  ;;  %v12297_v43 = vld [vmem:[#allocation36_spill] sm:$0xff] }
 0x2e0   : > { %12291 = vst [vmem:[#allocation193_spill] sm:$0xff] %v8434_v51  ;;  %v8438_v40 = vpop.eup %6164  ;;  %6184 = vpow2.f32 %v2790_v4  ;;  %v2824_v56 = vmul.f32 1.442695, %v2438_v16  ;;  %v2794_v3 = vmul.f32 1.442695, %v2423_v11  ;;  %v2426_v48 = vsub.f32 %v12296_v19, %v8226_v32  ;;  %v12301_v19 = vld [vmem:[#allocation35_spill] sm:$0xff] }
 0x2e1   : > { %v8444_v29 = vpop.eup %6166  ;;  %v3168_v61 = vadd.f32 %v8434_v51, %v3167_v6  ;;  %v3185_v60 = vadd.f32 %v8438_v40, %v3184_v30  ;;  %6186 = vpow2.f32 %v2820_v53  ;;  %v2441_v4 = vsub.f32 %v12297_v43, %v8388_v49  ;;  %v12300_v53 = vld [vmem:[#allocation141_spill] sm:$0xff] }
 0x2e2   : > { %12294 = vst [vmem:[#allocation83_spill] sm:$0xff] %v8444_v29  ;;  %v8448_v14 = vpop.eup %6168  ;;  %6188 = vpow2.f32 %v2822_v44  ;;  %v2826_v35 = vmul.f32 1.442695, %v2439_v22  ;;  %v2796_v6 = vmul.f32 1.442695, %v2424_v26  ;;  %v2427_v51 = vsub.f32 %v12300_v53, %v8226_v32  ;;  %v12305_v53 = vld [vmem:[#allocation37_spill] sm:$0xff] }
 0x2e3   : > { %12295 = vst [vmem:[#allocation85_spill] sm:$0xff] %v8448_v14  ;;  %v8454_v18 = vpop.eup %6170  ;;  %v3169_v16 = vadd.f32 %v8444_v29, %v3168_v61  ;;  %6190 = vpow2.f32 %v2792_v7  ;;  %v3186_v11 = vadd.f32 %v8448_v14, %v3185_v60  ;;  %v2442_v45 = vsub.f32 %v12301_v19, %v8388_v49  ;;  %v12304_v60 = vld [vmem:[#allocation166_spill] sm:$0xff] }
 0x2e4   : > { %12298 = vst [vmem:[#allocation110_spill] sm:$0xff] %v8454_v18  ;;  %v8458_v30 = vpop.eup %6172  ;;  %6192 = vpow2.f32 %v2824_v56  ;;  %v2828_v43 = vmul.f32 1.442695, %v2440_v62  ;;  %v2798_v61 = vmul.f32 1.442695, %v2425_v8  ;;  %v2428_v29 = vsub.f32 %v12304_v60, %v8226_v32  ;;  %v12309_v60 = vld [vmem:[#allocation58_spill] sm:$0xff] }
 0x2e5   : > { %12299 = vst [vmem:[#allocation112_spill] sm:$0xff] %v8458_v30  ;;  %v8464_v44 = vpop.eup %6174  ;;  %v3170_v22 = vadd.f32 %v8454_v18, %v3169_v16  ;;  %6194 = vpow2.f32 %v2794_v3  ;;  %v3187_v26 = vadd.f32 %v8458_v30, %v3186_v11  ;;  %v2443_v14 = vsub.f32 %v12305_v53, %v8388_v49  ;;  %v12308_v11 = vld [vmem:[#allocation168_spill] sm:$0xff] }
 0x2e6   : > { %12302 = vst [vmem:[#allocation10_spill] sm:$0xff] %v8464_v44  ;;  %v8468_v7 = vpop.eup %6176  ;;  %6196 = vpow2.f32 %v2826_v35  ;;  %v2830_v19 = vmul.f32 1.442695, %v2441_v4  ;;  %v2800_v16 = vmul.f32 1.442695, %v2426_v48  ;;  %v2429_v18 = vsub.f32 %v12308_v11, %v8226_v32 }
 0x2e7   : > { %12303 = vst [vmem:[#allocation111_spill] sm:$0xff] %v8468_v7  ;;  %v8474_v56 = vpop.eup %6178  ;;  %v3171_v62 = vadd.f32 %v8464_v44, %v3170_v22  ;;  %6198 = vpow2.f32 %v2796_v6  ;;  %v3188_v3 = vadd.f32 %v8468_v7, %v3187_v26  ;;  %v2444_v30 = vsub.f32 %v12309_v60, %v8388_v49  ;;  %v12312_v26 = vld [vmem:[#allocation60_spill] sm:$0xff] }
 0x2e8   : > { %12306 = vst [vmem:[#allocation12_spill] sm:$0xff] %v8474_v56  ;;  %v8478_v8 = vpop.eup %6180  ;;  %6200 = vpow2.f32 %v2828_v43  ;;  %v2832_v53 = vmul.f32 1.442695, %v2442_v45  ;;  %v2802_v22 = vmul.f32 1.442695, %v2427_v51  ;;  %v2445_v44 = vsub.f32 %v12312_v26, %v8388_v49  ;;  %v12314_v45 = vld [vmem:[#allocation167_spill] sm:$0xff] }
 0x2e9   : > { %12307 = vst [vmem:[#allocation113_spill] sm:$0xff] %v8478_v8  ;;  %v8484_v35 = vpop.eup %6182  ;;  %v3172_v4 = vadd.f32 %v8474_v56, %v3171_v62  ;;  %6202 = vpow2.f32 %v2798_v61  ;;  %v3189_v48 = vadd.f32 %v8478_v8, %v3188_v3  ;;  %v2834_v11 = vmul.f32 1.442695, %v2443_v14  ;;  %v12316_v62 = vld [vmem:[#allocation169_spill] sm:$0xff]  ;;  %v12317_v56 = vld [vmem:[#allocation59_spill] sm:$0xff] }
 0x2ea   : > { %12310 = vst [vmem:[#allocation11_spill] sm:$0xff] %v8484_v35  ;;  %v8488_v6 = vpop.eup %6184  ;;  %6204 = vpow2.f32 %v2830_v19  ;;  %v2430_v43 = vsub.f32 %v12314_v45, %v8226_v32  ;;  %v2804_v60 = vmul.f32 1.442695, %v2428_v29  ;;  %v2431_v3 = vsub.f32 %v12316_v62, %v8226_v32  ;;  %v12321_v62 = vld [vmem:[#allocation61_spill] sm:$0xff] }
 0x2eb   : > { %12311 = vst [vmem:[#allocation138_spill] sm:$0xff] %v8488_v6  ;;  %v8492_v7 = vpop.eup %6186  ;;  %3173 = vadd.xlane.f32.xlu0 %v3172_v4  ;;  %6206 = vpow2.f32 %v2800_v16  ;;  %v3190_v61 = vadd.f32 %v8484_v35, %v3189_v48  ;;  %v2446_v26 = vsub.f32 %v12317_v56, %v8388_v49  ;;  %v2836_v14 = vmul.f32 1.442695, %v2444_v30  ;;  %v12320_v48 = vld [vmem:[#allocation194_spill] sm:$0xff] }
 0x2ec   : > { %12313 = vst [vmem:[#allocation13_spill] sm:$0xff] %v8492_v7  ;;  %v8497_v51 = vpop.eup %6188  ;;  %6208 = vpow2.f32 %v2832_v53  ;;  %v2806_v4 = vmul.f32 1.442695, %v2429_v18  ;;  %v2432_v35 = vsub.f32 %v12320_v48, %v8226_v32  ;;  %v2447_v8 = vsub.f32 %v12321_v62, %v8388_v49  ;;  %v12325_v48 = vld [vmem:[#allocation86_spill] sm:$0xff] }
 0x2ed   : > { %12315 = vst [vmem:[#allocation140_spill] sm:$0xff] %v8497_v51  ;;  %v8503_v19 = vpop.eup %6190  ;;  %6210 = vpow2.f32 %v2802_v22  ;;  %v3191_v45 = vadd.f32 %v8488_v6, %v3190_v61  ;;  %v3208_v29 = vadd.f32 %v8497_v51, %v8492_v7  ;;  %v2838_v56 = vmul.f32 1.442695, %v2445_v44  ;;  %v12324_v6 = vld [vmem:[#allocation195_spill] sm:$0xff] }
 0x2ee   : > { %12318 = vst [vmem:[#allocation34_spill] sm:$0xff] %v8503_v19  ;;  %v8508_v16 = vpop.eup %6192  ;;  %6212 = vpow2.f32 %v2834_v11  ;;  %v2808_v53 = vmul.f32 1.442695, %v2430_v43  ;;  %v2433_v7 = vsub.f32 %v12324_v6, %v8226_v32  ;;  %v2448_v51 = vsub.f32 %v12325_v48, %v8388_v49  ;;  %v12328_v6 = vld [vmem:[#allocation88_spill] sm:$0xff] }
 0x2ef   : > { %12319 = vst [vmem:[#allocation139_spill] sm:$0xff] %v8508_v16  ;;  %v8514_v30 = vpop.eup %6194  ;;  %6214 = vpow2.f32 %v2804_v60  ;;  %v3192_v18 = vadd.f32 %v8503_v19, %v3191_v45  ;;  %v3209_v22 = vadd.f32 %v8508_v16, %v3208_v29  ;;  %v2840_v62 = vmul.f32 1.442695, %v2446_v26 }
 0x2f0   : > { %12322 = vst [vmem:[#allocation36_spill] sm:$0xff] %v8514_v30  ;;  %v8518_v61 = vpop.eup %6196  ;;  %6216 = vpow2.f32 %v2836_v14  ;;  %v2810_v44 = vmul.f32 1.442695, %v2431_v3  ;;  %v2434_v29 = vsub.f32 %v7818_v55, %v8226_v32  ;;  %v2449_v19 = vsub.f32 %v12328_v6, %v8388_v49  ;;  %v12332_v55 = vld [vmem:[#allocation87_spill] sm:$0xff] }
 0x2f1   : > { %12323 = vst [vmem:[#allocation141_spill] sm:$0xff] %v8518_v61  ;;  %v8524_v11 = vpop.eup %6198  ;;  %6218 = vpow2.f32 %v2806_v4  ;;  %v3193_v43 = vadd.f32 %v8514_v30, %v3192_v18  ;;  %v3210_v60 = vadd.f32 %v8518_v61, %v3209_v22  ;;  %v2842_v48 = vmul.f32 1.442695, %v2447_v8  ;;  %v12331_v22 = vld [vmem:[#allocation196_spill] sm:$0xff] }
 0x2f2   : > { %12326 = vst [vmem:[#allocation35_spill] sm:$0xff] %v8524_v11  ;;  %v8528_v45 = vpop.eup %6200  ;;  %6220 = vpow2.f32 %v2838_v56  ;;  %v2812_v26 = vmul.f32 1.442695, %v2432_v35  ;;  %v2435_v30 = vsub.f32 %v12331_v22, %v8226_v32  ;;  %v2450_v16 = vsub.f32 %v12332_v55, %v8388_v49  ;;  %v12335_v32 = vld [vmem:[#allocation89_spill] sm:$0xff] }
 0x2f3   : > { %12327 = vst [vmem:[#allocation166_spill] sm:$0xff] %v8528_v45  ;;  %v8534_v14 = vpop.eup %6202  ;;  %6222 = vpow2.f32 %v2808_v53  ;;  %v3194_v3 = vadd.f32 %v8524_v11, %v3193_v43  ;;  %v3211_v4 = vadd.f32 %v8528_v45, %v3210_v60  ;;  %v2844_v6 = vmul.f32 1.442695, %v2448_v51  ;;  %v8550_v60 = vpop.xlane.xlu1 %2240 }
 0x2f4   : > { %12329 = vst [vmem:[#allocation37_spill] sm:$0xff] %v8534_v14  ;;  %v8538_v18 = vpop.eup %6204  ;;  %6224 = vpow2.f32 %v2840_v62  ;;  %v2814_v8 = vmul.f32 1.442695, %v2433_v7  ;;  %v2816_v11 = vmul.f32 1.442695, %v2434_v29  ;;  %v2451_v22 = vsub.f32 %v12335_v32, %v8388_v49  ;;  %v12337_v7 = vld [vmem:[#allocation114_spill] sm:$0xff] }
 0x2f5   : > { %12330 = vst [vmem:[#allocation168_spill] sm:$0xff] %v8538_v18  ;;  %v8544_v56 = vpop.eup %6206  ;;  %6226 = vpow2.f32 %v2810_v44  ;;  %v3195_v35 = vadd.f32 %v8534_v14, %v3194_v3  ;;  %v3212_v53 = vadd.f32 %v8538_v18, %v3211_v4  ;;  %v2846_v55 = vmul.f32 1.442695, %v2449_v19  ;;  %v12339_v29 = vld [vmem:[#allocation116_spill] sm:$0xff] }
 0x2f6   : > { %12333 = vst [vmem:[#allocation58_spill] sm:$0xff] %v8544_v56  ;;  %v8548_v43 = vpop.eup %6208  ;;  %6228 = vpow2.f32 %v2842_v48  ;;  %v2452_v44 = vsub.f32 %v12337_v7, %v8388_v49  ;;  %v2818_v14 = vmul.f32 1.442695, %v2435_v30  ;;  %v2453_v45 = vsub.f32 %v12339_v29, %v8388_v49 }
 0x2f7   : > { %12334 = vst [vmem:[#allocation60_spill] sm:$0xff] %v8548_v43  ;;  %v8554_v62 = vpop.eup %6210  ;;  %6230 = vpow2.f32 %v2812_v26  ;;  %v3196_v51 = vadd.f32 %v8544_v56, %v3195_v35  ;;  %v3213_v3 = vadd.f32 %v8548_v43, %v3212_v53  ;;  %v2848_v32 = vmul.f32 1.442695, %v2450_v16  ;;  %v12341_v35 = vld [vmem:[#allocation14_spill] sm:$0xff]  ;;  %v12343_v53 = vld [vmem:[#allocation115_spill] sm:$0xff] }
 0x2f8   : > { %12336 = vst [vmem:[#allocation167_spill] sm:$0xff] %v8554_v62  ;;  %v8560_v4 = vpop.eup %6212  ;;  %6232 = vpow2.f32 %v2844_v6  ;;  %v2468_v7 = vsub.f32 %v12341_v35, %v8550_v60  ;;  %v2454_v30 = vsub.f32 %v12343_v53, %v8388_v49  ;;  %v2850_v43 = vmul.f32 1.442695, %v2451_v22  ;;  %v12344_v6 = vld [vmem:[#allocation16_spill] sm:$0xff]  ;;  %v12347_v35 = vld [vmem:[#allocation117_spill] sm:$0xff]  ;;  %v12348_v22 = vld [vmem:[#allocation15_spill] sm:$0xff] }
 0x2f9   : > { %12338 = vst [vmem:[#allocation169_spill] sm:$0xff] %v8560_v4  ;;  %v8564_v48 = vpop.eup %6214  ;;  %6234 = vpow2.f32 %v2814_v8  ;;  %v3197_v19 = vadd.f32 %v8554_v62, %v3196_v51  ;;  %v3214_v26 = vadd.f32 %v8560_v4, %v3213_v3  ;;  %v2469_v16 = vsub.f32 %v12344_v6, %v8550_v60 }
 0x2fa   : > { %12340 = vst [vmem:[#allocation59_spill] sm:$0xff] %v8564_v48  ;;  %v8570_v56 = vpop.eup %6216  ;;  %6236 = vpow2.f32 %v2846_v55  ;;  %v2852_v51 = vmul.f32 1.442695, %v2452_v44  ;;  %v2455_v4 = vsub.f32 %v12347_v35, %v8388_v49  ;;  %v2854_v53 = vmul.f32 1.442695, %v2453_v45 }
 0x2fb   : > { %12342 = vst [vmem:[#allocation194_spill] sm:$0xff] %v8570_v56  ;;  %v8576_v29 = vpop.eup %6218  ;;  %6238 = vpow2.f32 %v2816_v11  ;;  %v3198_v8 = vadd.f32 %v8564_v48, %v3197_v19  ;;  %v3215_v3 = vadd.f32 %v8570_v56, %v3214_v26  ;;  %v2470_v55 = vsub.f32 %v12348_v22, %v8550_v60  ;;  %v12351_v26 = vld [vmem:[#allocation142_spill] sm:$0xff] }
 0x2fc   : > { %12345 = vst [vmem:[#allocation61_spill] sm:$0xff] %v8576_v29  ;;  %v8580_v62 = vpop.eup %6220  ;;  %6240 = vpow2.f32 %v2848_v32  ;;  %v2884_v44 = vmul.f32 1.442695, %v2468_v7  ;;  %v2456_v48 = vsub.f32 %v12351_v26, %v8388_v49  ;;  %v12352_v32 = vld [vmem:[#allocation17_spill] sm:$0xff]  ;;  %v2886_v35 = vmul.f32 1.442695, %v2469_v16 }
 0x2fd   : > { %12346 = vst [vmem:[#allocation195_spill] sm:$0xff] %v8580_v62  ;;  %v8586_v18 = vpop.eup %6222  ;;  %6242 = vpow2.f32 %v2818_v14  ;;  %v3199_v11 = vadd.f32 %v8576_v29, %v3198_v8  ;;  %v3216_v19 = vadd.f32 %v8580_v62, %v3215_v3  ;;  %v2471_v45 = vsub.f32 %v12352_v32, %v8550_v60  ;;  %v12354_v7 = vld [vmem:[#allocation144_spill] sm:$0xff] }
 0x2fe   : > { %12349 = vst [vmem:[#allocation86_spill] sm:$0xff] %v8586_v18  ;;  %v8590_v6 = vpop.eup %6224  ;;  %6244 = vpow2.f32 %v2850_v43  ;;  %v2856_v14 = vmul.f32 1.442695, %v2454_v30  ;;  %v2457_v29 = vsub.f32 %v12354_v7, %v8388_v49  ;;  %v12355_v43 = vld [vmem:[#allocation38_spill] sm:$0xff]  ;;  %v2888_v62 = vmul.f32 1.442695, %v2470_v55 }
 0x2ff   : > { %12350 = vst [vmem:[#allocation88_spill] sm:$0xff] %v8590_v6  ;;  %v8596_v56 = vpop.eup %6226  ;;  %v3200_v22 = vadd.f32 %v8586_v18, %v3199_v11  ;;  %6246 = vpow2.f32 %v2852_v51  ;;  %v3217_v8 = vadd.f32 %v8590_v6, %v3216_v19  ;;  %v2472_v26 = vsub.f32 %v12355_v43, %v8550_v60  ;;  %v12358_v11 = vld [vmem:[#allocation143_spill] sm:$0xff]  ;;  %v12359_v7 = vld [vmem:[#allocation40_spill] sm:$0xff] }
 0x300   : > { %12353 = vst [vmem:[#allocation196_spill] sm:$0xff] %v8596_v56  ;;  %v8600_v3 = vpop.eup %6228  ;;  %6248 = vpow2.f32 %v2854_v53  ;;  %v2858_v61 = vmul.f32 1.442695, %v2455_v4  ;;  %v2458_v19 = vsub.f32 %v12358_v11, %v8388_v49  ;;  %v2473_v53 = vsub.f32 %v12359_v7, %v8550_v60  ;;  %v12363_v11 = vld [vmem:[#allocation39_spill] sm:$0xff] }
 0x301   : > { %v8606_v32 = vpop.eup %6230  ;;  %v3201_v16 = vadd.f32 %v8596_v56, %v3200_v22  ;;  %v3218_v51 = vadd.f32 %v8600_v3, %v3217_v8  ;;  %6250 = vpow2.f32 %v2884_v44  ;;  %v2890_v18 = vmul.f32 1.442695, %v2471_v45  ;;  %v12362_v44 = vld [vmem:[#allocation145_spill] sm:$0xff] }
 0x302   : > { %12356 = vst [vmem:[#allocation87_spill] sm:$0xff] %v8606_v32  ;;  %v8610_v30 = vpop.eup %6232  ;;  %6252 = vpow2.f32 %v2886_v35  ;;  %v2860_v22 = vmul.f32 1.442695, %v2456_v48  ;;  %v2459_v56 = vsub.f32 %v12362_v44, %v8388_v49  ;;  %v2474_v6 = vsub.f32 %v12363_v11, %v8550_v60  ;;  %v12367_v44 = vld [vmem:[#allocation41_spill] sm:$0xff] }
 0x303   : > { %12357 = vst [vmem:[#allocation89_spill] sm:$0xff] %v8610_v30  ;;  %v8616_v43 = vpop.eup %6234  ;;  %v3202_v55 = vadd.f32 %v8606_v32, %v3201_v16  ;;  %6254 = vpow2.f32 %v2856_v14  ;;  %v3219_v4 = vadd.f32 %v8610_v30, %v3218_v51  ;;  %v2892_v7 = vmul.f32 1.442695, %v2472_v26  ;;  %v12366_v51 = vld [vmem:[#allocation170_spill] sm:$0xff] }
 0x304   : > { %12360 = vst [vmem:[#allocation114_spill] sm:$0xff] %v8616_v43  ;;  %v8620_v8 = vpop.eup %6236  ;;  %6256 = vpow2.f32 %v2888_v62  ;;  %v2862_v16 = vmul.f32 1.442695, %v2457_v29  ;;  %v2460_v32 = vsub.f32 %v12366_v51, %v8388_v49  ;;  %v2475_v30 = vsub.f32 %v12367_v44, %v8550_v60  ;;  %v12371_v51 = vld [vmem:[#allocation62_spill] sm:$0xff] }
 0x305   : > { %12361 = vst [vmem:[#allocation116_spill] sm:$0xff] %v8620_v8  ;;  %v8626_v35 = vpop.eup %6238  ;;  %v3203_v45 = vadd.f32 %v8616_v43, %v3202_v55  ;;  %6258 = vpow2.f32 %v2858_v61  ;;  %v3220_v48 = vadd.f32 %v8620_v8, %v3219_v4  ;;  %v2894_v11 = vmul.f32 1.442695, %v2473_v53  ;;  %v12370_v4 = vld [vmem:[#allocation172_spill] sm:$0xff] }
 0x306   : > { %12364 = vst [vmem:[#allocation14_spill] sm:$0xff] %v8626_v35  ;;  %v8630_v14 = vpop.eup %6240  ;;  %6260 = vpow2.f32 %v2890_v18  ;;  %v2864_v55 = vmul.f32 1.442695, %v2458_v19  ;;  %v2461_v43 = vsub.f32 %v12370_v4, %v8388_v49  ;;  %v2476_v8 = vsub.f32 %v12371_v51, %v8550_v60 }
 0x307   : > { %12365 = vst [vmem:[#allocation115_spill] sm:$0xff] %v8630_v14  ;;  %v8636_v62 = vpop.eup %6242  ;;  %v3204_v26 = vadd.f32 %v8626_v35, %v3203_v45  ;;  %6262 = vpow2.f32 %v2860_v22  ;;  %v3221_v61 = vadd.f32 %v8630_v14, %v3220_v48  ;;  %v2896_v44 = vmul.f32 1.442695, %v2474_v6  ;;  %v12374_v48 = vld [vmem:[#allocation64_spill] sm:$0xff]  ;;  %v12376_v6 = vld [vmem:[#allocation171_spill] sm:$0xff] }
 0x308   : > { %12368 = vst [vmem:[#allocation16_spill] sm:$0xff] %v8636_v62  ;;  %v8640_v29 = vpop.eup %6244  ;;  %6264 = vpow2.f32 %v2892_v7  ;;  %v2866_v45 = vmul.f32 1.442695, %v2459_v56  ;;  %v2477_v35 = vsub.f32 %v12374_v48, %v8550_v60  ;;  %v2898_v4 = vmul.f32 1.442695, %v2475_v30 }
 0x309   : > { %12369 = vst [vmem:[#allocation117_spill] sm:$0xff] %v8640_v29  ;;  %v8646_v18 = vpop.eup %6246  ;;  %v3205_v53 = vadd.f32 %v8636_v62, %v3204_v26  ;;  %6266 = vpow2.f32 %v2862_v16  ;;  %v3222_v19 = vadd.f32 %v8640_v29, %v3221_v61  ;;  %v2462_v7 = vsub.f32 %v12376_v6, %v8388_v49  ;;  %v12378_v26 = vld [vmem:[#allocation173_spill] sm:$0xff]  ;;  %v12379_v62 = vld [vmem:[#allocation63_spill] sm:$0xff] }
 0x30a   : > { %12372 = vst [vmem:[#allocation15_spill] sm:$0xff] %v8646_v18  ;;  %v8650_v22 = vpop.eup %6248  ;;  %6268 = vpow2.f32 %v2894_v11  ;;  %v2868_v51 = vmul.f32 1.442695, %v2460_v32  ;;  %v2463_v61 = vsub.f32 %v12378_v26, %v8388_v49  ;;  %v2478_v48 = vsub.f32 %v12379_v62, %v8550_v60  ;;  %v12383_v26 = vld [vmem:[#allocation65_spill] sm:$0xff] }
 0x30b   : > { %12373 = vst [vmem:[#allocation142_spill] sm:$0xff] %v8650_v22  ;;  %v8654_v14 = vpop.eup %6250  ;;  %3206 = vadd.xlane.f32.xlu1 %v3205_v53  ;;  %6270 = vpow2.f32 %v2864_v55  ;;  %v3223_v16 = vadd.f32 %v8646_v18, %v3222_v19  ;;  %v2900_v30 = vmul.f32 1.442695, %v2476_v8  ;;  %v2870_v53 = vmul.f32 1.442695, %v2461_v43  ;;  %v12382_v19 = vld [vmem:[#allocation197_spill] sm:$0xff] }
 0x30c   : > { %12375 = vst [vmem:[#allocation17_spill] sm:$0xff] %v8654_v14  ;;  %v8659_v56 = vpop.eup %6252  ;;  %6272 = vpow2.f32 %v2896_v44  ;;  %v2464_v18 = vsub.f32 %v12382_v19, %v8388_v49  ;;  %v2479_v29 = vsub.f32 %v12383_v26, %v8550_v60  ;;  %v2902_v62 = vmul.f32 1.442695, %v2477_v35  ;;  %v12387_v19 = vld [vmem:[#allocation90_spill] sm:$0xff] }
 0x30d   : > { %12377 = vst [vmem:[#allocation144_spill] sm:$0xff] %v8659_v56  ;;  %v8665_v11 = vpop.eup %6254  ;;  %6274 = vpow2.f32 %v2866_v45  ;;  %v3224_v6 = vadd.f32 %v8650_v22, %v3223_v16  ;;  %v3241_v32 = vadd.f32 %v8659_v56, %v8654_v14  ;;  %v2872_v44 = vmul.f32 1.442695, %v2462_v7  ;;  %v12386_v14 = vld [vmem:[#allocation198_spill] sm:$0xff] }
 0x30e   : > { %12380 = vst [vmem:[#allocation38_spill] sm:$0xff] %v8665_v11  ;;  %v8670_v55 = vpop.eup %6256  ;;  %6276 = vpow2.f32 %v2898_v4  ;;  %v2465_v56 = vsub.f32 %v12386_v14, %v8388_v49  ;;  %v2480_v22 = vsub.f32 %v12387_v19, %v8550_v60  ;;  %v2904_v26 = vmul.f32 1.442695, %v2478_v48  ;;  %v12390_v14 = vld [vmem:[#allocation92_spill] sm:$0xff] }
 0x30f   : > { %12381 = vst [vmem:[#allocation143_spill] sm:$0xff] %v8670_v55  ;;  %v8676_v8 = vpop.eup %6258  ;;  %6278 = vpow2.f32 %v2868_v51  ;;  %v3225_v43 = vadd.f32 %v8665_v11, %v3224_v6  ;;  %v3242_v45 = vadd.f32 %v8670_v55, %v3241_v32  ;;  %v2874_v35 = vmul.f32 1.442695, %v2463_v61 }
 0x310   : > { %12384 = vst [vmem:[#allocation40_spill] sm:$0xff] %v8676_v8  ;;  %v8680_v16 = vpop.eup %6260  ;;  %6280 = vpow2.f32 %v2900_v30  ;;  %v2466_v32 = vsub.f32 %v7830_v15, %v8388_v49  ;;  %v2481_v11 = vsub.f32 %v12390_v14, %v8550_v60  ;;  %v2906_v19 = vmul.f32 1.442695, %v2479_v29  ;;  %v12394_v15 = vld [vmem:[#allocation91_spill] sm:$0xff] }
 0x311   : > { %12385 = vst [vmem:[#allocation145_spill] sm:$0xff] %v8680_v16  ;;  %v8686_v4 = vpop.eup %6262  ;;  %6282 = vpow2.f32 %v2870_v53  ;;  %v3226_v7 = vadd.f32 %v8676_v8, %v3225_v43  ;;  %v3243_v51 = vadd.f32 %v8680_v16, %v3242_v45  ;;  %v2876_v48 = vmul.f32 1.442695, %v2464_v18  ;;  %v12393_v45 = vld [vmem:[#allocation199_spill] sm:$0xff] }
 0x312   : > { %12388 = vst [vmem:[#allocation39_spill] sm:$0xff] %v8686_v4  ;;  %v8690_v6 = vpop.eup %6264  ;;  %6284 = vpow2.f32 %v2902_v62  ;;  %v2467_v55 = vsub.f32 %v12393_v45, %v8388_v49  ;;  %v2482_v8 = vsub.f32 %v12394_v15, %v8550_v60  ;;  %v2908_v14 = vmul.f32 1.442695, %v2480_v22  ;;  %v12397_v49 = vld [vmem:[#allocation93_spill] sm:$0xff] }
 0x313   : > { %12389 = vst [vmem:[#allocation170_spill] sm:$0xff] %v8690_v6  ;;  %v8696_v30 = vpop.eup %6266  ;;  %6286 = vpow2.f32 %v2872_v44  ;;  %v3227_v61 = vadd.f32 %v8686_v4, %v3226_v7  ;;  %v3244_v53 = vadd.f32 %v8690_v6, %v3243_v51  ;;  %v2878_v29 = vmul.f32 1.442695, %v2465_v56  ;;  %v8712_v51 = vpop.xlane.xlu0 %2273  ;;  %v12399_v56 = vld [vmem:[#allocation118_spill] sm:$0xff] }
 0x314   : > { %12391 = vst [vmem:[#allocation41_spill] sm:$0xff] %v8696_v30  ;;  %v8700_v43 = vpop.eup %6268  ;;  %6288 = vpow2.f32 %v2904_v26  ;;  %v2880_v4 = vmul.f32 1.442695, %v2466_v32  ;;  %v2483_v45 = vsub.f32 %v12397_v49, %v8550_v60  ;;  %v2910_v15 = vmul.f32 1.442695, %v2481_v11  ;;  %v12401_v32 = vld [vmem:[#allocation120_spill] sm:$0xff] }
 0x315   : > { %12392 = vst [vmem:[#allocation172_spill] sm:$0xff] %v8700_v43  ;;  %v8706_v62 = vpop.eup %6270  ;;  %6290 = vpow2.f32 %v2874_v35  ;;  %v3228_v18 = vadd.f32 %v8696_v30, %v3227_v61  ;;  %v3245_v44 = vadd.f32 %v8700_v43, %v3244_v53  ;;  %v2484_v35 = vsub.f32 %v12399_v56, %v8550_v60 }
 0x316   : > { %12395 = vst [vmem:[#allocation62_spill] sm:$0xff] %v8706_v62  ;;  %v8710_v7 = vpop.eup %6272  ;;  %6292 = vpow2.f32 %v2906_v19  ;;  %v2882_v30 = vmul.f32 1.442695, %v2467_v55  ;;  %v2485_v6 = vsub.f32 %v12401_v32, %v8550_v60  ;;  %v2912_v49 = vmul.f32 1.442695, %v2482_v8 }
 0x317   : > { %12396 = vst [vmem:[#allocation64_spill] sm:$0xff] %v8710_v7  ;;  %v8716_v26 = vpop.eup %6274  ;;  %6294 = vpow2.f32 %v2876_v48  ;;  %v3229_v22 = vadd.f32 %v8706_v62, %v3228_v18  ;;  %v3246_v61 = vadd.f32 %v8710_v7, %v3245_v44  ;;  %v12403_v18 = vld [vmem:[#allocation18_spill] sm:$0xff]  ;;  %v12405_v44 = vld [vmem:[#allocation119_spill] sm:$0xff]  ;;  %v2914_v7 = vmul.f32 1.442695, %v2483_v45 }
 0x318   : > { %12398 = vst [vmem:[#allocation171_spill] sm:$0xff] %v8716_v26  ;;  %v8722_v53 = vpop.eup %6276  ;;  %6296 = vpow2.f32 %v2908_v14  ;;  %v2500_v56 = vsub.f32 %v12403_v18, %v8712_v51  ;;  %v2486_v55 = vsub.f32 %v12405_v44, %v8550_v60  ;;  %v12406_v14 = vld [vmem:[#allocation20_spill] sm:$0xff]  ;;  %v12409_v18 = vld [vmem:[#allocation121_spill] sm:$0xff]  ;;  %v2918_v44 = vmul.f32 1.442695, %v2485_v6  ;;  %v12410_v45 = vld [vmem:[#allocation19_spill] sm:$0xff] }
 0x319   : > { %12400 = vst [vmem:[#allocation173_spill] sm:$0xff] %v8722_v53  ;;  %v8726_v19 = vpop.eup %6278  ;;  %6298 = vpow2.f32 %v2878_v29  ;;  %v3230_v11 = vadd.f32 %v8716_v26, %v3229_v22  ;;  %v3247_v48 = vadd.f32 %v8722_v53, %v3246_v61  ;;  %v2501_v8 = vsub.f32 %v12406_v14, %v8712_v51 }
 0x31a   : > { %12402 = vst [vmem:[#allocation63_spill] sm:$0xff] %v8726_v19  ;;  %v8732_v62 = vpop.eup %6280  ;;  %6300 = vpow2.f32 %v2910_v15  ;;  %v2916_v22 = vmul.f32 1.442695, %v2484_v35  ;;  %v2487_v53 = vsub.f32 %v12409_v18, %v8550_v60  ;;  %v2502_v15 = vsub.f32 %v12410_v45, %v8712_v51 }
 0x31b   : > { %12404 = vst [vmem:[#allocation197_spill] sm:$0xff] %v8732_v62  ;;  %v8738_v32 = vpop.eup %6282  ;;  %6302 = vpow2.f32 %v2880_v4  ;;  %v3231_v29 = vadd.f32 %v8726_v19, %v3230_v11  ;;  %v3248_v61 = vadd.f32 %v8732_v62, %v3247_v48  ;;  %v2948_v35 = vmul.f32 1.442695, %v2500_v56  ;;  %v12413_v48 = vld [vmem:[#allocation146_spill] sm:$0xff]  ;;  %v12416_v56 = vld [vmem:[#allocation148_spill] sm:$0xff] }
 0x31c   : > { %12407 = vst [vmem:[#allocation65_spill] sm:$0xff] %v8738_v32  ;;  %v8742_v26 = vpop.eup %6284  ;;  %6304 = vpow2.f32 %v2912_v49  ;;  %v2488_v19 = vsub.f32 %v12413_v48, %v8550_v60  ;;  %v12414_v49 = vld [vmem:[#allocation21_spill] sm:$0xff]  ;;  %v2950_v18 = vmul.f32 1.442695, %v2501_v8  ;;  %v2922_v16 = vmul.f32 1.442695, %v2487_v53 }
 0x31d   : > { %12408 = vst [vmem:[#allocation198_spill] sm:$0xff] %v8742_v26  ;;  %v8748_v43 = vpop.eup %6286  ;;  %6306 = vpow2.f32 %v2882_v30  ;;  %v3232_v4 = vadd.f32 %v8738_v32, %v3231_v29  ;;  %v3249_v11 = vadd.f32 %v8742_v26, %v3248_v61  ;;  %v2503_v6 = vsub.f32 %v12414_v49, %v8712_v51 }
 0x31e   : > { %12411 = vst [vmem:[#allocation90_spill] sm:$0xff] %v8748_v43  ;;  %v8752_v14 = vpop.eup %6288  ;;  %6308 = vpow2.f32 %v2914_v7  ;;  %v2920_v30 = vmul.f32 1.442695, %v2486_v55  ;;  %v2489_v32 = vsub.f32 %v12416_v56, %v8550_v60  ;;  %v12417_v7 = vld [vmem:[#allocation42_spill] sm:$0xff]  ;;  %v2952_v26 = vmul.f32 1.442695, %v2502_v15 }
 0x31f   : > { %12412 = vst [vmem:[#allocation92_spill] sm:$0xff] %v8752_v14  ;;  %v8758_v62 = vpop.eup %6290  ;;  %v3233_v45 = vadd.f32 %v8748_v43, %v3232_v4  ;;  %6310 = vpow2.f32 %v2916_v22  ;;  %v3250_v29 = vadd.f32 %v8752_v14, %v3249_v11  ;;  %v2504_v48 = vsub.f32 %v12417_v7, %v8712_v51  ;;  %v12420_v4 = vld [vmem:[#allocation147_spill] sm:$0xff]  ;;  %v12421_v56 = vld [vmem:[#allocation44_spill] sm:$0xff] }
 0x320   : > { %12415 = vst [vmem:[#allocation199_spill] sm:$0xff] %v8758_v62  ;;  %v8762_v61 = vpop.eup %6292  ;;  %6312 = vpow2.f32 %v2918_v44  ;;  %v2490_v11 = vsub.f32 %v12420_v4, %v8550_v60  ;;  %v2505_v44 = vsub.f32 %v12421_v56, %v8712_v51  ;;  %v2954_v43 = vmul.f32 1.442695, %v2503_v6  ;;  %v12425_v4 = vld [vmem:[#allocation43_spill] sm:$0xff] }
 0x321   : > { %v8768_v49 = vpop.eup %6294  ;;  %v3234_v8 = vadd.f32 %v8758_v62, %v3233_v45  ;;  %v3251_v22 = vadd.f32 %v8762_v61, %v3250_v29  ;;  %6314 = vpow2.f32 %v2948_v35  ;;  %v2924_v45 = vmul.f32 1.442695, %v2488_v19  ;;  %v12424_v35 = vld [vmem:[#allocation149_spill] sm:$0xff] }
 0x322   : > { %12418 = vst [vmem:[#allocation91_spill] sm:$0xff] %v8768_v49  ;;  %v8772_v55 = vpop.eup %6296  ;;  %6316 = vpow2.f32 %v2950_v18  ;;  %v2491_v62 = vsub.f32 %v12424_v35, %v8550_v60  ;;  %v2506_v14 = vsub.f32 %v12425_v4, %v8712_v51  ;;  %v2956_v56 = vmul.f32 1.442695, %v2504_v48  ;;  %v12429_v35 = vld [vmem:[#allocation45_spill] sm:$0xff] }
 0x323   : > { %12419 = vst [vmem:[#allocation93_spill] sm:$0xff] %v8772_v55  ;;  %v8778_v7 = vpop.eup %6298  ;;  %v3235_v15 = vadd.f32 %v8768_v49, %v3234_v8  ;;  %6318 = vpow2.f32 %v2920_v30  ;;  %v3252_v53 = vadd.f32 %v8772_v55, %v3251_v22  ;;  %v2926_v8 = vmul.f32 1.442695, %v2489_v32  ;;  %v12428_v22 = vld [vmem:[#allocation174_spill] sm:$0xff] }
 0x324   : > { %12422 = vst [vmem:[#allocation118_spill] sm:$0xff] %v8778_v7  ;;  %v8782_v29 = vpop.eup %6300  ;;  %6320 = vpow2.f32 %v2952_v26  ;;  %v2492_v49 = vsub.f32 %v12428_v22, %v8550_v60  ;;  %v2507_v55 = vsub.f32 %v12429_v35, %v8712_v51  ;;  %v2958_v4 = vmul.f32 1.442695, %v2505_v44  ;;  %v12433_v22 = vld [vmem:[#allocation66_spill] sm:$0xff] }
 0x325   : > { %12423 = vst [vmem:[#allocation120_spill] sm:$0xff] %v8782_v29  ;;  %v8788_v18 = vpop.eup %6302  ;;  %v3236_v6 = vadd.f32 %v8778_v7, %v3235_v15  ;;  %6322 = vpow2.f32 %v2922_v16  ;;  %v3253_v19 = vadd.f32 %v8782_v29, %v3252_v53  ;;  %v2928_v15 = vmul.f32 1.442695, %v2490_v11  ;;  %v12432_v53 = vld [vmem:[#allocation176_spill] sm:$0xff] }
 0x326   : > { %12426 = vst [vmem:[#allocation18_spill] sm:$0xff] %v8788_v18  ;;  %v8792_v30 = vpop.eup %6304  ;;  %6324 = vpow2.f32 %v2954_v43  ;;  %v2493_v7 = vsub.f32 %v12432_v53, %v8550_v60  ;;  %v2508_v29 = vsub.f32 %v12433_v22, %v8712_v51  ;;  %v2960_v35 = vmul.f32 1.442695, %v2506_v14  ;;  %v12438_v14 = vld [vmem:[#allocation175_spill] sm:$0xff] }
 0x327   : > { %12427 = vst [vmem:[#allocation119_spill] sm:$0xff] %v8792_v30  ;;  %v8798_v26 = vpop.eup %6306  ;;  %v3237_v48 = vadd.f32 %v8788_v18, %v3236_v6  ;;  %6326 = vpow2.f32 %v2924_v45  ;;  %v3254_v16 = vadd.f32 %v8792_v30, %v3253_v19  ;;  %v2930_v6 = vmul.f32 1.442695, %v2491_v62  ;;  %v12436_v19 = vld [vmem:[#allocation68_spill] sm:$0xff] }
 0x328   : > { %12430 = vst [vmem:[#allocation20_spill] sm:$0xff] %v8798_v26  ;;  %v8802_v32 = vpop.eup %6308  ;;  %6328 = vpow2.f32 %v2956_v56  ;;  %v2509_v18 = vsub.f32 %v12436_v19, %v8712_v51  ;;  %v2962_v53 = vmul.f32 1.442695, %v2507_v55  ;;  %v2494_v56 = vsub.f32 %v12438_v14, %v8550_v60 }
 0x329   : > { %12431 = vst [vmem:[#allocation121_spill] sm:$0xff] %v8802_v32  ;;  %v8808_v43 = vpop.eup %6310  ;;  %v3238_v44 = vadd.f32 %v8798_v26, %v3237_v48  ;;  %6330 = vpow2.f32 %v2926_v8  ;;  %v3255_v11 = vadd.f32 %v8802_v32, %v3254_v16  ;;  %v2932_v22 = vmul.f32 1.442695, %v2492_v49  ;;  %v12440_v48 = vld [vmem:[#allocation177_spill] sm:$0xff]  ;;  %v12441_v26 = vld [vmem:[#allocation67_spill] sm:$0xff] }
 0x32a   : > { %12434 = vst [vmem:[#allocation19_spill] sm:$0xff] %v8808_v43  ;;  %v8812_v45 = vpop.eup %6312  ;;  %6332 = vpow2.f32 %v2958_v4  ;;  %v2495_v16 = vsub.f32 %v12440_v48, %v8550_v60  ;;  %v2510_v19 = vsub.f32 %v12441_v26, %v8712_v51  ;;  %v2964_v55 = vmul.f32 1.442695, %v2508_v29  ;;  %v12445_v48 = vld [vmem:[#allocation69_spill] sm:$0xff] }
 0x32b   : > { %12435 = vst [vmem:[#allocation146_spill] sm:$0xff] %v8812_v45  ;;  %v8816_v30 = vpop.eup %6314  ;;  %3239 = vadd.xlane.f32.xlu0 %v3238_v44  ;;  %6334 = vpow2.f32 %v2928_v15  ;;  %v3256_v8 = vadd.f32 %v8808_v43, %v3255_v11  ;;  %v2934_v44 = vmul.f32 1.442695, %v2493_v7  ;;  %v12444_v11 = vld [vmem:[#allocation200_spill] sm:$0xff]  ;;  %v2511_v32 = vsub.f32 %v12445_v48, %v8712_v51 }
 0x32c   : > { %12437 = vst [vmem:[#allocation21_spill] sm:$0xff] %v8816_v30  ;;  %v8821_v62 = vpop.eup %6316  ;;  %6336 = vpow2.f32 %v2960_v35  ;;  %v2496_v43 = vsub.f32 %v12444_v11, %v8550_v60  ;;  %v2966_v26 = vmul.f32 1.442695, %v2509_v18  ;;  %v2936_v35 = vmul.f32 1.442695, %v2494_v56  ;;  %v12448_v11 = vld [vmem:[#allocation94_spill] sm:$0xff] }
 0x32d   : > { %12439 = vst [vmem:[#allocation148_spill] sm:$0xff] %v8821_v62  ;;  %v8827_v4 = vpop.eup %6318  ;;  %6338 = vpow2.f32 %v2930_v6  ;;  %v3257_v14 = vadd.f32 %v8812_v45, %v3256_v8  ;;  %v3274_v49 = vadd.f32 %v8821_v62, %v8816_v30  ;;  %v12447_v30 = vld [vmem:[#allocation201_spill] sm:$0xff]  ;;  %v2512_v45 = vsub.f32 %v12448_v11, %v8712_v51 }
 0x32e   : > { %12442 = vst [vmem:[#allocation42_spill] sm:$0xff] %v8827_v4  ;;  %v8832_v15 = vpop.eup %6320  ;;  %6340 = vpow2.f32 %v2962_v53  ;;  %v2497_v62 = vsub.f32 %v12447_v30, %v8550_v60  ;;  %v2968_v48 = vmul.f32 1.442695, %v2510_v19  ;;  %v2938_v18 = vmul.f32 1.442695, %v2495_v16  ;;  %v12451_v30 = vld [vmem:[#allocation96_spill] sm:$0xff] }
 0x32f   : > { %12443 = vst [vmem:[#allocation147_spill] sm:$0xff] %v8832_v15  ;;  %v8838_v29 = vpop.eup %6322  ;;  %6342 = vpow2.f32 %v2932_v22  ;;  %v3258_v7 = vadd.f32 %v8827_v4, %v3257_v14  ;;  %v3275_v6 = vadd.f32 %v8832_v15, %v3274_v49  ;;  %v2498_v49 = vsub.f32 %v7842_v54, %v8550_v60  ;;  %v12454_v54 = vld [vmem:[#allocation95_spill] sm:$0xff] }
 0x330   : > { %v8842_v8 = vpop.eup %6324  ;;  %6344 = vpow2.f32 %v2964_v55  ;;  %v2513_v15 = vsub.f32 %v12451_v30, %v8712_v51  ;;  %v2970_v11 = vmul.f32 1.442695, %v2511_v32  ;;  %v2940_v19 = vmul.f32 1.442695, %v2496_v43 }
 0x331   : > { %12446 = vst [vmem:[#allocation44_spill] sm:$0xff] %v8842_v8  ;;  %v8848_v53 = vpop.eup %6326  ;;  %6346 = vpow2.f32 %v2934_v44  ;;  %v3259_v56 = vadd.f32 %v8838_v29, %v3258_v7  ;;  %v3276_v22 = vadd.f32 %v8842_v8, %v3275_v6  ;;  %v2499_v6 = vsub.f32 %v7848_v5, %v8550_v60  ;;  %v12457_v5 = vld [vmem:[#allocation97_spill] sm:$0xff] }
 0x332   : > { %12449 = vst [vmem:[#allocation149_spill] sm:$0xff] %v8848_v53  ;;  %v8852_v14 = vpop.eup %6328  ;;  %6348 = vpow2.f32 %v2966_v26  ;;  %v2514_v8 = vsub.f32 %v12454_v54, %v8712_v51  ;;  %v2972_v30 = vmul.f32 1.442695, %v2512_v45  ;;  %v2942_v32 = vmul.f32 1.442695, %v2497_v62  ;;  %v12459_v62 = vld [vmem:[#allocation122_spill] sm:$0xff] }
 0x333   : > { %12450 = vst [vmem:[#allocation43_spill] sm:$0xff] %v8852_v14  ;;  %v8858_v55 = vpop.eup %6330  ;;  %6350 = vpow2.f32 %v2936_v35  ;;  %v3260_v16 = vadd.f32 %v8848_v53, %v3259_v56  ;;  %v3277_v44 = vadd.f32 %v8852_v14, %v3276_v22  ;;  %v8874_v22 = vpop.xlane.xlu1 %2306  ;;  %v2944_v14 = vmul.f32 1.442695, %v2498_v49  ;;  %v12461_v49 = vld [vmem:[#allocation124_spill] sm:$0xff] }
 0x334   : > { %12452 = vst [vmem:[#allocation174_spill] sm:$0xff] %v8858_v55  ;;  %v8862_v7 = vpop.eup %6332  ;;  %6352 = vpow2.f32 %v2968_v48  ;;  %v2515_v60 = vsub.f32 %v12457_v5, %v8712_v51  ;;  %v2974_v54 = vmul.f32 1.442695, %v2513_v15  ;;  %v2517_v53 = vsub.f32 %v12461_v49, %v8712_v51 }
 0x335   : > { %12453 = vst [vmem:[#allocation45_spill] sm:$0xff] %v8862_v7  ;;  %v8868_v26 = vpop.eup %6334  ;;  %6354 = vpow2.f32 %v2938_v18  ;;  %v3261_v43 = vadd.f32 %v8858_v55, %v3260_v16  ;;  %v3278_v35 = vadd.f32 %v8862_v7, %v3277_v44  ;;  %v2516_v18 = vsub.f32 %v12459_v62, %v8712_v51 }
 0x336   : > { %12455 = vst [vmem:[#allocation176_spill] sm:$0xff] %v8868_v26  ;;  %v8872_v56 = vpop.eup %6336  ;;  %6356 = vpow2.f32 %v2970_v11  ;;  %v2946_v7 = vmul.f32 1.442695, %v2499_v6  ;;  %v2976_v5 = vmul.f32 1.442695, %v2514_v8 }
 0x337   : > { %12456 = vst [vmem:[#allocation66_spill] sm:$0xff] %v8872_v56  ;;  %v8878_v48 = vpop.eup %6338  ;;  %6358 = vpow2.f32 %v2940_v19  ;;  %v3262_v45 = vadd.f32 %v8868_v26, %v3261_v43  ;;  %v3279_v16 = vadd.f32 %v8872_v56, %v3278_v35  ;;  %v12463_v43 = vld [vmem:[#allocation22_spill] sm:$0xff]  ;;  %v12465_v35 = vld [vmem:[#allocation123_spill] sm:$0xff]  ;;  %v2978_v56 = vmul.f32 1.442695, %v2515_v60 }
 0x338   : > { %12458 = vst [vmem:[#allocation68_spill] sm:$0xff] %v8878_v48  ;;  %v8884_v44 = vpop.eup %6340  ;;  %6360 = vpow2.f32 %v2972_v30  ;;  %v2532_v62 = vsub.f32 %v12463_v43, %v8874_v22  ;;  %v2518_v6 = vsub.f32 %v12465_v35, %v8712_v51  ;;  %v12466_v30 = vld [vmem:[#allocation24_spill] sm:$0xff]  ;;  %v12469_v43 = vld [vmem:[#allocation125_spill] sm:$0xff]  ;;  %v2982_v35 = vmul.f32 1.442695, %v2517_v53  ;;  %v12470_v60 = vld [vmem:[#allocation23_spill] sm:$0xff] }
 0x339   : > { %12460 = vst [vmem:[#allocation175_spill] sm:$0xff] %v8884_v44  ;;  %v8888_v11 = vpop.eup %6342  ;;  %6362 = vpow2.f32 %v2942_v32  ;;  %v3263_v15 = vadd.f32 %v8878_v48, %v3262_v45  ;;  %v3280_v19 = vadd.f32 %v8884_v44, %v3279_v16  ;;  %v2533_v8 = vsub.f32 %v12466_v30, %v8874_v22 }
 0x33a   : > { %12462 = vst [vmem:[#allocation177_spill] sm:$0xff] %v8888_v11  ;;  %v8894_v26 = vpop.eup %6344  ;;  %6364 = vpow2.f32 %v2974_v54  ;;  %v2980_v45 = vmul.f32 1.442695, %v2516_v18  ;;  %v2519_v48 = vsub.f32 %v12469_v43, %v8712_v51  ;;  %v2534_v54 = vsub.f32 %v12470_v60, %v8874_v22 }
 0x33b   : > { %12464 = vst [vmem:[#allocation67_spill] sm:$0xff] %v8894_v26  ;;  %v8900_v49 = vpop.eup %6346  ;;  %6366 = vpow2.f32 %v2944_v14  ;;  %v3264_v32 = vadd.f32 %v8888_v11, %v3263_v15  ;;  %v3281_v16 = vadd.f32 %v8894_v26, %v3280_v19  ;;  %v3012_v18 = vmul.f32 1.442695, %v2532_v62  ;;  %v12473_v19 = vld [vmem:[#allocation150_spill] sm:$0xff]  ;;  %v12476_v62 = vld [vmem:[#allocation152_spill] sm:$0xff] }
 0x33c   : > { %12467 = vst [vmem:[#allocation200_spill] sm:$0xff] %v8900_v49  ;;  %v8904_v44 = vpop.eup %6348  ;;  %6368 = vpow2.f32 %v2976_v5  ;;  %v2520_v11 = vsub.f32 %v12473_v19, %v8712_v51  ;;  %v12474_v5 = vld [vmem:[#allocation25_spill] sm:$0xff]  ;;  %v3014_v43 = vmul.f32 1.442695, %v2533_v8  ;;  %v2986_v4 = vmul.f32 1.442695, %v2519_v48 }
 0x33d   : > { %12468 = vst [vmem:[#allocation69_spill] sm:$0xff] %v8904_v44  ;;  %v8910_v55 = vpop.eup %6350  ;;  %6370 = vpow2.f32 %v2946_v7  ;;  %v3265_v14 = vadd.f32 %v8900_v49, %v3264_v32  ;;  %v3282_v15 = vadd.f32 %v8904_v44, %v3281_v16  ;;  %v2535_v53 = vsub.f32 %v12474_v5, %v8874_v22 }
 0x33e   : > { %12471 = vst [vmem:[#allocation201_spill] sm:$0xff] %v8910_v55  ;;  %v8914_v30 = vpop.eup %6352  ;;  %6372 = vpow2.f32 %v2978_v56  ;;  %v2984_v7 = vmul.f32 1.442695, %v2518_v6  ;;  %v2521_v49 = vsub.f32 %v12476_v62, %v8712_v51  ;;  %v12477_v56 = vld [vmem:[#allocation46_spill] sm:$0xff]  ;;  %v3016_v44 = vmul.f32 1.442695, %v2534_v54 }
 0x33f   : > { %12472 = vst [vmem:[#allocation94_spill] sm:$0xff] %v8914_v30  ;;  %v8920_v26 = vpop.eup %6354  ;;  %v3266_v60 = vadd.f32 %v8910_v55, %v3265_v14  ;;  %6374 = vpow2.f32 %v2980_v45  ;;  %v3283_v32 = vadd.f32 %v8914_v30, %v3282_v15  ;;  %v2536_v19 = vsub.f32 %v12477_v56, %v8874_v22  ;;  %v12480_v14 = vld [vmem:[#allocation151_spill] sm:$0xff]  ;;  %v12481_v62 = vld [vmem:[#allocation48_spill] sm:$0xff] }
 0x340   : > { %12475 = vst [vmem:[#allocation96_spill] sm:$0xff] %v8920_v26  ;;  %v8924_v16 = vpop.eup %6356  ;;  %6376 = vpow2.f32 %v2982_v35  ;;  %v2522_v15 = vsub.f32 %v12480_v14, %v8712_v51  ;;  %v2537_v35 = vsub.f32 %v12481_v62, %v8874_v22  ;;  %v3018_v55 = vmul.f32 1.442695, %v2535_v53  ;;  %v12485_v14 = vld [vmem:[#allocation47_spill] sm:$0xff] }
 0x341   : > { %v8930_v5 = vpop.eup %6358  ;;  %v3267_v8 = vadd.f32 %v8920_v26, %v3266_v60  ;;  %v3284_v45 = vadd.f32 %v8924_v16, %v3283_v32  ;;  %6378 = vpow2.f32 %v3012_v18  ;;  %v2988_v60 = vmul.f32 1.442695, %v2520_v11  ;;  %v12484_v18 = vld [vmem:[#allocation153_spill] sm:$0xff] }
 0x342   : > { %12478 = vst [vmem:[#allocation95_spill] sm:$0xff] %v8930_v5  ;;  %v8934_v6 = vpop.eup %6360  ;;  %6380 = vpow2.f32 %v3014_v43  ;;  %v2523_v26 = vsub.f32 %v12484_v18, %v8712_v51  ;;  %v2538_v30 = vsub.f32 %v12485_v14, %v8874_v22  ;;  %v3020_v62 = vmul.f32 1.442695, %v2536_v19  ;;  %v12489_v18 = vld [vmem:[#allocation49_spill] sm:$0xff] }
 0x343   : > { %12479 = vst [vmem:[#allocation97_spill] sm:$0xff] %v8934_v6  ;;  %v8940_v56 = vpop.eup %6362  ;;  %v3268_v54 = vadd.f32 %v8930_v5, %v3267_v8  ;;  %6382 = vpow2.f32 %v2984_v7  ;;  %v3285_v48 = vadd.f32 %v8934_v6, %v3284_v45  ;;  %v2990_v8 = vmul.f32 1.442695, %v2521_v49  ;;  %v12488_v45 = vld [vmem:[#allocation178_spill] sm:$0xff] }
 0x344   : > { %12482 = vst [vmem:[#allocation122_spill] sm:$0xff] %v8940_v56  ;;  %v8944_v32 = vpop.eup %6364  ;;  %6384 = vpow2.f32 %v3016_v44  ;;  %v2524_v5 = vsub.f32 %v12488_v45, %v8712_v51  ;;  %v2539_v6 = vsub.f32 %v12489_v18, %v8874_v22  ;;  %v3022_v14 = vmul.f32 1.442695, %v2537_v35  ;;  %v12493_v45 = vld [vmem:[#allocation70_spill] sm:$0xff] }
 0x345   : > { %12483 = vst [vmem:[#allocation124_spill] sm:$0xff] %v8944_v32  ;;  %v8950_v43 = vpop.eup %6366  ;;  %v3269_v53 = vadd.f32 %v8940_v56, %v3268_v54  ;;  %6386 = vpow2.f32 %v2986_v4  ;;  %v3286_v11 = vadd.f32 %v8944_v32, %v3285_v48  ;;  %v2992_v54 = vmul.f32 1.442695, %v2522_v15  ;;  %v12492_v48 = vld [vmem:[#allocation180_spill] sm:$0xff] }
 0x346   : > { %12486 = vst [vmem:[#allocation22_spill] sm:$0xff] %v8950_v43  ;;  %v8954_v7 = vpop.eup %6368  ;;  %6388 = vpow2.f32 %v3018_v55  ;;  %v2525_v56 = vsub.f32 %v12492_v48, %v8712_v51  ;;  %v2540_v32 = vsub.f32 %v12493_v45, %v8874_v22  ;;  %v3024_v18 = vmul.f32 1.442695, %v2538_v30  ;;  %v12498_v30 = vld [vmem:[#allocation179_spill] sm:$0xff] }
 0x347   : > { %12487 = vst [vmem:[#allocation123_spill] sm:$0xff] %v8954_v7  ;;  %v8960_v44 = vpop.eup %6370  ;;  %v3270_v19 = vadd.f32 %v8950_v43, %v3269_v53  ;;  %6390 = vpow2.f32 %v2988_v60  ;;  %v3287_v4 = vadd.f32 %v8954_v7, %v3286_v11  ;;  %v2994_v53 = vmul.f32 1.442695, %v2523_v26  ;;  %v12496_v11 = vld [vmem:[#allocation72_spill] sm:$0xff] }
 0x348   : > { %12490 = vst [vmem:[#allocation24_spill] sm:$0xff] %v8960_v44  ;;  %v8964_v49 = vpop.eup %6372  ;;  %6392 = vpow2.f32 %v3020_v62  ;;  %v2541_v43 = vsub.f32 %v12496_v11, %v8874_v22  ;;  %v3026_v48 = vmul.f32 1.442695, %v2539_v6  ;;  %v2526_v62 = vsub.f32 %v12498_v30, %v8712_v51 }
 0x349   : > { %12491 = vst [vmem:[#allocation125_spill] sm:$0xff] %v8964_v49  ;;  %v8970_v55 = vpop.eup %6374  ;;  %v3271_v35 = vadd.f32 %v8960_v44, %v3270_v19  ;;  %6394 = vpow2.f32 %v2990_v8  ;;  %v3288_v15 = vadd.f32 %v8964_v49, %v3287_v4  ;;  %v2996_v45 = vmul.f32 1.442695, %v2524_v5  ;;  %v12500_v19 = vld [vmem:[#allocation181_spill] sm:$0xff]  ;;  %v12501_v44 = vld [vmem:[#allocation71_spill] sm:$0xff] }
 0x34a   : > { %12494 = vst [vmem:[#allocation23_spill] sm:$0xff] %v8970_v55  ;;  %v8974_v60 = vpop.eup %6376  ;;  %6396 = vpow2.f32 %v3022_v14  ;;  %v2527_v4 = vsub.f32 %v12500_v19, %v8712_v51  ;;  %v2542_v11 = vsub.f32 %v12501_v44, %v8874_v22  ;;  %v3028_v6 = vmul.f32 1.442695, %v2540_v32  ;;  %v12504_v19 = vld [vmem:[#allocation73_spill] sm:$0xff] }
 0x34b   : > { %12495 = vst [vmem:[#allocation150_spill] sm:$0xff] %v8974_v60  ;;  %v8978_v7 = vpop.eup %6378  ;;  %3272 = vadd.xlane.f32.xlu1 %v3271_v35  ;;  %6398 = vpow2.f32 %v2992_v54  ;;  %v3289_v8 = vadd.f32 %v8970_v55, %v3288_v15  ;;  %v2998_v35 = vmul.f32 1.442695, %v2525_v56  ;;  %v12503_v15 = vld [vmem:[#allocation202_spill] sm:$0xff]  ;;  %v2543_v49 = vsub.f32 %v12504_v19, %v8874_v22 }
 0x34c   : > { %12497 = vst [vmem:[#allocation25_spill] sm:$0xff] %v8978_v7  ;;  %v8983_v26 = vpop.eup %6380  ;;  %6400 = vpow2.f32 %v3024_v18  ;;  %v2528_v55 = vsub.f32 %v12503_v15, %v8712_v51  ;;  %v3030_v44 = vmul.f32 1.442695, %v2541_v43  ;;  %v3000_v18 = vmul.f32 1.442695, %v2526_v62  ;;  %v12507_v15 = vld [vmem:[#allocation98_spill] sm:$0xff] }
 0x34d   : > { %12499 = vst [vmem:[#allocation152_spill] sm:$0xff] %v8983_v26  ;;  %v8989_v14 = vpop.eup %6382  ;;  %6402 = vpow2.f32 %v2994_v53  ;;  %v3290_v30 = vadd.f32 %v8974_v60, %v3289_v8  ;;  %v3307_v5 = vadd.f32 %v8983_v26, %v8978_v7  ;;  %v12506_v7 = vld [vmem:[#allocation203_spill] sm:$0xff]  ;;  %v2544_v60 = vsub.f32 %v12507_v15, %v8874_v22 }
 0x34e   : > { %v8994_v54 = vpop.eup %6384  ;;  %6404 = vpow2.f32 %v3026_v48  ;;  %v2529_v26 = vsub.f32 %v12506_v7, %v8712_v51  ;;  %v3032_v19 = vmul.f32 1.442695, %v2542_v11  ;;  %v3002_v43 = vmul.f32 1.442695, %v2527_v4  ;;  %v12509_v7 = vld [vmem:[#allocation100_spill] sm:$0xff] }
 0x34f   : > { %12502 = vst [vmem:[#allocation46_spill] sm:$0xff] %v8994_v54  ;;  %v9000_v32 = vpop.eup %6386  ;;  %6406 = vpow2.f32 %v2996_v45  ;;  %v3291_v56 = vadd.f32 %v8989_v14, %v3290_v30  ;;  %v3308_v53 = vadd.f32 %v8994_v54, %v3307_v5  ;;  %v2530_v5 = vsub.f32 %v7854_v9, %v8712_v51  ;;  %v12511_v9 = vld [vmem:[#allocation99_spill] sm:$0xff] }
 0x350   : > { %v9004_v8 = vpop.eup %6388  ;;  %6408 = vpow2.f32 %v3028_v6  ;;  %v2545_v54 = vsub.f32 %v12509_v7, %v8874_v22  ;;  %v3034_v15 = vmul.f32 1.442695, %v2543_v49  ;;  %v3004_v11 = vmul.f32 1.442695, %v2528_v55 }
 0x351   : > { %12505 = vst [vmem:[#allocation151_spill] sm:$0xff] %v9004_v8  ;;  %v9010_v48 = vpop.eup %6390  ;;  %6410 = vpow2.f32 %v2998_v35  ;;  %v3292_v62 = vadd.f32 %v9000_v32, %v3291_v56  ;;  %v3309_v45 = vadd.f32 %v9004_v8, %v3308_v53  ;;  %v2531_v53 = vsub.f32 %v7860_v10, %v8712_v51 }
 0x352   : > { %v9014_v30 = vpop.eup %6392  ;;  %6412 = vpow2.f32 %v3030_v44  ;;  %v2546_v8 = vsub.f32 %v12511_v9, %v8874_v22  ;;  %v3036_v7 = vmul.f32 1.442695, %v2544_v60  ;;  %v3006_v49 = vmul.f32 1.442695, %v2529_v26 }
 0x353   : > { %12508 = vst [vmem:[#allocation48_spill] sm:$0xff] %v9014_v30  ;;  %v9020_v6 = vpop.eup %6394  ;;  %6414 = vpow2.f32 %v3000_v18  ;;  %v3293_v4 = vadd.f32 %v9010_v48, %v3292_v62  ;;  %v3310_v35 = vadd.f32 %v9014_v30, %v3309_v45  ;;  %v12513_v45 = vld [vmem:[#allocation101_spill] sm:$0xff]  ;;  %v3038_v10 = vmul.f32 1.442695, %v2545_v54 }
 0x354   : > { %v9024_v56 = vpop.eup %6396  ;;  %6416 = vpow2.f32 %v3032_v19  ;;  %v2547_v30 = vsub.f32 %v12513_v45, %v8874_v22  ;;  %v3008_v19 = vmul.f32 1.442695, %v2530_v5  ;;  %v3040_v9 = vmul.f32 1.442695, %v2546_v8 }
 0x355   : > { %12510 = vst [vmem:[#allocation153_spill] sm:$0xff] %v9024_v56  ;;  %v9030_v44 = vpop.eup %6398  ;;  %6418 = vpow2.f32 %v3002_v43  ;;  %v3294_v55 = vadd.f32 %v9020_v6, %v3293_v4  ;;  %v3311_v18 = vadd.f32 %v9024_v56, %v3310_v35  ;;  %v12515_v4 = vld [vmem:[#allocation126_spill] sm:$0xff] }
 0x356   : > { %v9034_v62 = vpop.eup %6400  ;;  %6420 = vpow2.f32 %v3034_v15  ;;  %v2548_v35 = vsub.f32 %v12515_v4, %v8874_v22  ;;  %v3010_v15 = vmul.f32 1.442695, %v2531_v53  ;;  %v3042_v45 = vmul.f32 1.442695, %v2547_v30  ;;  %v12520_v53 = vld [vmem:[#allocation127_spill] sm:$0xff] }
 0x357   : > { %12512 = vst [vmem:[#allocation47_spill] sm:$0xff] %v9034_v62  ;;  %v9038_v51 = vpop.eup %6402  ;;  %6422 = vpow2.f32 %v3004_v11  ;;  %v3295_v60 = vadd.f32 %v9030_v44, %v3294_v55  ;;  %v3312_v43 = vadd.f32 %v9034_v62, %v3311_v18  ;;  %v12518_v55 = vld [vmem:[#allocation128_spill] sm:$0xff] }
 0x358   : > { %v9042_v26 = vpop.eup %6404  ;;  %6424 = vpow2.f32 %v3036_v7  ;;  %v2549_v18 = vsub.f32 %v12518_v55, %v8874_v22 }
 0x359   : > { %12514 = vst [vmem:[#allocation178_spill] sm:$0xff] %v9042_v26  ;;  %v9046_v56 = vpop.eup %6406  ;;  %6426 = vpow2.f32 %v3006_v49  ;;  %v3296_v54 = vadd.f32 %v9038_v51, %v3295_v60  ;;  %v3313_v11 = vadd.f32 %v9042_v26, %v3312_v43  ;;  %v2550_v60 = vsub.f32 %v12520_v53, %v8874_v22 }
 0x35a   : > { %12516 = vst [vmem:[#allocation49_spill] sm:$0xff] %v9046_v56  ;;  %v9050_v5 = vpop.eup %6408  ;;  %6428 = vpow2.f32 %v3038_v10  ;;  %v3044_v43 = vmul.f32 1.442695, %v2548_v35 }
 0x35b   : > { %12517 = vst [vmem:[#allocation180_spill] sm:$0xff] %v9050_v5  ;;  %v9054_v62 = vpop.eup %6410  ;;  %6430 = vpow2.f32 %v3008_v19  ;;  %v3297_v8 = vadd.f32 %v9046_v56, %v3296_v54  ;;  %v3314_v7 = vadd.f32 %v9050_v5, %v3313_v11  ;;  %v12523_v19 = vld [vmem:[#allocation129_spill] sm:$0xff]  ;;  %v3046_v11 = vmul.f32 1.442695, %v2549_v18 }
 0x35c   : > { %v9058_v49 = vpop.eup %6412  ;;  %6432 = vpow2.f32 %v3040_v9  ;;  %v2551_v54 = vsub.f32 %v12523_v19, %v8874_v22  ;;  %v12528_v19 = vld [vmem:[#allocation156_spill] sm:$0xff] }
 0x35d   : > { %12519 = vst [vmem:[#allocation70_spill] sm:$0xff] %v9058_v49  ;;  %v9062_v4 = vpop.eup %6414  ;;  %6434 = vpow2.f32 %v3010_v15  ;;  %v3298_v10 = vadd.f32 %v9054_v62, %v3297_v8  ;;  %v3315_v30 = vadd.f32 %v9058_v49, %v3314_v7  ;;  %v12525_v15 = vld [vmem:[#allocation154_spill] sm:$0xff]  ;;  %v3048_v7 = vmul.f32 1.442695, %v2550_v60 }
 0x35e   : > { %12521 = vst [vmem:[#allocation72_spill] sm:$0xff] %v9062_v4  ;;  %v9066_v55 = vpop.eup %6416  ;;  %6436 = vpow2.f32 %v3042_v45  ;;  %v2552_v8 = vsub.f32 %v12525_v15, %v8874_v22  ;;  %v12531_v15 = vld [vmem:[#allocation155_spill] sm:$0xff] }
 0x35f   : > { %12522 = vst [vmem:[#allocation179_spill] sm:$0xff] %v9066_v55  ;;  %v9070_v5 = vpop.eup %6418  ;;  %v3299_v53 = vadd.f32 %v9062_v4, %v3298_v10  ;;  %v3316_v35 = vadd.f32 %v9066_v55, %v3315_v30  ;;  %6438 = vpow2.f32 %v3044_v43  ;;  %v2553_v10 = vsub.f32 %v12528_v19, %v8874_v22  ;;  %v12534_v19 = vld [vmem:[#allocation157_spill] sm:$0xff] }
 0x360   : > { %v9074_v9 = vpop.eup %6420  ;;  %6440 = vpow2.f32 %v3046_v11  ;;  %v3050_v30 = vmul.f32 1.442695, %v2551_v54 }
 0x361   : > { %12524 = vst [vmem:[#allocation181_spill] sm:$0xff] %v9074_v9  ;;  %v9078_v49 = vpop.eup %6422  ;;  %v3300_v26 = vadd.f32 %v9070_v5, %v3299_v53  ;;  %v3317_v45 = vadd.f32 %v9074_v9, %v3316_v35  ;;  %v2554_v53 = vsub.f32 %v12531_v15, %v8874_v22  ;;  %6442 = vpow2.f32 %v3048_v7  ;;  %v12536_v15 = vld [vmem:[#allocation182_spill] sm:$0xff] }
 0x362   : > { %12526 = vst [vmem:[#allocation71_spill] sm:$0xff] %v9078_v49  ;;  %v9082_v18 = vpop.eup %6424  ;;  %v3052_v35 = vmul.f32 1.442695, %v2552_v8  ;;  %6444 = vpow2.f32 %v3050_v30 }
 0x363   : > { %12527 = vst [vmem:[#allocation202_spill] sm:$0xff] %v9082_v18  ;;  %v9086_v4 = vpop.eup %6426  ;;  %v3301_v55 = vadd.f32 %v9078_v49, %v3300_v26  ;;  %v3318_v43 = vadd.f32 %v9082_v18, %v3317_v45  ;;  %v2555_v26 = vsub.f32 %v12534_v19, %v8874_v22  ;;  %v3054_v45 = vmul.f32 1.442695, %v2553_v10  ;;  %v12538_v10 = vld [vmem:[#allocation184_spill] sm:$0xff] }
 0x364   : > { %12529 = vst [vmem:[#allocation73_spill] sm:$0xff] %v9086_v4  ;;  %v9090_v60 = vpop.eup %6428  ;;  %6446 = vpow2.f32 %v3052_v35  ;;  %v2557_v30 = vsub.f32 %v12538_v10, %v8874_v22 }
 0x365   : > { %12530 = vst [vmem:[#allocation203_spill] sm:$0xff] %v9090_v60  ;;  %v9094_v9 = vpop.eup %6430  ;;  %v3302_v56 = vadd.f32 %v9086_v4, %v3301_v55  ;;  %v3319_v11 = vadd.f32 %v9090_v60, %v3318_v43  ;;  %v2556_v55 = vsub.f32 %v12536_v15, %v8874_v22  ;;  %v3056_v43 = vmul.f32 1.442695, %v2554_v53  ;;  %v12540_v15 = vld [vmem:[#allocation183_spill] sm:$0xff] }
 0x366   : > { %12532 = vst [vmem:[#allocation98_spill] sm:$0xff] %v9094_v9  ;;  %v9098_v54 = vpop.eup %6432  ;;  %6448 = vpow2.f32 %v3054_v45  ;;  %v2558_v35 = vsub.f32 %v12540_v15, %v8874_v22  ;;  %v3062_v45 = vmul.f32 1.442695, %v2557_v30  ;;  %v2562_v15 = vsub.f32 %v7866_v57, %v8874_v22 }
 0x367   : > { %12533 = vst [vmem:[#allocation100_spill] sm:$0xff] %v9098_v54  ;;  %v9102_v49 = vpop.eup %6434  ;;  %v3303_v18 = vadd.f32 %v9094_v9, %v3302_v56  ;;  %v3320_v7 = vadd.f32 %v9098_v54, %v3319_v11  ;;  %v3058_v56 = vmul.f32 1.442695, %v2555_v26  ;;  %6450 = vpow2.f32 %v3056_v43 }
 0x368   : > { %12535 = vst [vmem:[#allocation99_spill] sm:$0xff] %v9102_v49  ;;  %v9106_v8 = vpop.eup %6436  ;;  %v3060_v53 = vmul.f32 1.442695, %v2556_v55  ;;  %v3064_v10 = vmul.f32 1.442695, %v2558_v35 }
 0x369   : > { %v3304_v4 = vadd.f32 %v9102_v49, %v3303_v18  ;;  %v3321_v60 = vadd.f32 %v9106_v8, %v3320_v7  ;;  %v9112_v19 = vpop.eup %6438  ;;  %v12542_v49 = vld [vmem:[#allocation185_spill] sm:$0xff]  ;;  %6452 = vpow2.f32 %v3058_v56 }
 0x36a   : > { %12537 = vst [vmem:[#allocation101_spill] sm:$0xff] %v9112_v19  ;;  %v9117_v9 = vpop.eup %6440  ;;  %v2559_v54 = vsub.f32 %v12542_v49, %v8874_v22  ;;  %6454 = vpow2.f32 %v3060_v53 }
 0x36b   : > { %3305 = vadd.xlane.f32.xlu0 %v3304_v4  ;;  %v3322_v11 = vadd.f32 %v9112_v19, %v3321_v60  ;;  %12539 = vst [vmem:[#allocation126_spill] sm:$0xff] %v9117_v9  ;;  %v9122_v7 = vpop.eup %6442  ;;  %v2560_v60 = vsub.f32 %v7864_v59, %v8874_v22  ;;  %6456 = vpow2.f32 %v3062_v45 }
 0x36c   : > { %12541 = vst [vmem:[#allocation128_spill] sm:$0xff] %v9122_v7  ;;  %v9127_v26 = vpop.eup %6444  ;;  %v3066_v49 = vmul.f32 1.442695, %v2559_v54  ;;  %6458 = vpow2.f32 %v3064_v10 }
 0x36d   : > { %v3323_v18 = vadd.f32 %v9117_v9, %v3322_v11  ;;  %12543 = vst [vmem:[#allocation127_spill] sm:$0xff] %v9127_v26  ;;  %v2561_v11 = vsub.f32 %v7870_v25, %v8874_v22  ;;  %v3068_v59 = vmul.f32 1.442695, %v2560_v60 }
 0x36e   : > { %v9132_v43 = vpop.eup %6446  ;;  %6460 = vpow2.f32 %v3066_v49 }
 0x36f   : > { %v3324_v4 = vadd.f32 %v9122_v7, %v3323_v18  ;;  %12544 = vst [vmem:[#allocation129_spill] sm:$0xff] %v9132_v43  ;;  %v2563_v18 = vsub.f32 %v7872_v13, %v8874_v22  ;;  %v3070_v25 = vmul.f32 1.442695, %v2561_v11  ;;  %6462 = vpow2.f32 %v3068_v59  ;;  %v12592_v7 = vld [vmem:[#allocation136_spill] sm:$0xff] }
 0x370   : > { %v9137_v56 = vpop.eup %6448 }
 0x371   : > { %v3325_v55 = vadd.f32 %v9127_v26, %v3324_v4  ;;  %12545 = vst [vmem:[#allocation154_spill] sm:$0xff] %v9137_v56  ;;  %v9142_v53 = vpop.eup %6450  ;;  %v3072_v4 = vmul.f32 1.442695, %v2562_v15  ;;  %6464 = vpow2.f32 %v3070_v25  ;;  %v3074_v60 = vmul.f32 1.442695, %v2563_v18 }
 0x372   : > { %12546 = vst [vmem:[#allocation156_spill] sm:$0xff] %v9142_v53 }
 0x373   : > { %v3326_v30 = vadd.f32 %v9132_v43, %v3325_v55  ;;  %v9147_v45 = vpop.eup %6452  ;;  %6466 = vpow2.f32 %v3072_v4 }
 0x374   : > { %12547 = vst [vmem:[#allocation155_spill] sm:$0xff] %v9147_v45  ;;  %v9150_v57 = vpop.eup %6454  ;;  %6468 = vpow2.f32 %v3074_v60 }
 0x375   : > { %v3327_v35 = vadd.f32 %v9137_v56, %v3326_v30  ;;  %12548 = vst [vmem:[#allocation157_spill] sm:$0xff] %v9150_v57  ;;  %v9153_v30 = vpop.eup %6456  ;;  %v12590_v56 = vld [vmem:[#allocation137_spill] sm:$0xff] }
 0x376   : > { %12549 = vst [vmem:[#allocation182_spill] sm:$0xff] %v9153_v30  ;;  %v9156_v22 = vpop.eup %6458 }
 0x377   : > { %v3328_v54 = vadd.f32 %v9142_v53, %v3327_v35  ;;  %12550 = vst [vmem:[#allocation184_spill] sm:$0xff] %v9156_v22  ;;  %v12586_v53 = vld [vmem:[#allocation159_spill] sm:$0xff] }
 0x378   : > { %v9159_v49 = vpop.eup %6460 }
 0x379   : > { %v3329_v55 = vadd.f32 %v9147_v45, %v3328_v54  ;;  %12551 = vst [vmem:[#allocation183_spill] sm:$0xff] %v9159_v49  ;;  %v9162_v59 = vpop.eup %6462  ;;  %v12588_v45 = vld [vmem:[#allocation189_spill] sm:$0xff] }
 0x37a   : > { %12552 = vst [vmem:[#allocation185_spill] sm:$0xff] %v9162_v59 }
 0x37b   : > { %v3330_v10 = vadd.f32 %v9150_v57, %v3329_v55  ;;  %v9165_v18 = vpop.eup %6464 }
 0x37c   : > { %12553 = vst [vmem:[#allocation215_spill] sm:$0xff] %v9165_v18 }
 0x37d   : > { %v3331_v13 = vadd.f32 %v9153_v30, %v3330_v10  ;;  %v9168_v54 = vpop.eup %6466  ;;  %v3108_v10 = vpop.xlane.xlu0 %3107 }
 0x37e   : > { %12554 = vst [vmem:[#allocation216_spill] sm:$0xff] %v9168_v54  ;;  %v9171_v55 = vpop.eup %6468 }
 0x37f   : > { %v3332_v11 = vadd.f32 %v9156_v22, %v3331_v13  ;;  %12555 = vst [vmem:[#allocation217_spill] sm:$0xff] %v9171_v55  ;;  %v3141_v13 = vpop.xlane.xlu1 %3140 }
 0x380   : > { %6470 = vrcp.f32 %v3141_v13 }
 0x381   : > { %v3333_v15 = vadd.f32 %v9159_v49, %v3332_v11  ;;  %v3174_v11 = vpop.xlane.xlu0 %3173  ;;  %6472 = vrcp.f32 %v3108_v10 }
 0x382   : > { %6474 = vrcp.f32 %v3174_v11 }
 0x383   : > { %v3334_v35 = vadd.f32 %v9162_v59, %v3333_v15 }
 0x385   : > { %v3335_v25 = vadd.f32 %v9165_v18, %v3334_v35 }
 0x387   : > { %v3336_v4 = vadd.f32 %v9168_v54, %v3335_v25 }
 0x389   : > { %v3337_v60 = vadd.f32 %v9171_v55, %v3336_v4 }
 0x38a   : > { %v9174_v15 = vpop.eup %6470 }
 0x38b   : > { %3338 = vadd.xlane.f32.xlu1 %v3337_v60  ;;  %12556 = vst [vmem:[#allocation218_spill] sm:$0xff] %v9174_v15  ;;  %v9176_v35 = vpop.eup %6472  ;;  %v9182_v25 = vmul.f32 %v9174_v15, %v8011_v28 }
 0x38c   : > { %12557 = vst [vmem:[#allocation219_spill] sm:$0xff] %v9176_v35  ;;  %v9178_v59 = vpop.eup %6474  ;;  %v9188_v60 = vmul.f32 %v9176_v35, %v7902_v38  ;;  %v9202_v28 = vmul.f32 %v9176_v35, %v7913_v1  ;;  %v9206_v11 = vmul.f32 %v9176_v35, %v7900_v33  ;;  %v9210_v38 = vmul.f32 %v9174_v15, %v8032_v52 }
 0x38d   : > { %12558 = vst [vmem:[#allocation220_spill] sm:$0xff] %v9178_v59  ;;  %12559 = vst [vmem:[#allocation221_spill] sm:$0xff] %v9182_v25  ;;  %v9192_v10 = vmul.f32 %v9178_v59, %v8173_v0  ;;  %v9214_v0 = vmul.f32 %v9174_v15, %v8006_v50  ;;  %v9222_v1 = vmul.f32 %v9174_v15, %v8022_v47 }
 0x38e   : > { %12561 = vst [vmem:[#allocation223_spill] sm:$0xff] %v9188_v60  ;;  %v3617_v13 = vadd.f32 %v9182_v25, %v9188_v60  ;;  %12564 = vst [vmem:[#allocation226_spill] sm:$0xff] %v9202_v28  ;;  %v9227_v33 = vmul.f32 %v9176_v35, %v7923_v37  ;;  %v9231_v52 = vmul.f32 %v9174_v15, %v8052_v12 }
 0x38f   : > { %12562 = vst [vmem:[#allocation224_spill] sm:$0xff] %v9192_v10  ;;  %12565 = vst [vmem:[#allocation227_spill] sm:$0xff] %v9206_v11  ;;  %v9235_v50 = vmul.f32 %v9174_v15, %v8074_v31  ;;  %v9243_v47 = vmul.f32 %v9176_v35, %v7918_v42  ;;  %v9247_v37 = vmul.f32 %v9174_v15, %v8042_v41 }
 0x390   : > { %12566 = vst [vmem:[#allocation228_spill] sm:$0xff] %v9210_v38  ;;  %12567 = vst [vmem:[#allocation229_spill] sm:$0xff] %v9214_v0  ;;  %v3618_v54 = vadd.f32 %v3617_v13, %v9192_v10  ;;  %v9251_v12 = vmul.f32 %v9176_v35, %v7928_v17  ;;  %v9258_v31 = vmul.f32 %v9178_v59, %v8194_v27 }
 0x391   : > { %12569 = vst [vmem:[#allocation231_spill] sm:$0xff] %v9222_v1  ;;  %12570 = vst [vmem:[#allocation232_spill] sm:$0xff] %v9227_v33  ;;  %v9266_v42 = vmul.f32 %v9176_v35, %v7951_v58  ;;  %v3643_v41 = vadd.f32 %v9210_v38, %v9202_v28  ;;  %v3604_v17 = vadd.f32 %v9214_v0, %v9206_v11  ;;  %v12751_v38 = vld [vmem:[#allocation120_spill] sm:$0xff]  ;;  %v12757_v28 = vld [vmem:[#allocation119_spill] sm:$0xff] }
 0x392   : > { %12571 = vst [vmem:[#allocation233_spill] sm:$0xff] %v9231_v52  ;;  %12572 = vst [vmem:[#allocation234_spill] sm:$0xff] %v9235_v50  ;;  %v9276_v27 = vmul.f32 %v9174_v15, %v8094_v21  ;;  %v9284_v58 = vmul.f32 %v9178_v59, %v8184_v2  ;;  %v3669_v55 = vadd.f32 %v9231_v52, %v9227_v33  ;;  %v12637_v52 = vld [vmem:[#allocation210_spill] sm:$0xff] }
 0x393   : > { %12574 = vst [vmem:[#allocation236_spill] sm:$0xff] %v9243_v47  ;;  %12575 = vst [vmem:[#allocation237_spill] sm:$0xff] %v9247_v37  ;;  %v9292_v49 = vmul.f32 %v9178_v59, %v8214_v36  ;;  %v9296_v21 = vmul.f32 %v9178_v59, %v8236_v46  ;;  %v3656_v2 = vadd.f32 %v9247_v37, %v9243_v47  ;;  %v12600_v37 = vld [vmem:[#allocation162_spill] sm:$0xff]  ;;  %v12602_v47 = vld [vmem:[#allocation56_spill] sm:$0xff] }
 0x394   : > { %12576 = vst [vmem:[#allocation238_spill] sm:$0xff] %v9251_v12  ;;  %12577 = vst [vmem:[#allocation239_spill] sm:$0xff] %v9258_v31  ;;  %v3644_v30 = vadd.f32 %v3643_v41, %v9258_v31  ;;  %v9307_v43 = vmul.f32 %v9178_v59, %v12586_v53  ;;  %v9313_v46 = vmul.f32 %v9178_v59, %v12588_v45  ;;  %v12594_v41 = vld [vmem:[#allocation135_spill] sm:$0xff]  ;;  %v12749_v31 = vld [vmem:[#allocation92_spill] sm:$0xff] }
 0x395   : > { %12579 = vst [vmem:[#allocation241_spill] sm:$0xff] %v9266_v42  ;;  %12580 = vst [vmem:[#allocation242_spill] sm:$0xff] %v9276_v27 }
 0x396   : > { %12582 = vst [vmem:[#allocation244_spill] sm:$0xff] %v9284_v58  ;;  %12583 = vst [vmem:[#allocation245_spill] sm:$0xff] %v9292_v49 }
 0x397   : > { %12584 = vst [vmem:[#allocation246_spill] sm:$0xff] %v9296_v21  ;;  %12587 = vst [vmem:[#allocation159_spill] sm:$0xff] %v9307_v43 }
 0x398   : > { %v3207_v22 = vpop.xlane.xlu1 %3206  ;;  %12589 = vst [vmem:[#allocation189_spill] sm:$0xff] %v9313_v46 }
 0x399   : > { %6476 = vrcp.f32 %v3207_v22 }
 0x3a3   : > { %v9184_v4 = vpop.eup %6476 }
 0x3a4   : > { %12560 = vst [vmem:[#allocation222_spill] sm:$0xff] %v9184_v4  ;;  %v9196_v22 = vmul.f32 %v9184_v4, %v8335_v39  ;;  %v9218_v39 = vmul.f32 %v9176_v35, %v7908_v24  ;;  %v9239_v24 = vmul.f32 %v9176_v35, %v7937_v20  ;;  %v9262_v20 = vmul.f32 %v9174_v15, %v8062_v34 }
 0x3a5   : > { %v9280_v34 = vmul.f32 %v9178_v59, %v8168_v23  ;;  %v9300_v23 = vmul.f32 %v9178_v59, %v8204_v63  ;;  %v9317_v63 = vmul.f32 %v9184_v4, %v12590_v56  ;;  %v9321_v19 = vmul.f32 %v9184_v4, %v12592_v7 }
 0x3a6   : > { %12563 = vst [vmem:[#allocation225_spill] sm:$0xff] %v9196_v22  ;;  %12568 = vst [vmem:[#allocation230_spill] sm:$0xff] %v9218_v39  ;;  %v9254_v13 = vadd.f32 %v3618_v54, %v9196_v22  ;;  %v3630_v54 = vadd.f32 %v9222_v1, %v9218_v39  ;;  %v3695_v57 = vadd.f32 %v9235_v50, %v9239_v24  ;;  %v12604_v50 = vld [vmem:[#allocation192_spill] sm:$0xff]  ;;  %v12700_v39 = vld [vmem:[#allocation214_spill] sm:$0xff] }
 0x3a7   : > { %12573 = vst [vmem:[#allocation235_spill] sm:$0xff] %v9239_v24  ;;  %12578 = vst [vmem:[#allocation240_spill] sm:$0xff] %v9262_v20  ;;  %v3682_v36 = vadd.f32 %v9262_v20, %v9251_v12  ;;  %v9325_v53 = vmul.f32 %v9184_v4, %v12594_v41  ;;  %v3605_v26 = vadd.f32 %v3604_v17, %v9280_v34  ;;  %v12596_v20 = vld [vmem:[#allocation164_spill] sm:$0xff] }
 0x3a8   : > { %12581 = vst [vmem:[#allocation243_spill] sm:$0xff] %v9280_v34  ;;  %12585 = vst [vmem:[#allocation247_spill] sm:$0xff] %v9300_v23  ;;  %v3631_v9 = vadd.f32 %v3630_v54, %v9284_v58  ;;  %v9331_v45 = vmul.f32 %v9184_v4, %v12596_v20  ;;  %v3670_v12 = vadd.f32 %v3669_v55, %v9292_v49  ;;  %v12610_v49 = vld [vmem:[#allocation2_spill] sm:$0xff]  ;;  %v12647_v58 = vld [vmem:[#allocation141_spill] sm:$0xff] }
 0x3a9   : > { %12591 = vst [vmem:[#allocation137_spill] sm:$0xff] %v9317_v63  ;;  %12593 = vst [vmem:[#allocation136_spill] sm:$0xff] %v9321_v19  ;;  %v3696_v7 = vadd.f32 %v3695_v57, %v9296_v21  ;;  %v9341_v41 = vmul.f32 %v9184_v4, %v12600_v37  ;;  %v3657_v17 = vadd.f32 %v3656_v2, %v9300_v23  ;;  %v12606_v2 = vld [vmem:[#allocation4_spill] sm:$0xff] }
 0x3aa   : > { %12595 = vst [vmem:[#allocation135_spill] sm:$0xff] %v9325_v53  ;;  %12597 = vst [vmem:[#allocation164_spill] sm:$0xff] %v9331_v45  ;;  %v9346_v54 = vmul.f32 %v9184_v4, %v12602_v47  ;;  %v3683_v20 = vadd.f32 %v3682_v36, %v9307_v43  ;;  %v3721_v55 = vadd.f32 %v9276_v27, %v9266_v42  ;;  %v12608_v43 = vld [vmem:[#allocation77_spill] sm:$0xff]  ;;  %v12614_v42 = vld [vmem:[#allocation79_spill] sm:$0xff] }
 0x3ab   : > { %12601 = vst [vmem:[#allocation162_spill] sm:$0xff] %v9341_v41  ;;  %v3645_v57 = vadd.f32 %v3644_v30, %v9317_v63  ;;  %v3606_v37 = vadd.f32 %v3605_v26, %v9321_v19  ;;  %v3632_v21 = vadd.f32 %v3631_v9, %v9325_v53  ;;  %v9360_v23 = vmul.f32 %v9174_v15, %v12606_v2  ;;  %v12612_v30 = vld [vmem:[#allocation206_spill] sm:$0xff]  ;;  %v12651_v19 = vld [vmem:[#allocation139_spill] sm:$0xff] }
 0x3ac   : > { %12603 = vst [vmem:[#allocation56_spill] sm:$0xff] %v9346_v54  ;;  %v3671_v47 = vadd.f32 %v3670_v12, %v9331_v45  ;;  %v9370_v27 = vmul.f32 %v9174_v15, %v12610_v49  ;;  %v3658_v26 = vadd.f32 %v3657_v17, %v9341_v41  ;;  %v3722_v9 = vadd.f32 %v3721_v55, %v9313_v46  ;;  %v12618_v49 = vld [vmem:[#allocation188_spill] sm:$0xff]  ;;  %v12620_v17 = vld [vmem:[#allocation205_spill] sm:$0xff] }
 0x3ad   : > { %12607 = vst [vmem:[#allocation4_spill] sm:$0xff] %v9360_v23  ;;  %v9376_v2 = vmul.f32 %v9176_v35, %v12612_v30  ;;  %v9380_v12 = vmul.f32 %v9178_v59, %v12614_v42  ;;  %v9389_v45 = vmul.f32 %v9178_v59, %v12618_v49  ;;  %v9393_v55 = vmul.f32 %v9176_v35, %v12620_v17  ;;  %v12623_v46 = vld [vmem:[#allocation80_spill] sm:$0xff] }
 0x3ae   : > { %12611 = vst [vmem:[#allocation2_spill] sm:$0xff] %v9370_v27  ;;  %v9398_v42 = vmul.f32 %v9184_v4, %v8438_v40 }
 0x3af   : > { %12613 = vst [vmem:[#allocation206_spill] sm:$0xff] %v9376_v2  ;;  %12615 = vst [vmem:[#allocation79_spill] sm:$0xff] %v9380_v12 }
 0x3b0   : > { %12619 = vst [vmem:[#allocation188_spill] sm:$0xff] %v9389_v45  ;;  %12621 = vst [vmem:[#allocation205_spill] sm:$0xff] %v9393_v55 }
 0x3b1   : > { %12622 = vst [vmem:[#allocation248_spill] sm:$0xff] %v9398_v42 }
 0x3b8   : > { %v3240_v18 = vpop.xlane.xlu0 %3239 }
 0x3b9   : > { %6478 = vrcp.f32 %v3240_v18  ;;  %v12598_v18 = vld [vmem:[#allocation165_spill] sm:$0xff] }
 0x3ba   : > { %v9335_v56 = vmul.f32 %v9184_v4, %v12598_v18  ;;  %v9351_v18 = vmul.f32 %v9184_v4, %v12604_v50  ;;  %v9366_v50 = vmul.f32 %v9174_v15, %v12608_v43  ;;  %v12616_v43 = vld [vmem:[#allocation204_spill] sm:$0xff] }
 0x3bc   : > { %12599 = vst [vmem:[#allocation165_spill] sm:$0xff] %v9335_v56  ;;  %12605 = vst [vmem:[#allocation192_spill] sm:$0xff] %v9351_v18  ;;  %v3697_v36 = vadd.f32 %v3696_v7, %v9335_v56  ;;  %v3684_v7 = vadd.f32 %v3683_v20, %v9346_v54  ;;  %v9385_v56 = vmul.f32 %v9176_v35, %v12616_v43  ;;  %v12625_v54 = vld [vmem:[#allocation191_spill] sm:$0xff] }
 0x3bd   : > { %12609 = vst [vmem:[#allocation77_spill] sm:$0xff] %v9366_v50  ;;  %v3723_v30 = vadd.f32 %v3722_v9, %v9351_v18  ;;  %v3747_v20 = vadd.f32 %v9360_v23, %v9376_v2  ;;  %v9404_v43 = vmul.f32 %v9178_v59, %v12623_v46  ;;  %v9408_v49 = vmul.f32 %v9184_v4, %v12625_v54  ;;  %v12627_v18 = vld [vmem:[#allocation5_spill] sm:$0xff]  ;;  %v12629_v46 = vld [vmem:[#allocation84_spill] sm:$0xff] }
 0x3be   : > { %12617 = vst [vmem:[#allocation204_spill] sm:$0xff] %v9385_v56  ;;  %v3708_v17 = vadd.f32 %v9366_v50, %v9385_v56  ;;  %v3734_v9 = vadd.f32 %v9370_v27, %v9393_v55  ;;  %v9416_v40 = vmul.f32 %v9174_v15, %v12627_v18  ;;  %v9423_v2 = vmul.f32 %v9184_v4, %v12629_v46  ;;  %v12631_v54 = vld [vmem:[#allocation28_spill] sm:$0xff]  ;;  %v12633_v50 = vld [vmem:[#allocation3_spill] sm:$0xff]  ;;  %v12639_v46 = vld [vmem:[#allocation26_spill] sm:$0xff] }
 0x3bf   : > { %12624 = vst [vmem:[#allocation80_spill] sm:$0xff] %v9404_v43  ;;  %12626 = vst [vmem:[#allocation191_spill] sm:$0xff] %v9408_v49  ;;  %v3748_v23 = vadd.f32 %v3747_v20, %v9380_v12  ;;  %v9427_v24 = vmul.f32 %v9174_v15, %v12631_v54  ;;  %v9431_v56 = vmul.f32 %v9174_v15, %v12633_v50  ;;  %v12635_v18 = vld [vmem:[#allocation208_spill] sm:$0xff]  ;;  %v12641_v50 = vld [vmem:[#allocation207_spill] sm:$0xff] }
 0x3c0   : > { %12628 = vst [vmem:[#allocation5_spill] sm:$0xff] %v9416_v40  ;;  %12630 = vst [vmem:[#allocation84_spill] sm:$0xff] %v9423_v2  ;;  %v3709_v27 = vadd.f32 %v3708_v17, %v9389_v45  ;;  %v9436_v55 = vmul.f32 %v9176_v35, %v12635_v18  ;;  %v9440_v20 = vmul.f32 %v9176_v35, %v12637_v52  ;;  %v12643_v17 = vld [vmem:[#allocation209_spill] sm:$0xff]  ;;  %v12645_v45 = vld [vmem:[#allocation140_spill] sm:$0xff] }
 0x3c1   : > { %12632 = vst [vmem:[#allocation28_spill] sm:$0xff] %v9427_v24  ;;  %12634 = vst [vmem:[#allocation3_spill] sm:$0xff] %v9431_v56  ;;  %v9444_v12 = vmul.f32 %v9174_v15, %v12639_v46  ;;  %v3749_v54 = vadd.f32 %v3748_v23, %v9398_v42  ;;  %v3735_v33 = vadd.f32 %v3734_v9, %v9404_v43  ;;  %v12649_v43 = vld [vmem:[#allocation13_spill] sm:$0xff] }
 0x3c2   : > { %12636 = vst [vmem:[#allocation208_spill] sm:$0xff] %v9436_v55  ;;  %12638 = vst [vmem:[#allocation210_spill] sm:$0xff] %v9440_v20  ;;  %v9450_v53 = vmul.f32 %v9176_v35, %v12641_v50  ;;  %v9454_v18 = vmul.f32 %v9176_v35, %v12643_v17  ;;  %v3710_v23 = vadd.f32 %v3709_v27, %v9408_v49  ;;  %v12653_v27 = vld [vmem:[#allocation168_spill] sm:$0xff] }
 0x3c3   : > { %v9418_v41 = vpop.eup %6478  ;;  %12640 = vst [vmem:[#allocation26_spill] sm:$0xff] %v9444_v12  ;;  %v3773_v9 = vadd.f32 %v9416_v40, %v9436_v55  ;;  %v3736_v17 = vadd.f32 %v3735_v33, %v9423_v2  ;;  %v3799_v42 = vadd.f32 %v9427_v24, %v9440_v20  ;;  %v12655_v40 = vld [vmem:[#allocation6_spill] sm:$0xff]  ;;  %v12657_v24 = vld [vmem:[#allocation169_spill] sm:$0xff]  ;;  %v12663_v2 = vld [vmem:[#allocation7_spill] sm:$0xff] }
 0x3c4   : > { %12642 = vst [vmem:[#allocation207_spill] sm:$0xff] %v9450_v53  ;;  %12644 = vst [vmem:[#allocation209_spill] sm:$0xff] %v9454_v18  ;;  %v9458_v52 = vmul.f32 %v9418_v41, %v12645_v45  ;;  %v9462_v46 = vmul.f32 %v9418_v41, %v12647_v58  ;;  %v9469_v50 = vmul.f32 %v9418_v41, %v12649_v43 }
 0x3c5   : > { %v3760_v45 = vadd.f32 %v9431_v56, %v9450_v53  ;;  %v9478_v58 = vmul.f32 %v9418_v41, %v12651_v19  ;;  %v9482_v49 = vmul.f32 %v9418_v41, %v12653_v27  ;;  %v9486_v43 = vmul.f32 %v9178_v59, %v12655_v40  ;;  %v12659_v56 = vld [vmem:[#allocation166_spill] sm:$0xff]  ;;  %v12661_v53 = vld [vmem:[#allocation60_spill] sm:$0xff] }
 0x3c6   : > { %12646 = vst [vmem:[#allocation140_spill] sm:$0xff] %v9458_v52  ;;  %12648 = vst [vmem:[#allocation141_spill] sm:$0xff] %v9462_v46  ;;  %v3786_v33 = vadd.f32 %v9444_v12, %v9454_v18  ;;  %v9492_v20 = vmul.f32 %v9418_v41, %v12657_v24  ;;  %v9496_v19 = vmul.f32 %v9418_v41, %v12659_v56  ;;  %v12665_v24 = vld [vmem:[#allocation195_spill] sm:$0xff]  ;;  %v12667_v56 = vld [vmem:[#allocation106_spill] sm:$0xff] }
 0x3c7   : > { %12650 = vst [vmem:[#allocation13_spill] sm:$0xff] %v9469_v50  ;;  %12652 = vst [vmem:[#allocation139_spill] sm:$0xff] %v9478_v58  ;;  %v9500_v27 = vmul.f32 %v9418_v41, %v12661_v53  ;;  %v9504_v40 = vmul.f32 %v9178_v59, %v12663_v2  ;;  %v9508_v12 = vadd.f32 %v9254_v13, %v9458_v52  ;;  %v12670_v13 = vld [vmem:[#allocation194_spill] sm:$0xff] }
 0x3c8   : > { %12654 = vst [vmem:[#allocation168_spill] sm:$0xff] %v9482_v49  ;;  %12656 = vst [vmem:[#allocation6_spill] sm:$0xff] %v9486_v43  ;;  %v9511_v18 = vadd.f32 %v3645_v57, %v9462_v46  ;;  %v9515_v34 = vmul.f32 %v9418_v41, %v12665_v24  ;;  %v9519_v1 = vmul.f32 %v9178_v59, %v12667_v56  ;;  %v12672_v57 = vld [vmem:[#allocation88_spill] sm:$0xff] }
 0x3c9   : > { %12658 = vst [vmem:[#allocation169_spill] sm:$0xff] %v9492_v20  ;;  %12660 = vst [vmem:[#allocation166_spill] sm:$0xff] %v9496_v19  ;;  %v9522_v53 = vadd.f32 %v3606_v37, %v9469_v50  ;;  %v9526_v2 = vmul.f32 %v9418_v41, %v8600_v3  ;;  %v9530_v52 = vmul.f32 %v9418_v41, %v12670_v13  ;;  %v12674_v37 = vld [vmem:[#allocation112_spill] sm:$0xff] }
 0x3ca   : > { %12662 = vst [vmem:[#allocation60_spill] sm:$0xff] %v9500_v27  ;;  %12664 = vst [vmem:[#allocation7_spill] sm:$0xff] %v9504_v40  ;;  %v9534_v46 = vmul.f32 %v9418_v41, %v12672_v57  ;;  %v9537_v24 = vadd.f32 %v3632_v21, %v9478_v58  ;;  %v9540_v56 = vadd.f32 %v3671_v47, %v9482_v49  ;;  %v12676_v47 = vld [vmem:[#allocation113_spill] sm:$0xff]  ;;  %v12678_v58 = vld [vmem:[#allocation27_spill] sm:$0xff] }
 0x3cb   : > { %12666 = vst [vmem:[#allocation195_spill] sm:$0xff] %v9515_v34  ;;  %12668 = vst [vmem:[#allocation106_spill] sm:$0xff] %v9519_v1  ;;  %v9544_v50 = vmul.f32 %v9184_v4, %v12674_v37  ;;  %v9547_v3 = vadd.f32 %v3697_v36, %v9492_v20  ;;  %v9550_v13 = vadd.f32 %v3658_v26, %v9496_v19 }
 0x3cc   : > { %12669 = vst [vmem:[#allocation249_spill] sm:$0xff] %v9526_v2  ;;  %12671 = vst [vmem:[#allocation194_spill] sm:$0xff] %v9530_v52  ;;  %v9553_v57 = vadd.f32 %v3684_v7, %v9500_v27  ;;  %v9557_v21 = vadd.f32 %v3723_v30, %v9515_v34  ;;  %v9561_v49 = vmul.f32 %v9184_v4, %v12676_v47  ;;  %v12680_v30 = vld [vmem:[#allocation8_spill] sm:$0xff] }
 0x3cd   : > { %12673 = vst [vmem:[#allocation88_spill] sm:$0xff] %v9534_v46  ;;  %12675 = vst [vmem:[#allocation112_spill] sm:$0xff] %v9544_v50  ;;  %v3800_v37 = vadd.f32 %v3799_v42, %v9504_v40  ;;  %v9566_v36 = vmul.f32 %v9174_v15, %v12678_v58  ;;  %v9569_v26 = vadd.f32 %v3749_v54, %v9526_v2  ;;  %v12682_v47 = vld [vmem:[#allocation116_spill] sm:$0xff]  ;;  %v12686_v2 = vld [vmem:[#allocation9_spill] sm:$0xff] }
 0x3ce   : > { %12677 = vst [vmem:[#allocation113_spill] sm:$0xff] %v9561_v49  ;;  %v9572_v7 = vadd.f32 %v3710_v23, %v9530_v52  ;;  %v9583_v42 = vmul.f32 %v9418_v41, %v12682_v47  ;;  %v12684_v40 = vld [vmem:[#allocation212_spill] sm:$0xff]  ;;  %v9592_v23 = vmul.f32 %v9178_v59, %v12686_v2  ;;  %v12692_v47 = vld [vmem:[#allocation111_spill] sm:$0xff]  ;;  %v12696_v2 = vld [vmem:[#allocation89_spill] sm:$0xff] }
 0x3cf   : > { %12679 = vst [vmem:[#allocation27_spill] sm:$0xff] %v9566_v36  ;;  %v9588_v54 = vmul.f32 %v9176_v35, %v12684_v40  ;;  %v9604_v34 = vmul.f32 %v9184_v4, %v12692_v47  ;;  %v9613_v27 = vmul.f32 %v9418_v41, %v12696_v2  ;;  %v3761_v47 = vadd.f32 %v3760_v45, %v9519_v1  ;;  %v12704_v2 = vld [vmem:[#allocation115_spill] sm:$0xff] }
 0x3d0   : > { %12683 = vst [vmem:[#allocation116_spill] sm:$0xff] %v9583_v42  ;;  %12687 = vst [vmem:[#allocation9_spill] sm:$0xff] %v9592_v23  ;;  %v9633_v63 = vmul.f32 %v9418_v41, %v12704_v2 }
 0x3d1   : > { %12685 = vst [vmem:[#allocation212_spill] sm:$0xff] %v9588_v54  ;;  %12693 = vst [vmem:[#allocation111_spill] sm:$0xff] %v9604_v34 }
 0x3d2   : > { %12697 = vst [vmem:[#allocation89_spill] sm:$0xff] %v9613_v27  ;;  %12705 = vst [vmem:[#allocation115_spill] sm:$0xff] %v9633_v63 }
 0x3d8   : > { %v3273_v55 = vpop.xlane.xlu1 %3272 }
 0x3d9   : > { %6480 = vrcp.f32 %v3273_v55  ;;  %v3774_v55 = vadd.f32 %v3773_v9, %v9486_v43  ;;  %v9575_v9 = vadd.f32 %v3736_v17, %v9534_v46  ;;  %v9579_v43 = vmul.f32 %v9178_v59, %v12680_v30  ;;  %v12688_v17 = vld [vmem:[#allocation117_spill] sm:$0xff] }
 0x3da   : > { %v9596_v46 = vmul.f32 %v9418_v41, %v12688_v17  ;;  %v12690_v30 = vld [vmem:[#allocation85_spill] sm:$0xff]  ;;  %v12698_v17 = vld [vmem:[#allocation138_spill] sm:$0xff] }
 0x3db   : > { %12681 = vst [vmem:[#allocation8_spill] sm:$0xff] %v9579_v43  ;;  %v3775_v58 = vadd.f32 %v3774_v55, %v9544_v50  ;;  %v9600_v52 = vmul.f32 %v9184_v4, %v12690_v30  ;;  %v12694_v55 = vld [vmem:[#allocation29_spill] sm:$0xff]  ;;  %v3801_v50 = vadd.f32 %v3800_v37, %v9561_v49  ;;  %v9617_v19 = vmul.f32 %v9184_v4, %v12698_v17  ;;  %v12702_v37 = vld [vmem:[#allocation32_spill] sm:$0xff]  ;;  %v12706_v17 = vld [vmem:[#allocation142_spill] sm:$0xff] }
 0x3dc   : > { %12689 = vst [vmem:[#allocation117_spill] sm:$0xff] %v9596_v46  ;;  %v9608_v40 = vmul.f32 %v9174_v15, %v12694_v55  ;;  %v3825_v30 = vadd.f32 %v9566_v36, %v9588_v54  ;;  %v3787_v20 = vadd.f32 %v3786_v33, %v9579_v43  ;;  %v9625_v55 = vmul.f32 %v9176_v35, %v12700_v39  ;;  %v12708_v36 = vld [vmem:[#allocation133_spill] sm:$0xff] }
 0x3dd   : > { %12691 = vst [vmem:[#allocation85_spill] sm:$0xff] %v9600_v52  ;;  %12699 = vst [vmem:[#allocation138_spill] sm:$0xff] %v9617_v19  ;;  %v9629_v49 = vmul.f32 %v9178_v59, %v12702_v37  ;;  %v9637_v0 = vmul.f32 %v9418_v41, %v12706_v17  ;;  %v9642_v33 = vmul.f32 %v9174_v15, %v12708_v36  ;;  %v12710_v37 = vld [vmem:[#allocation36_spill] sm:$0xff]  ;;  %v12714_v36 = vld [vmem:[#allocation134_spill] sm:$0xff] }
 0x3de   : > { %12695 = vst [vmem:[#allocation29_spill] sm:$0xff] %v9608_v40  ;;  %12701 = vst [vmem:[#allocation214_spill] sm:$0xff] %v9625_v55  ;;  %v3826_v45 = vadd.f32 %v3825_v30, %v9592_v23  ;;  %v3762_v39 = vadd.f32 %v3761_v47, %v9600_v52  ;;  %v3788_v54 = vadd.f32 %v3787_v20, %v9604_v34  ;;  %v12712_v30 = vld [vmem:[#allocation211_spill] sm:$0xff]  ;;  %v12716_v20 = vld [vmem:[#allocation158_spill] sm:$0xff] }
 0x3df   : > { %12703 = vst [vmem:[#allocation32_spill] sm:$0xff] %v9629_v49  ;;  %12707 = vst [vmem:[#allocation142_spill] sm:$0xff] %v9637_v0  ;;  %v9648_v43 = vmul.f32 %v9184_v4, %v12710_v37  ;;  %v3851_v2 = vadd.f32 %v9608_v40, %v9625_v55  ;;  %v9657_v23 = vmul.f32 %v9176_v35, %v12712_v30  ;;  %v12718_v52 = vld [vmem:[#allocation213_spill] sm:$0xff] }
 0x3e0   : > { %12709 = vst [vmem:[#allocation133_spill] sm:$0xff] %v9642_v33  ;;  %v3827_v17 = vadd.f32 %v3826_v45, %v9617_v19  ;;  %v9661_v47 = vmul.f32 %v9178_v59, %v12714_v36  ;;  %v9665_v34 = vmul.f32 %v9174_v15, %v12716_v20  ;;  %v3776_v37 = vadd.f32 %v3775_v58, %v9583_v42  ;;  %v12720_v20 = vld [vmem:[#allocation144_spill] sm:$0xff]  ;;  %v12747_v42 = vld [vmem:[#allocation197_spill] sm:$0xff] }
 0x3e1   : > { %12711 = vst [vmem:[#allocation36_spill] sm:$0xff] %v9648_v43  ;;  %12713 = vst [vmem:[#allocation211_spill] sm:$0xff] %v9657_v23  ;;  %v3802_v40 = vadd.f32 %v3801_v50, %v9596_v46  ;;  %v3763_v55 = vadd.f32 %v3762_v39, %v9613_v27  ;;  %v3852_v45 = vadd.f32 %v3851_v2, %v9629_v49  ;;  %v12722_v50 = vld [vmem:[#allocation145_spill] sm:$0xff]  ;;  %v12726_v49 = vld [vmem:[#allocation40_spill] sm:$0xff] }
 0x3e2   : > { %12715 = vst [vmem:[#allocation134_spill] sm:$0xff] %v9661_v47  ;;  %12717 = vst [vmem:[#allocation158_spill] sm:$0xff] %v9665_v34  ;;  %v3789_v19 = vadd.f32 %v3788_v54, %v9633_v63  ;;  %v3828_v30 = vadd.f32 %v3827_v17, %v9637_v0  ;;  %v3812_v36 = vadd.f32 %v9642_v33, %v9657_v23  ;;  %v12724_v54 = vld [vmem:[#allocation186_spill] sm:$0xff]  ;;  %v12730_v0 = vld [vmem:[#allocation17_spill] sm:$0xff] }
 0x3e3   : > { %v9652_v1 = vpop.eup %6480  ;;  %v9677_v11 = vmul.f32 %v9176_v35, %v12718_v52  ;;  %v3853_v2 = vadd.f32 %v3852_v45, %v9648_v43  ;;  %v9690_v17 = vmul.f32 %v9176_v35, %v12724_v54  ;;  %v9694_v33 = vmul.f32 %v9418_v41, %v12726_v49  ;;  %v12728_v52 = vld [vmem:[#allocation11_spill] sm:$0xff]  ;;  %v12734_v63 = vld [vmem:[#allocation172_spill] sm:$0xff]  ;;  %v12736_v27 = vld [vmem:[#allocation30_spill] sm:$0xff] }
 0x3e4   : > { %v9681_v58 = vmul.f32 %v9652_v1, %v12720_v20  ;;  %v9685_v39 = vmul.f32 %v9652_v1, %v12722_v50  ;;  %v9698_v23 = vmul.f32 %v9184_v4, %v12728_v52  ;;  %v3813_v20 = vadd.f32 %v3812_v36, %v9661_v47  ;;  %v12732_v43 = vld [vmem:[#allocation143_spill] sm:$0xff]  ;;  %v12738_v36 = vld [vmem:[#allocation173_spill] sm:$0xff]  ;;  %v12744_v46 = vld [vmem:[#allocation198_spill] sm:$0xff] }
 0x3e5   : > { %12719 = vst [vmem:[#allocation213_spill] sm:$0xff] %v9677_v11  ;;  %12725 = vst [vmem:[#allocation186_spill] sm:$0xff] %v9690_v17  ;;  %v3838_v50 = vadd.f32 %v9665_v34, %v9677_v11  ;;  %v9705_v45 = vmul.f32 %v9652_v1, %v12730_v0  ;;  %v9709_v54 = vmul.f32 %v9652_v1, %v12732_v43  ;;  %v12740_v34 = vld [vmem:[#allocation170_spill] sm:$0xff]  ;;  %v12742_v11 = vld [vmem:[#allocation64_spill] sm:$0xff] }
 0x3e6   : > { %12721 = vst [vmem:[#allocation144_spill] sm:$0xff] %v9681_v58  ;;  %12723 = vst [vmem:[#allocation145_spill] sm:$0xff] %v9685_v39  ;;  %v9713_v49 = vmul.f32 %v9652_v1, %v12734_v63  ;;  %v9717_v52 = vmul.f32 %v9178_v59, %v12736_v27  ;;  %v9721_v47 = vmul.f32 %v9652_v1, %v12738_v36 }
 0x3e7   : > { %12727 = vst [vmem:[#allocation40_spill] sm:$0xff] %v9694_v33  ;;  %12729 = vst [vmem:[#allocation11_spill] sm:$0xff] %v9698_v23  ;;  %v9725_v0 = vmul.f32 %v9652_v1, %v12740_v34  ;;  %v9729_v43 = vmul.f32 %v9652_v1, %v12742_v11  ;;  %v9733_v63 = vmul.f32 %v9652_v1, %v12744_v46 }
 0x3e8   : > { %12731 = vst [vmem:[#allocation17_spill] sm:$0xff] %v9705_v45  ;;  %12733 = vst [vmem:[#allocation143_spill] sm:$0xff] %v9709_v54  ;;  %v9737_v27 = vadd.f32 %v9508_v12, %v9681_v58  ;;  %v9741_v36 = vadd.f32 %v9511_v18, %v9685_v39  ;;  %v9745_v34 = vmul.f32 %v9652_v1, %v8762_v61  ;;  %v12753_v58 = vld [vmem:[#allocation121_spill] sm:$0xff] }
 0x3e9   : > { %12735 = vst [vmem:[#allocation172_spill] sm:$0xff] %v9713_v49  ;;  %12737 = vst [vmem:[#allocation30_spill] sm:$0xff] %v9717_v52  ;;  %v9749_v11 = vmul.f32 %v9652_v1, %v12747_v42  ;;  %v9753_v46 = vmul.f32 %v9652_v1, %v12749_v31  ;;  %v9757_v12 = vmul.f32 %v9652_v1, %v12751_v38  ;;  %v12755_v39 = vld [vmem:[#allocation93_spill] sm:$0xff] }
 0x3ea   : > { %12739 = vst [vmem:[#allocation173_spill] sm:$0xff] %v9721_v47  ;;  %12741 = vst [vmem:[#allocation170_spill] sm:$0xff] %v9725_v0  ;;  %v9761_v18 = vmul.f32 %v9652_v1, %v12753_v58  ;;  %v9765_v61 = vmul.f32 %v9652_v1, %v12755_v39  ;;  %v9769_v42 = vadd.f32 %v9522_v53, %v9705_v45  ;;  %v12821_v45 = vld [vmem:[#allocation58_spill] sm:$0xff] }
 0x3eb   : > { %12743 = vst [vmem:[#allocation64_spill] sm:$0xff] %v9729_v43  ;;  %12745 = vst [vmem:[#allocation198_spill] sm:$0xff] %v9733_v63  ;;  %v9773_v31 = vadd.f32 %v9537_v24, %v9709_v54  ;;  %v9777_v38 = vadd.f32 %v9540_v56, %v9713_v49  ;;  %v9781_v58 = vmul.f32 %v9652_v1, %v12757_v28  ;;  %v12810_v54 = vld [vmem:[#allocation102_spill] sm:$0xff] }
 0x3ec   : > { %12746 = vst [vmem:[#allocation250_spill] sm:$0xff] %v9745_v34  ;;  %12748 = vst [vmem:[#allocation197_spill] sm:$0xff] %v9749_v11  ;;  %v9785_v39 = vadd.f32 %v9547_v3, %v9721_v47  ;;  %v9789_v53 = vadd.f32 %v9550_v13, %v9725_v0  ;;  %v9793_v24 = vadd.f32 %v9553_v57, %v9729_v43  ;;  %v12759_v47 = vld [vmem:[#allocation146_spill] sm:$0xff] }
 0x3ed   : > { %12750 = vst [vmem:[#allocation92_spill] sm:$0xff] %v9753_v46  ;;  %12752 = vst [vmem:[#allocation120_spill] sm:$0xff] %v9757_v12  ;;  %v9797_v56 = vadd.f32 %v9557_v21, %v9733_v63  ;;  %v9801_v28 = vadd.f32 %v9569_v26, %v9745_v34  ;;  %v9805_v3 = vadd.f32 %v9572_v7, %v9749_v11  ;;  %v12762_v34 = vld [vmem:[#allocation15_spill] sm:$0xff] }
 0x3ee   : > { %12754 = vst [vmem:[#allocation121_spill] sm:$0xff] %v9761_v18  ;;  %12756 = vst [vmem:[#allocation93_spill] sm:$0xff] %v9765_v61  ;;  %v9809_v13 = vmul.f32 %v9652_v1, %v12759_v47  ;;  %v9813_v57 = vmul.f32 %v9652_v1, %v8838_v29  ;;  %v9817_v21 = vadd.f32 %v9575_v9, %v9753_v46  ;;  %v12764_v9 = vld [vmem:[#allocation19_spill] sm:$0xff] }
 0x3ef   : > { %12758 = vst [vmem:[#allocation119_spill] sm:$0xff] %v9781_v58  ;;  %v9820_v63 = vadd.f32 %v3776_v37, %v9757_v12  ;;  %v9823_v26 = vadd.f32 %v3802_v40, %v9761_v18  ;;  %v9826_v7 = vadd.f32 %v3763_v55, %v9765_v61  ;;  %v9829_v47 = vadd.f32 %v3789_v19, %v9781_v58  ;;  %v12766_v18 = vld [vmem:[#allocation34_spill] sm:$0xff]  ;;  %v12770_v58 = vld [vmem:[#allocation161_spill] sm:$0xff]  ;;  %v12776_v12 = vld [vmem:[#allocation187_spill] sm:$0xff] }
 0x3f0   : > { %12760 = vst [vmem:[#allocation146_spill] sm:$0xff] %v9809_v13  ;;  %12761 = vst [vmem:[#allocation251_spill] sm:$0xff] %v9813_v57  ;;  %v3854_v29 = vadd.f32 %v3853_v2, %v9694_v33  ;;  %v9834_v43 = vmul.f32 %v9418_v41, %v12762_v34  ;;  %v9838_v37 = vmul.f32 %v9652_v1, %v12764_v9  ;;  %v12768_v61 = vld [vmem:[#allocation50_spill] sm:$0xff]  ;;  %v12786_v46 = vld [vmem:[#allocation167_spill] sm:$0xff] }
 0x3f1   : > { %v3814_v40 = vadd.f32 %v3813_v20, %v9698_v23  ;;  %v9843_v55 = vmul.f32 %v9184_v4, %v12766_v18  ;;  %v9847_v19 = vmul.f32 %v9174_v15, %v12768_v61  ;;  %v9851_v2 = vmul.f32 %v9174_v15, %v12770_v58  ;;  %v12772_v33 = vld [vmem:[#allocation38_spill] sm:$0xff]  ;;  %v12774_v23 = vld [vmem:[#allocation33_spill] sm:$0xff] }
 0x3f2   : > { %12763 = vst [vmem:[#allocation15_spill] sm:$0xff] %v9834_v43  ;;  %12765 = vst [vmem:[#allocation19_spill] sm:$0xff] %v9838_v37  ;;  %v9854_v34 = vadd.f32 %v3828_v30, %v9809_v13  ;;  %v9857_v9 = vadd.f32 %v3854_v29, %v9813_v57  ;;  %v9861_v20 = vmul.f32 %v9418_v41, %v12772_v33  ;;  %v12778_v30 = vld [vmem:[#allocation163_spill] sm:$0xff]  ;;  %v12780_v57 = vld [vmem:[#allocation42_spill] sm:$0xff] }
 0x3f3   : > { %12767 = vst [vmem:[#allocation34_spill] sm:$0xff] %v9843_v55  ;;  %12769 = vst [vmem:[#allocation50_spill] sm:$0xff] %v9847_v19  ;;  %v3839_v18 = vadd.f32 %v3838_v50, %v9717_v52  ;;  %v9866_v61 = vmul.f32 %v9178_v59, %v12774_v23  ;;  %v9870_v58 = vmul.f32 %v9176_v35, %v12776_v12  ;;  %v12782_v50 = vld [vmem:[#allocation37_spill] sm:$0xff]  ;;  %v12784_v23 = vld [vmem:[#allocation160_spill] sm:$0xff] }
 0x3f4   : > { %12771 = vst [vmem:[#allocation161_spill] sm:$0xff] %v9851_v2  ;;  %12773 = vst [vmem:[#allocation38_spill] sm:$0xff] %v9861_v20  ;;  %v9874_v13 = vmul.f32 %v9178_v59, %v12778_v30  ;;  %v3815_v29 = vadd.f32 %v3814_v40, %v9834_v43  ;;  %v9879_v33 = vmul.f32 %v9652_v1, %v12780_v57 }
 0x3f5   : > { %12775 = vst [vmem:[#allocation33_spill] sm:$0xff] %v9866_v61  ;;  %12777 = vst [vmem:[#allocation187_spill] sm:$0xff] %v9870_v58  ;;  %v9887_v52 = vmul.f32 %v9174_v15, %v12784_v23  ;;  %v3840_v12 = vadd.f32 %v3839_v18, %v9843_v55  ;;  %v3877_v30 = vadd.f32 %v9847_v19, %v9690_v17  ;;  %v12790_v23 = vld [vmem:[#allocation74_spill] sm:$0xff]  ;;  %v12792_v55 = vld [vmem:[#allocation31_spill] sm:$0xff] }
 0x3f6   : > { %12779 = vst [vmem:[#allocation163_spill] sm:$0xff] %v9874_v13  ;;  %12781 = vst [vmem:[#allocation42_spill] sm:$0xff] %v9879_v33  ;;  %v9894_v40 = vmul.f32 %v9184_v4, %v12786_v46  ;;  %v3903_v57 = vadd.f32 %v9851_v2, %v9870_v58  ;;  %v9899_v43 = vadd.f32 %v3815_v29, %v9838_v37  ;;  %v12794_v29 = vld [vmem:[#allocation76_spill] sm:$0xff] }
 0x3f7   : > { %12785 = vst [vmem:[#allocation160_spill] sm:$0xff] %v9887_v52  ;;  %v9907_v18 = vmul.f32 %v9176_v35, %v12790_v23  ;;  %v9911_v19 = vmul.f32 %v9178_v59, %v12792_v55  ;;  %v3841_v46 = vadd.f32 %v3840_v12, %v9861_v20  ;;  %v3878_v17 = vadd.f32 %v3877_v30, %v9866_v61  ;;  %v12798_v23 = vld [vmem:[#allocation35_spill] sm:$0xff]  ;;  %v12800_v12 = vld [vmem:[#allocation52_spill] sm:$0xff] }
 0x3f8   : > { %v3306_v11 = vpop.xlane.xlu0 %3305  ;;  %12787 = vst [vmem:[#allocation167_spill] sm:$0xff] %v9894_v40  ;;  %v3904_v2 = vadd.f32 %v3903_v57, %v9874_v13  ;;  %v9918_v58 = vmul.f32 %v9176_v35, %v12794_v29  ;;  %v9926_v49 = vmul.f32 %v9184_v4, %v12798_v23  ;;  %v9932_v30 = vmul.f32 %v9174_v15, %v12800_v12  ;;  %v12802_v29 = vld [vmem:[#allocation174_spill] sm:$0xff]  ;;  %v12804_v23 = vld [vmem:[#allocation68_spill] sm:$0xff] }
 0x3f9   : > { %6482 = vrcp.f32 %v3306_v11  ;;  %v9883_v11 = vmul.f32 %v9184_v4, %v12782_v50  ;;  %v12788_v50 = vld [vmem:[#allocation41_spill] sm:$0xff]  ;;  %12791 = vst [vmem:[#allocation74_spill] sm:$0xff] %v9907_v18  ;;  %12793 = vst [vmem:[#allocation31_spill] sm:$0xff] %v9911_v19  ;;  %v3864_v55 = vadd.f32 %v9887_v52, %v9907_v18  ;;  %v9935_v57 = vadd.f32 %v3841_v46, %v9879_v33  ;;  %v12806_v52 = vld [vmem:[#allocation39_spill] sm:$0xff] }
 0x3fa   : > { %v9903_v0 = vmul.f32 %v9418_v41, %v12788_v50  ;;  %12795 = vst [vmem:[#allocation76_spill] sm:$0xff] %v9918_v58  ;;  %v12796_v50 = vld [vmem:[#allocation171_spill] sm:$0xff]  ;;  %12799 = vst [vmem:[#allocation35_spill] sm:$0xff] %v9926_v49  ;;  %v9939_v13 = vmul.f32 %v9652_v1, %v12802_v29  ;;  %v3905_v61 = vadd.f32 %v3904_v2, %v9894_v40  ;;  %v12808_v46 = vld [vmem:[#allocation54_spill] sm:$0xff] }
 0x3fb   : > { %12783 = vst [vmem:[#allocation37_spill] sm:$0xff] %v9883_v11  ;;  %v9922_v37 = vmul.f32 %v9418_v41, %v12796_v50  ;;  %12801 = vst [vmem:[#allocation52_spill] sm:$0xff] %v9932_v30  ;;  %v3879_v50 = vadd.f32 %v3878_v17, %v9883_v11  ;;  %v9945_v20 = vmul.f32 %v9652_v1, %v12804_v23  ;;  %v12812_v2 = vld [vmem:[#allocation53_spill] sm:$0xff]  ;;  %v12814_v40 = vld [vmem:[#allocation190_spill] sm:$0xff] }
 0x3fc   : > { %12789 = vst [vmem:[#allocation41_spill] sm:$0xff] %v9903_v0  ;;  %12803 = vst [vmem:[#allocation174_spill] sm:$0xff] %v9939_v13  ;;  %v9949_v18 = vmul.f32 %v9418_v41, %v12806_v52  ;;  %v3865_v12 = vadd.f32 %v3864_v55, %v9911_v19  ;;  %v9954_v33 = vmul.f32 %v9178_v59, %v12808_v46  ;;  %v12819_v11 = vld [vmem:[#allocation149_spill] sm:$0xff] }
 0x3fd   : > { %12797 = vst [vmem:[#allocation171_spill] sm:$0xff] %v9922_v37  ;;  %12805 = vst [vmem:[#allocation68_spill] sm:$0xff] %v9945_v20  ;;  %v3880_v29 = vadd.f32 %v3879_v50, %v9903_v0  ;;  %v9959_v17 = vmul.f32 %v9176_v35, %v12810_v54  ;;  %v9963_v23 = vmul.f32 %v9174_v15, %v12812_v2  ;;  %v12816_v50 = vld [vmem:[#allocation103_spill] sm:$0xff] }
 0x3fe   : > { %12807 = vst [vmem:[#allocation39_spill] sm:$0xff] %v9949_v18  ;;  %12809 = vst [vmem:[#allocation54_spill] sm:$0xff] %v9954_v33  ;;  %v9967_v52 = vmul.f32 %v9174_v15, %v12814_v40  ;;  %v3906_v55 = vadd.f32 %v3905_v61, %v9922_v37  ;;  %v3866_v19 = vadd.f32 %v3865_v12, %v9926_v49  ;;  %v12823_v12 = vld [vmem:[#allocation57_spill] sm:$0xff] }
 0x3ff   : > { %12811 = vst [vmem:[#allocation102_spill] sm:$0xff] %v9959_v17  ;;  %12813 = vst [vmem:[#allocation53_spill] sm:$0xff] %v9963_v23  ;;  %v3890_v46 = vadd.f32 %v9932_v30, %v9918_v58  ;;  %v9975_v0 = vmul.f32 %v9176_v35, %v12816_v50  ;;  %v9980_v2 = vadd.f32 %v3880_v29, %v9939_v13  ;;  %v12825_v58 = vld [vmem:[#allocation193_spill] sm:$0xff] }
 0x400   : > { %12815 = vst [vmem:[#allocation190_spill] sm:$0xff] %v9967_v52  ;;  %v9984_v40 = vmul.f32 %v9652_v1, %v12819_v11  ;;  %v9988_v61 = vmul.f32 %v9184_v4, %v12821_v45  ;;  %v9992_v49 = vmul.f32 %v9178_v59, %v12823_v12  ;;  %v9995_v50 = vadd.f32 %v3906_v55, %v9945_v20  ;;  %v12827_v11 = vld [vmem:[#allocation62_spill] sm:$0xff]  ;;  %v12829_v45 = vld [vmem:[#allocation61_spill] sm:$0xff]  ;;  %v12831_v12 = vld [vmem:[#allocation148_spill] sm:$0xff] }
 0x401   : > { %12817 = vst [vmem:[#allocation103_spill] sm:$0xff] %v9975_v0  ;;  %v3867_v30 = vadd.f32 %v3866_v19, %v9949_v18  ;;  %v3891_v29 = vadd.f32 %v3890_v46, %v9954_v33  ;;  %v10001_v37 = vmul.f32 %v9178_v59, %v12825_v58  ;;  %v10005_v13 = vmul.f32 %v9418_v41, %v12827_v11  ;;  %v12832_v58 = vld [vmem:[#allocation44_spill] sm:$0xff]  ;;  %v12833_v11 = vld [vmem:[#allocation21_spill] sm:$0xff] }
 0x402   : > { %12820 = vst [vmem:[#allocation149_spill] sm:$0xff] %v9984_v40  ;;  %12822 = vst [vmem:[#allocation58_spill] sm:$0xff] %v9988_v61  ;;  %v10009_v22 = vmul.f32 %v9184_v4, %v12829_v45  ;;  %v3929_v55 = vadd.f32 %v9963_v23, %v9959_v17  ;;  %v3955_v19 = vadd.f32 %v9967_v52, %v9975_v0  ;;  %v12834_v45 = vld [vmem:[#allocation147_spill] sm:$0xff] }
 0x403   : > { %v9977_v54 = vpop.eup %6482  ;;  %12824 = vst [vmem:[#allocation57_spill] sm:$0xff] %v9992_v49  ;;  %12826 = vst [vmem:[#allocation193_spill] sm:$0xff] %v10001_v37  ;;  %v3868_v23 = vadd.f32 %v3867_v30, %v9984_v40  ;;  %v3892_v52 = vadd.f32 %v3891_v29, %v9988_v61  ;;  %v12842_v29 = vld [vmem:[#allocation66_spill] sm:$0xff]  ;;  %v12857_v61 = vld [vmem:[#allocation97_spill] sm:$0xff] }
 0x404   : > { %12818 = vst [vmem:[#allocation252_spill] sm:$0xff] %v9977_v54  ;;  %12828 = vst [vmem:[#allocation62_spill] sm:$0xff] %v10005_v13  ;;  %v10017_v46 = vmul.f32 %v9977_v54, %v12831_v12  ;;  %v10021_v18 = vmul.f32 %v9977_v54, %v12832_v58  ;;  %v10025_v33 = vmul.f32 %v9977_v54, %v12833_v11  ;;  %v12835_v12 = vld [vmem:[#allocation75_spill] sm:$0xff]  ;;  %v12837_v58 = vld [vmem:[#allocation45_spill] sm:$0xff] }
 0x405   : > { %12830 = vst [vmem:[#allocation61_spill] sm:$0xff] %v10009_v22  ;;  %v10029_v20 = vmul.f32 %v9977_v54, %v12834_v45  ;;  %v3930_v0 = vadd.f32 %v3929_v55, %v9992_v49  ;;  %v10036_v17 = vmul.f32 %v9176_v35, %v12835_v12  ;;  %v10040_v10 = vmul.f32 %v9977_v54, %v12837_v58  ;;  %v12838_v11 = vld [vmem:[#allocation175_spill] sm:$0xff]  ;;  %v12844_v58 = vld [vmem:[#allocation196_spill] sm:$0xff] }
 0x406   : > { %v10044_v25 = vmul.f32 %v9977_v54, %v12838_v11  ;;  %v12840_v45 = vld [vmem:[#allocation43_spill] sm:$0xff]  ;;  %v3956_v30 = vadd.f32 %v3955_v19, %v10001_v37  ;;  %v10053_v55 = vmul.f32 %v9977_v54, %v12842_v29  ;;  %v3893_v12 = vadd.f32 %v3892_v52, %v10005_v13  ;;  %v12851_v37 = vld [vmem:[#allocation94_spill] sm:$0xff]  ;;  %v12855_v13 = vld [vmem:[#allocation125_spill] sm:$0xff] }
 0x407   : > { %12836 = vst [vmem:[#allocation148_spill] sm:$0xff] %v10036_v17  ;;  %v10048_v60 = vmul.f32 %v9977_v54, %v12840_v45  ;;  %v3931_v49 = vadd.f32 %v3930_v0, %v10009_v22  ;;  %v10059_v40 = vmul.f32 %v9184_v4, %v12844_v58  ;;  %v10063_v11 = vadd.f32 %v9737_v27, %v10017_v46  ;;  %v12846_v0 = vld [vmem:[#allocation69_spill] sm:$0xff]  ;;  %v12849_v58 = vld [vmem:[#allocation67_spill] sm:$0xff]  ;;  %v12853_v22 = vld [vmem:[#allocation124_spill] sm:$0xff] }
 0x408   : > { %12839 = vst [vmem:[#allocation44_spill] sm:$0xff] %v10044_v25  ;;  %12843 = vst [vmem:[#allocation147_spill] sm:$0xff] %v10053_v55  ;;  %v10067_v45 = vadd.f32 %v9741_v36, %v10021_v18  ;;  %v10071_v19 = vadd.f32 %v9769_v42, %v10025_v33  ;;  %v10075_v52 = vadd.f32 %v9773_v31, %v10029_v20 }
 0x409   : > { %12841 = vst [vmem:[#allocation21_spill] sm:$0xff] %v10048_v60  ;;  %12845 = vst [vmem:[#allocation75_spill] sm:$0xff] %v10059_v40  ;;  %v10079_v29 = vmul.f32 %v9977_v54, %v12846_v0  ;;  %v10083_v27 = vmul.f32 %v9977_v54, %v8924_v16  ;;  %v10087_v36 = vmul.f32 %v9977_v54, %v12849_v58 }
 0x40a   : > { %v10091_v42 = vmul.f32 %v9977_v54, %v12851_v37  ;;  %v10095_v31 = vadd.f32 %v9777_v38, %v10040_v10  ;;  %v10099_v0 = vadd.f32 %v9785_v39, %v10044_v25  ;;  %v10103_v16 = vadd.f32 %v9789_v53, %v10048_v60  ;;  %v12859_v25 = vld [vmem:[#allocation123_spill] sm:$0xff]  ;;  %v12861_v60 = vld [vmem:[#allocation150_spill] sm:$0xff] }
 0x40b   : > { %12847 = vst [vmem:[#allocation45_spill] sm:$0xff] %v10079_v29  ;;  %12848 = vst [vmem:[#allocation175_spill] sm:$0xff] %v10083_v27  ;;  %v10107_v58 = vmul.f32 %v9977_v54, %v12853_v22  ;;  %v10111_v37 = vadd.f32 %v9793_v24, %v10053_v55  ;;  %v10115_v38 = vmul.f32 %v9977_v54, %v12855_v13  ;;  %v12864_v55 = vld [vmem:[#allocation23_spill] sm:$0xff] }
 0x40c   : > { %12850 = vst [vmem:[#allocation43_spill] sm:$0xff] %v10087_v36  ;;  %12852 = vst [vmem:[#allocation66_spill] sm:$0xff] %v10091_v42  ;;  %v10119_v39 = vmul.f32 %v9977_v54, %v12857_v61  ;;  %v10123_v53 = vmul.f32 %v9977_v54, %v12859_v25  ;;  %v10127_v22 = vmul.f32 %v9977_v54, %v12861_v60 }
 0x40d   : > { %12854 = vst [vmem:[#allocation196_spill] sm:$0xff] %v10107_v58  ;;  %12856 = vst [vmem:[#allocation69_spill] sm:$0xff] %v10115_v38  ;;  %v10131_v24 = vmul.f32 %v9977_v54, %v9000_v32  ;;  %v10135_v13 = vmul.f32 %v9977_v54, %v12864_v55  ;;  %v10139_v61 = vmul.f32 %v9977_v54, %v8989_v14 }
 0x40e   : > { %12858 = vst [vmem:[#allocation67_spill] sm:$0xff] %v10119_v39  ;;  %12860 = vst [vmem:[#allocation94_spill] sm:$0xff] %v10123_v53  ;;  %v10143_v25 = vadd.f32 %v9797_v56, %v10079_v29  ;;  %v10147_v60 = vadd.f32 %v9801_v28, %v10083_v27  ;;  %v10151_v32 = vadd.f32 %v9805_v3, %v10087_v36 }
 0x40f   : > { %12862 = vst [vmem:[#allocation124_spill] sm:$0xff] %v10127_v22  ;;  %12863 = vst [vmem:[#allocation125_spill] sm:$0xff] %v10131_v24  ;;  %v10155_v55 = vadd.f32 %v9817_v21, %v10091_v42  ;;  %v10159_v14 = vadd.f32 %v9820_v63, %v10107_v58  ;;  %v10163_v56 = vmul.f32 %v9977_v54, %v9020_v6  ;;  %v12871_v58 = vld [vmem:[#allocation176_spill] sm:$0xff] }
 0x410   : > { %12865 = vst [vmem:[#allocation97_spill] sm:$0xff] %v10135_v13  ;;  %12866 = vst [vmem:[#allocation123_spill] sm:$0xff] %v10139_v61  ;;  %v10167_v28 = vmul.f32 %v9977_v54, %v9038_v51  ;;  %v10171_v3 = vmul.f32 %v9977_v54, %v9010_v48  ;;  %v10175_v21 = vadd.f32 %v9823_v26, %v10115_v38 }
 0x411   : > { %12867 = vst [vmem:[#allocation150_spill] sm:$0xff] %v10163_v56  ;;  %v10179_v63 = vadd.f32 %v9826_v7, %v10119_v39  ;;  %v10183_v6 = vadd.f32 %v9829_v47, %v10123_v53  ;;  %v10187_v51 = vmul.f32 %v9652_v1, %v12871_v58  ;;  %v10191_v48 = vadd.f32 %v9854_v34, %v10127_v22  ;;  %v12878_v53 = vld [vmem:[#allocation65_spill] sm:$0xff]  ;;  %v12880_v22 = vld [vmem:[#allocation199_spill] sm:$0xff] }
 0x412   : > { %12868 = vst [vmem:[#allocation23_spill] sm:$0xff] %v10167_v28  ;;  %12869 = vst [vmem:[#allocation253_spill] sm:$0xff] %v10171_v3  ;;  %v10195_v26 = vadd.f32 %v9857_v9, %v10131_v24  ;;  %v10199_v7 = vadd.f32 %v9899_v43, %v10135_v13  ;;  %v10203_v47 = vadd.f32 %v9935_v57, %v10139_v61  ;;  %v12887_v13 = vld [vmem:[#allocation200_spill] sm:$0xff] }
 0x413   : > { %12870 = vst [vmem:[#allocation254_spill] sm:$0xff] %v10183_v6  ;;  %12872 = vst [vmem:[#allocation176_spill] sm:$0xff] %v10187_v51  ;;  %v10207_v58 = vmul.f32 %v9977_v54, %v9030_v44  ;;  %v10211_v34 = vmul.f32 %v9418_v41, %v12878_v53  ;;  %v10215_v9 = vmul.f32 %v9418_v41, %v12880_v22  ;;  %v12885_v44 = vld [vmem:[#allocation51_spill] sm:$0xff]  ;;  %v12889_v24 = vld [vmem:[#allocation96_spill] sm:$0xff] }
 0x414   : > { %12873 = vst [vmem:[#allocation255_spill] sm:$0xff] %v10191_v48  ;;  %12874 = vst [vmem:[#allocation256_spill] sm:$0xff] %v10195_v26  ;;  %v10219_v43 = vadd.f32 %v9980_v2, %v10163_v56  ;;  %v10223_v57 = vadd.f32 %v9995_v50, %v10167_v28  ;;  %v10230_v61 = vmul.f32 %v9174_v15, %v12885_v44 }
 0x415   : > { %12875 = vst [vmem:[#allocation257_spill] sm:$0xff] %v10199_v7  ;;  %12876 = vst [vmem:[#allocation258_spill] sm:$0xff] %v10203_v47  ;;  %v3894_v53 = vadd.f32 %v3893_v12, %v10187_v51  ;;  %v10235_v22 = vmul.f32 %v9652_v1, %v12887_v13  ;;  %v10239_v2 = vmul.f32 %v9652_v1, %v12889_v24  ;;  %v12895_v13 = vld [vmem:[#allocation78_spill] sm:$0xff] }
 0x416   : > { %12877 = vst [vmem:[#allocation259_spill] sm:$0xff] %v10207_v58  ;;  %12879 = vst [vmem:[#allocation65_spill] sm:$0xff] %v10211_v34  ;;  %v3957_v50 = vadd.f32 %v3956_v30, %v10059_v40  ;;  %v10248_v44 = vmul.f32 %v9977_v54, %v9070_v5  ;;  %v10256_v51 = vmul.f32 %v9174_v15, %v12895_v13  ;;  %v12898_v40 = vld [vmem:[#allocation59_spill] sm:$0xff]  ;;  %v12902_v13 = vld [vmem:[#allocation104_spill] sm:$0xff] }
 0x417   : > { %12881 = vst [vmem:[#allocation199_spill] sm:$0xff] %v10215_v9  ;;  %12882 = vst [vmem:[#allocation260_spill] sm:$0xff] %v10219_v43  ;;  %v10259_v24 = vadd.f32 %v3894_v53, %v10207_v58  ;;  %v3932_v30 = vadd.f32 %v3931_v49, %v10211_v34  ;;  %v10265_v28 = vmul.f32 %v9184_v4, %v12898_v40  ;;  %v12900_v5 = vld [vmem:[#allocation63_spill] sm:$0xff]  ;;  %v12904_v53 = vld [vmem:[#allocation82_spill] sm:$0xff] }
 0x418   : > { %v3339_v42 = vpop.xlane.xlu1 %3338  ;;  %12883 = vst [vmem:[#allocation261_spill] sm:$0xff] %v10223_v57  ;;  %12886 = vst [vmem:[#allocation51_spill] sm:$0xff] %v10230_v61  ;;  %v10269_v56 = vmul.f32 %v9418_v41, %v12900_v5  ;;  %v10279_v49 = vmul.f32 %v9178_v59, %v12904_v53  ;;  %v12908_v5 = vld [vmem:[#allocation108_spill] sm:$0xff] }
 0x419   : > { %6484 = vrcp.f32 %v3339_v42  ;;  %v10226_v42 = vadd.f32 %v3868_v23, %v10171_v3  ;;  %12888 = vst [vmem:[#allocation200_spill] sm:$0xff] %v10235_v22  ;;  %12890 = vst [vmem:[#allocation96_spill] sm:$0xff] %v10239_v2  ;;  %v10244_v23 = vmul.f32 %v9977_v54, %v9054_v62  ;;  %v12893_v3 = vld [vmem:[#allocation55_spill] sm:$0xff]  ;;  %v3958_v62 = vadd.f32 %v3957_v50, %v10215_v9  ;;  %v12906_v9 = vld [vmem:[#allocation177_spill] sm:$0xff] }
 0x41a   : > { %12892 = vst [vmem:[#allocation264_spill] sm:$0xff] %v10248_v44  ;;  %v10252_v12 = vmul.f32 %v9178_v59, %v12893_v3  ;;  %12896 = vst [vmem:[#allocation78_spill] sm:$0xff] %v10256_v51  ;;  %v3916_v3 = vadd.f32 %v10230_v61, %v10036_v17  ;;  %v3933_v50 = vadd.f32 %v3932_v30, %v10235_v22  ;;  %v12912_v30 = vld [vmem:[#allocation130_spill] sm:$0xff]  ;;  %v12920_v22 = vld [vmem:[#allocation49_spill] sm:$0xff] }
 0x41b   : > { %12884 = vst [vmem:[#allocation262_spill] sm:$0xff] %v10226_v42  ;;  %12891 = vst [vmem:[#allocation263_spill] sm:$0xff] %v10244_v23  ;;  %v10275_v42 = vmul.f32 %v9176_v35, %v12902_v13  ;;  %v3959_v40 = vadd.f32 %v3958_v62, %v10239_v2  ;;  %v10285_v34 = vmul.f32 %v9652_v1, %v12906_v9  ;;  %v12910_v13 = vld [vmem:[#allocation86_spill] sm:$0xff] }
 0x41c   : > { %12894 = vst [vmem:[#allocation55_spill] sm:$0xff] %v10252_v12  ;;  %12897 = vst [vmem:[#allocation265_spill] sm:$0xff] %v10259_v24  ;;  %v10289_v58 = vmul.f32 %v9174_v15, %v12908_v5  ;;  %v3917_v61 = vadd.f32 %v3916_v3, %v10252_v12  ;;  %v10294_v17 = vmul.f32 %v9184_v4, %v12910_v13  ;;  %v12916_v5 = vld [vmem:[#allocation110_spill] sm:$0xff]  ;;  %v12918_v12 = vld [vmem:[#allocation131_spill] sm:$0xff] }
 0x41d   : > { %12899 = vst [vmem:[#allocation59_spill] sm:$0xff] %v10265_v28  ;;  %12901 = vst [vmem:[#allocation63_spill] sm:$0xff] %v10269_v56  ;;  %v3942_v53 = vadd.f32 %v10256_v51, %v10275_v42  ;;  %v10300_v62 = vmul.f32 %v9176_v35, %v12912_v30  ;;  %v10303_v9 = vadd.f32 %v3933_v50, %v10244_v23 }
 0x41e   : > { %12903 = vst [vmem:[#allocation104_spill] sm:$0xff] %v10275_v42  ;;  %12905 = vst [vmem:[#allocation82_spill] sm:$0xff] %v10279_v49  ;;  %v10306_v2 = vadd.f32 %v3959_v40, %v10248_v44  ;;  %v10310_v3 = vmul.f32 %v9178_v59, %v12916_v5  ;;  %v10314_v13 = vmul.f32 %v9176_v35, %v12918_v12  ;;  %v12922_v42 = vld [vmem:[#allocation109_spill] sm:$0xff]  ;;  %v12924_v5 = vld [vmem:[#allocation90_spill] sm:$0xff] }
 0x41f   : > { %12907 = vst [vmem:[#allocation177_spill] sm:$0xff] %v10285_v34  ;;  %12909 = vst [vmem:[#allocation108_spill] sm:$0xff] %v10289_v58  ;;  %v10318_v51 = vmul.f32 %v9977_v54, %v12920_v22  ;;  %v3918_v30 = vadd.f32 %v3917_v61, %v10265_v28  ;;  %v3943_v50 = vadd.f32 %v3942_v53, %v10279_v49  ;;  %v12926_v12 = vld [vmem:[#allocation114_spill] sm:$0xff]  ;;  %v12928_v61 = vld [vmem:[#allocation12_spill] sm:$0xff] }
 0x420   : > { %12911 = vst [vmem:[#allocation86_spill] sm:$0xff] %v10294_v17  ;;  %12913 = vst [vmem:[#allocation130_spill] sm:$0xff] %v10300_v62  ;;  %v10324_v40 = vmul.f32 %v9174_v15, %v12922_v42  ;;  %v10330_v23 = vmul.f32 %v9418_v41, %v12924_v5  ;;  %v10334_v35 = vmul.f32 %v9184_v4, %v12926_v12  ;;  %v12930_v49 = vld [vmem:[#allocation152_spill] sm:$0xff]  ;;  %v12931_v28 = vld [vmem:[#allocation151_spill] sm:$0xff] }
 0x421   : > { %12914 = vst [vmem:[#allocation266_spill] sm:$0xff] %v10303_v9  ;;  %12915 = vst [vmem:[#allocation267_spill] sm:$0xff] %v10306_v2  ;;  %v3981_v22 = vadd.f32 %v10289_v58, %v10300_v62  ;;  %v10340_v53 = vmul.f32 %v9178_v59, %v12928_v61  ;;  %v10351_v5 = vadd.f32 %v3918_v30, %v10269_v56  ;;  %v12932_v2 = vld [vmem:[#allocation25_spill] sm:$0xff]  ;;  %v12933_v61 = vld [vmem:[#allocation46_spill] sm:$0xff] }
 0x422   : > { %12917 = vst [vmem:[#allocation110_spill] sm:$0xff] %v10310_v3  ;;  %12919 = vst [vmem:[#allocation131_spill] sm:$0xff] %v10314_v13  ;;  %v10354_v12 = vadd.f32 %v3943_v50, %v10294_v17 }
 0x423   : > { %12921 = vst [vmem:[#allocation49_spill] sm:$0xff] %v10318_v51  ;;  %12923 = vst [vmem:[#allocation109_spill] sm:$0xff] %v10324_v40  ;;  %v10326_v44 = vpop.eup %6484 }
 0x424   : > { %12925 = vst [vmem:[#allocation90_spill] sm:$0xff] %v10330_v23  ;;  %12927 = vst [vmem:[#allocation114_spill] sm:$0xff] %v10334_v35  ;;  %v10344_v42 = vmul.f32 %v10326_v44, %v12930_v49  ;;  %v10348_v15 = vmul.f32 %v10326_v44, %v12931_v28  ;;  %v10358_v58 = vmul.f32 %v10326_v44, %v12932_v2  ;;  %v12934_v49 = vld [vmem:[#allocation153_spill] sm:$0xff]  ;;  %v12936_v28 = vld [vmem:[#allocation178_spill] sm:$0xff] }
 0x425   : > { %12929 = vst [vmem:[#allocation12_spill] sm:$0xff] %v10340_v53  ;;  %v10362_v62 = vmul.f32 %v10326_v44, %v12933_v61  ;;  %v10366_v59 = vmul.f32 %v10326_v44, %v12934_v49  ;;  %v10370_v9 = vmul.f32 %v10326_v44, %v12936_v28  ;;  %v12938_v2 = vld [vmem:[#allocation48_spill] sm:$0xff]  ;;  %v12940_v61 = vld [vmem:[#allocation47_spill] sm:$0xff] }
 0x426   : > { %v3623_v30 = vadd.f32 %v10063_v11, %v10344_v42  ;;  %v3649_v50 = vadd.f32 %v10067_v45, %v10348_v15  ;;  %v10378_v17 = vmul.f32 %v10326_v44, %v12938_v2  ;;  %v10382_v56 = vmul.f32 %v10326_v44, %v12940_v61 }
 0x427   : > { %12935 = vst [vmem:[#allocation152_spill] sm:$0xff] %v10366_v59  ;;  %12937 = vst [vmem:[#allocation151_spill] sm:$0xff] %v10370_v9  ;;  %v3610_v49 = vadd.f32 %v10071_v19, %v10358_v58  ;;  %v3636_v28 = vadd.f32 %v10075_v52, %v10362_v62  ;;  %v3675_v11 = vadd.f32 %v10095_v31, %v10366_v59 }
 0x428   : > { %12939 = vst [vmem:[#allocation25_spill] sm:$0xff] %v10378_v17  ;;  %12941 = vst [vmem:[#allocation46_spill] sm:$0xff] %v10382_v56  ;;  %v3701_v45 = vadd.f32 %v10099_v0, %v10370_v9  ;;  %v3624_v24 = vrot.slane %v3623_v30, 4  ;;  %v3650_v39 = vrot.slane %v3649_v50, 4  ;;  %v3662_v2 = vadd.f32 %v10103_v16, %v10378_v17 }
 0x429   : > { %v3688_v61 = vadd.f32 %v10111_v37, %v10382_v56  ;;  %v3611_v38 = vrot.slane %v3610_v49, 4  ;;  %v3637_v57 = vrot.slane %v3636_v28, 4  ;;  %v3676_v19 = vrot.slane %v3675_v11, 4 }
 0x42a   : > { %v3702_v43 = vrot.slane %v3701_v45, 4  ;;  %v3625_v36 = vadd.f32 %v3624_v24, %v3623_v30  ;;  %v3651_v52 = vadd.f32 %v3650_v39, %v3649_v50  ;;  %v3663_v27 = vrot.slane %v3662_v2, 4 }
 0x42b   : > { %v3689_v29 = vrot.slane %v3688_v61, 4  ;;  %v3612_v31 = vadd.f32 %v3611_v38, %v3610_v49  ;;  %v3638_v47 = vadd.f32 %v3637_v57, %v3636_v28  ;;  %v3677_v7 = vadd.f32 %v3676_v19, %v3675_v11 }
 0x42c   : > { %v3703_v0 = vadd.f32 %v3702_v43, %v3701_v45  ;;  %v3626_v54 = vrot.slane %v3625_v36, 2  ;;  %v3652_v26 = vrot.slane %v3651_v52, 2  ;;  %v3664_v53 = vadd.f32 %v3663_v27, %v3662_v2 }
 0x42d   : > { %v3690_v51 = vadd.f32 %v3689_v29, %v3688_v61  ;;  %v3613_v16 = vrot.slane %v3612_v31, 2  ;;  %v3639_v48 = vrot.slane %v3638_v47, 2  ;;  %v3678_v6 = vrot.slane %v3677_v7, 2 }
 0x42e   : > { %v3704_v37 = vrot.slane %v3703_v0, 2  ;;  %v3627_v56 = vadd.f32 %v3626_v54, %v3625_v36  ;;  %v3653_v17 = vadd.f32 %v3652_v26, %v3651_v52  ;;  %v3665_v9 = vrot.slane %v3664_v53, 2 }
 0x42f   : > { %v3691_v59 = vrot.slane %v3690_v51, 2  ;;  %v3614_v24 = vadd.f32 %v3613_v16, %v3612_v31  ;;  %v3640_v39 = vadd.f32 %v3639_v48, %v3638_v47  ;;  %v3679_v30 = vadd.f32 %v3678_v6, %v3677_v7  ;;  %v12946_v31 = vld [vmem:[#allocation203_spill] sm:$0xff] }
 0x430   : > { %v3705_v50 = vadd.f32 %v3704_v37, %v3703_v0  ;;  %v3628_v38 = vrot.slane %v3627_v56, 1  ;;  %v3654_v57 = vrot.slane %v3653_v17, 1  ;;  %v3666_v49 = vadd.f32 %v3665_v9, %v3664_v53  ;;  %v12944_v9 = vld [vmem:[#allocation180_spill] sm:$0xff]  ;;  %v12945_v53 = vld [vmem:[#allocation179_spill] sm:$0xff] }
 0x431   : > { %v3692_v43 = vadd.f32 %v3691_v59, %v3690_v51  ;;  %v3615_v28 = vrot.slane %v3614_v24, 1  ;;  %v3641_v11 = vrot.slane %v3640_v39, 1  ;;  %v3680_v27 = vrot.slane %v3679_v30, 1  ;;  %v12942_v59 = vld [vmem:[#allocation70_spill] sm:$0xff] }
 0x432   : > { %v3706_v29 = vrot.slane %v3705_v50, 1  ;;  %v3629_v45 = vadd.f32 %v3628_v38, %v3627_v56  ;;  %v3655_v2 = vadd.f32 %v3654_v57, %v3653_v17  ;;  %v3982_v61 = vadd.f32 %v3981_v22, %v10310_v3  ;;  %v12943_v56 = vld [vmem:[#allocation181_spill] sm:$0xff]  ;;  %v12966_v3 = vld [vmem:[#allocation231_spill] sm:$0xff] }
 0x433   : > { %v10399_v54 = vadd.f32 %v10324_v40, %v10314_v13  ;;  %v3616_v36 = vadd.f32 %v3615_v28, %v3614_v24  ;;  %v3642_v48 = vadd.f32 %v3641_v11, %v3640_v39  ;;  %v3667_v6 = vrot.slane %v3666_v49, 1  ;;  %v12967_v13 = vld [vmem:[#allocation243_spill] sm:$0xff] }
 0x434   : > { %v3693_v26 = vrot.slane %v3692_v43, 1  ;;  %6486 = vrcp.f32 %v3629_v45  ;;  %v3681_v7 = vadd.f32 %v3680_v27, %v3679_v30  ;;  %v3707_v47 = vadd.f32 %v3706_v29, %v3705_v50  ;;  %v12950_v29 = vld [vmem:[#allocation118_spill] sm:$0xff] }
 0x435   : > { %v10403_v51 = vmul.f32 %v10326_v44, %v12942_v59  ;;  %6488 = vrcp.f32 %v3655_v2  ;;  %v10407_v17 = vmul.f32 %v10326_v44, %v12943_v56  ;;  %v10411_v22 = vmul.f32 %v10326_v44, %v12944_v9  ;;  %v12954_v59 = vld [vmem:[#allocation202_spill] sm:$0xff]  ;;  %v12955_v9 = vld [vmem:[#allocation223_spill] sm:$0xff] }
 0x436   : > { %v10415_v19 = vmul.f32 %v10326_v44, %v12945_v53  ;;  %6490 = vrcp.f32 %v3616_v36  ;;  %v10421_v0 = vmul.f32 %v10326_v44, %v12946_v31  ;;  %v10425_v16 = vmul.f32 %v10326_v44, %v9106_v8 }
 0x437   : > { %v3727_v52 = vadd.f32 %v10143_v25, %v10403_v51  ;;  %6492 = vrcp.f32 %v3642_v48  ;;  %v3753_v37 = vadd.f32 %v10147_v60, %v10407_v17  ;;  %v3714_v24 = vadd.f32 %v10151_v32, %v10411_v22  ;;  %v12952_v48 = vld [vmem:[#allocation16_spill] sm:$0xff] }
 0x438   : > { %12947 = vst [vmem:[#allocation153_spill] sm:$0xff] %v10421_v0  ;;  %12948 = vst [vmem:[#allocation178_spill] sm:$0xff] %v10425_v16  ;;  %v3740_v39 = vadd.f32 %v10155_v55, %v10415_v19  ;;  %v3668_v30 = vadd.f32 %v3667_v6, %v3666_v49  ;;  %v3779_v50 = vadd.f32 %v10159_v14, %v10421_v0  ;;  %6494 = vrcp.f32 %v3681_v7  ;;  %v12949_v49 = vld [vmem:[#allocation201_spill] sm:$0xff] }
 0x439   : > { %v3728_v25 = vrot.slane %v3727_v52, 4  ;;  %v3805_v38 = vadd.f32 %v10175_v21, %v10425_v16  ;;  %v3694_v8 = vadd.f32 %v3693_v26, %v3692_v43  ;;  %v3754_v57 = vrot.slane %v3753_v37, 4 }
 0x43a   : > { %v3715_v28 = vrot.slane %v3714_v24, 4  ;;  %v3741_v11 = vrot.slane %v3740_v39, 4  ;;  %v3780_v27 = vrot.slane %v3779_v50, 4  ;;  %6496 = vrcp.f32 %v3707_v47 }
 0x43b   : > { %v10437_v60 = vadd.f32 %v3728_v25, %v3727_v52  ;;  %v3806_v32 = vrot.slane %v3805_v38, 4  ;;  %v10441_v55 = vadd.f32 %v10351_v5, %v10285_v34  ;;  %v10445_v14 = vmul.f32 %v9652_v1, %v12949_v49  ;;  %v12956_v52 = vld [vmem:[#allocation221_spill] sm:$0xff]  ;;  %v12969_v34 = vld [vmem:[#allocation244_spill] sm:$0xff] }
 0x43c   : > { %v10449_v21 = vadd.f32 %v10354_v12, %v10330_v23  ;;  %6498 = vrcp.f32 %v3668_v30  ;;  %v10451_v43 = vadd.f32 %v3754_v57, %v3753_v37  ;;  %v10455_v45 = vmul.f32 %v9418_v41, %v12950_v29  ;;  %v12957_v37 = vld [vmem:[#allocation224_spill] sm:$0xff]  ;;  %v12962_v29 = vld [vmem:[#allocation227_spill] sm:$0xff] }
 0x43d   : > { %v10458_v2 = vadd.f32 %v3982_v61, %v10334_v35  ;;  %6500 = vrcp.f32 %v3694_v8  ;;  %v10460_v5 = vadd.f32 %v3715_v28, %v3714_v24  ;;  %v10462_v36 = vadd.f32 %v3741_v11, %v3740_v39  ;;  %v12958_v39 = vld [vmem:[#allocation225_spill] sm:$0xff]  ;;  %v12959_v8 = vld [vmem:[#allocation226_spill] sm:$0xff]  ;;  %v12968_v23 = vld [vmem:[#allocation136_spill] sm:$0xff] }
 0x43e   : > { %12951 = vst [vmem:[#allocation48_spill] sm:$0xff] %v10455_v45  ;;  %v10466_v6 = vmul.f32 %v9184_v4, %v12952_v48  ;;  %v6487_v12 = vpop.eup %6486  ;;  %v10469_v7 = vadd.f32 %v3780_v27, %v3779_v50  ;;  %v10471_v47 = vadd.f32 %v3806_v32, %v3805_v38  ;;  %v10475_v61 = vmul.f32 %v10326_v44, %v12954_v59  ;;  %v12960_v50 = vld [vmem:[#allocation228_spill] sm:$0xff]  ;;  %v12961_v38 = vld [vmem:[#allocation239_spill] sm:$0xff]  ;;  %v12963_v59 = vld [vmem:[#allocation229_spill] sm:$0xff] }
 0x43f   : > { %v6489_v56 = vpop.eup %6488  ;;  %v4053_v53 = vmul.f32 %v6487_v12, %v12955_v9  ;;  %v4085_v31 = vmul.f32 %v6487_v12, %v12956_v52  ;;  %v4117_v24 = vmul.f32 %v6487_v12, %v12957_v37  ;;  %v4149_v30 = vmul.f32 %v6487_v12, %v12958_v39  ;;  %v12964_v52 = vld [vmem:[#allocation137_spill] sm:$0xff]  ;;  %v12965_v35 = vld [vmem:[#allocation230_spill] sm:$0xff] }
 0x440   : > { %12953 = vst [vmem:[#allocation47_spill] sm:$0xff] %v10466_v6  ;;  %v6491_v25 = vpop.eup %6490  ;;  %v4055_v57 = vmul.f32 %v6489_v56, %v12959_v8  ;;  %v4087_v28 = vmul.f32 %v6489_v56, %v12960_v50  ;;  %v4119_v11 = vmul.f32 %v6489_v56, %v12961_v38  ;;  %v4151_v26 = vmul.f32 %v6489_v56, %v12964_v52 }
 0x441   : > { %v6493_v32 = vpop.eup %6492  ;;  %v5693_v49 = vpack.c.bf16 %v4085_v31, %v4053_v53  ;;  %v4052_v48 = vmul.f32 %v6491_v25, %v12962_v29  ;;  %v4084_v9 = vmul.f32 %v6491_v25, %v12963_v59  ;;  %v5697_v8 = vpack.c.bf16 %v4149_v30, %v4117_v24  ;;  %v12970_v59 = vld [vmem:[#allocation135_spill] sm:$0xff]  ;;  %v12973_v30 = vld [vmem:[#allocation141_spill] sm:$0xff] }
 0x442   : > { %v5709_v37 = vpack.c.bf16 %v4087_v28, %v4055_v57  ;;  %v4054_v39 = vmul.f32 %v6493_v32, %v12965_v35  ;;  %v4086_v40 = vmul.f32 %v6493_v32, %v12966_v3  ;;  %v4116_v38 = vmul.f32 %v6491_v25, %v12967_v13  ;;  %v10493_v31 = vpop.eup %6494  ;;  %v12971_v57 = vld [vmem:[#allocation140_spill] sm:$0xff] }
 0x443   : > { %5694 = vmatprep.subr.bf16.mxu0 %v5693_v49  ;;  %v5695_v50 = vpack.c.bf16 %v4084_v9, %v4052_v48  ;;  %v4148_v27 = vmul.f32 %v6491_v25, %v12968_v23  ;;  %v4118_v53 = vmul.f32 %v6493_v32, %v12969_v34  ;;  %v4150_v52 = vmul.f32 %v6493_v32, %v12970_v59  ;;  %v12972_v35 = vld [vmem:[#allocation144_spill] sm:$0xff]  ;;  %v12974_v49 = vld [vmem:[#allocation145_spill] sm:$0xff] }
 0x444   : > { %5710 = vmatprep.subr.bf16.mxu1 %v5709_v37  ;;  %v5711_v29 = vpack.c.bf16 %v4086_v40, %v4054_v39  ;;  %v4181_v28 = vmul.f32 %v6487_v12, %v12971_v57  ;;  %v4213_v4 = vmul.f32 %v6487_v12, %v12972_v35  ;;  %v10498_v3 = vpop.eup %6496  ;;  %v5713_v24 = vpack.c.bf16 %v4151_v26, %v4119_v11  ;;  %v12975_v48 = vld [vmem:[#allocation100_spill] sm:$0xff]  ;;  %v12976_v37 = vld [vmem:[#allocation13_spill] sm:$0xff] }
 0x445   : > { %5696 = vmatpush1.bf16.msra.mxu0 %v5695_v50  ;;  %v4183_v13 = vmul.f32 %v6489_v56, %v12973_v30  ;;  %v4215_v23 = vmul.f32 %v6489_v56, %v12974_v49  ;;  %v10504_v34 = vmul.f32 %v10326_v44, %v12975_v48  ;;  %v5699_v40 = vpack.c.bf16 %v4148_v27, %v4116_v38  ;;  %v12977_v59 = vld [vmem:[#allocation17_spill] sm:$0xff]  ;;  %v12978_v30 = vld [vmem:[#allocation139_spill] sm:$0xff] }
 0x446   : > { %v10506_v9 = vpop.eup %6498  ;;  %5712 = vmatpush1.bf16.msra.mxu1 %v5711_v29  ;;  %5698 = vmatprep.subr.bf16.mxu0 %v5697_v8  ;;  %v4180_v39 = vmul.f32 %v6491_v25, %v12976_v37  ;;  %v4212_v57 = vmul.f32 %v6491_v25, %v12977_v59  ;;  %v3717_v50 = vrot.slane %v10460_v5, 2  ;;  %v5715_v11 = vpack.c.bf16 %v4150_v52, %v4118_v53  ;;  %v12979_v48 = vld [vmem:[#allocation143_spill] sm:$0xff] }
 0x447   : > { %v10511_v26 = vpop.eup %6500  ;;  %5714 = vmatprep.subr.bf16.mxu1 %v5713_v24  ;;  %v5701_v35 = vpack.c.bf16 %v4213_v4, %v4181_v28  ;;  %v4182_v49 = vmul.f32 %v6493_v32, %v12978_v30  ;;  %v4214_v16 = vmul.f32 %v6493_v32, %v12979_v48  ;;  %v5717_v0 = vpack.c.bf16 %v4215_v23, %v4183_v13  ;;  %v12985_v13 = vld [vmem:[#allocation236_spill] sm:$0xff]  ;;  %v12986_v23 = vld [vmem:[#allocation237_spill] sm:$0xff] }
 0x448   : > { %v4245_v29 = vmul.f32 %v6487_v12, %v10017_v46  ;;  %v4277_v27 = vmul.f32 %v6487_v12, %v10344_v42  ;;  %v4247_v8 = vmul.f32 %v6489_v56, %v10021_v18  ;;  %v4279_v38 = vmul.f32 %v6489_v56, %v10348_v15  ;;  %v12982_v12 = vld [vmem:[#allocation233_spill] sm:$0xff]  ;;  %v12983_v56 = vld [vmem:[#allocation235_spill] sm:$0xff]  ;;  %v12988_v30 = vld [vmem:[#allocation240_spill] sm:$0xff] }
 0x449   : > { %5700 = vmatpush1.bf16.msra.mxu0 %v5699_v40  ;;  %v4244_v37 = vmul.f32 %v6491_v25, %v10025_v33  ;;  %v4276_v24 = vmul.f32 %v6491_v25, %v10358_v58  ;;  %v4246_v4 = vmul.f32 %v6493_v32, %v10029_v20  ;;  %v5703_v53 = vpack.c.bf16 %v4212_v57, %v4180_v39  ;;  %v12981_v33 = vld [vmem:[#allocation232_spill] sm:$0xff] }
 0x44a   : > { %5716 = vmatpush1.bf16.msra.mxu1 %v5715_v11  ;;  %5702 = vmatprep.subr.bf16.mxu0 %v5701_v35  ;;  %v4278_v52 = vmul.f32 %v6493_v32, %v10362_v62  ;;  %v12980_v46 = vrot.slane %v10437_v60, 2  ;;  %v3743_v18 = vrot.slane %v10462_v36, 2  ;;  %v5719_v15 = vpack.c.bf16 %v4214_v16, %v4182_v49  ;;  %v12984_v62 = vld [vmem:[#allocation234_spill] sm:$0xff] }
 0x44b   : > { %5718 = vmatprep.subr.bf16.mxu1 %v5717_v0  ;;  %v4057_v58 = vmul.f32 %v10493_v31, %v12981_v33  ;;  %v4089_v20 = vmul.f32 %v10493_v31, %v12982_v12  ;;  %v4059_v25 = vmul.f32 %v10498_v3, %v12983_v56  ;;  %v5705_v28 = vpack.c.bf16 %v4277_v27, %v4245_v29  ;;  %v12987_v11 = vld [vmem:[#allocation238_spill] sm:$0xff] }
 0x44c   : > { %v10526_v42 = vadd.f32 %v12980_v46, %v10437_v60  ;;  %v4091_v32 = vmul.f32 %v10498_v3, %v12984_v62  ;;  %v4056_v60 = vmul.f32 %v10506_v9, %v12985_v13  ;;  %v4088_v0 = vmul.f32 %v10506_v9, %v12986_v23  ;;  %v12993_v46 = vld [vmem:[#allocation247_spill] sm:$0xff]  ;;  %v12994_v33 = vld [vmem:[#allocation162_spill] sm:$0xff]  ;;  %v12997_v62 = vld [vmem:[#allocation168_spill] sm:$0xff] }
 0x44d   : > { %5704 = vmatpush1.bf16.msra.mxu0 %v5703_v53  ;;  %v5721_v16 = vpack.c.bf16 %v4279_v38, %v4247_v8  ;;  %v5707_v40 = vpack.c.bf16 %v4276_v24, %v4244_v37  ;;  %v5723_v39 = vpack.c.bf16 %v4278_v52, %v4246_v4  ;;  %v10543_v59 = vadd.f32 %v10179_v63, %v10475_v61  ;;  %v12989_v8 = vld [vmem:[#allocation245_spill] sm:$0xff]  ;;  %v12990_v37 = vld [vmem:[#allocation164_spill] sm:$0xff]  ;;  %v12991_v24 = vld [vmem:[#allocation246_spill] sm:$0xff] }
 0x44e   : > { %5720 = vmatpush1.bf16.msra.mxu1 %v5719_v15  ;;  %5706 = vmatprep.subr.bf16.mxu0 %v5705_v28  ;;  %v5725_v57 = vpack.c.bf16 %v4089_v20, %v4057_v58  ;;  %v4058_v35 = vmul.f32 %v10511_v26, %v12987_v11  ;;  %v4090_v49 = vmul.f32 %v10511_v26, %v12988_v30  ;;  %v3782_v48 = vrot.slane %v10469_v7, 2  ;;  %v12992_v53 = vld [vmem:[#allocation165_spill] sm:$0xff]  ;;  %v10565_v12 = vld [vmem:[%s11296_s2] sm:$0xff]  ;;  %v12995_v20 = vld [vmem:[#allocation159_spill] sm:$0xff] }
 0x44f   : > { %5722 = vmatprep.subr.bf16.mxu1 %v5721_v16  ;;  %v5741_v29 = vpack.c.bf16 %v4091_v32, %v4059_v25  ;;  %v5727_v27 = vpack.c.bf16 %v4088_v0, %v4056_v60  ;;  %v4121_v38 = vmul.f32 %v10493_v31, %v12989_v8  ;;  %v4153_v63 = vmul.f32 %v10493_v31, %v12990_v37  ;;  %v12996_v25 = vld [vmem:[#allocation56_spill] sm:$0xff]  ;;  %v12999_v0 = vld [vmem:[#allocation169_spill] sm:$0xff]  ;;  %v13001_v37 = vld [vmem:[#allocation166_spill] sm:$0xff] }
 0x450   : > { %v4123_v4 = vmul.f32 %v10498_v3, %v12991_v24  ;;  %v4155_v52 = vmul.f32 %v10498_v3, %v12992_v53  ;;  %v4120_v15 = vmul.f32 %v10506_v9, %v12993_v46  ;;  %v4152_v58 = vmul.f32 %v10506_v9, %v12994_v33  ;;  %v12998_v13 = vld [vmem:[#allocation172_spill] sm:$0xff]  ;;  %v13002_v53 = vld [vmem:[#allocation170_spill] sm:$0xff] }
 0x451   : > { %5708 = vmatpush1.bf16.msra.mxu0 %v5707_v40  ;;  %v4122_v56 = vmul.f32 %v10511_v26, %v12995_v20  ;;  %v4154_v28 = vmul.f32 %v10511_v26, %v12996_v25  ;;  %v4185_v32 = vmul.f32 %v10493_v31, %v12997_v62  ;;  %v4217_v60 = vmul.f32 %v10493_v31, %v12998_v13  ;;  %v13000_v40 = vld [vmem:[#allocation173_spill] sm:$0xff]  ;;  %v13003_v33 = vld [vmem:[#allocation60_spill] sm:$0xff] }
 0x452   : > { %5724 = vmatpush1.bf16.msra.mxu1 %v5723_v39  ;;  %5726 = vmatprep.subr.bf16.mxu0 %v5725_v57  ;;  %v5743_v23 = vpack.c.bf16 %v4090_v49, %v4058_v35  ;;  %v4187_v16 = vmul.f32 %v10498_v3, %v12999_v0  ;;  %v4219_v11 = vmul.f32 %v10498_v3, %v13000_v40  ;;  %v3732_v30 = vrot.slane %v10526_v42, 1  ;;  %v13004_v35 = vld [vmem:[#allocation64_spill] sm:$0xff] }
 0x453   : > { %5742 = vmatprep.subr.bf16.mxu1 %v5741_v29  ;;  %v5729_v8 = vpack.c.bf16 %v4153_v63, %v4121_v38  ;;  %v4184_v24 = vmul.f32 %v10506_v9, %v13001_v37  ;;  %v4216_v46 = vmul.f32 %v10506_v9, %v13002_v53  ;;  %v4186_v39 = vmul.f32 %v10511_v26, %v13003_v33  ;;  %v13005_v38 = vld [vmem:[#allocation152_spill] sm:$0xff]  ;;  %v13007_v53 = vld [vmem:[#allocation151_spill] sm:$0xff] }
 0x454   : > { %5673 = vmatmul.mubr.msk.f32.vlgmr.msra.gmra.mrb[128].mxu0 %vm4309_vm1, %v10565_v12  ;;  %v5745_v57 = vpack.c.bf16 %v4155_v52, %v4123_v4  ;;  %v4218_v49 = vmul.f32 %v10511_v26, %v13004_v35  ;;  %v4249_v29 = vmul.f32 %v10493_v31, %v10040_v10  ;;  %v4281_v63 = vmul.f32 %v10493_v31, %v13005_v38  ;;  %v13006_v0 = vld [vmem:[#allocation44_spill] sm:$0xff] }
 0x455   : > { %5674 = vmatmul.mubr.msk.f32.vlgmr.msra.gmra.mrb[128].mxu1 %vm4309_vm1, %v10565_v12  ;;  %5728 = vmatpush1.bf16.msra.mxu0 %v5727_v27  ;;  %v5731_v20 = vpack.c.bf16 %v4152_v58, %v4120_v15  ;;  %v5747_v25 = vpack.c.bf16 %v4154_v28, %v4122_v56  ;;  %v5733_v62 = vpack.c.bf16 %v4217_v60, %v4185_v32  ;;  %v3808_v13 = vrot.slane %v10471_v47, 2  ;;  %v13008_v15 = vld [vmem:[#allocation21_spill] sm:$0xff] }
 0x456   : > { %5744 = vmatpush1.bf16.msra.mxu1 %v5743_v23  ;;  %5730 = vmatprep.subr.bf16.mxu0 %v5729_v8  ;;  %v5749_v4 = vpack.c.bf16 %v4219_v11, %v4187_v16  ;;  %v5735_v52 = vpack.c.bf16 %v4216_v46, %v4184_v24  ;;  %v4251_v40 = vmul.f32 %v10498_v3, %v13006_v0  ;;  %v3767_v10 = vrot.slane %v10543_v59, 4  ;;  %v13011_v16 = vld [vmem:[#allocation25_spill] sm:$0xff]  ;;  %v13012_v11 = vld [vmem:[#allocation147_spill] sm:$0xff] }
 0x457   : > { %5746 = vmatprep.subr.bf16.mxu1 %v5745_v57  ;;  %v5751_v31 = vpack.c.bf16 %v4218_v49, %v4186_v39  ;;  %v5737_v37 = vpack.c.bf16 %v4281_v63, %v4249_v29  ;;  %v4283_v27 = vmul.f32 %v10498_v3, %v13007_v53  ;;  %v4248_v58 = vmul.f32 %v10506_v9, %v13008_v15  ;;  %v13014_v39 = vld [vmem:[#allocation254_spill] sm:$0xff] }
 0x458   : > { %v3733_v56 = vadd.f32 %v3732_v30, %v10526_v42  ;;  %v13009_v28 = vrot.slane %v10451_v43, 2  ;;  %v13010_v60 = vmov 0.0   ;;  %v3718_v23 = vadd.f32 %v3717_v50, %v10460_v5  ;;  %v13013_v50 = vld [vmem:[#allocation46_spill] sm:$0xff] }
 0x459   : > { %4519 = vmatprep.mubr.f32.mxu0 %v13010_v60  ;;  %4590 = vmatprep.mubr.f32.mxu1 %v13010_v60  ;;  %v4280_v3 = vmul.f32 %v10506_v9, %v13011_v16  ;;  %v4250_v8 = vmul.f32 %v10511_v26, %v13012_v11  ;;  %v3744_v42 = vadd.f32 %v3743_v18, %v10462_v36 }
 0x45a   : > { %v3757_v32 = vadd.f32 %v13009_v28, %v10451_v43  ;;  %5732 = vmatpush1.bf16.msra.mxu0 %v5731_v20  ;;  %v3783_v43 = vadd.f32 %v3782_v48, %v10469_v7  ;;  %5748 = vmatpush1.bf16.msra.mxu1 %v5747_v25  ;;  %6502 = vrcp.f32 %v3733_v56  ;;  %v3719_v24 = vrot.slane %v3718_v23, 1  ;;  %v13015_v48 = vld [vmem:[#allocation126_spill] sm:$0xff]  ;;  %v13017_v20 = vld [vmem:[#allocation127_spill] sm:$0xff]  ;;  %v13020_v56 = vld [vmem:[#allocation256_spill] sm:$0xff] }
 0x45b   : > { %5734 = vmatprep.subr.bf16.mxu0 %v5733_v62  ;;  %v3809_v5 = vadd.f32 %v3808_v13, %v10471_v47  ;;  %5750 = vmatprep.subr.bf16.mxu1 %v5749_v4  ;;  %v4282_v9 = vmul.f32 %v10511_v26, %v13013_v50  ;;  %v3745_v46 = vrot.slane %v3744_v42, 1  ;;  %v3768_v33 = vadd.f32 %v3767_v10, %v10543_v59  ;;  %v13016_v59 = vld [vmem:[#allocation255_spill] sm:$0xff]  ;;  %v13026_v50 = vld [vmem:[#allocation241_spill] sm:$0xff] }
 0x45c   : > { %v3758_v30 = vrot.slane %v3757_v32, 1  ;;  %v3792_v57 = vadd.f32 %v13014_v39, %v10504_v34  ;;  %v3720_v18 = vadd.f32 %v3719_v24, %v3718_v23  ;;  %v3784_v7 = vrot.slane %v3783_v43, 1  ;;  %v13025_v24 = vld [vmem:[#allocation122_spill] sm:$0xff]  ;;  %v13028_v39 = vld [vmem:[#allocation189_spill] sm:$0xff] }
 0x45d   : > { %v10629_v35 = vmul.f32 %v10326_v44, %v13015_v48  ;;  %v5753_v49 = vpack.c.bf16 %v4283_v27, %v4251_v40  ;;  %v3746_v47 = vadd.f32 %v3745_v46, %v3744_v42  ;;  %v3769_v29 = vrot.slane %v3768_v33, 2  ;;  %v13019_v27 = vld [vmem:[#allocation12_spill] sm:$0xff]  ;;  %v13027_v46 = vld [vmem:[#allocation242_spill] sm:$0xff]  ;;  %v13030_v48 = vld [vmem:[#allocation257_spill] sm:$0xff] }
 0x45e   : > { %v3759_v36 = vadd.f32 %v3758_v30, %v3757_v32  ;;  %5736 = vmatpush1.bf16.msra.mxu0 %v5735_v52  ;;  %v3793_v38 = vrot.slane %v3792_v57, 4  ;;  %5752 = vmatpush1.bf16.msra.mxu1 %v5751_v31  ;;  %v3810_v26 = vrot.slane %v3809_v5, 1  ;;  %v10635_v25 = vmul.f32 %v10326_v44, %v13017_v20  ;;  %v13018_v31 = vld [vmem:[#allocation49_spill] sm:$0xff]  ;;  %v13024_v30 = vld [vmem:[#allocation252_spill] sm:$0xff] }
 0x45f   : > { %5738 = vmatprep.subr.bf16.mxu0 %v5737_v37  ;;  %v3831_v63 = vadd.f32 %v13016_v59, %v10629_v35  ;;  %5754 = vmatprep.subr.bf16.mxu1 %v5753_v49  ;;  %v5739_v62 = vpack.c.bf16 %v4280_v3, %v4248_v58  ;;  %v3770_v13 = vadd.f32 %v3769_v29, %v3768_v33  ;;  %v13021_v32 = vld [vmem:[#allocation101_spill] sm:$0xff]  ;;  %v13022_v3 = vld [vmem:[#allocation128_spill] sm:$0xff]  ;;  %v13032_v59 = vld [vmem:[#allocation258_spill] sm:$0xff] }
 0x460   : > { %6504 = vrcp.f32 %v3759_v36  ;;  %v3794_v4 = vadd.f32 %v3793_v38, %v3792_v57  ;;  %v5755_v52 = vpack.c.bf16 %v4282_v9, %v4250_v8  ;;  %v3785_v0 = vadd.f32 %v3784_v7, %v3783_v43  ;;  %v13023_v43 = vld [vmem:[#allocation72_spill] sm:$0xff] }
 0x461   : > { %6506 = vrcp.f32 %v3720_v18  ;;  %v3832_v40 = vrot.slane %v3831_v63, 4  ;;  %v3771_v10 = vrot.slane %v3770_v13, 1  ;;  %v10639_v37 = vadd.f32 %v10441_v55, %v13018_v31  ;;  %v13029_v36 = vld [vmem:[#allocation192_spill] sm:$0xff] }
 0x462   : > { %6508 = vrcp.f32 %v3746_v47  ;;  %5740 = vmatpush1.bf16.msra.mxu0 %v5739_v62  ;;  %v10643_v53 = vadd.f32 %v10449_v21, %v10445_v14  ;;  %v4008_v15 = vadd.f32 %v10399_v54, %v13019_v27  ;;  %5756 = vmatpush1.bf16.msra.mxu1 %v5755_v52  ;;  %v3811_v58 = vadd.f32 %v3810_v26, %v3809_v5  ;;  %v13031_v47 = vld [vmem:[#allocation20_spill] sm:$0xff]  ;;  %v13033_v62 = vld [vmem:[#allocation195_spill] sm:$0xff]  ;;  %v13034_v52 = vld [vmem:[#allocation198_spill] sm:$0xff] }
 0x463   : > { %v10649_v28 = vadd.f32 %v13020_v56, %v10635_v25  ;;  %v10653_v23 = vmul.f32 %v10326_v44, %v13021_v32  ;;  %v10657_v55 = vadd.f32 %v10458_v2, %v10455_v45  ;;  %v3772_v16 = vadd.f32 %v3771_v10, %v3770_v13  ;;  %v13036_v56 = vld [vmem:[#allocation206_spill] sm:$0xff]  ;;  %v13048_v27 = vld [vmem:[#allocation249_spill] sm:$0xff]  ;;  %v13053_v31 = vld [vmem:[#allocation92_spill] sm:$0xff] }
 0x464   : > { %v3795_v21 = vrot.slane %v3794_v4, 2  ;;  %v10661_v11 = vmul.f32 %v10326_v44, %v13022_v3  ;;  %v10664_v54 = vadd.f32 %v4008_v15, %v10466_v6  ;;  %v6503_v8 = vpop.eup %6502  ;;  %6510 = vrcp.f32 %v3785_v0  ;;  %v13047_v6 = vld [vmem:[#allocation84_spill] sm:$0xff]  ;;  %v13049_v45 = vld [vmem:[#allocation250_spill] sm:$0xff] }
 0x465   : > { %5675 = vmatmul.mubr.msk.f32.vlgmr.msra.gmra.mrb[130].mxu0 %vm4309_vm1, %v10565_v12  ;;  %v10668_v42 = vadd.f32 %v3832_v40, %v3831_v63  ;;  %v10672_v2 = vmul.f32 %v13024_v30, %v13023_v43  ;;  %v10676_v5 = vmul.f32 %v9652_v1, %v13025_v24  ;;  %v4061_v9 = vmul.f32 %v6503_v8, %v13026_v50  ;;  %v13035_v40 = vld [vmem:[#allocation45_spill] sm:$0xff]  ;;  %v13038_v24 = vld [vmem:[#allocation204_spill] sm:$0xff] }
 0x466   : > { %v4093_v33 = vmul.f32 %v6503_v8, %v13027_v46  ;;  %5676 = vmatmul.mubr.msk.f32.vlgmr.msra.gmra.mrb[130].mxu1 %vm4309_vm1, %v10565_v12  ;;  %v4125_v57 = vmul.f32 %v6503_v8, %v13028_v39  ;;  %v4157_v18 = vmul.f32 %v6503_v8, %v13029_v36  ;;  %6512 = vrcp.f32 %v3811_v58  ;;  %4661 = vmatprep.mubr.f32.mxu0 %v13010_v60  ;;  %v13041_v36 = vld [vmem:[#allocation248_spill] sm:$0xff] }
 0x467   : > { %v3858_v7 = vrot.slane %v10649_v28, 4  ;;  %v10688_v49 = vadd.f32 %v13030_v48, %v10653_v23  ;;  %v10692_v29 = vmul.f32 %v9418_v41, %v13031_v47  ;;  %4732 = vmatprep.mubr.f32.mxu1 %v13010_v60  ;;  %6514 = vrcp.f32 %v3772_v16 }
 0x468   : > { %v5757_v38 = vpack.c.bf16 %v4093_v33, %v4061_v9  ;;  %v10695_v26 = vadd.f32 %v3795_v21, %v3794_v4  ;;  %v10699_v63 = vadd.f32 %v13032_v59, %v10661_v11  ;;  %v4189_v13 = vmul.f32 %v6503_v8, %v13033_v62  ;;  %v13037_v4 = vld [vmem:[#allocation4_spill] sm:$0xff]  ;;  %v13039_v9 = vld [vmem:[#allocation77_spill] sm:$0xff]  ;;  %v13040_v33 = vld [vmem:[#allocation79_spill] sm:$0xff] }
 0x469   : > { %v4221_v0 = vmul.f32 %v6503_v8, %v13034_v52  ;;  %v10704_v10 = vmul.f32 %v6503_v8, %v13035_v40  ;;  %v3834_v15 = vrot.slane %v10668_v42, 2  ;;  %v5761_v21 = vpack.c.bf16 %v4157_v18, %v4125_v57  ;;  %v13042_v59 = vld [vmem:[#allocation205_spill] sm:$0xff]  ;;  %v13043_v62 = vld [vmem:[#allocation2_spill] sm:$0xff]  ;;  %v13044_v40 = vld [vmem:[#allocation188_spill] sm:$0xff] }
 0x46a   : > { %v6505_v20 = vpop.eup %6504  ;;  %5758 = vmatprep.subr.bf16.mxu0 %v5757_v38  ;;  %v10710_v3 = vmul.f32 %v6503_v8, %v10403_v51  ;;  %v13045_v18 = vld [vmem:[#allocation191_spill] sm:$0xff]  ;;  %v13046_v8 = vld [vmem:[#allocation80_spill] sm:$0xff] }
 0x46b   : > { %v6507_v58 = vpop.eup %6506  ;;  %v4063_v32 = vmul.f32 %v6505_v20, %v13036_v56  ;;  %v4095_v16 = vmul.f32 %v6505_v20, %v13037_v4  ;;  %v4127_v39 = vmul.f32 %v6505_v20, %v13040_v33  ;;  %v4159_v48 = vmul.f32 %v6505_v20, %v13041_v36 }
 0x46c   : > { %v6509_v43 = vpop.eup %6508  ;;  %v4060_v50 = vmul.f32 %v6507_v58, %v13038_v24  ;;  %v4092_v46 = vmul.f32 %v6507_v58, %v13039_v9  ;;  %v4124_v56 = vmul.f32 %v6507_v58, %v13044_v40  ;;  %v4156_v51 = vmul.f32 %v6507_v58, %v13045_v18  ;;  %v13051_v40 = vld [vmem:[#allocation197_spill] sm:$0xff] }
 0x46d   : > { %v5773_v47 = vpack.c.bf16 %v4095_v16, %v4063_v32  ;;  %v4062_v38 = vmul.f32 %v6509_v43, %v13042_v59  ;;  %v4094_v52 = vmul.f32 %v6509_v43, %v13043_v62  ;;  %v4126_v4 = vmul.f32 %v6509_v43, %v13046_v8  ;;  %v13050_v32 = vld [vmem:[#allocation194_spill] sm:$0xff] }
 0x46e   : > { %v5759_v57 = vpack.c.bf16 %v4092_v46, %v4060_v50  ;;  %v4158_v24 = vmul.f32 %v6509_v43, %v13047_v6  ;;  %v4191_v33 = vmul.f32 %v6505_v20, %v13048_v27  ;;  %v4223_v36 = vmul.f32 %v6505_v20, %v13049_v45  ;;  %v10725_v59 = vpop.eup %6510  ;;  %v13052_v46 = vld [vmem:[#allocation88_spill] sm:$0xff]  ;;  %v13054_v6 = vld [vmem:[#allocation175_spill] sm:$0xff] }
 0x46f   : > { %5774 = vmatprep.subr.bf16.mxu1 %v5773_v47  ;;  %v5775_v9 = vpack.c.bf16 %v4094_v52, %v4062_v38  ;;  %v4188_v16 = vmul.f32 %v6507_v58, %v13050_v32  ;;  %v5777_v62 = vpack.c.bf16 %v4159_v48, %v4127_v39  ;;  %v4220_v50 = vmul.f32 %v6507_v58, %v13051_v40 }
 0x470   : > { %5760 = vmatpush1.bf16.msra.mxu0 %v5759_v57  ;;  %v4190_v18 = vmul.f32 %v6509_v43, %v13052_v46  ;;  %v4222_v8 = vmul.f32 %v6509_v43, %v13053_v31  ;;  %v4255_v47 = vmul.f32 %v6505_v20, %v13054_v6  ;;  %v4287_v27 = vmul.f32 %v6505_v20, %v10407_v17  ;;  %v10736_v52 = vpop.eup %6512  ;;  %v13065_v6 = vld [vmem:[#allocation7_spill] sm:$0xff] }
 0x471   : > { %5776 = vmatpush1.bf16.msra.mxu1 %v5775_v9  ;;  %5762 = vmatprep.subr.bf16.mxu0 %v5761_v21  ;;  %v3797_v45 = vrot.slane %v10695_v26, 1  ;;  %v10734_v38 = vadd.f32 %v3858_v7, %v10649_v28  ;;  %v5763_v39 = vpack.c.bf16 %v4156_v51, %v4124_v56  ;;  %v5765_v48 = vpack.c.bf16 %v4221_v0, %v4189_v13  ;;  %v10741_v21 = vpop.eup %6514  ;;  %v13055_v28 = vld [vmem:[#allocation43_spill] sm:$0xff]  ;;  %v13057_v0 = vld [vmem:[#allocation208_spill] sm:$0xff]  ;;  %v13059_v51 = vld [vmem:[#allocation210_spill] sm:$0xff] }
 0x472   : > { %5778 = vmatprep.subr.bf16.mxu1 %v5777_v62  ;;  %v5769_v57 = vpack.c.bf16 %v10710_v3, %v10704_v10  ;;  %v3835_v31 = vadd.f32 %v3834_v15, %v10668_v42  ;;  %v5779_v9 = vpack.c.bf16 %v4158_v24, %v4126_v4  ;;  %v5781_v32 = vpack.c.bf16 %v4223_v36, %v4191_v33  ;;  %v13056_v62 = vld [vmem:[#allocation66_spill] sm:$0xff]  ;;  %v13058_v10 = vld [vmem:[#allocation5_spill] sm:$0xff]  ;;  %v13060_v24 = vld [vmem:[#allocation28_spill] sm:$0xff] }
 0x473   : > { %v5767_v17 = vpack.c.bf16 %v4220_v50, %v4188_v16  ;;  %v5783_v20 = vpack.c.bf16 %v4222_v8, %v4190_v18  ;;  %v5785_v40 = vpack.c.bf16 %v4287_v27, %v4255_v47  ;;  %v4252_v7 = vmul.f32 %v6507_v58, %v13055_v28  ;;  %v13063_v16 = vld [vmem:[#allocation6_spill] sm:$0xff]  ;;  %v13064_v18 = vld [vmem:[#allocation112_spill] sm:$0xff]  ;;  %v13066_v27 = vld [vmem:[#allocation113_spill] sm:$0xff] }
 0x474   : > { %5764 = vmatpush1.bf16.msra.mxu0 %v5763_v39  ;;  %v4284_v46 = vmul.f32 %v6507_v58, %v10411_v22  ;;  %v4254_v56 = vmul.f32 %v6509_v43, %v13056_v62  ;;  %v4286_v13 = vmul.f32 %v6509_v43, %v10415_v19  ;;  %v4065_v42 = vmul.f32 %v10725_v59, %v13057_v0  ;;  %v13061_v58 = vld [vmem:[#allocation207_spill] sm:$0xff]  ;;  %v13070_v62 = vld [vmem:[#allocation120_spill] sm:$0xff] }
 0x475   : > { %5780 = vmatpush1.bf16.msra.mxu1 %v5779_v9  ;;  %5766 = vmatprep.subr.bf16.mxu0 %v5765_v48  ;;  %v4097_v15 = vmul.f32 %v10725_v59, %v13058_v10  ;;  %v3819_v3 = vrot.slane %v10688_v49, 4  ;;  %v4067_v4 = vmul.f32 %v10736_v52, %v13059_v51  ;;  %v4099_v22 = vmul.f32 %v10736_v52, %v13060_v24  ;;  %v13062_v43 = vld [vmem:[#allocation3_spill] sm:$0xff]  ;;  %v13068_v48 = vld [vmem:[#allocation85_spill] sm:$0xff]  ;;  %v13071_v10 = vld [vmem:[#allocation154_spill] sm:$0xff] }
 0x476   : > { %5782 = vmatprep.subr.bf16.mxu1 %v5781_v32  ;;  %v4064_v33 = vmul.f32 %v10741_v21, %v13061_v58  ;;  %v3798_v19 = vadd.f32 %v3797_v45, %v10695_v26  ;;  %v4096_v36 = vmul.f32 %v10741_v21, %v13062_v43  ;;  %v4129_v50 = vmul.f32 %v10725_v59, %v13063_v16  ;;  %v13067_v26 = vld [vmem:[#allocation106_spill] sm:$0xff]  ;;  %v13069_v32 = vld [vmem:[#allocation116_spill] sm:$0xff]  ;;  %v13072_v43 = vld [vmem:[#allocation155_spill] sm:$0xff] }
 0x477   : > { %v4161_v8 = vmul.f32 %v10725_v59, %v13064_v18  ;;  %v10767_v47 = vmul.f32 %v10736_v52, %v13065_v6  ;;  %v10771_v39 = vmul.f32 %v10736_v52, %v13066_v27  ;;  %v4128_v45 = vmul.f32 %v10741_v21, %v13067_v26 }
 0x478   : > { %5768 = vmatpush1.bf16.msra.mxu0 %v5767_v17  ;;  %6516 = vrcp.f32 %v3798_v19  ;;  %v4160_v9 = vmul.f32 %v10741_v21, %v13068_v48  ;;  %v4193_v28 = vmul.f32 %v10725_v59, %v13069_v32  ;;  %v4225_v0 = vmul.f32 %v10725_v59, %v13070_v62  ;;  %v13073_v32 = vld [vmem:[#allocation117_spill] sm:$0xff] }
 0x479   : > { %5784 = vmatpush1.bf16.msra.mxu1 %v5783_v20  ;;  %5770 = vmatprep.subr.bf16.mxu0 %v5769_v57  ;;  %v3845_v17 = vrot.slane %v10699_v63, 4  ;;  %v10784_v51 = vmul.f32 %v10326_v44, %v13071_v10  ;;  %v5771_v24 = vpack.c.bf16 %v4284_v46, %v4252_v7  ;;  %v3836_v58 = vrot.slane %v3835_v31, 1  ;;  %v13074_v46 = vld [vmem:[#allocation121_spill] sm:$0xff] }
 0x47a   : > { %5786 = vmatprep.subr.bf16.mxu1 %v5785_v40  ;;  %v3860_v19 = vrot.slane %v10734_v38, 2  ;;  %v10789_v57 = vmul.f32 %v10326_v44, %v13072_v43  ;;  %v5787_v20 = vpack.c.bf16 %v4286_v13, %v4254_v56  ;;  %v5789_v16 = vpack.c.bf16 %v4097_v15, %v4065_v42  ;;  %v13075_v56 = vld [vmem:[#allocation89_spill] sm:$0xff] }
 0x47b   : > { %v5805_v18 = vpack.c.bf16 %v4099_v22, %v4067_v4  ;;  %v5791_v6 = vpack.c.bf16 %v4096_v36, %v4064_v33  ;;  %v5793_v27 = vpack.c.bf16 %v4161_v8, %v4129_v50  ;;  %v5809_v26 = vpack.c.bf16 %v10771_v39, %v10767_v47  ;;  %v13076_v42 = vld [vmem:[#allocation93_spill] sm:$0xff]  ;;  %v13077_v36 = vld [vmem:[#allocation196_spill] sm:$0xff] }
 0x47c   : > { %5772 = vmatpush1.bf16.msra.mxu0 %v5771_v24  ;;  %v5795_v48 = vpack.c.bf16 %v4160_v9, %v4128_v45  ;;  %v10795_v40 = vmul.f32 %v10736_v52, %v13073_v32  ;;  %v5797_v7 = vpack.c.bf16 %v4225_v0, %v4193_v28  ;;  %v10799_v62 = vmul.f32 %v10736_v52, %v13074_v46  ;;  %v13078_v47 = vld [vmem:[#allocation260_spill] sm:$0xff]  ;;  %v13079_v45 = vld [vmem:[#allocation261_spill] sm:$0xff]  ;;  %v13085_v32 = vld [vmem:[#allocation178_spill] sm:$0xff] }
 0x47d   : > { %5788 = vmatpush1.bf16.msra.mxu1 %v5787_v20  ;;  %5790 = vmatprep.subr.bf16.mxu0 %v5789_v16  ;;  %v4192_v13 = vmul.f32 %v10741_v21, %v13075_v56  ;;  %v4224_v15 = vmul.f32 %v10741_v21, %v13076_v42  ;;  %v3837_v4 = vadd.f32 %v3836_v58, %v3835_v31  ;;  %v13080_v31 = vld [vmem:[#allocation129_spill] sm:$0xff]  ;;  %v13086_v46 = vld [vmem:[#allocation8_spill] sm:$0xff]  ;;  %v13087_v56 = vld [vmem:[#allocation67_spill] sm:$0xff] }
 0x47e   : > { %5806 = vmatprep.subr.bf16.mxu1 %v5805_v18  ;;  %v3861_v22 = vadd.f32 %v3860_v19, %v10734_v38  ;;  %v3820_v33 = vadd.f32 %v3819_v3, %v10688_v49  ;;  %v4257_v50 = vmul.f32 %v10725_v59, %v13077_v36  ;;  %v3846_v8 = vadd.f32 %v3845_v17, %v10699_v63  ;;  %v13081_v28 = vld [vmem:[#allocation153_spill] sm:$0xff] }
 0x47f   : > { %5677 = vmatmul.mubr.msk.f32.vlgmr.msra.gmra.mrb[132].mxu0 %vm4309_vm1, %v10565_v12  ;;  %v3883_v39 = vadd.f32 %v13078_v47, %v10784_v51  ;;  %v3909_v9 = vadd.f32 %v13079_v45, %v10789_v57  ;;  %6518 = vrcp.f32 %v3837_v4  ;;  %v10820_v3 = vmul.f32 %v10326_v44, %v13080_v31  ;;  %v13082_v17 = vld [vmem:[#allocation69_spill] sm:$0xff]  ;;  %v13088_v4 = vld [vmem:[#allocation262_spill] sm:$0xff]  ;;  %v13090_v45 = vld [vmem:[#allocation111_spill] sm:$0xff] }
 0x480   : > { %5678 = vmatmul.mubr.msk.f32.vlgmr.msra.gmra.mrb[132].mxu1 %vm4309_vm1, %v10565_v12  ;;  %5792 = vmatpush1.bf16.msra.mxu0 %v5791_v6  ;;  %v3862_v49 = vrot.slane %v3861_v22, 1  ;;  %v3821_v38 = vrot.slane %v3820_v33, 2  ;;  %v5813_v63 = vpack.c.bf16 %v10799_v62, %v10795_v40  ;;  %v4289_v0 = vmul.f32 %v10725_v59, %v13081_v28  ;;  %v13083_v16 = vld [vmem:[#allocation209_spill] sm:$0xff]  ;;  %v13084_v6 = vld [vmem:[#allocation26_spill] sm:$0xff] }
 0x481   : > { %5794 = vmatprep.subr.bf16.mxu0 %v5793_v27  ;;  %v10828_v10 = vmul.f32 %v10736_v52, %v13082_v17  ;;  %4803 = vmatprep.mubr.f32.mxu0 %v13010_v60  ;;  %v3847_v43 = vrot.slane %v3846_v8, 2  ;;  %v3884_v20 = vrot.slane %v3883_v39, 4  ;;  %v4291_v59 = vmul.f32 %v10736_v52, %v13085_v32  ;;  %v13091_v32 = vld [vmem:[#allocation182_spill] sm:$0xff] }
 0x482   : > { %v6517_v24 = vpop.eup %6516  ;;  %v3863_v58 = vadd.f32 %v3862_v49, %v3861_v22  ;;  %4874 = vmatprep.mubr.f32.mxu1 %v13010_v60  ;;  %v3822_v19 = vadd.f32 %v3821_v38, %v3820_v33  ;;  %v3910_v40 = vrot.slane %v3909_v9, 4  ;;  %v4256_v42 = vmul.f32 %v10741_v21, %v13087_v56  ;;  %v13089_v33 = vld [vmem:[#allocation156_spill] sm:$0xff] }
 0x483   : > { %v4066_v18 = vmul.f32 %v6517_v24, %v13083_v16  ;;  %v4098_v27 = vmul.f32 %v6517_v24, %v13084_v6  ;;  %v4130_v62 = vmul.f32 %v6517_v24, %v13086_v46  ;;  %v3870_v22 = vadd.f32 %v13088_v4, %v10820_v3  ;;  %v13097_v4 = vld [vmem:[#allocation27_spill] sm:$0xff] }
 0x484   : > { %5796 = vmatpush1.bf16.msra.mxu0 %v5795_v48  ;;  %v10843_v36 = vmul.f32 %v10326_v44, %v13089_v33  ;;  %v4162_v49 = vmul.f32 %v6517_v24, %v13090_v45  ;;  %6520 = vrcp.f32 %v3863_v58  ;;  %v3823_v52 = vrot.slane %v3822_v19, 1  ;;  %v13093_v58 = vld [vmem:[#allocation119_spill] sm:$0xff] }
 0x485   : > { %v5807_v47 = vpack.c.bf16 %v4098_v27, %v4066_v18  ;;  %5798 = vmatprep.subr.bf16.mxu0 %v5797_v7  ;;  %v5799_v38 = vpack.c.bf16 %v4224_v15, %v4192_v13  ;;  %v4288_v48 = vmul.f32 %v10741_v21, %v10475_v61  ;;  %v3848_v31 = vadd.f32 %v3847_v43, %v3846_v8  ;;  %v13092_v18 = vld [vmem:[#allocation115_spill] sm:$0xff]  ;;  %v13094_v21 = vld [vmem:[#allocation265_spill] sm:$0xff] }
 0x486   : > { %v3885_v28 = vadd.f32 %v3884_v20, %v3883_v39  ;;  %v5801_v17 = vpack.c.bf16 %v4289_v0, %v4257_v50  ;;  %v3824_v16 = vadd.f32 %v3823_v52, %v3822_v19  ;;  %v3911_v6 = vadd.f32 %v3910_v40, %v3909_v9  ;;  %v13096_v20 = vld [vmem:[#allocation212_spill] sm:$0xff] }
 0x487   : > { %5808 = vmatpush1.bf16.msra.mxu1 %v5807_v47  ;;  %v10850_v46 = vmul.f32 %v10326_v44, %v13091_v32  ;;  %v4194_v7 = vmul.f32 %v6517_v24, %v13092_v18  ;;  %v4226_v27 = vmul.f32 %v6517_v24, %v13093_v58  ;;  %v3849_v13 = vrot.slane %v3848_v31, 1  ;;  %v13101_v18 = vld [vmem:[#allocation138_spill] sm:$0xff] }
 0x488   : > { %5810 = vmatprep.subr.bf16.mxu1 %v5809_v26  ;;  %5800 = vmatpush1.bf16.msra.mxu0 %v5799_v38  ;;  %v3886_v15 = vrot.slane %v3885_v28, 2  ;;  %v5811_v56 = vpack.c.bf16 %v4162_v49, %v4130_v62  ;;  %6522 = vrcp.f32 %v3824_v16  ;;  %v3871_v61 = vrot.slane %v3870_v22, 4  ;;  %v13095_v26 = vld [vmem:[#allocation94_spill] sm:$0xff]  ;;  %v13099_v16 = vld [vmem:[#allocation183_spill] sm:$0xff] }
 0x489   : > { %5802 = vmatprep.subr.bf16.mxu0 %v5801_v17  ;;  %v3896_v50 = vadd.f32 %v13094_v21, %v10843_v36  ;;  %v6519_v8 = vpop.eup %6518  ;;  %v5803_v39 = vpack.c.bf16 %v4288_v48, %v4256_v42  ;;  %v3850_v9 = vadd.f32 %v3849_v13, %v3848_v31  ;;  %v3912_v19 = vrot.slane %v3911_v6, 2  ;;  %v13098_v42 = vld [vmem:[#allocation266_spill] sm:$0xff] }
 0x48a   : > { %v3887_v0 = vadd.f32 %v3886_v15, %v3885_v28  ;;  %v4258_v43 = vmul.f32 %v6517_v24, %v13095_v26  ;;  %v4069_v40 = vmul.f32 %v6519_v8, %v13096_v20  ;;  %v4101_v33 = vmul.f32 %v6519_v8, %v13097_v4  ;;  %v13105_v20 = vld [vmem:[#allocation142_spill] sm:$0xff] }
 0x48b   : > { %5812 = vmatpush1.bf16.msra.mxu1 %v5811_v56  ;;  %v10861_v62 = vadd.f32 %v10643_v53, %v10672_v2  ;;  %v5815_v47 = vpack.c.bf16 %v4226_v27, %v4194_v7  ;;  %v4290_v45 = vmul.f32 %v6517_v24, %v10504_v34  ;;  %6524 = vrcp.f32 %v3850_v9  ;;  %v13100_v24 = vld [vmem:[#allocation9_spill] sm:$0xff]  ;;  %v13104_v9 = vld [vmem:[#allocation267_spill] sm:$0xff]  ;;  %v13106_v4 = vld [vmem:[#allocation146_spill] sm:$0xff] }
 0x48c   : > { %5814 = vmatprep.subr.bf16.mxu1 %v5813_v63  ;;  %5804 = vmatpush1.bf16.msra.mxu0 %v5803_v39  ;;  %v3935_v49 = vadd.f32 %v13098_v42, %v10850_v46  ;;  %v5821_v52 = vpack.c.bf16 %v4101_v33, %v4069_v40  ;;  %v3888_v38 = vrot.slane %v3887_v0, 1  ;;  %v3872_v48 = vadd.f32 %v3871_v61, %v3870_v22  ;;  %v13107_v33 = vld [vmem:[#allocation124_spill] sm:$0xff] }
 0x48d   : > { %v3897_v31 = vrot.slane %v3896_v50, 4  ;;  %v5817_v28 = vpack.c.bf16 %v4291_v59, %v10828_v10  ;;  %v3913_v17 = vadd.f32 %v3912_v19, %v3911_v6  ;;  %v10869_v53 = vmul.f32 %v10326_v44, %v13099_v16  ;;  %v13102_v10 = vld [vmem:[#allocation214_spill] sm:$0xff]  ;;  %v13103_v6 = vld [vmem:[#allocation29_spill] sm:$0xff] }
 0x48e   : > { %v10873_v63 = vadd.f32 %v10657_v55, %v10676_v5  ;;  %v10875_v34 = vpop.eup %6520  ;;  %5822 = vmatprep.subr.bf16.mxu0 %v5821_v52  ;;  %v4133_v32 = vmul.f32 %v6519_v8, %v13100_v24  ;;  %v4165_v22 = vmul.f32 %v6519_v8, %v13101_v18  ;;  %v3889_v7 = vadd.f32 %v3888_v38, %v3887_v0  ;;  %v13110_v52 = vld [vmem:[#allocation32_spill] sm:$0xff] }
 0x48f   : > { %5816 = vmatpush1.bf16.msra.mxu1 %v5815_v47  ;;  %v4071_v59 = vmul.f32 %v10875_v34, %v13102_v10  ;;  %v4103_v58 = vmul.f32 %v10875_v34, %v13103_v6  ;;  %5679 = vmatmul.mubr.msk.f32.vlgmr.msra.gmra.mrb[134].mxu0 %vm4309_vm1, %v10565_v12  ;;  %v3914_v55 = vrot.slane %v3913_v17, 1  ;;  %v10887_v27 = vadd.f32 %v10664_v54, %v10692_v29  ;;  %v13108_v47 = vld [vmem:[#allocation211_spill] sm:$0xff] }
 0x490   : > { %5818 = vmatprep.subr.bf16.mxu1 %v5817_v28  ;;  %v5819_v13 = vpack.c.bf16 %v4290_v45, %v4258_v43  ;;  %4945 = vmatprep.mubr.f32.mxu0 %v13010_v60  ;;  %v3873_v15 = vrot.slane %v3872_v48, 2  ;;  %v3898_v56 = vadd.f32 %v3897_v31, %v3896_v50  ;;  %v3936_v61 = vrot.slane %v3935_v49, 4  ;;  %v13109_v45 = vld [vmem:[#allocation133_spill] sm:$0xff]  ;;  %v13111_v31 = vld [vmem:[#allocation36_spill] sm:$0xff] }
 0x491   : > { %v5837_v21 = vpack.c.bf16 %v4103_v58, %v4071_v59  ;;  %6526 = vrcp.f32 %v3889_v7  ;;  %v3915_v39 = vadd.f32 %v3914_v55, %v3913_v17  ;;  %v3961_v0 = vadd.f32 %v13104_v9, %v10869_v53  ;;  %v13112_v7 = vld [vmem:[#allocation134_spill] sm:$0xff]  ;;  %v13113_v59 = vld [vmem:[#allocation11_spill] sm:$0xff]  ;;  %v13114_v58 = vld [vmem:[#allocation213_spill] sm:$0xff] }
 0x492   : > { %v6523_v19 = vpop.eup %6522  ;;  %v5825_v26 = vpack.c.bf16 %v4165_v22, %v4133_v32  ;;  %v4197_v40 = vmul.f32 %v6519_v8, %v13105_v20  ;;  %v4229_v54 = vmul.f32 %v6519_v8, %v13106_v4  ;;  %v10895_v43 = vmul.f32 %v6519_v8, %v13107_v33  ;;  %v13116_v9 = vld [vmem:[#allocation40_spill] sm:$0xff] }
 0x493   : > { %5820 = vmatpush1.bf16.msra.mxu1 %v5819_v13  ;;  %v4068_v50 = vmul.f32 %v6523_v19, %v13108_v47  ;;  %v4100_v42 = vmul.f32 %v6523_v19, %v13109_v45  ;;  %v4135_v38 = vmul.f32 %v10875_v34, %v13110_v52  ;;  %v4167_v28 = vmul.f32 %v10875_v34, %v13111_v31  ;;  %v13115_v13 = vld [vmem:[#allocation158_spill] sm:$0xff] }
 0x494   : > { %5838 = vmatprep.subr.bf16.mxu1 %v5837_v21  ;;  %v10904_v17 = vmul.f32 %v6519_v8, %v10629_v35  ;;  %v3874_v16 = vadd.f32 %v3873_v15, %v3872_v48  ;;  %v3899_v24 = vrot.slane %v3898_v56, 2  ;;  %v3937_v32 = vadd.f32 %v3936_v61, %v3935_v49  ;;  %v13117_v8 = vld [vmem:[#allocation251_spill] sm:$0xff] }
 0x495   : > { %v6525_v18 = vpop.eup %6524  ;;  %v5823_v22 = vpack.c.bf16 %v4100_v42, %v4068_v50  ;;  %v4132_v10 = vmul.f32 %v6523_v19, %v13112_v7  ;;  %v4164_v6 = vmul.f32 %v6523_v19, %v13113_v59  ;;  %6528 = vrcp.f32 %v3915_v39  ;;  %v13118_v61 = vld [vmem:[#allocation15_spill] sm:$0xff]  ;;  %v13119_v39 = vld [vmem:[#allocation30_spill] sm:$0xff] }
 0x496   : > { %5680 = vmatmul.mubr.msk.f32.vlgmr.msra.gmra.mrb[134].mxu1 %vm4309_vm1, %v10565_v12  ;;  %v4070_v55 = vmul.f32 %v6525_v18, %v13114_v58  ;;  %v4102_v21 = vmul.f32 %v6525_v18, %v13115_v13  ;;  %v4199_v35 = vmul.f32 %v10875_v34, %v13116_v9  ;;  %v4231_v49 = vmul.f32 %v10875_v34, %v13117_v8  ;;  %v13120_v50 = vld [vmem:[#allocation34_spill] sm:$0xff]  ;;  %v13121_v42 = vld [vmem:[#allocation19_spill] sm:$0xff] }
 0x497   : > { %5016 = vmatprep.mubr.f32.mxu1 %v13010_v60  ;;  %5824 = vmatpush1.bf16.msra.mxu0 %v5823_v22  ;;  %v5841_v48 = vpack.c.bf16 %v4167_v28, %v4135_v38  ;;  %v5829_v15 = vpack.c.bf16 %v4229_v54, %v4197_v40  ;;  %v4196_v20 = vmul.f32 %v6523_v19, %v13118_v61  ;;  %v3962_v4 = vrot.slane %v3961_v0, 4  ;;  %v13122_v54 = vld [vmem:[#allocation125_spill] sm:$0xff]  ;;  %v13124_v9 = vld [vmem:[#allocation42_spill] sm:$0xff] }
 0x498   : > { %v5839_v33 = vpack.c.bf16 %v4102_v21, %v4070_v55  ;;  %5826 = vmatprep.subr.bf16.mxu0 %v5825_v26  ;;  %v4134_v47 = vmul.f32 %v6525_v18, %v13119_v39  ;;  %v4166_v45 = vmul.f32 %v6525_v18, %v13120_v50  ;;  %v4228_v52 = vmul.f32 %v6523_v19, %v13121_v42  ;;  %v13128_v61 = vld [vmem:[#allocation50_spill] sm:$0xff]  ;;  %v13129_v39 = vld [vmem:[#allocation157_spill] sm:$0xff] }
 0x499   : > { %v5827_v31 = vpack.c.bf16 %v4164_v6, %v4132_v10  ;;  %v3875_v7 = vrot.slane %v3874_v16, 1  ;;  %v3900_v59 = vadd.f32 %v3899_v24, %v3898_v56  ;;  %v3938_v58 = vrot.slane %v3937_v32, 2  ;;  %v13123_v24 = vld [vmem:[#allocation38_spill] sm:$0xff] }
 0x49a   : > { %5840 = vmatpush1.bf16.msra.mxu1 %v5839_v33  ;;  %v5845_v13 = vpack.c.bf16 %v4231_v49, %v4199_v35  ;;  %v5833_v40 = vpack.c.bf16 %v10904_v17, %v10895_v43  ;;  %v4263_v38 = vmul.f32 %v10875_v34, %v13122_v54  ;;  %v4295_v26 = vmul.f32 %v10875_v34, %v10635_v25  ;;  %v13125_v43 = vld [vmem:[#allocation97_spill] sm:$0xff]  ;;  %v13126_v34 = vld [vmem:[#allocation123_spill] sm:$0xff] }
 0x49b   : > { %v6527_v28 = vpop.eup %6526  ;;  %5842 = vmatprep.subr.bf16.mxu1 %v5841_v48  ;;  %5828 = vmatpush1.bf16.msra.mxu0 %v5827_v31  ;;  %v3876_v22 = vadd.f32 %v3875_v7, %v3874_v16  ;;  %v3901_v55 = vrot.slane %v3900_v59, 1  ;;  %v3939_v10 = vadd.f32 %v3938_v58, %v3937_v32  ;;  %v3963_v6 = vadd.f32 %v3962_v4, %v3961_v0  ;;  %v13127_v32 = vld [vmem:[#allocation186_spill] sm:$0xff]  ;;  %v13133_v7 = vld [vmem:[#allocation187_spill] sm:$0xff]  ;;  %v13134_v58 = vld [vmem:[#allocation161_spill] sm:$0xff] }
 0x49c   : > { %v5843_v56 = vpack.c.bf16 %v4166_v45, %v4134_v47  ;;  %5830 = vmatprep.subr.bf16.mxu0 %v5829_v15  ;;  %v4198_v21 = vmul.f32 %v6525_v18, %v13123_v24  ;;  %v4230_v35 = vmul.f32 %v6525_v18, %v13124_v9  ;;  %v4260_v17 = vmul.f32 %v6523_v19, %v13125_v43  ;;  %v13130_v47 = vld [vmem:[#allocation33_spill] sm:$0xff]  ;;  %v13132_v45 = vld [vmem:[#allocation184_spill] sm:$0xff] }
 0x49d   : > { %v5831_v8 = vpack.c.bf16 %v4228_v52, %v4196_v20  ;;  %v4292_v49 = vmul.f32 %v6523_v19, %v10653_v23  ;;  %6530 = vrcp.f32 %v3876_v22  ;;  %v3902_v25 = vadd.f32 %v3901_v55, %v3900_v59  ;;  %v13135_v22 = vld [vmem:[#allocation41_spill] sm:$0xff]  ;;  %v13136_v55 = vld [vmem:[#allocation174_spill] sm:$0xff] }
 0x49e   : > { %5844 = vmatpush1.bf16.msra.mxu1 %v5843_v56  ;;  %v4262_v48 = vmul.f32 %v6525_v18, %v13126_v34  ;;  %v4294_v16 = vmul.f32 %v6525_v18, %v10661_v11  ;;  %v4073_v0 = vmul.f32 %v6527_v28, %v13127_v32  ;;  %v4105_v15 = vmul.f32 %v6527_v28, %v13128_v61  ;;  %v13131_v11 = vld [vmem:[#allocation37_spill] sm:$0xff]  ;;  %v13139_v34 = vld [vmem:[#allocation215_spill] sm:$0xff] }
 0x49f   : > { %v10935_v4 = vpop.eup %6528  ;;  %5846 = vmatprep.subr.bf16.mxu1 %v5845_v13  ;;  %5832 = vmatpush1.bf16.msra.mxu0 %v5831_v8  ;;  %6532 = vrcp.f32 %v3902_v25  ;;  %v3940_v33 = vrot.slane %v3939_v10, 1  ;;  %v3964_v20 = vrot.slane %v3963_v6, 2  ;;  %v10939_v23 = vmul.f32 %v10326_v44, %v13129_v39  ;;  %v13141_v61 = vld [vmem:[#allocation163_spill] sm:$0xff] }
 0x4a0   : > { %v5847_v19 = vpack.c.bf16 %v4230_v35, %v4198_v21  ;;  %5834 = vmatprep.subr.bf16.mxu0 %v5833_v40  ;;  %v4137_v50 = vmul.f32 %v6527_v28, %v13130_v47  ;;  %v4169_v18 = vmul.f32 %v6527_v28, %v13131_v11  ;;  %v10945_v42 = vmul.f32 %v10326_v44, %v13132_v45  ;;  %v13138_v35 = vld [vmem:[#allocation217_spill] sm:$0xff] }
 0x4a1   : > { %v5849_v52 = vpack.c.bf16 %v4295_v26, %v4263_v38  ;;  %v5835_v31 = vpack.c.bf16 %v4292_v49, %v4260_v17  ;;  %v4075_v59 = vmul.f32 %v10935_v4, %v13133_v7  ;;  %v4107_v13 = vmul.f32 %v10935_v4, %v13134_v58  ;;  %v13137_v26 = vld [vmem:[#allocation73_spill] sm:$0xff] }
 0x4a2   : > { %5848 = vmatpush1.bf16.msra.mxu1 %v5847_v19  ;;  %v5853_v54 = vpack.c.bf16 %v4105_v15, %v4073_v0  ;;  %v10952_v40 = vmul.f32 %v6527_v28, %v13135_v22  ;;  %v10955_v56 = vmul.f32 %v6527_v28, %v13136_v55  ;;  %v3941_v24 = vadd.f32 %v3940_v33, %v3939_v10  ;;  %v13142_v33 = vld [vmem:[#allocation167_spill] sm:$0xff]  ;;  %v13143_v19 = vld [vmem:[#allocation74_spill] sm:$0xff]  ;;  %v13148_v22 = vld [vmem:[#allocation52_spill] sm:$0xff] }
 0x4a3   : > { %5850 = vmatprep.subr.bf16.mxu1 %v5849_v52  ;;  %5836 = vmatpush1.bf16.msra.mxu0 %v5835_v31  ;;  %v3965_v21 = vadd.f32 %v3964_v20, %v3963_v6  ;;  %v3922_v38 = vadd.f32 %v10639_v37, %v10939_v23  ;;  %v10961_v9 = vmul.f32 %v13024_v30, %v13137_v26  ;;  %v13146_v52 = vld [vmem:[#allocation31_spill] sm:$0xff]  ;;  %v13150_v26 = vld [vmem:[#allocation68_spill] sm:$0xff] }
 0x4a4   : > { %v10965_v43 = vmul.f32 %v10326_v44, %v13138_v35  ;;  %v5851_v17 = vpack.c.bf16 %v4294_v16, %v4262_v48  ;;  %5854 = vmatprep.subr.bf16.mxu0 %v5853_v54  ;;  %v5857_v8 = vpack.c.bf16 %v4169_v18, %v4137_v50  ;;  %v3948_v10 = vadd.f32 %v10861_v62, %v10945_v42  ;;  %v13140_v48 = vld [vmem:[#allocation150_spill] sm:$0xff]  ;;  %v13144_v50 = vld [vmem:[#allocation160_spill] sm:$0xff]  ;;  %v13149_v55 = vld [vmem:[#allocation35_spill] sm:$0xff] }
 0x4a5   : > { %v5869_v49 = vpack.c.bf16 %v4107_v13, %v4075_v59  ;;  %v3966_v25 = vrot.slane %v3965_v21, 1  ;;  %v3923_v6 = vrot.slane %v3922_v38, 4  ;;  %v10971_v37 = vmul.f32 %v10326_v44, %v13139_v34 }
 0x4a6   : > { %5852 = vmatpush1.bf16.msra.mxu1 %v5851_v17  ;;  %5681 = vmatmul.mubr.msk.f32.vlgmr.msra.gmra.mrb[136].mxu0 %vm4309_vm1, %v10565_v12  ;;  %v5861_v32 = vpack.c.bf16 %v10955_v56, %v10952_v40  ;;  %v10978_v16 = vmul.f32 %v6527_v28, %v13140_v48  ;;  %v10981_v0 = vmul.f32 %v6527_v28, %v10784_v51  ;;  %6534 = vrcp.f32 %v3941_v24  ;;  %v13145_v51 = vld [vmem:[#allocation171_spill] sm:$0xff]  ;;  %v13154_v48 = vld [vmem:[#allocation24_spill] sm:$0xff] }
 0x4a7   : > { %v6531_v62 = vpop.eup %6530  ;;  %5870 = vmatprep.subr.bf16.mxu1 %v5869_v49  ;;  %v4139_v15 = vmul.f32 %v10935_v4, %v13141_v61  ;;  %v4171_v20 = vmul.f32 %v10935_v4, %v13142_v33  ;;  %5087 = vmatprep.mubr.f32.mxu0 %v13010_v60  ;;  %v3986_v39 = vadd.f32 %v10873_v63, %v10961_v9  ;;  %v3949_v18 = vrot.slane %v3948_v10, 4  ;;  %v13147_v63 = vld [vmem:[#allocation76_spill] sm:$0xff]  ;;  %v13152_v49 = vld [vmem:[#allocation54_spill] sm:$0xff] }
 0x4a8   : > { %v4072_v47 = vmul.f32 %v6531_v62, %v13143_v19  ;;  %v4104_v11 = vmul.f32 %v6531_v62, %v13144_v50  ;;  %v4203_v28 = vmul.f32 %v10935_v4, %v13145_v51  ;;  %v4136_v31 = vmul.f32 %v6531_v62, %v13146_v52  ;;  %v13157_v51 = vld [vmem:[#allocation253_spill] sm:$0xff] }
 0x4a9   : > { %v6533_v45 = vpop.eup %6532  ;;  %5682 = vmatmul.mubr.msk.f32.vlgmr.msra.gmra.mrb[136].mxu1 %vm4309_vm1, %v10565_v12  ;;  %v3967_v7 = vadd.f32 %v3966_v25, %v3965_v21  ;;  %v3924_v59 = vadd.f32 %v3923_v6, %v3922_v38  ;;  %v3987_v58 = vadd.f32 %v3986_v39, %v10971_v37  ;;  %v4168_v56 = vmul.f32 %v6531_v62, %v13149_v55  ;;  %v13151_v21 = vld [vmem:[#allocation23_spill] sm:$0xff]  ;;  %v13153_v6 = vld [vmem:[#allocation58_spill] sm:$0xff] }
 0x4aa   : > { %v5855_v13 = vpack.c.bf16 %v4104_v11, %v4072_v47  ;;  %v4074_v54 = vmul.f32 %v6533_v45, %v13147_v63  ;;  %v4106_v40 = vmul.f32 %v6533_v45, %v13148_v22  ;;  %5158 = vmatprep.mubr.f32.mxu1 %v13010_v60  ;;  %v5873_v24 = vpack.c.bf16 %v4171_v20, %v4139_v15  ;;  %v13155_v15 = vld [vmem:[#allocation39_spill] sm:$0xff]  ;;  %v13156_v20 = vld [vmem:[#allocation149_spill] sm:$0xff]  ;;  %v13159_v22 = vld [vmem:[#allocation62_spill] sm:$0xff] }
 0x4ab   : > { %v4235_v35 = vmul.f32 %v10935_v4, %v13150_v26  ;;  %v5865_v12 = vpack.c.bf16 %v10981_v0, %v10978_v16  ;;  %v4267_v38 = vmul.f32 %v10935_v4, %v13151_v21  ;;  %v4138_v25 = vmul.f32 %v6533_v45, %v13152_v49  ;;  %v13158_v63 = vld [vmem:[#allocation99_spill] sm:$0xff]  ;;  %v13162_v21 = vld [vmem:[#allocation102_spill] sm:$0xff]  ;;  %v13163_v49 = vld [vmem:[#allocation53_spill] sm:$0xff] }
 0x4ac   : > { %5856 = vmatpush1.bf16.msra.mxu0 %v5855_v13  ;;  %v5871_v17 = vpack.c.bf16 %v4106_v40, %v4074_v54  ;;  %v4170_v34 = vmul.f32 %v6533_v45, %v13153_v6  ;;  %v11012_v61 = vmul.f32 %v9652_v1, %v13154_v48  ;;  %v4200_v33 = vmul.f32 %v6531_v62, %v13155_v15  ;;  %v13160_v40 = vld [vmem:[#allocation176_spill] sm:$0xff]  ;;  %v13165_v48 = vld [vmem:[#allocation219_spill] sm:$0xff] }
 0x4ad   : > { %5858 = vmatprep.subr.bf16.mxu0 %v5857_v8  ;;  %v4232_v39 = vmul.f32 %v6531_v62, %v13156_v20  ;;  %6536 = vrcp.f32 %v3967_v7  ;;  %v3925_v16 = vrot.slane %v3924_v59, 2  ;;  %v5859_v0 = vpack.c.bf16 %v4168_v56, %v4136_v31 }
 0x4ae   : > { %5872 = vmatpush1.bf16.msra.mxu1 %v5871_v17  ;;  %v4299_v19 = vmul.f32 %v10935_v4, %v10789_v57  ;;  %v3950_v47 = vadd.f32 %v3949_v18, %v3948_v10  ;;  %v3988_v50 = vrot.slane %v3987_v58, 4  ;;  %v5877_v11 = vpack.c.bf16 %v4235_v35, %v4203_v28 }
 0x4af   : > { %5874 = vmatprep.subr.bf16.mxu1 %v5873_v24  ;;  %v4264_v52 = vmul.f32 %v6531_v62, %v13157_v51  ;;  %v3926_v13 = vadd.f32 %v3925_v16, %v3924_v59  ;;  %v11021_v8 = vmul.f32 %v13024_v30, %v13158_v63  ;;  %v5875_v7 = vpack.c.bf16 %v4170_v34, %v4138_v25  ;;  %v13161_v59 = vld [vmem:[#allocation259_spill] sm:$0xff]  ;;  %v13164_v34 = vld [vmem:[#allocation105_spill] sm:$0xff] }
 0x4b0   : > { %v11023_v54 = vpop.eup %6534  ;;  %5860 = vmatpush1.bf16.msra.mxu0 %v5859_v0  ;;  %v4202_v31 = vmul.f32 %v6533_v45, %v13159_v22  ;;  %v4234_v55 = vmul.f32 %v6533_v45, %v13160_v40  ;;  %v3951_v57 = vrot.slane %v3950_v47, 2  ;;  %v5863_v4 = vpack.c.bf16 %v4232_v39, %v4200_v33  ;;  %v13167_v33 = vld [vmem:[#allocation218_spill] sm:$0xff]  ;;  %v13173_v40 = vld [vmem:[#allocation61_spill] sm:$0xff] }
 0x4b1   : > { %5862 = vmatprep.subr.bf16.mxu0 %v5861_v32  ;;  %v4296_v10 = vmul.f32 %v6531_v62, %v10820_v3  ;;  %v3927_v28 = vrot.slane %v3926_v13, 1  ;;  %v4011_v18 = vadd.f32 %v10887_v27, %v11012_v61  ;;  %v4266_v56 = vmul.f32 %v6533_v45, %v13161_v59  ;;  %v13172_v22 = vld [vmem:[#allocation190_spill] sm:$0xff] }
 0x4b2   : > { %5876 = vmatpush1.bf16.msra.mxu1 %v5875_v7  ;;  %v4298_v24 = vmul.f32 %v6533_v45, %v10843_v36  ;;  %v3952_v26 = vadd.f32 %v3951_v57, %v3950_v47  ;;  %v3989_v35 = vadd.f32 %v3988_v50, %v3987_v58  ;;  %v4077_v17 = vmul.f32 %v11023_v54, %v13162_v21  ;;  %v13166_v58 = vld [vmem:[#allocation81_spill] sm:$0xff]  ;;  %v13168_v47 = vld [vmem:[#allocation83_spill] sm:$0xff]  ;;  %v13169_v50 = vld [vmem:[#allocation220_spill] sm:$0xff] }
 0x4b3   : > { %5878 = vmatprep.subr.bf16.mxu1 %v5877_v11  ;;  %v4109_v32 = vmul.f32 %v11023_v54, %v13163_v49  ;;  %v3928_v25 = vadd.f32 %v3927_v28, %v3926_v13  ;;  %v4012_v3 = vadd.f32 %v4011_v18, %v11021_v8  ;;  %v5879_v62 = vpack.c.bf16 %v4234_v55, %v4202_v31  ;;  %v13171_v7 = vld [vmem:[#allocation103_spill] sm:$0xff]  ;;  %v13176_v18 = vld [vmem:[#allocation216_spill] sm:$0xff]  ;;  %v13177_v21 = vld [vmem:[#allocation65_spill] sm:$0xff] }
 0x4b4   : > { %5864 = vmatpush1.bf16.msra.mxu0 %v5863_v4  ;;  %v3953_v27 = vrot.slane %v3952_v26, 1  ;;  %v3990_v6 = vrot.slane %v3989_v35, 2  ;;  %v11039_v15 = vmul.f32 %v13165_v48, %v13164_v34  ;;  %v5881_v36 = vpack.c.bf16 %v4299_v19, %v4267_v38  ;;  %v13170_v19 = vld [vmem:[#allocation57_spill] sm:$0xff]  ;;  %v13174_v57 = vld [vmem:[#allocation87_spill] sm:$0xff]  ;;  %v13175_v4 = vld [vmem:[#allocation222_spill] sm:$0xff] }
 0x4b5   : > { %5866 = vmatprep.subr.bf16.mxu0 %v5865_v12  ;;  %6538 = vrcp.f32 %v3928_v25  ;;  %v4013_v45 = vadd.f32 %v4012_v3, %v10965_v43  ;;  %v11044_v20 = vmul.f32 %v13167_v33, %v13166_v58  ;;  %v5867_v39 = vpack.c.bf16 %v4296_v10, %v4264_v52  ;;  %v13178_v49 = vld [vmem:[#allocation200_spill] sm:$0xff]  ;;  %v13179_v25 = vld [vmem:[#allocation91_spill] sm:$0xff] }
 0x4b6   : > { %5880 = vmatpush1.bf16.msra.mxu1 %v5879_v62  ;;  %v3954_v16 = vadd.f32 %v3953_v27, %v3952_v26  ;;  %v3991_v0 = vadd.f32 %v3990_v6, %v3989_v35  ;;  %v11048_v11 = vmul.f32 %v13169_v50, %v13168_v47  ;;  %v5883_v12 = vpack.c.bf16 %v4298_v24, %v4266_v56  ;;  %v11075_v35 = vld [vmem:[%s11296_s2] sm:$0xff]  ;;  %v13180_v6 = vld [vmem:[#allocation263_spill] sm:$0xff] }
 0x4b7   : > { %v11050_v51 = vpop.eup %6536  ;;  %5882 = vmatprep.subr.bf16.mxu1 %v5881_v36  ;;  %v5885_v38 = vpack.c.bf16 %v4109_v32, %v4077_v17  ;;  %v11054_v13 = vmul.f32 %v11023_v54, %v13170_v19  ;;  %v4014_v63 = vrot.slane %v4013_v45, 4  ;;  %v4173_v55 = vmul.f32 %v11023_v54, %v13173_v40  ;;  %v13183_v19 = vld [vmem:[#allocation71_spill] sm:$0xff]  ;;  %v13187_v40 = vld [vmem:[#allocation132_spill] sm:$0xff] }
 0x4b8   : > { %5868 = vmatpush1.bf16.msra.mxu0 %v5867_v39  ;;  %v4079_v52 = vmul.f32 %v11050_v51, %v13171_v7  ;;  %v4111_v31 = vmul.f32 %v11050_v51, %v13172_v22  ;;  %6540 = vrcp.f32 %v3954_v16  ;;  %v11064_v10 = vmul.f32 %v13175_v4, %v13174_v57  ;;  %v13181_v39 = vld [vmem:[#allocation95_spill] sm:$0xff]  ;;  %v13185_v7 = vld [vmem:[#allocation193_spill] sm:$0xff]  ;;  %v13188_v57 = vld [vmem:[#allocation148_spill] sm:$0xff] }
 0x4b9   : > { %5886 = vmatprep.subr.bf16.mxu0 %v5885_v38  ;;  %v3968_v28 = vadd.f32 %v11044_v20, %v11039_v15  ;;  %v11070_v59 = vmul.f32 %v10326_v44, %v13176_v18  ;;  %v3992_v24 = vrot.slane %v3991_v0, 1  ;;  %v4015_v26 = vadd.f32 %v4014_v63, %v4013_v45  ;;  %v13186_v22 = vld [vmem:[#allocation75_spill] sm:$0xff] }
 0x4ba   : > { %5884 = vmatpush1.bf16.msra.mxu1 %v5883_v12  ;;  %v5901_v56 = vpack.c.bf16 %v4111_v31, %v4079_v52  ;;  %v11081_v17 = vmul.f32 %v11023_v54, %v13177_v21  ;;  %v11085_v32 = vmul.f32 %v11023_v54, %v13178_v49  ;;  %v11089_v3 = vmul.f32 %v9418_v41, %v13179_v25  ;;  %v13182_v12 = vld [vmem:[#allocation107_spill] sm:$0xff] }
 0x4bb   : > { %5683 = vmatmul.mubr.msk.f32.vlgmr.msra.gmra.mrb[138].mxu0 %vm4309_vm1, %v11075_v35  ;;  %v3969_v62 = vadd.f32 %v3968_v28, %v11048_v11  ;;  %v5889_v27 = vpack.c.bf16 %v4173_v55, %v11054_v13  ;;  %v11095_v34 = vmul.f32 %v11023_v54, %v13180_v6  ;;  %v3993_v36 = vadd.f32 %v3992_v24, %v3991_v0  ;;  %v13189_v18 = vld [vmem:[#allocation51_spill] sm:$0xff]  ;;  %v13190_v24 = vld [vmem:[#allocation10_spill] sm:$0xff] }
 0x4bc   : > { %5902 = vmatprep.subr.bf16.mxu1 %v5901_v56  ;;  %v4016_v45 = vrot.slane %v4015_v26, 2  ;;  %5229 = vmatprep.mubr.f32.mxu0 %v13010_v60  ;;  %v11102_v58 = vmul.f32 %v11023_v54, %v10850_v46  ;;  %v11106_v16 = vmul.f32 %v9652_v1, %v13181_v39  ;;  %v11111_v38 = vmul.f32 %v13167_v33, %v13182_v12  ;;  %v13184_v46 = vld [vmem:[#allocation185_spill] sm:$0xff]  ;;  %v13192_v49 = vld [vmem:[#allocation199_spill] sm:$0xff] }
 0x4bd   : > { %5684 = vmatmul.mubr.msk.f32.vlgmr.msra.gmra.mrb[138].mxu1 %vm4309_vm1, %v11075_v35  ;;  %v3970_v47 = vadd.f32 %v3969_v62, %v11064_v10  ;;  %6542 = vrcp.f32 %v3993_v36  ;;  %v11116_v13 = vmul.f32 %v13024_v30, %v13183_v19  ;;  %v11120_v54 = vmul.f32 %v10326_v44, %v13184_v46  ;;  %v13193_v62 = vld [vmem:[#allocation96_spill] sm:$0xff]  ;;  %v13195_v12 = vld [vmem:[#allocation59_spill] sm:$0xff] }
 0x4be   : > { %v4017_v0 = vadd.f32 %v4016_v45, %v4015_v26  ;;  %5300 = vmatprep.mubr.f32.mxu1 %v13010_v60  ;;  %v4143_v52 = vmul.f32 %v11050_v51, %v13185_v7  ;;  %v4175_v33 = vmul.f32 %v11050_v51, %v13186_v22  ;;  %v11129_v55 = vmul.f32 %v13165_v48, %v13187_v40  ;;  %v13191_v26 = vld [vmem:[#allocation14_spill] sm:$0xff] }
 0x4bf   : > { %v6539_v63 = vpop.eup %6538  ;;  %v3971_v31 = vadd.f32 %v3970_v47, %v11089_v3  ;;  %v11135_v44 = vmul.f32 %v13169_v50, %v13190_v24  ;;  %v11139_v21 = vmul.f32 %v13175_v4, %v13191_v26  ;;  %v4207_v25 = vmul.f32 %v11050_v51, %v13192_v49  ;;  %v13194_v47 = vld [vmem:[#allocation55_spill] sm:$0xff]  ;;  %v13196_v4 = vld [vmem:[#allocation104_spill] sm:$0xff]  ;;  %v13197_v22 = vld [vmem:[#allocation78_spill] sm:$0xff] }
 0x4c0   : > { %v4076_v28 = vmul.f32 %v6539_v63, %v13188_v57  ;;  %v4108_v56 = vmul.f32 %v6539_v63, %v13189_v18  ;;  %v4239_v6 = vmul.f32 %v11050_v51, %v13193_v62  ;;  %v3994_v36 = vadd.f32 %v11111_v38, %v11129_v55  ;;  %v13198_v18 = vld [vmem:[#allocation18_spill] sm:$0xff] }
 0x4c1   : > { %v3972_v48 = vadd.f32 %v3971_v31, %v11106_v16  ;;  %v4140_v50 = vmul.f32 %v6539_v63, %v13194_v47  ;;  %v4172_v19 = vmul.f32 %v6539_v63, %v13195_v12  ;;  %v4018_v46 = vrot.slane %v4017_v0, 1  ;;  %v13199_v31 = vld [vmem:[#allocation63_spill] sm:$0xff]  ;;  %v13201_v12 = vld [vmem:[#allocation82_spill] sm:$0xff] }
 0x4c2   : > { %v6541_v45 = vpop.eup %6540  ;;  %v5887_v39 = vpack.c.bf16 %v4108_v56, %v4076_v28  ;;  %v5905_v57 = vpack.c.bf16 %v4175_v33, %v4143_v52  ;;  %v11154_v24 = vmul.f32 %v9418_v41, %v13198_v18  ;;  %v4204_v26 = vmul.f32 %v6539_v63, %v13199_v31  ;;  %v13200_v28 = vld [vmem:[#allocation22_spill] sm:$0xff] }
 0x4c3   : > { %v4078_v7 = vmul.f32 %v6541_v45, %v13196_v4  ;;  %v4110_v40 = vmul.f32 %v6541_v45, %v13197_v22  ;;  %v3973_v49 = vadd.f32 %v3972_v48, %v11116_v13  ;;  %v11160_v56 = vmul.f32 %v9652_v1, %v13200_v28  ;;  %v13202_v52 = vld [vmem:[#allocation86_spill] sm:$0xff]  ;;  %v13203_v22 = vld [vmem:[#allocation177_spill] sm:$0xff] }
 0x4c4   : > { %5888 = vmatpush1.bf16.msra.mxu0 %v5887_v39  ;;  %v3995_v62 = vadd.f32 %v3994_v36, %v11135_v44  ;;  %v4142_v4 = vmul.f32 %v6541_v45, %v13201_v12  ;;  %v4174_v33 = vmul.f32 %v6541_v45, %v13202_v52  ;;  %v4236_v41 = vmul.f32 %v6539_v63, %v13203_v22  ;;  %v13204_v36 = vld [vmem:[#allocation264_spill] sm:$0xff]  ;;  %v13208_v12 = vld [vmem:[#allocation130_spill] sm:$0xff] }
 0x4c5   : > { %v5903_v47 = vpack.c.bf16 %v4110_v40, %v4078_v7  ;;  %5890 = vmatprep.subr.bf16.mxu0 %v5889_v27  ;;  %v5891_v18 = vpack.c.bf16 %v4172_v19, %v4140_v50  ;;  %v4019_v39 = vadd.f32 %v4018_v46, %v4017_v0  ;;  %v3974_v31 = vadd.f32 %v3973_v49, %v11120_v54  ;;  %v13205_v50 = vld [vmem:[#allocation98_spill] sm:$0xff]  ;;  %v13207_v49 = vld [vmem:[#allocation49_spill] sm:$0xff]  ;;  %v13209_v52 = vld [vmem:[#allocation108_spill] sm:$0xff] }
 0x4c6   : > { %v3996_v48 = vadd.f32 %v3995_v62, %v11139_v21  ;;  %v5893_v1 = vpack.c.bf16 %v11085_v32, %v11081_v17  ;;  %v5909_v28 = vpack.c.bf16 %v4239_v6, %v4207_v25  ;;  %v4271_v27 = vmul.f32 %v11050_v51, %v13204_v36  ;;  %v13206_v32 = vld [vmem:[#allocation90_spill] sm:$0xff] }
 0x4c7   : > { %5904 = vmatpush1.bf16.msra.mxu1 %v5903_v47  ;;  %v4303_v7 = vmul.f32 %v11050_v51, %v10869_v53  ;;  %v11174_v40 = vpop.eup %6542  ;;  %6544 = vrcp.f32 %v4019_v39  ;;  %v3975_v0 = vrot.slane %v3974_v31, 4  ;;  %v11178_v19 = vmul.f32 %v13024_v30, %v13205_v50 }
 0x4c8   : > { %5906 = vmatprep.subr.bf16.mxu1 %v5905_v57  ;;  %5892 = vmatpush1.bf16.msra.mxu0 %v5891_v18  ;;  %v3997_v46 = vadd.f32 %v3996_v48, %v11154_v24  ;;  %v5907_v17 = vpack.c.bf16 %v4174_v33, %v4142_v4  ;;  %v4206_v25 = vmul.f32 %v6541_v45, %v13206_v32 }
 0x4c9   : > { %5894 = vmatprep.subr.bf16.mxu0 %v5893_v1  ;;  %v4238_v6 = vmul.f32 %v6541_v45, %v10445_v14  ;;  %v4268_v53 = vmul.f32 %v6539_v63, %v13207_v49  ;;  %v5895_v51 = vpack.c.bf16 %v4236_v41, %v4204_v26  ;;  %v4300_v57 = vmul.f32 %v6539_v63, %v10939_v23 }
 0x4ca   : > { %v3976_v62 = vadd.f32 %v3975_v0, %v3974_v31  ;;  %v3998_v47 = vadd.f32 %v3997_v46, %v11160_v56  ;;  %v5897_v30 = vpack.c.bf16 %v11102_v58, %v11095_v34  ;;  %v4081_v4 = vmul.f32 %v11174_v40, %v13208_v12 }
 0x4cb   : > { %5908 = vmatpush1.bf16.msra.mxu1 %v5907_v17  ;;  %v4113_v33 = vmul.f32 %v11174_v40, %v13209_v52  ;;  %v5911_v22 = vpack.c.bf16 %v4238_v6, %v4206_v25  ;;  %v4270_v23 = vmul.f32 %v6541_v45, %v10672_v2  ;;  %v4302_v63 = vmul.f32 %v6541_v45, %v10945_v42  ;;  %v13210_v2 = vld [vmem:[#allocation131_spill] sm:$0xff]  ;;  %v13211_v45 = vld [vmem:[#allocation109_spill] sm:$0xff]  ;;  %v13212_v6 = vld [vmem:[#allocation110_spill] sm:$0xff] }
 0x4cc   : > { %5910 = vmatprep.subr.bf16.mxu1 %v5909_v28  ;;  %5896 = vmatpush1.bf16.msra.mxu0 %v5895_v51  ;;  %v3977_v14 = vrot.slane %v3976_v62, 2  ;;  %v3999_v26 = vadd.f32 %v3998_v47, %v11178_v19  ;;  %v5913_v41 = vpack.c.bf16 %v4303_v7, %v4271_v27  ;;  %v5899_v18 = vpack.c.bf16 %v4300_v57, %v4268_v53  ;;  %v13213_v53 = vld [vmem:[#allocation114_spill] sm:$0xff] }
 0x4cd   : > { %5898 = vmatprep.subr.bf16.mxu0 %v5897_v30  ;;  %v5917_v39 = vpack.c.bf16 %v4113_v33, %v4081_v4  ;;  %v5915_v1 = vpack.c.bf16 %v4302_v63, %v4270_v23  ;;  %v4145_v49 = vmul.f32 %v11174_v40, %v13212_v6  ;;  %v4177_v51 = vmul.f32 %v11174_v40, %v13213_v53  ;;  %v13214_v4 = vld [vmem:[#allocation48_spill] sm:$0xff]  ;;  %v13216_v23 = vld [vmem:[#allocation47_spill] sm:$0xff] }
 0x4ce   : > { %v3978_v34 = vadd.f32 %v3977_v14, %v3976_v62  ;;  %v4000_v58 = vadd.f32 %v3999_v26, %v11070_v59  ;;  %v4209_v52 = vmul.f32 %v11174_v40, %v13214_v4  ;;  %v4241_v33 = vmul.f32 %v11174_v40, %v10676_v5 }
 0x4cf   : > { %5912 = vmatpush1.bf16.msra.mxu1 %v5911_v22  ;;  %v13215_v22 = vld [vmem:[#allocation12_spill] sm:$0xff]  ;;  %v4305_v5 = vmul.f32 %v11174_v40, %v10971_v37 }
 0x4d0   : > { %5914 = vmatprep.subr.bf16.mxu1 %v5913_v41  ;;  %5900 = vmatpush1.bf16.msra.mxu0 %v5899_v18  ;;  %v3979_v31 = vrot.slane %v3978_v34, 1  ;;  %v4001_v48 = vrot.slane %v4000_v58, 4  ;;  %v5925_v41 = vpack.c.bf16 %v4241_v33, %v4209_v52 }
 0x4d1   : > { %5918 = vmatprep.subr.bf16.mxu0 %v5917_v39  ;;  %v11196_v28 = vpop.eup %6544 }
 0x4d2   : > { %v3980_v36 = vadd.f32 %v3979_v31, %v3978_v34  ;;  %v4002_v0 = vadd.f32 %v4001_v48, %v4000_v58  ;;  %v4083_v42 = vmul.f32 %v11196_v28, %v13210_v2  ;;  %v4115_v27 = vmul.f32 %v11196_v28, %v13211_v45 }
 0x4d3   : > { %5916 = vmatpush1.bf16.msra.mxu1 %v5915_v1  ;;  %5685 = vmatmul.mubr.msk.f32.vlgmr.msra.gmra.mrb[140].mxu0 %vm4309_vm1, %v11075_v35  ;;  %v4179_v63 = vmul.f32 %v11196_v28, %v13216_v23  ;;  %v4211_v37 = vmul.f32 %v11196_v28, %v10692_v29  ;;  %v4275_v1 = vmul.f32 %v11196_v28, %v11021_v8 }
 0x4d4   : > { %6546 = vrcp.f32 %v3980_v36  ;;  %v4003_v7 = vrot.slane %v4002_v0, 2  ;;  %5371 = vmatprep.mubr.f32.mxu0 %v13010_v60  ;;  %v5933_v50 = vpack.c.bf16 %v4115_v27, %v4083_v42  ;;  %v4307_v29 = vmul.f32 %v11196_v28, %v10965_v43 }
 0x4d6   : > { %5686 = vmatmul.mubr.msk.f32.vlgmr.msra.gmra.mrb[140].mxu1 %vm4309_vm1, %v11075_v35  ;;  %v4004_v46 = vadd.f32 %v4003_v7, %v4002_v0  ;;  %5934 = vmatprep.subr.bf16.mxu1 %v5933_v50 }
 0x4d7   : > { %5442 = vmatprep.mubr.f32.mxu1 %v13010_v60  ;;  %v5921_v60 = vpack.c.bf16 %v4177_v51, %v4145_v49 }
 0x4d8   : > { %v4005_v17 = vrot.slane %v4004_v46, 1 }
 0x4da   : > { %v4006_v32 = vadd.f32 %v4005_v17, %v4004_v46 }
 0x4dc   : > { %6548 = vrcp.f32 %v4006_v32 }
 0x4de   : > { %v6547_v25 = vpop.eup %6546 }
 0x4df   : > { %v4080_v57 = vmul.f32 %v6547_v25, %v11039_v15  ;;  %v4112_v62 = vmul.f32 %v6547_v25, %v11044_v20  ;;  %v4144_v30 = vmul.f32 %v6547_v25, %v11048_v11  ;;  %v4176_v12 = vmul.f32 %v6547_v25, %v11064_v10 }
 0x4e0   : > { %v4208_v26 = vmul.f32 %v6547_v25, %v11089_v3  ;;  %v4240_v15 = vmul.f32 %v6547_v25, %v11106_v16  ;;  %v4273_v20 = vmul.f32 %v11174_v40, %v10961_v9  ;;  %v4147_v10 = vmul.f32 %v11196_v28, %v13215_v22 }
 0x4e1   : > { %v5919_v47 = vpack.c.bf16 %v4112_v62, %v4080_v57  ;;  %v5923_v14 = vpack.c.bf16 %v4176_v12, %v4144_v30  ;;  %v4272_v16 = vmul.f32 %v6547_v25, %v11116_v13  ;;  %v4304_v9 = vmul.f32 %v6547_v25, %v11120_v54 }
 0x4e2   : > { %v5927_v31 = vpack.c.bf16 %v4240_v15, %v4208_v26  ;;  %v5937_v48 = vpack.c.bf16 %v4179_v63, %v4147_v10 }
 0x4e3   : > { %5920 = vmatpush1.bf16.msra.mxu0 %v5919_v47  ;;  %v5931_v40 = vpack.c.bf16 %v4304_v9, %v4272_v16 }
 0x4e4   : > { %5922 = vmatprep.subr.bf16.mxu0 %v5921_v60 }
 0x4e6   : > { %v6549_v11 = vpop.eup %6548 }
 0x4e7   : > { %v4082_v18 = vmul.f32 %v6549_v11, %v11129_v55  ;;  %v4114_v3 = vmul.f32 %v6549_v11, %v11111_v38  ;;  %5924 = vmatpush1.bf16.msra.mxu0 %v5923_v14  ;;  %v4146_v58 = vmul.f32 %v6549_v11, %v11135_v44  ;;  %v4178_v39 = vmul.f32 %v6549_v11, %v11139_v21 }
 0x4e8   : > { %5926 = vmatprep.subr.bf16.mxu0 %v5925_v41  ;;  %v4243_v55 = vmul.f32 %v11196_v28, %v11012_v61  ;;  %v5929_v38 = vpack.c.bf16 %v4305_v5, %v4273_v20  ;;  %v4210_v54 = vmul.f32 %v6549_v11, %v11154_v24  ;;  %v4242_v44 = vmul.f32 %v6549_v11, %v11160_v56 }
 0x4e9   : > { %v5935_v34 = vpack.c.bf16 %v4114_v3, %v4082_v18  ;;  %v5939_v13 = vpack.c.bf16 %v4178_v39, %v4146_v58  ;;  %v4274_v36 = vmul.f32 %v6549_v11, %v11178_v19  ;;  %v4306_v0 = vmul.f32 %v6549_v11, %v11070_v59 }
 0x4ea   : > { %v5941_v21 = vpack.c.bf16 %v4243_v55, %v4211_v37  ;;  %v5943_v61 = vpack.c.bf16 %v4242_v44, %v4210_v54  ;;  %v5945_v24 = vpack.c.bf16 %v4307_v29, %v4275_v1 }
 0x4eb   : > { %5936 = vmatpush1.bf16.msra.mxu1 %v5935_v34  ;;  %5928 = vmatpush1.bf16.msra.mxu0 %v5927_v31  ;;  %v5947_v56 = vpack.c.bf16 %v4306_v0, %v4274_v36 }
 0x4ec   : > { %5938 = vmatprep.subr.bf16.mxu1 %v5937_v48  ;;  %5930 = vmatprep.subr.bf16.mxu0 %v5929_v38 }
 0x4ef   : > { %5940 = vmatpush1.bf16.msra.mxu1 %v5939_v13  ;;  %5932 = vmatpush1.bf16.msra.mxu0 %v5931_v40 }
 0x4f0   : > { %5942 = vmatprep.subr.bf16.mxu1 %v5941_v21 }
 0x4f2   : > { %5687 = vmatmul.mubr.msk.f32.vlgmr.msra.gmra.mrb[142].mxu0 %vm4309_vm1, %v11075_v35 }
 0x4f3   : > { %5944 = vmatpush1.bf16.msra.mxu1 %v5943_v61 }
 0x4f4   : > { %5946 = vmatprep.subr.bf16.mxu1 %v5945_v24 }
 0x4f7   : > { %5948 = vmatpush1.bf16.msra.mxu1 %v5947_v56 }
 0x4fa   : > { %5688 = vmatmul.mubr.msk.f32.vlgmr.msra.gmra.mrb[142].mxu1 %vm4309_vm1, %v11075_v35 }
 0x527   : > { %v4379_v43 = vpop.f32.mrb[128].mxu0 }
 0x528   : > { %5449 = vst [vmem:[%s11257_s16] sm:$0xff] %v4379_v43  ;;  %v4450_v8 = vpop.f32.mrb[128].mxu1  ;;  %v4381_v59 = vpop.f32.mrb[129].mxu0 }
 0x529   : > { %5451 = vst [vmem:[%s11257_s16 + $0x10] sm:$0xff] %v4450_v8  ;;  %5450 = vst [vmem:[%s11257_s16 + $0x8] sm:$0xff] %v4381_v59  ;;  %v4452_v35 = vpop.f32.mrb[129].mxu1 }
 0x52a   : > { %5452 = vst [vmem:[%s11257_s16 + $0x18] sm:$0xff] %v4452_v35 }
 0x538   : > { %v4521_v19 = vpop.f32.mrb[130].mxu0 }
 0x539   : > { %5453 = vst [vmem:[%s11257_s16 + $0x20] sm:$0xff] %v4521_v19  ;;  %v4592_v28 = vpop.f32.mrb[130].mxu1  ;;  %v4523_v2 = vpop.f32.mrb[131].mxu0 }
 0x53a   : > { %5455 = vst [vmem:[%s11257_s16 + $0x30] sm:$0xff] %v4592_v28  ;;  %5454 = vst [vmem:[%s11257_s16 + $0x28] sm:$0xff] %v4523_v2  ;;  %v4594_v42 = vpop.f32.mrb[131].mxu1 }
 0x53b   : > { %5456 = vst [vmem:[%s11257_s16 + $0x38] sm:$0xff] %v4594_v42 }
 0x552   : > { %v4663_v45 = vpop.f32.mrb[132].mxu0 }
 0x553   : > { %5457 = vst [vmem:[%s11257_s16 + $0x40] sm:$0xff] %v4663_v45  ;;  %v4734_v27 = vpop.f32.mrb[132].mxu1  ;;  %v4665_v7 = vpop.f32.mrb[133].mxu0 }
 0x554   : > { %5459 = vst [vmem:[%s11257_s16 + $0x50] sm:$0xff] %v4734_v27  ;;  %5458 = vst [vmem:[%s11257_s16 + $0x48] sm:$0xff] %v4665_v7  ;;  %v4736_v50 = vpop.f32.mrb[133].mxu1 }
 0x555   : > { %5460 = vst [vmem:[%s11257_s16 + $0x58] sm:$0xff] %v4736_v50 }
 0x562   : > { %v4805_v46 = vpop.f32.mrb[134].mxu0 }
 0x563   : > { %5461 = vst [vmem:[%s11257_s16 + $0x60] sm:$0xff] %v4805_v46  ;;  %v4807_v17 = vpop.f32.mrb[135].mxu0 }
 0x564   : > { %5462 = vst [vmem:[%s11257_s16 + $0x68] sm:$0xff] %v4807_v17 }
 0x569   : > { %v4876_v32 = vpop.f32.mrb[134].mxu1 }
 0x56a   : > { %5463 = vst [vmem:[%s11257_s16 + $0x70] sm:$0xff] %v4876_v32  ;;  %v4878_v25 = vpop.f32.mrb[135].mxu1 }
 0x56b   : > { %5464 = vst [vmem:[%s11257_s16 + $0x78] sm:$0xff] %v4878_v25 }
 0x579   : > { %v4947_v6 = vpop.f32.mrb[136].mxu0 }
 0x57a   : > { %5465 = vst [vmem:[%s11257_s16 + $0x80] sm:$0xff] %v4947_v6  ;;  %v4949_v49 = vpop.f32.mrb[137].mxu0 }
 0x57b   : > { %5466 = vst [vmem:[%s11257_s16 + $0x88] sm:$0xff] %v4949_v49 }
 0x57c   : > { %v5018_v53 = vpop.f32.mrb[136].mxu1 }
 0x57d   : > { %5467 = vst [vmem:[%s11257_s16 + $0x90] sm:$0xff] %v5018_v53  ;;  %v5020_v51 = vpop.f32.mrb[137].mxu1 }
 0x57e   : > { %5468 = vst [vmem:[%s11257_s16 + $0x98] sm:$0xff] %v5020_v51 }
 0x58e   : > { %v5089_v57 = vpop.f32.mrb[138].mxu0 }
 0x58f   : > { %5469 = vst [vmem:[%s11257_s16 + $0xa0] sm:$0xff] %v5089_v57  ;;  %v5091_v62 = vpop.f32.mrb[139].mxu0 }
 0x590   : > { %v5160_v47 = vpop.f32.mrb[138].mxu1  ;;  %5470 = vst [vmem:[%s11257_s16 + $0xa8] sm:$0xff] %v5091_v62 }
 0x591   : > { %5471 = vst [vmem:[%s11257_s16 + $0xb0] sm:$0xff] %v5160_v47  ;;  %v5162_v30 = vpop.f32.mrb[139].mxu1 }
 0x592   : > { %5472 = vst [vmem:[%s11257_s16 + $0xb8] sm:$0xff] %v5162_v30 }
 0x5a6   : > { %v5231_v12 = vpop.f32.mrb[140].mxu0 }
 0x5a7   : > { %5473 = vst [vmem:[%s11257_s16 + $0xc0] sm:$0xff] %v5231_v12  ;;  %v5233_v60 = vpop.f32.mrb[141].mxu0 }
 0x5a8   : > { %5474 = vst [vmem:[%s11257_s16 + $0xc8] sm:$0xff] %v5233_v60 }
 0x5a9   : > { %v5302_v4 = vpop.f32.mrb[140].mxu1 }
 0x5aa   : > { %5475 = vst [vmem:[%s11257_s16 + $0xd0] sm:$0xff] %v5302_v4  ;;  %v5304_v52 = vpop.f32.mrb[141].mxu1 }
 0x5ab   : > { %5476 = vst [vmem:[%s11257_s16 + $0xd8] sm:$0xff] %v5304_v52 }
 0x5c5   : > { %v5373_v33 = vpop.f32.mrb[142].mxu0 }
 0x5c6   : > { %5477 = vst [vmem:[%s11257_s16 + $0xe0] sm:$0xff] %v5373_v33  ;;  %v5375_v14 = vpop.f32.mrb[143].mxu0 }
 0x5c7   : > { %5478 = vst [vmem:[%s11257_s16 + $0xe8] sm:$0xff] %v5375_v14 }
 0x5cd   : > { %v5444_v26 = vpop.f32.mrb[142].mxu1 }
 0x5ce   : > { %5479 = vst [vmem:[%s11257_s16 + $0xf0] sm:$0xff] %v5444_v26  ;;  %v5446_v15 = vpop.f32.mrb[143].mxu1 }
 0x5cf   : > { %5480 = vst [vmem:[%s11257_s16 + $0xf8] sm:$0xff] %v5446_v15 }
 0x5d0 PF: > { %s13_s12 = sadd.s32 1, %s6557_s12  }
 0x5d1   : > { %p10_p4 = scmp.ge.s32.totalorder %s13_s12, 4  }
 0x5d3   :  { %12 = sbr.rel (!%p10_p4) target bundleno = 1 (0x1), region = 62 }

</bundles_post_ra>
